<compile_context>
chip_gen: v7x
topology: tpu7x:2x2x1
jax: 0.10.0
libtpu: 0.0.40
codegen_flags: <defaults>
</compile_context>

<pallas_src>
import functools

import jax
import jax.numpy as jnp
from jax.experimental import pallas as pl
from jax.experimental.pallas import tpu as pltpu

EPS = 1e-5


def _resblock_kernel(x_ref, w1_ref, b1_ref, w2_ref, b2_ref, o_ref, pad_scr,
                     *, H, W, C):
    """x_ref: (H, W, C) f32 input block.  w*_ref: (9, C, C) bf16 weights
    (tap-major HWIO).  b*_ref: (1, C) f32.  o_ref: (H, W, C) f32 output.
    pad_scr: (H+2, W+2, C) bf16 VMEM scratch shared by both convs."""

    # Zero only the 1-pixel border of the padded scratch; the interior is
    # fully overwritten below for each conv.  Covers all four edges (corners
    # redundantly) every grid step.
    zrow = jnp.zeros((1, W + 2, C), pad_scr.dtype)
    zcol = jnp.zeros((H + 2, 1, C), pad_scr.dtype)
    pad_scr[0:1, :, :] = zrow
    pad_scr[H + 1:H + 2, :, :] = zrow
    pad_scr[:, 0:1, :] = zcol
    pad_scr[:, W + 1:W + 2, :] = zcol

    def conv3x3(w_ref, b_ref):
        # 9 shifted-window taps, each a single flat (H*W, C) x (C, C) bf16
        # matmul with f32 accumulation.  Bias added once at the end.
        acc = jnp.zeros((H * W, C), jnp.float32)
        for k in range(9):
            dy, dx = divmod(k, 3)
            patch = pad_scr[dy:dy + H, dx:dx + W, :].reshape(H * W, C)
            acc = acc + jnp.dot(patch, w_ref[k],
                                preferred_element_type=jnp.float32)
        return acc + b_ref[...]

    def instance_norm(v):
        # One-pass per-channel stats over H*W (biased variance, like
        # nn.InstanceNorm2d with affine=False, eps=1e-5).
        inv_hw = 1.0 / (H * W)
        mean = jnp.sum(v, axis=0, keepdims=True) * inv_hw          # (1, C)
        mean2 = jnp.sum(v * v, axis=0, keepdims=True) * inv_hw     # (1, C)
        var = jnp.maximum(mean2 - mean * mean, 0.0)
        return (v - mean) * jax.lax.rsqrt(var + EPS)

    # ---- stage x (bf16), conv1 -> instance norm -> relu ----
    pad_scr[1:H + 1, 1:W + 1, :] = x_ref[...].astype(pad_scr.dtype)
    h1 = jnp.maximum(instance_norm(conv3x3(w1_ref, b1_ref)), 0.0)

    # ---- stage h1 (bf16), conv2 -> instance norm ----
    pad_scr[1:H + 1, 1:W + 1, :] = h1.reshape(H, W, C).astype(pad_scr.dtype)
    h2 = instance_norm(conv3x3(w2_ref, b2_ref))

    # ---- residual add against the aligned, un-padded f32 input block ----
    o_ref[...] = (x_ref[...] + h2.reshape(H, W, C)).astype(o_ref.dtype)


def residual_block(x_nchw, w1_hwio, b1, w2_hwio, b2):
    """x_nchw: (N, C, H, W) float32.  w*_hwio: (3, 3, C, C).  b*: (C,)."""
    N, C, H, W = x_nchw.shape

    # glue: NCHW -> NHWC; flatten conv taps; weights -> bf16 (MXU-native)
    x = jnp.transpose(x_nchw, (0, 2, 3, 1)).astype(jnp.float32)     # (N,H,W,C)
    w1r = w1_hwio.reshape(9, C, C).astype(jnp.bfloat16)
    w2r = w2_hwio.reshape(9, C, C).astype(jnp.bfloat16)
    b1r = b1.reshape(1, C).astype(jnp.float32)
    b2r = b2.reshape(1, C).astype(jnp.float32)

    kernel = functools.partial(_resblock_kernel, H=H, W=W, C=C)

    out_nhwc = pl.pallas_call(
        kernel,
        out_shape=jax.ShapeDtypeStruct((N, H, W, C), jnp.float32),
        grid_spec=pltpu.PrefetchScalarGridSpec(
            num_scalar_prefetch=0,
            grid=(N,),
            in_specs=[
                pl.BlockSpec((None, H, W, C), lambda n: (n, 0, 0, 0)),
                pl.BlockSpec((9, C, C), lambda n: (0, 0, 0)),
                pl.BlockSpec((1, C), lambda n: (0, 0)),
                pl.BlockSpec((9, C, C), lambda n: (0, 0, 0)),
                pl.BlockSpec((1, C), lambda n: (0, 0)),
            ],
            out_specs=pl.BlockSpec((None, H, W, C), lambda n: (n, 0, 0, 0)),
            scratch_shapes=[pltpu.VMEM((H + 2, W + 2, C), jnp.bfloat16)],
        ),
        compiler_params=pltpu.CompilerParams(
            dimension_semantics=("parallel",),
            vmem_limit_bytes=64 * 1024 * 1024),
    )(x, w1r, b1r, w2r, b2r)

    return jnp.transpose(out_nhwc, (0, 3, 1, 2))  # back to NCHW


# ---------------- pure-JAX reference (for correctness check) ----------------
def _reference(x_nchw, w1_hwio, b1, w2_hwio, b2):
    def conv(x, w_hwio, b):
        x_nhwc = jnp.transpose(x, (0, 2, 3, 1))
        y = jax.lax.conv_general_dilated(
            x_nhwc, w_hwio, window_strides=(1, 1),
            padding=((1, 1), (1, 1)),
            dimension_numbers=("NHWC", "HWIO", "NHWC"))
        y = y + b
        return jnp.transpose(y, (0, 3, 1, 2))

    def inorm(x):
        mean = jnp.mean(x, axis=(2, 3), keepdims=True)
        var = jnp.mean((x - mean) ** 2, axis=(2, 3), keepdims=True)
        return (x - mean) / jnp.sqrt(var + EPS)

    h = jax.nn.relu(inorm(conv(x_nchw, w1_hwio, b1)))
    h = inorm(conv(h, w2_hwio, b2))
    return x_nchw + h


if __name__ == "__main__":
    N, C, H, W = 2, 4, 16, 16

    key = jax.random.PRNGKey(0)
    kx, k1, k2, k3, k4 = jax.random.split(key, 5)

    x = jax.random.normal(kx, (N, C, H, W), dtype=jnp.float32)
    # conv weights in HWIO = (kh, kw, in_ch, out_ch); biases (C,)
    w1 = jax.random.normal(k1, (3, 3, C, C), dtype=jnp.float32) * 0.1
    b1 = jax.random.normal(k2, (C,), dtype=jnp.float32) * 0.1
    w2 = jax.random.normal(k3, (3, 3, C, C), dtype=jnp.float32) * 0.1
    b2 = jax.random.normal(k4, (C,), dtype=jnp.float32) * 0.1

    out = jax.block_until_ready(residual_block(x, w1, b1, w2, b2))

    ref = _reference(x, w1, b1, w2, b2)
    err = float(jnp.max(jnp.abs(out - ref)))
    assert out.shape == (N, C, H, W)
    # matmul operands are bf16 (f32 accumulation), so tolerance is loosened
    assert err < 5e-2, f"max abs error {err}"

    print("KERNEL_OK")
</pallas_src>

<mosaic_0001>
module attributes {stable_mosaic.version = 11 : i64} {
  func.func @_resblock_kernel(%arg0: i32, %arg1: memref<1x16x16x4xf32, #tpu.memory_space<vmem>>, %arg2: memref<9x4x4xbf16, #tpu.memory_space<vmem>>, %arg3: memref<1x4xf32, #tpu.memory_space<vmem>>, %arg4: memref<9x4x4xbf16, #tpu.memory_space<vmem>>, %arg5: memref<1x4xf32, #tpu.memory_space<vmem>>, %arg6: memref<1x16x16x4xf32, #tpu.memory_space<vmem>>, %arg7: memref<18x18x4xbf16, #tpu.memory_space<vmem>>) attributes {dimension_semantics = [#tpu.dimension_semantics<parallel>], iteration_bounds = array<i64: 2>, scalar_prefetch = 0 : i64, scratch_operands = 1 : i64, tpu.core_type = #tpu.core_type<tc>, window_params = [{transform_indices = @transform_0, window_bounds = array<i64: 1, 16, 16, 4>}, {pipeline_mode = #tpu.pipeline_mode<synchronous>, transform_indices = @transform_1, window_bounds = array<i64: 9, 4, 4>}, {pipeline_mode = #tpu.pipeline_mode<synchronous>, transform_indices = @transform_2, window_bounds = array<i64: 1, 4>}, {pipeline_mode = #tpu.pipeline_mode<synchronous>, transform_indices = @transform_3, window_bounds = array<i64: 9, 4, 4>}, {pipeline_mode = #tpu.pipeline_mode<synchronous>, transform_indices = @transform_4, window_bounds = array<i64: 1, 4>}, {transform_indices = @transform_5, window_bounds = array<i64: 1, 16, 16, 4>}]} {
    %cst = arith.constant 0.000000e+00 : bf16
    %0 = vector.broadcast %cst : bf16 to vector<1x18x4xbf16>
    %cst_0 = arith.constant 0.000000e+00 : bf16
    %1 = vector.broadcast %cst_0 : bf16 to vector<18x1x4xbf16>
    %c0 = arith.constant 0 : index
    %c0_1 = arith.constant 0 : index
    %c0_2 = arith.constant 0 : index
    %2 = vector.load %arg7[%c0, %c0_1, %c0_2] : memref<18x18x4xbf16, #tpu.memory_space<vmem>>, vector<1x18x4xbf16>
    tpu.vector_store %arg7[%c0, %c0_1, %c0_2], %0 {strides = array<i32>} : memref<18x18x4xbf16, #tpu.memory_space<vmem>>, vector<1x18x4xbf16>,
    %c17 = arith.constant 17 : index
    %c0_3 = arith.constant 0 : index
    %c0_4 = arith.constant 0 : index
    %3 = vector.load %arg7[%c17, %c0_3, %c0_4] : memref<18x18x4xbf16, #tpu.memory_space<vmem>>, vector<1x18x4xbf16>
    tpu.vector_store %arg7[%c17, %c0_3, %c0_4], %0 {strides = array<i32>} : memref<18x18x4xbf16, #tpu.memory_space<vmem>>, vector<1x18x4xbf16>,
    %c0_5 = arith.constant 0 : index
    %c0_6 = arith.constant 0 : index
    %c0_7 = arith.constant 0 : index
    %4 = vector.load %arg7[%c0_5, %c0_6, %c0_7] : memref<18x18x4xbf16, #tpu.memory_space<vmem>>, vector<18x1x4xbf16>
    tpu.vector_store %arg7[%c0_5, %c0_6, %c0_7], %1 {strides = array<i32>} : memref<18x18x4xbf16, #tpu.memory_space<vmem>>, vector<18x1x4xbf16>,
    %c0_8 = arith.constant 0 : index
    %c17_9 = arith.constant 17 : index
    %c0_10 = arith.constant 0 : index
    %5 = vector.load %arg7[%c0_8, %c17_9, %c0_10] : memref<18x18x4xbf16, #tpu.memory_space<vmem>>, vector<18x1x4xbf16>
    tpu.vector_store %arg7[%c0_8, %c17_9, %c0_10], %1 {strides = array<i32>} : memref<18x18x4xbf16, #tpu.memory_space<vmem>>, vector<18x1x4xbf16>,
    %c0_11 = arith.constant 0 : index
    %c0_12 = arith.constant 0 : index
    %c0_13 = arith.constant 0 : index
    %c0_14 = arith.constant 0 : index
    %6 = vector.load %arg1[%c0_11, %c0_12, %c0_13, %c0_14] : memref<1x16x16x4xf32, #tpu.memory_space<vmem>>, vector<1x16x16x4xf32>
    %7 = vector.shape_cast %6 : vector<1x16x16x4xf32> to vector<16x16x4xf32>
    %8 = arith.truncf %7 : vector<16x16x4xf32> to vector<16x16x4xbf16>
    %c1 = arith.constant 1 : index
    %c1_15 = arith.constant 1 : index
    %c0_16 = arith.constant 0 : index
    %9 = vector.load %arg7[%c1, %c1_15, %c0_16] : memref<18x18x4xbf16, #tpu.memory_space<vmem>>, vector<16x16x4xbf16>
    tpu.vector_store %arg7[%c1, %c1_15, %c0_16], %8 {strides = array<i32>} : memref<18x18x4xbf16, #tpu.memory_space<vmem>>, vector<16x16x4xbf16>,
    %cst_17 = arith.constant 0.000000e+00 : f32
    %10 = vector.broadcast %cst_17 : f32 to vector<256x4xf32>
    %c0_18 = arith.constant 0 : index
    %c0_19 = arith.constant 0 : index
    %c0_20 = arith.constant 0 : index
    %11 = vector.load %arg7[%c0_18, %c0_19, %c0_20] : memref<18x18x4xbf16, #tpu.memory_space<vmem>>, vector<16x16x4xbf16>
    %12 = vector.shape_cast %11 : vector<16x16x4xbf16> to vector<256x4xbf16>
    %c0_21 = arith.constant 0 : index
    %c0_22 = arith.constant 0 : index
    %c0_23 = arith.constant 0 : index
    %13 = vector.load %arg2[%c0_21, %c0_22, %c0_23] : memref<9x4x4xbf16, #tpu.memory_space<vmem>>, vector<1x4x4xbf16>
    %14 = vector.shape_cast %13 : vector<1x4x4xbf16> to vector<4x4xbf16>
    %cst_24 = arith.constant dense<0.000000e+00> : vector<256x4xf32>
    %15 = tpu.matmul %12, %14, %cst_24 {dimension_numbers = #tpu.dot_dimension_numbers<[1], [0], [0], [1], [0, 0, 1, 1], [], []>} : vector<256x4xbf16>, vector<4x4xbf16>, vector<256x4xf32> -> vector<256x4xf32>
    %16 = arith.addf %10, %15 : vector<256x4xf32>
    %c0_25 = arith.constant 0 : index
    %c1_26 = arith.constant 1 : index
    %c0_27 = arith.constant 0 : index
    %17 = vector.load %arg7[%c0_25, %c1_26, %c0_27] : memref<18x18x4xbf16, #tpu.memory_space<vmem>>, vector<16x16x4xbf16>
    %18 = vector.shape_cast %17 : vector<16x16x4xbf16> to vector<256x4xbf16>
    %c1_28 = arith.constant 1 : index
    %c0_29 = arith.constant 0 : index
    %c0_30 = arith.constant 0 : index
    %19 = vector.load %arg2[%c1_28, %c0_29, %c0_30] : memref<9x4x4xbf16, #tpu.memory_space<vmem>>, vector<1x4x4xbf16>
    %20 = vector.shape_cast %19 : vector<1x4x4xbf16> to vector<4x4xbf16>
    %cst_31 = arith.constant dense<0.000000e+00> : vector<256x4xf32>
    %21 = tpu.matmul %18, %20, %cst_31 {dimension_numbers = #tpu.dot_dimension_numbers<[1], [0], [0], [1], [0, 0, 1, 1], [], []>} : vector<256x4xbf16>, vector<4x4xbf16>, vector<256x4xf32> -> vector<256x4xf32>
    %22 = arith.addf %16, %21 : vector<256x4xf32>
    %c0_32 = arith.constant 0 : index
    %c2 = arith.constant 2 : index
    %c0_33 = arith.constant 0 : index
    %23 = vector.load %arg7[%c0_32, %c2, %c0_33] : memref<18x18x4xbf16, #tpu.memory_space<vmem>>, vector<16x16x4xbf16>
    %24 = vector.shape_cast %23 : vector<16x16x4xbf16> to vector<256x4xbf16>
    %c2_34 = arith.constant 2 : index
    %c0_35 = arith.constant 0 : index
    %c0_36 = arith.constant 0 : index
    %25 = vector.load %arg2[%c2_34, %c0_35, %c0_36] : memref<9x4x4xbf16, #tpu.memory_space<vmem>>, vector<1x4x4xbf16>
    %26 = vector.shape_cast %25 : vector<1x4x4xbf16> to vector<4x4xbf16>
    %cst_37 = arith.constant dense<0.000000e+00> : vector<256x4xf32>
    %27 = tpu.matmul %24, %26, %cst_37 {dimension_numbers = #tpu.dot_dimension_numbers<[1], [0], [0], [1], [0, 0, 1, 1], [], []>} : vector<256x4xbf16>, vector<4x4xbf16>, vector<256x4xf32> -> vector<256x4xf32>
    %28 = arith.addf %22, %27 : vector<256x4xf32>
    %c1_38 = arith.constant 1 : index
    %c0_39 = arith.constant 0 : index
    %c0_40 = arith.constant 0 : index
    %29 = vector.load %arg7[%c1_38, %c0_39, %c0_40] : memref<18x18x4xbf16, #tpu.memory_space<vmem>>, vector<16x16x4xbf16>
    %30 = vector.shape_cast %29 : vector<16x16x4xbf16> to vector<256x4xbf16>
    %c3 = arith.constant 3 : index
    %c0_41 = arith.constant 0 : index
    %c0_42 = arith.constant 0 : index
    %31 = vector.load %arg2[%c3, %c0_41, %c0_42] : memref<9x4x4xbf16, #tpu.memory_space<vmem>>, vector<1x4x4xbf16>
    %32 = vector.shape_cast %31 : vector<1x4x4xbf16> to vector<4x4xbf16>
    %cst_43 = arith.constant dense<0.000000e+00> : vector<256x4xf32>
    %33 = tpu.matmul %30, %32, %cst_43 {dimension_numbers = #tpu.dot_dimension_numbers<[1], [0], [0], [1], [0, 0, 1, 1], [], []>} : vector<256x4xbf16>, vector<4x4xbf16>, vector<256x4xf32> -> vector<256x4xf32>
    %34 = arith.addf %28, %33 : vector<256x4xf32>
    %c1_44 = arith.constant 1 : index
    %c1_45 = arith.constant 1 : index
    %c0_46 = arith.constant 0 : index
    %35 = vector.load %arg7[%c1_44, %c1_45, %c0_46] : memref<18x18x4xbf16, #tpu.memory_space<vmem>>, vector<16x16x4xbf16>
    %36 = vector.shape_cast %35 : vector<16x16x4xbf16> to vector<256x4xbf16>
    %c4 = arith.constant 4 : index
    %c0_47 = arith.constant 0 : index
    %c0_48 = arith.constant 0 : index
    %37 = vector.load %arg2[%c4, %c0_47, %c0_48] : memref<9x4x4xbf16, #tpu.memory_space<vmem>>, vector<1x4x4xbf16>
    %38 = vector.shape_cast %37 : vector<1x4x4xbf16> to vector<4x4xbf16>
    %cst_49 = arith.constant dense<0.000000e+00> : vector<256x4xf32>
    %39 = tpu.matmul %36, %38, %cst_49 {dimension_numbers = #tpu.dot_dimension_numbers<[1], [0], [0], [1], [0, 0, 1, 1], [], []>} : vector<256x4xbf16>, vector<4x4xbf16>, vector<256x4xf32> -> vector<256x4xf32>
    %40 = arith.addf %34, %39 : vector<256x4xf32>
    %c1_50 = arith.constant 1 : index
    %c2_51 = arith.constant 2 : index
    %c0_52 = arith.constant 0 : index
    %41 = vector.load %arg7[%c1_50, %c2_51, %c0_52] : memref<18x18x4xbf16, #tpu.memory_space<vmem>>, vector<16x16x4xbf16>
    %42 = vector.shape_cast %41 : vector<16x16x4xbf16> to vector<256x4xbf16>
    %c5 = arith.constant 5 : index
    %c0_53 = arith.constant 0 : index
    %c0_54 = arith.constant 0 : index
    %43 = vector.load %arg2[%c5, %c0_53, %c0_54] : memref<9x4x4xbf16, #tpu.memory_space<vmem>>, vector<1x4x4xbf16>
    %44 = vector.shape_cast %43 : vector<1x4x4xbf16> to vector<4x4xbf16>
    %cst_55 = arith.constant dense<0.000000e+00> : vector<256x4xf32>
    %45 = tpu.matmul %42, %44, %cst_55 {dimension_numbers = #tpu.dot_dimension_numbers<[1], [0], [0], [1], [0, 0, 1, 1], [], []>} : vector<256x4xbf16>, vector<4x4xbf16>, vector<256x4xf32> -> vector<256x4xf32>
    %46 = arith.addf %40, %45 : vector<256x4xf32>
    %c2_56 = arith.constant 2 : index
    %c0_57 = arith.constant 0 : index
    %c0_58 = arith.constant 0 : index
    %47 = vector.load %arg7[%c2_56, %c0_57, %c0_58] : memref<18x18x4xbf16, #tpu.memory_space<vmem>>, vector<16x16x4xbf16>
    %48 = vector.shape_cast %47 : vector<16x16x4xbf16> to vector<256x4xbf16>
    %c6 = arith.constant 6 : index
    %c0_59 = arith.constant 0 : index
    %c0_60 = arith.constant 0 : index
    %49 = vector.load %arg2[%c6, %c0_59, %c0_60] : memref<9x4x4xbf16, #tpu.memory_space<vmem>>, vector<1x4x4xbf16>
    %50 = vector.shape_cast %49 : vector<1x4x4xbf16> to vector<4x4xbf16>
    %cst_61 = arith.constant dense<0.000000e+00> : vector<256x4xf32>
    %51 = tpu.matmul %48, %50, %cst_61 {dimension_numbers = #tpu.dot_dimension_numbers<[1], [0], [0], [1], [0, 0, 1, 1], [], []>} : vector<256x4xbf16>, vector<4x4xbf16>, vector<256x4xf32> -> vector<256x4xf32>
    %52 = arith.addf %46, %51 : vector<256x4xf32>
    %c2_62 = arith.constant 2 : index
    %c1_63 = arith.constant 1 : index
    %c0_64 = arith.constant 0 : index
    %53 = vector.load %arg7[%c2_62, %c1_63, %c0_64] : memref<18x18x4xbf16, #tpu.memory_space<vmem>>, vector<16x16x4xbf16>
    %54 = vector.shape_cast %53 : vector<16x16x4xbf16> to vector<256x4xbf16>
    %c7 = arith.constant 7 : index
    %c0_65 = arith.constant 0 : index
    %c0_66 = arith.constant 0 : index
    %55 = vector.load %arg2[%c7, %c0_65, %c0_66] : memref<9x4x4xbf16, #tpu.memory_space<vmem>>, vector<1x4x4xbf16>
    %56 = vector.shape_cast %55 : vector<1x4x4xbf16> to vector<4x4xbf16>
    %cst_67 = arith.constant dense<0.000000e+00> : vector<256x4xf32>
    %57 = tpu.matmul %54, %56, %cst_67 {dimension_numbers = #tpu.dot_dimension_numbers<[1], [0], [0], [1], [0, 0, 1, 1], [], []>} : vector<256x4xbf16>, vector<4x4xbf16>, vector<256x4xf32> -> vector<256x4xf32>
    %58 = arith.addf %52, %57 : vector<256x4xf32>
    %c2_68 = arith.constant 2 : index
    %c2_69 = arith.constant 2 : index
    %c0_70 = arith.constant 0 : index
    %59 = vector.load %arg7[%c2_68, %c2_69, %c0_70] : memref<18x18x4xbf16, #tpu.memory_space<vmem>>, vector<16x16x4xbf16>
    %60 = vector.shape_cast %59 : vector<16x16x4xbf16> to vector<256x4xbf16>
    %c8 = arith.constant 8 : index
    %c0_71 = arith.constant 0 : index
    %c0_72 = arith.constant 0 : index
    %61 = vector.load %arg2[%c8, %c0_71, %c0_72] : memref<9x4x4xbf16, #tpu.memory_space<vmem>>, vector<1x4x4xbf16>
    %62 = vector.shape_cast %61 : vector<1x4x4xbf16> to vector<4x4xbf16>
    %cst_73 = arith.constant dense<0.000000e+00> : vector<256x4xf32>
    %63 = tpu.matmul %60, %62, %cst_73 {dimension_numbers = #tpu.dot_dimension_numbers<[1], [0], [0], [1], [0, 0, 1, 1], [], []>} : vector<256x4xbf16>, vector<4x4xbf16>, vector<256x4xf32> -> vector<256x4xf32>
    %64 = arith.addf %58, %63 : vector<256x4xf32>
    %c0_74 = arith.constant 0 : index
    %c0_75 = arith.constant 0 : index
    %65 = vector.load %arg3[%c0_74, %c0_75] : memref<1x4xf32, #tpu.memory_space<vmem>>, vector<1x4xf32>
    %66 = vector.broadcast %65 : vector<1x4xf32> to vector<256x4xf32>
    %67 = arith.addf %64, %66 : vector<256x4xf32>
    %cst_76 = arith.constant dense<0.000000e+00> : vector<4xf32>
    %68 = vector.multi_reduction <add>, %67, %cst_76 [0] : vector<256x4xf32> to vector<4xf32>
    %69 = vector.shape_cast %68 : vector<4xf32> to vector<1x4xf32>
    %cst_77 = arith.constant 3.906250e-03 : f32
    %70 = vector.broadcast %cst_77 : f32 to vector<1x4xf32>
    %71 = arith.mulf %69, %70 : vector<1x4xf32>
    %72 = arith.mulf %67, %67 : vector<256x4xf32>
    %cst_78 = arith.constant dense<0.000000e+00> : vector<4xf32>
    %73 = vector.multi_reduction <add>, %72, %cst_78 [0] : vector<256x4xf32> to vector<4xf32>
    %74 = vector.shape_cast %73 : vector<4xf32> to vector<1x4xf32>
    %cst_79 = arith.constant 3.906250e-03 : f32
    %75 = vector.broadcast %cst_79 : f32 to vector<1x4xf32>
    %76 = arith.mulf %74, %75 : vector<1x4xf32>
    %77 = arith.mulf %71, %71 : vector<1x4xf32>
    %78 = arith.subf %76, %77 : vector<1x4xf32>
    %cst_80 = arith.constant 0.000000e+00 : f32
    %79 = vector.broadcast %cst_80 : f32 to vector<1x4xf32>
    %80 = arith.maximumf %78, %79 : vector<1x4xf32>
    %81 = vector.broadcast %71 : vector<1x4xf32> to vector<256x4xf32>
    %82 = arith.subf %67, %81 : vector<256x4xf32>
    %cst_81 = arith.constant 9.99999974E-6 : f32
    %83 = vector.broadcast %cst_81 : f32 to vector<1x4xf32>
    %84 = arith.addf %80, %83 : vector<1x4xf32>
    %85 = math.rsqrt %84 : vector<1x4xf32>
    %86 = vector.broadcast %85 : vector<1x4xf32> to vector<256x4xf32>
    %87 = arith.mulf %82, %86 : vector<256x4xf32>
    %cst_82 = arith.constant 0.000000e+00 : f32
    %88 = vector.broadcast %cst_82 : f32 to vector<256x4xf32>
    %89 = arith.maximumf %87, %88 : vector<256x4xf32>
    %90 = vector.shape_cast %89 : vector<256x4xf32> to vector<16x16x4xf32>
    %91 = arith.truncf %90 : vector<16x16x4xf32> to vector<16x16x4xbf16>
    %c1_83 = arith.constant 1 : index
    %c1_84 = arith.constant 1 : index
    %c0_85 = arith.constant 0 : index
    %92 = vector.load %arg7[%c1_83, %c1_84, %c0_85] : memref<18x18x4xbf16, #tpu.memory_space<vmem>>, vector<16x16x4xbf16>
    tpu.vector_store %arg7[%c1_83, %c1_84, %c0_85], %91 {strides = array<i32>} : memref<18x18x4xbf16, #tpu.memory_space<vmem>>, vector<16x16x4xbf16>,
    %cst_86 = arith.constant 0.000000e+00 : f32
    %93 = vector.broadcast %cst_86 : f32 to vector<256x4xf32>
    %c0_87 = arith.constant 0 : index
    %c0_88 = arith.constant 0 : index
    %c0_89 = arith.constant 0 : index
    %94 = vector.load %arg7[%c0_87, %c0_88, %c0_89] : memref<18x18x4xbf16, #tpu.memory_space<vmem>>, vector<16x16x4xbf16>
    %95 = vector.shape_cast %94 : vector<16x16x4xbf16> to vector<256x4xbf16>
    %c0_90 = arith.constant 0 : index
    %c0_91 = arith.constant 0 : index
    %c0_92 = arith.constant 0 : index
    %96 = vector.load %arg4[%c0_90, %c0_91, %c0_92] : memref<9x4x4xbf16, #tpu.memory_space<vmem>>, vector<1x4x4xbf16>
    %97 = vector.shape_cast %96 : vector<1x4x4xbf16> to vector<4x4xbf16>
    %cst_93 = arith.constant dense<0.000000e+00> : vector<256x4xf32>
    %98 = tpu.matmul %95, %97, %cst_93 {dimension_numbers = #tpu.dot_dimension_numbers<[1], [0], [0], [1], [0, 0, 1, 1], [], []>} : vector<256x4xbf16>, vector<4x4xbf16>, vector<256x4xf32> -> vector<256x4xf32>
    %99 = arith.addf %93, %98 : vector<256x4xf32>
    %c0_94 = arith.constant 0 : index
    %c1_95 = arith.constant 1 : index
    %c0_96 = arith.constant 0 : index
    %100 = vector.load %arg7[%c0_94, %c1_95, %c0_96] : memref<18x18x4xbf16, #tpu.memory_space<vmem>>, vector<16x16x4xbf16>
    %101 = vector.shape_cast %100 : vector<16x16x4xbf16> to vector<256x4xbf16>
    %c1_97 = arith.constant 1 : index
    %c0_98 = arith.constant 0 : index
    %c0_99 = arith.constant 0 : index
    %102 = vector.load %arg4[%c1_97, %c0_98, %c0_99] : memref<9x4x4xbf16, #tpu.memory_space<vmem>>, vector<1x4x4xbf16>
    %103 = vector.shape_cast %102 : vector<1x4x4xbf16> to vector<4x4xbf16>
    %cst_100 = arith.constant dense<0.000000e+00> : vector<256x4xf32>
    %104 = tpu.matmul %101, %103, %cst_100 {dimension_numbers = #tpu.dot_dimension_numbers<[1], [0], [0], [1], [0, 0, 1, 1], [], []>} : vector<256x4xbf16>, vector<4x4xbf16>, vector<256x4xf32> -> vector<256x4xf32>
    %105 = arith.addf %99, %104 : vector<256x4xf32>
    %c0_101 = arith.constant 0 : index
    %c2_102 = arith.constant 2 : index
    %c0_103 = arith.constant 0 : index
    %106 = vector.load %arg7[%c0_101, %c2_102, %c0_103] : memref<18x18x4xbf16, #tpu.memory_space<vmem>>, vector<16x16x4xbf16>
    %107 = vector.shape_cast %106 : vector<16x16x4xbf16> to vector<256x4xbf16>
    %c2_104 = arith.constant 2 : index
    %c0_105 = arith.constant 0 : index
    %c0_106 = arith.constant 0 : index
    %108 = vector.load %arg4[%c2_104, %c0_105, %c0_106] : memref<9x4x4xbf16, #tpu.memory_space<vmem>>, vector<1x4x4xbf16>
    %109 = vector.shape_cast %108 : vector<1x4x4xbf16> to vector<4x4xbf16>
    %cst_107 = arith.constant dense<0.000000e+00> : vector<256x4xf32>
    %110 = tpu.matmul %107, %109, %cst_107 {dimension_numbers = #tpu.dot_dimension_numbers<[1], [0], [0], [1], [0, 0, 1, 1], [], []>} : vector<256x4xbf16>, vector<4x4xbf16>, vector<256x4xf32> -> vector<256x4xf32>
    %111 = arith.addf %105, %110 : vector<256x4xf32>
    %c1_108 = arith.constant 1 : index
    %c0_109 = arith.constant 0 : index
    %c0_110 = arith.constant 0 : index
    %112 = vector.load %arg7[%c1_108, %c0_109, %c0_110] : memref<18x18x4xbf16, #tpu.memory_space<vmem>>, vector<16x16x4xbf16>
    %113 = vector.shape_cast %112 : vector<16x16x4xbf16> to vector<256x4xbf16>
    %c3_111 = arith.constant 3 : index
    %c0_112 = arith.constant 0 : index
    %c0_113 = arith.constant 0 : index
    %114 = vector.load %arg4[%c3_111, %c0_112, %c0_113] : memref<9x4x4xbf16, #tpu.memory_space<vmem>>, vector<1x4x4xbf16>
    %115 = vector.shape_cast %114 : vector<1x4x4xbf16> to vector<4x4xbf16>
    %cst_114 = arith.constant dense<0.000000e+00> : vector<256x4xf32>
    %116 = tpu.matmul %113, %115, %cst_114 {dimension_numbers = #tpu.dot_dimension_numbers<[1], [0], [0], [1], [0, 0, 1, 1], [], []>} : vector<256x4xbf16>, vector<4x4xbf16>, vector<256x4xf32> -> vector<256x4xf32>
    %117 = arith.addf %111, %116 : vector<256x4xf32>
    %c1_115 = arith.constant 1 : index
    %c1_116 = arith.constant 1 : index
    %c0_117 = arith.constant 0 : index
    %118 = vector.load %arg7[%c1_115, %c1_116, %c0_117] : memref<18x18x4xbf16, #tpu.memory_space<vmem>>, vector<16x16x4xbf16>
    %119 = vector.shape_cast %118 : vector<16x16x4xbf16> to vector<256x4xbf16>
    %c4_118 = arith.constant 4 : index
    %c0_119 = arith.constant 0 : index
    %c0_120 = arith.constant 0 : index
    %120 = vector.load %arg4[%c4_118, %c0_119, %c0_120] : memref<9x4x4xbf16, #tpu.memory_space<vmem>>, vector<1x4x4xbf16>
    %121 = vector.shape_cast %120 : vector<1x4x4xbf16> to vector<4x4xbf16>
    %cst_121 = arith.constant dense<0.000000e+00> : vector<256x4xf32>
    %122 = tpu.matmul %119, %121, %cst_121 {dimension_numbers = #tpu.dot_dimension_numbers<[1], [0], [0], [1], [0, 0, 1, 1], [], []>} : vector<256x4xbf16>, vector<4x4xbf16>, vector<256x4xf32> -> vector<256x4xf32>
    %123 = arith.addf %117, %122 : vector<256x4xf32>
    %c1_122 = arith.constant 1 : index
    %c2_123 = arith.constant 2 : index
    %c0_124 = arith.constant 0 : index
    %124 = vector.load %arg7[%c1_122, %c2_123, %c0_124] : memref<18x18x4xbf16, #tpu.memory_space<vmem>>, vector<16x16x4xbf16>
    %125 = vector.shape_cast %124 : vector<16x16x4xbf16> to vector<256x4xbf16>
    %c5_125 = arith.constant 5 : index
    %c0_126 = arith.constant 0 : index
    %c0_127 = arith.constant 0 : index
    %126 = vector.load %arg4[%c5_125, %c0_126, %c0_127] : memref<9x4x4xbf16, #tpu.memory_space<vmem>>, vector<1x4x4xbf16>
    %127 = vector.shape_cast %126 : vector<1x4x4xbf16> to vector<4x4xbf16>
    %cst_128 = arith.constant dense<0.000000e+00> : vector<256x4xf32>
    %128 = tpu.matmul %125, %127, %cst_128 {dimension_numbers = #tpu.dot_dimension_numbers<[1], [0], [0], [1], [0, 0, 1, 1], [], []>} : vector<256x4xbf16>, vector<4x4xbf16>, vector<256x4xf32> -> vector<256x4xf32>
    %129 = arith.addf %123, %128 : vector<256x4xf32>
    %c2_129 = arith.constant 2 : index
    %c0_130 = arith.constant 0 : index
    %c0_131 = arith.constant 0 : index
    %130 = vector.load %arg7[%c2_129, %c0_130, %c0_131] : memref<18x18x4xbf16, #tpu.memory_space<vmem>>, vector<16x16x4xbf16>
    %131 = vector.shape_cast %130 : vector<16x16x4xbf16> to vector<256x4xbf16>
    %c6_132 = arith.constant 6 : index
    %c0_133 = arith.constant 0 : index
    %c0_134 = arith.constant 0 : index
    %132 = vector.load %arg4[%c6_132, %c0_133, %c0_134] : memref<9x4x4xbf16, #tpu.memory_space<vmem>>, vector<1x4x4xbf16>
    %133 = vector.shape_cast %132 : vector<1x4x4xbf16> to vector<4x4xbf16>
    %cst_135 = arith.constant dense<0.000000e+00> : vector<256x4xf32>
    %134 = tpu.matmul %131, %133, %cst_135 {dimension_numbers = #tpu.dot_dimension_numbers<[1], [0], [0], [1], [0, 0, 1, 1], [], []>} : vector<256x4xbf16>, vector<4x4xbf16>, vector<256x4xf32> -> vector<256x4xf32>
    %135 = arith.addf %129, %134 : vector<256x4xf32>
    %c2_136 = arith.constant 2 : index
    %c1_137 = arith.constant 1 : index
    %c0_138 = arith.constant 0 : index
    %136 = vector.load %arg7[%c2_136, %c1_137, %c0_138] : memref<18x18x4xbf16, #tpu.memory_space<vmem>>, vector<16x16x4xbf16>
    %137 = vector.shape_cast %136 : vector<16x16x4xbf16> to vector<256x4xbf16>
    %c7_139 = arith.constant 7 : index
    %c0_140 = arith.constant 0 : index
    %c0_141 = arith.constant 0 : index
    %138 = vector.load %arg4[%c7_139, %c0_140, %c0_141] : memref<9x4x4xbf16, #tpu.memory_space<vmem>>, vector<1x4x4xbf16>
    %139 = vector.shape_cast %138 : vector<1x4x4xbf16> to vector<4x4xbf16>
    %cst_142 = arith.constant dense<0.000000e+00> : vector<256x4xf32>
    %140 = tpu.matmul %137, %139, %cst_142 {dimension_numbers = #tpu.dot_dimension_numbers<[1], [0], [0], [1], [0, 0, 1, 1], [], []>} : vector<256x4xbf16>, vector<4x4xbf16>, vector<256x4xf32> -> vector<256x4xf32>
    %141 = arith.addf %135, %140 : vector<256x4xf32>
    %c2_143 = arith.constant 2 : index
    %c2_144 = arith.constant 2 : index
    %c0_145 = arith.constant 0 : index
    %142 = vector.load %arg7[%c2_143, %c2_144, %c0_145] : memref<18x18x4xbf16, #tpu.memory_space<vmem>>, vector<16x16x4xbf16>
    %143 = vector.shape_cast %142 : vector<16x16x4xbf16> to vector<256x4xbf16>
    %c8_146 = arith.constant 8 : index
    %c0_147 = arith.constant 0 : index
    %c0_148 = arith.constant 0 : index
    %144 = vector.load %arg4[%c8_146, %c0_147, %c0_148] : memref<9x4x4xbf16, #tpu.memory_space<vmem>>, vector<1x4x4xbf16>
    %145 = vector.shape_cast %144 : vector<1x4x4xbf16> to vector<4x4xbf16>
    %cst_149 = arith.constant dense<0.000000e+00> : vector<256x4xf32>
    %146 = tpu.matmul %143, %145, %cst_149 {dimension_numbers = #tpu.dot_dimension_numbers<[1], [0], [0], [1], [0, 0, 1, 1], [], []>} : vector<256x4xbf16>, vector<4x4xbf16>, vector<256x4xf32> -> vector<256x4xf32>
    %147 = arith.addf %141, %146 : vector<256x4xf32>
    %c0_150 = arith.constant 0 : index
    %c0_151 = arith.constant 0 : index
    %148 = vector.load %arg5[%c0_150, %c0_151] : memref<1x4xf32, #tpu.memory_space<vmem>>, vector<1x4xf32>
    %149 = vector.broadcast %148 : vector<1x4xf32> to vector<256x4xf32>
    %150 = arith.addf %147, %149 : vector<256x4xf32>
    %cst_152 = arith.constant dense<0.000000e+00> : vector<4xf32>
    %151 = vector.multi_reduction <add>, %150, %cst_152 [0] : vector<256x4xf32> to vector<4xf32>
    %152 = vector.shape_cast %151 : vector<4xf32> to vector<1x4xf32>
    %cst_153 = arith.constant 3.906250e-03 : f32
    %153 = vector.broadcast %cst_153 : f32 to vector<1x4xf32>
    %154 = arith.mulf %152, %153 : vector<1x4xf32>
    %155 = arith.mulf %150, %150 : vector<256x4xf32>
    %cst_154 = arith.constant dense<0.000000e+00> : vector<4xf32>
    %156 = vector.multi_reduction <add>, %155, %cst_154 [0] : vector<256x4xf32> to vector<4xf32>
    %157 = vector.shape_cast %156 : vector<4xf32> to vector<1x4xf32>
    %cst_155 = arith.constant 3.906250e-03 : f32
    %158 = vector.broadcast %cst_155 : f32 to vector<1x4xf32>
    %159 = arith.mulf %157, %158 : vector<1x4xf32>
    %160 = arith.mulf %154, %154 : vector<1x4xf32>
    %161 = arith.subf %159, %160 : vector<1x4xf32>
    %cst_156 = arith.constant 0.000000e+00 : f32
    %162 = vector.broadcast %cst_156 : f32 to vector<1x4xf32>
    %163 = arith.maximumf %161, %162 : vector<1x4xf32>
    %164 = vector.broadcast %154 : vector<1x4xf32> to vector<256x4xf32>
    %165 = arith.subf %150, %164 : vector<256x4xf32>
    %cst_157 = arith.constant 9.99999974E-6 : f32
    %166 = vector.broadcast %cst_157 : f32 to vector<1x4xf32>
    %167 = arith.addf %163, %166 : vector<1x4xf32>
    %168 = math.rsqrt %167 : vector<1x4xf32>
    %169 = vector.broadcast %168 : vector<1x4xf32> to vector<256x4xf32>
    %170 = arith.mulf %165, %169 : vector<256x4xf32>
    %c0_158 = arith.constant 0 : index
    %c0_159 = arith.constant 0 : index
    %c0_160 = arith.constant 0 : index
    %c0_161 = arith.constant 0 : index
    %171 = vector.load %arg1[%c0_158, %c0_159, %c0_160, %c0_161] : memref<1x16x16x4xf32, #tpu.memory_space<vmem>>, vector<1x16x16x4xf32>
    %172 = vector.shape_cast %171 : vector<1x16x16x4xf32> to vector<16x16x4xf32>
    %173 = vector.shape_cast %170 : vector<256x4xf32> to vector<16x16x4xf32>
    %174 = arith.addf %172, %173 : vector<16x16x4xf32>
    %c0_162 = arith.constant 0 : index
    %c0_163 = arith.constant 0 : index
    %c0_164 = arith.constant 0 : index
    %c0_165 = arith.constant 0 : index
    %175 = vector.load %arg6[%c0_162, %c0_163, %c0_164, %c0_165] : memref<1x16x16x4xf32, #tpu.memory_space<vmem>>, vector<1x16x16x4xf32>
    %176 = vector.shape_cast %175 : vector<1x16x16x4xf32> to vector<16x16x4xf32>
    %177 = vector.shape_cast %174 : vector<16x16x4xf32> to vector<1x16x16x4xf32>
    tpu.vector_store %arg6[%c0_162, %c0_163, %c0_164, %c0_165], %177 {strides = array<i32>} : memref<1x16x16x4xf32, #tpu.memory_space<vmem>>, vector<1x16x16x4xf32>,
    return
  }
  func.func @transform_0(%arg0: i32) -> (i32, i32, i32, i32) {
    %c0_i32 = arith.constant 0 : i32
    %c0_i32_0 = arith.constant 0 : i32
    %c0_i32_1 = arith.constant 0 : i32
    %c0_i32_2 = arith.constant 0 : i32
    return %arg0, %c0_i32, %c0_i32_0, %c0_i32_1 : i32, i32, i32, i32
  }
  func.func @transform_1(%arg0: i32) -> (i32, i32, i32) {
    %c0_i32 = arith.constant 0 : i32
    %c0_i32_0 = arith.constant 0 : i32
    %c0_i32_1 = arith.constant 0 : i32
    %c0_i32_2 = arith.constant 0 : i32
    return %c0_i32, %c0_i32_0, %c0_i32_1 : i32, i32, i32
  }
  func.func @transform_2(%arg0: i32) -> (i32, i32) {
    %c0_i32 = arith.constant 0 : i32
    %c0_i32_0 = arith.constant 0 : i32
    %c0_i32_1 = arith.constant 0 : i32
    return %c0_i32, %c0_i32_0 : i32, i32
  }
  func.func @transform_3(%arg0: i32) -> (i32, i32, i32) {
    %c0_i32 = arith.constant 0 : i32
    %c0_i32_0 = arith.constant 0 : i32
    %c0_i32_1 = arith.constant 0 : i32
    %c0_i32_2 = arith.constant 0 : i32
    return %c0_i32, %c0_i32_0, %c0_i32_1 : i32, i32, i32
  }
  func.func @transform_4(%arg0: i32) -> (i32, i32) {
    %c0_i32 = arith.constant 0 : i32
    %c0_i32_0 = arith.constant 0 : i32
    %c0_i32_1 = arith.constant 0 : i32
    return %c0_i32, %c0_i32_0 : i32, i32
  }
  func.func @transform_5(%arg0: i32) -> (i32, i32, i32, i32) {
    %c0_i32 = arith.constant 0 : i32
    %c0_i32_0 = arith.constant 0 : i32
    %c0_i32_1 = arith.constant 0 : i32
    %c0_i32_2 = arith.constant 0 : i32
    return %arg0, %c0_i32, %c0_i32_0, %c0_i32_1 : i32, i32, i32, i32
  }
}

</mosaic_0001>

<bundles_post_ra>
// kernel: tpu_custom_call.1
= control target key start
LH: loop header
LB: loop body
LE: loop exit
PB: predicated region body
PF: predicated region fallthrough
CT: control target
= control target key end

     0   :  { %10 = vsyncpa [#allocation4], 0  ;;  %s18870_s0 = inlined_call_operand.hbm [shape: f32[2,16,16,4], index: 0, kind: input, shape index: {}]   ;;  %s18871_s1 = inlined_call_operand.hbm [shape: bf16[9,4,4], index: 1, kind: input, shape index: {}]   ;;  %s18872_s2 = inlined_call_operand.hbm [shape: f32[1,4], index: 2, kind: input, shape index: {}]   ;;  %s18873_s3 = inlined_call_operand.hbm [shape: bf16[9,4,4], index: 3, kind: input, shape index: {}]   ;;  %s18874_s4 = inlined_call_operand.hbm [shape: f32[1,4], index: 4, kind: input, shape index: {}]   ;;  %s18875_s5 = inlined_call_operand.hbm [shape: f32[2,16,16,4], index: 5, kind: output, shape index: {}]  }
   0x1   :  { %12 = vsyncpa [#allocation4 + $0x1], 0 }
   0x2   :  { %13 = vsyncpa [#allocation7], 0 }
   0x3   :  { %14 = vsyncpa [#allocation10], 0 }
   0x4   :  { %15 = vsyncpa [#allocation5], 0 }
   0x5   :  { %17 = vsyncpa [#allocation5 + $0x1], 0  ;;  %s14176_s18 = smov 0   ;;  %s14178_s19 = smov 0  }
   0x6   :  { %s14180_s20 = smov 0   ;;  %s14182_s21 = smov 0  }
   0x7 LB: > { %s14197_s22 = sadd.s32 4294967295, %s14131_s21   ;;  %s11432_s23 = sadd.s32 4294967294, %s14131_s21   ;;  %s14131_s21 = sphi %s14182_s21, %s19282_s21   ;;  %s14127_s20 = sphi %s14180_s20, %s19281_s20   ;;  %s14123_s19 = sphi %s14178_s19, %s19280_s19   ;;  %s14119_s18 = sphi %s14176_s18, %s19279_s18  }
   0x8   : > { %p43_p0 = scmp.ne.s32.totalorder %s14123_s19, %s14119_s18  ;;  %p18876_p1 = scmp.eq.s32.totalorder %s14197_s22, 0 }
   0x9   : > { %p157_p3 = scmp.eq.s32.totalorder %s11432_s23, 1  ;;  %p11433_p5 = scmp.ge.s32.totalorder %s14131_s21, 1 }
   0xa   : > { %p14206_p4 = por %p18876_p1, %p43_p0  ;;  %p164_p7 = scmp.lt.s32.totalorder %s14131_s21, 3 }
   0xb   : > { %p14211_p6 = por %p157_p3, %p43_p0  ;;  %s14133_s27 = smov [#allocation6]  }
   0xc   : > { %s18988_s24 = scalar_select %p14206_p4, 1, 0 }
   0xd   : > { %s18989_s25 = scalar_select %p14211_p6, 1, 0 }
   0xe   : > { %p14216_p8 = pnand %p11433_p5, %p164_p7  ;;  %s176_s28 = sshll.u32 %s14133_s27, 4  ;;  %s14220_s28 = int_to_ptr.vmem [resolvable:$true] %s176_s28 }
   0xf   : > { %s14134_s30 = smov [#allocation9]   ;;  %s14135_s7 = smov [#allocation8]  }
  0x10   : > { %s18990_s26 = scalar_select %p14216_p8, 1, 0 }
  0x11   : > { %p13726_p9 = pneg %p14216_p8  ;;  %s200_s6 = sshll.u32 %s14134_s30, 4  ;;  %s14231_s6 = int_to_ptr.vmem [resolvable:$true] %s200_s6 }
  0x12   : > { %s14233_s8 = sshll.u32 %s14135_s7, 4  ;;  %s13915_s11 = scalar_lea.hbm %s18871_s1, 288  ;;  %s191_s8 = int_to_ptr.vmem [resolvable:$true] %s14233_s8 }
  0x13   : > { %p14227_p11 = pnand %p13726_p9, %p18876_p1  ;;  %p13916_p12 = scmp.ne.s32.totalorder %s18871_s1, %s13915_s11 }
  0x14   : > { %p13922_p5 = scmp.lt.u32.totalorder %s13915_s11, %s18871_s1 }
  0x15   : > { %p14243_p13 = pneg %p14227_p11 }
  0x17   : > { %p13918_p0 = pnand %p14243_p13, %p13916_p12 }
  0x19   : > { %p13919_p3 = pneg %p13918_p0 }
  0x1b   : > { %p13924_p7 = pnand %p13922_p5, %p13919_p3 }
  0x1d   : > { %13927 = shalt.err (!%p13924_p7)
}
  0x1e   : > { %s13928_s17 = scalar_lea.vmem %s14220_s28, 288  ;;  %p13936_p2 = scmp.lt.s32.totalorder %s14220_s28, %s14220_s28 }
  0x1f   : > { %p13929_p9 = scmp.ne.s32.totalorder %s14220_s28, %s13928_s17  ;;  %p13937_p6 = scmp.lt.s32.totalorder %s13928_s17, %s13928_s17 }
  0x21   : > { %p13931_p10 = pnand %p13929_p9, %p14243_p13  ;;  %p13938_p12 = por %p13937_p6, %p13936_p2 }
  0x23   : > { %p13932_p1 = pneg %p13931_p10 }
  0x25   : > { %p13939_p0 = pnand %p13938_p12, %p13932_p1 }
  0x27   : > { %13942 = shalt.err (!%p13939_p0)
}
  0x28   : > { %s14136_s23 = smov 32   ;;  %s14137_s27 = smov 2  }
  0x29   : > { %13729 = dma.hbm_to_vmem [thread:$0]  (!%p14227_p11), %s18871_s1, 288, %s14220_s28, [#allocation7], %s14136_s23, %s14136_s23, %s14137_s27  }
  0x2a   : > { %s13943_s11 = scalar_lea.hbm %s18873_s3, 288 }
  0x2b   : > { %p13944_p2 = scmp.ne.s32.totalorder %s18873_s3, %s13943_s11  ;;  %p13950_p10 = scmp.lt.u32.totalorder %s13943_s11, %s18873_s3 }
  0x2d   : > { %p13946_p1 = pnand %p13944_p2, %p14243_p13 }
  0x2f   : > { %p13947_p6 = pneg %p13946_p1 }
  0x31   : > { %p13952_p3 = pnand %p13950_p10, %p13947_p6 }
  0x33   : > { %13955 = shalt.err (!%p13952_p3)
}
  0x34   : > { %s13956_s28 = scalar_lea.vmem %s14231_s6, 288  ;;  %p13964_p12 = scmp.lt.s32.totalorder %s14231_s6, %s14231_s6 }
  0x35   : > { %p13957_p5 = scmp.ne.s32.totalorder %s14231_s6, %s13956_s28  ;;  %p13965_p0 = scmp.lt.s32.totalorder %s13956_s28, %s13956_s28 }
  0x37   : > { %p13959_p7 = pnand %p13957_p5, %p14243_p13  ;;  %p13966_p2 = por %p13965_p0, %p13964_p12 }
  0x39   : > { %p13960_p9 = pneg %p13959_p7 }
  0x3b   : > { %p13967_p1 = pnand %p13966_p2, %p13960_p9 }
  0x3d   : > { %13970 = shalt.err (!%p13967_p1)
}
  0x3e   : > { %13735 = dma.hbm_to_vmem [thread:$0]  (!%p14227_p11), %s18873_s3, 288, %s14231_s6, [#allocation10], %s14136_s23, %s14136_s23, %s14137_s27  }
  0x3f   : > { %s13971_s10 = scalar_lea.hbm %s18872_s2, 16 }
  0x40   : > { %p13972_p6 = scmp.ne.s32.totalorder %s18872_s2, %s13971_s10  ;;  %p13978_p5 = scmp.lt.u32.totalorder %s13971_s10, %s18872_s2 }
  0x42   : > { %p13974_p10 = pnand %p13972_p6, %p14243_p13 }
  0x44   : > { %p13975_p3 = pneg %p13974_p10 }
  0x46   : > { %p13980_p7 = pnand %p13978_p5, %p13975_p3 }
  0x48   : > { %13983 = shalt.err (!%p13980_p7)
}
  0x49   : > { %s13984_s16 = scalar_lea.vmem %s191_s8, 16  ;;  %s13991_s6 = scalar_lea.vmem %s191_s8, 32 }
  0x4a   : > { %p13985_p9 = scmp.ne.s32.totalorder %s191_s8, %s13984_s16  ;;  %p13992_p2 = scmp.lt.s32.totalorder %s191_s8, %s191_s8 }
  0x4b   : > { %p13993_p1 = scmp.lt.s32.totalorder %s13991_s6, %s13984_s16 }
  0x4c   : > { %p13987_p12 = pnand %p13985_p9, %p14243_p13 }
  0x4d   : > { %p13994_p4 = por %p13993_p1, %p13992_p2 }
  0x4e   : > { %p13988_p0 = pneg %p13987_p12 }
  0x50   : > { %p13995_p8 = pnand %p13994_p4, %p13988_p0 }
  0x52   : > { %13998 = shalt.err (!%p13995_p8)
}
  0x53   : > { %13732 = dma.hbm_to_vmem [thread:$0]  (!%p14227_p11), %s18872_s2, 16, %s191_s8, [#allocation7]  }
  0x54   : > { %s14138_s28 = smov [#allocation11]   ;;  %s13999_s9 = scalar_lea.hbm %s18874_s4, 16 }
  0x55   : > { %s214_s17 = sshll.u32 %s14138_s28, 4  ;;  %p14000_p6 = scmp.ne.s32.totalorder %s18874_s4, %s13999_s9  ;;  %s215_s17 = int_to_ptr.vmem [resolvable:$true] %s214_s17 }
  0x56   : > { %p14006_p10 = scmp.lt.u32.totalorder %s13999_s9, %s18874_s4 }
  0x57   : > { %p14002_p4 = pnand %p14000_p6, %p14243_p13 }
  0x59   : > { %p14003_p8 = pneg %p14002_p4 }
  0x5b   : > { %p14008_p3 = pnand %p14006_p10, %p14003_p8 }
  0x5d   : > { %14011 = shalt.err (!%p14008_p3)
}
  0x5e   : > { %s14012_s8 = scalar_lea.vmem %s215_s17, 16  ;;  %s14019_s15 = scalar_lea.vmem %s215_s17, 32 }
  0x5f   : > { %p14013_p5 = scmp.ne.s32.totalorder %s215_s17, %s14012_s8  ;;  %p14020_p12 = scmp.lt.s32.totalorder %s215_s17, %s215_s17 }
  0x60   : > { %p14021_p0 = scmp.lt.s32.totalorder %s14019_s15, %s14012_s8 }
  0x61   : > { %p14015_p7 = pnand %p14013_p5, %p14243_p13 }
  0x62   : > { %p14022_p2 = por %p14021_p0, %p14020_p12 }
  0x63   : > { %p14016_p9 = pneg %p14015_p7 }
  0x65   : > { %p14023_p1 = pnand %p14022_p2, %p14016_p9 }
  0x67   : > { %14026 = shalt.err (!%p14023_p1)
}
  0x68   : > { %13738 = dma.hbm_to_vmem [thread:$0]  (!%p14227_p11), %s18874_s4, 16, %s215_s17, [#allocation10]  }
  0x69   : > { %s14325_s14 = sadd.s32 1, %s14131_s21   ;;  %s30_s23 = sadd.s32 1, %s14127_s20 }
  0x6a   : > { %s27_s29 = ssub.s32 %s14131_s21, %s14325_s14  ;;  %p37_p13 = scmp.ne.s32.totalorder %s14127_s20, %s14123_s19 }
  0x6b   : > { %p28_p6 = scmp.eq.s32.totalorder %s27_s29, 0  ;;  %p38_p4 = scmp.eq.s32.totalorder %s14131_s21, 0 }
  0x6c   : > { %p18993_p8 = scmp.eq.s32.totalorder %s14197_s22, 1  ;;  %p13751_p3 = scmp.lt.s32.totalorder %s14131_s21, 2 }
  0x6d   : > { %s14341_s28 = scalar_select %p28_p6, %s14127_s20, %s30_s23  }
  0x6e   : > { %p14335_p10 = por %p18993_p8, %p37_p13  ;;  %p39_p5 = por %p38_p4, %p37_p13 }
  0x6f   : > { %s225_s30 = sand.u32 1, %s14127_s20   ;;  %s12192_s17 = sshll.u32 %s14131_s21, 12 }
  0x70   : > { %s11439_s7 = sshll.u32 %s225_s30, 8  ;;  %s14348_s11 = scalar_lea.hbm %s18870_s0, %s12192_s17 }
  0x71   : > { %s229_s12 = scalar_lea.vmem [#allocation3], %s11439_s7  ;;  %p14352_p11 = pnand %p13751_p3, %p39_p5 }
  0x72   : > { %s236_s13 = sshll.u32 %s229_s12, 4  ;;  %s14356_s15 = scalar_lea.sflag [#allocation4], %s225_s30  ;;  %s14350_s13 = int_to_ptr.vmem [resolvable:$true] %s236_s13 }
  0x73   : > { %s14027_s16 = scalar_lea.hbm %s14348_s11, 4096  ;;  %p14029_p9 = pneg %p14352_p11 }
  0x74   : > { %p14028_p7 = scmp.ne.s32.totalorder %s14348_s11, %s14027_s16  ;;  %s14032_s29 = scalar_lea.hbm %s18870_s0, 8192 }
  0x75   : > { %p14033_p2 = scmp.lt.u32.totalorder %s14348_s11, %s18870_s0  ;;  %p14034_p1 = scmp.lt.u32.totalorder %s14032_s29, %s14027_s16 }
  0x76   : > { %p14030_p12 = pnand %p14029_p9, %p14028_p7  ;;  %p14036_p6 = scmp.lt.u32.totalorder %s14027_s16, %s14348_s11 }
  0x77   : > { %p14035_p13 = por %p14034_p1, %p14033_p2 }
  0x78   : > { %p14031_p0 = pneg %p14030_p12 }
  0x79   : > { %p14037_p4 = por %p14036_p6, %p14035_p13 }
  0x7b   : > { %p14038_p8 = pnand %p14037_p4, %p14031_p0 }
  0x7d   : > { %14041 = shalt.err (!%p14038_p8)
}
  0x7e   : > { %s14042_s30 = scalar_lea.vmem %s14350_s13, 4096  ;;  %s14139_s9 = smov [#allocation3]  }
  0x7f   : > { %p14043_p3 = scmp.ne.s32.totalorder %s14350_s13, %s14042_s30  ;;  %s14047_s10 = sshll.u32 %s14139_s9, 4  ;;  %s14048_s10 = int_to_ptr.vmem [resolvable:$false] %s14047_s10 }
  0x80   : > { %s14049_s12 = scalar_lea.vmem %s14048_s10, 8192  ;;  %p14050_p12 = scmp.lt.s32.totalorder %s14350_s13, %s14048_s10 }
  0x81   : > { %p14045_p5 = pnand %p14043_p3, %p14029_p9  ;;  %p14051_p2 = scmp.lt.s32.totalorder %s14049_s12, %s14042_s30 }
  0x83   : > { %p14046_p7 = pneg %p14045_p5  ;;  %p14052_p1 = por %p14051_p2, %p14050_p12 }
  0x85   : > { %p14053_p13 = pnand %p14052_p1, %p14046_p7 }
  0x87   : > { %14056 = shalt.err (!%p14053_p13)
}
  0x88   : > { %s14140_s16 = smov 128   ;;  %s14141_s6 = smov 8  }
  0x89   : > { %13742 = dma.hbm_to_vmem [thread:$0]  (!%p14352_p11), %s14348_s11, 4096, %s14350_s13, %s14356_s15, %s14140_s16, %s14140_s16, %s14141_s6  }
  0x8a   : > { %p18996_p9 = scmp.ne.s32.totalorder %s18990_s26, 0 }
  0x8c   : > { %248 = sbr.rel (%p18996_p9) target bundleno = 2052 (0x804), region = 40 }
  0x93   : > { %s14387_s23 = sand.u32 1, %s14123_s19   ;;  %p18997_p0 = scmp.ne.s32.totalorder %s18988_s24, 0 }
  0x94   : > { %s11443_s29 = sshll.u32 %s14387_s23, 8  ;;  %s251_s7 = scalar_lea.sflag [#allocation4], %s14387_s23 }
  0x95   : > { %s14393_s17 = scalar_lea.vmem [#allocation3], %s11443_s29 }
  0x96   : > { %14102 = dma.done.wait (%p18997_p0), %s251_s7, 4096  }
  0x97   : > { %14104 = vsyncadd (%p18997_p0), %s251_s7, 4294963200  ;;  %p18998_p11 = scmp.eq.s32.totalorder %s14197_s22, 0 }
  0x99   : > { %14106 = dma.done.wait (%p18998_p11), [#allocation7], 304   ;;  %p18999_p6 = pmov %p18998_p11 }
  0x9b   : > { %14108 = vsyncadd (%p18999_p6), [#allocation7], 4294966992  ;;  %p19000_p4 = pmov %p18999_p6 }
  0x9d   : > { %14110 = dma.done.wait (%p19000_p4), [#allocation10], 304   ;;  %p19001_p8 = pmov %p19000_p4 }
  0x9e   : > { %vm298_vm0 = vcmask 27648   ;;  %vm301_vm1 = vcmask 24576   ;;  %v14142_v0 = vmov 0   ;;  %vm308_vm2 = vsmask.f32 256  ;;  %v420_v17 = vld [vmem:[%s14393_s17] sm:$0xff] }
  0x9f   : > { %14112 = vsyncadd (%p19001_p8), [#allocation10], 4294966992  ;;  %299 = vst.msk [vmem:[#allocation2] sm:$0xf] %vm298_vm0, %v14142_v0  ;;  %vm364_vm3 = vsmask.f32 7938  ;;  %v12193_v19 = vpack.c.bf16 %v420_v17, %v420_v17 }
  0xa0   : > { %300 = vst.msk [vmem:[#allocation2 + $0x4] sm:$0xf] %vm298_vm0, %v14142_v0  ;;  %304 = vst.msk [vmem:[#allocation2 + $0xcc] sm:$0xf] %vm298_vm0, %v14142_v0  ;;  %vm1520_vm4 = vcmask 1041408   ;;  %v19002_v1 = vmov 0 }
  0xa1   : > { %302 = vst.msk [vmem:[#allocation2 + $0x8] sm:$0x1] %vm301_vm1, %v14142_v0  ;;  %306 = vst.msk [vmem:[#allocation2 + $0xd4] sm:$0x1] %vm301_vm1, %v14142_v0  ;;  %v19005_v2 = vmov 0  ;;  %v421_v18 = vld [vmem:[%s14393_s17 + $0x8] sm:$0xff] }
  0xa2   : > { %305 = vst.msk [vmem:[#allocation2 + $0xd0] sm:$0xf] %vm298_vm0, %v14142_v0  ;;  %vm14412_vm5 = vmand %vm301_vm1, %vm308_vm2  ;;  %vm548_vm7 = vsmask.f32 4368  ;;  %v1422_v3 = vld [vmem:[#allocation6 + $0x2] sm:$0x3]  ;;  %v12194_v20 = vpack.c.bf16 %v421_v18, %v421_v18 }
  0xa3   : > { %v19003_v1 = vsel %vm14412_vm5, 4294967295, %v19002_v1  ;;  %vm14417_vm6 = vmand %vm301_vm1, %vm364_vm3  ;;  %v14421_v4 = vld [vmem:[#allocation6] sm:$0x3]  ;;  %v313_v5 = vld [vmem:[#allocation2 + $0xc] sm:$0x1]  ;;  %13688 = vmatprep.subr.msk.bf16.mxu0 %vm1520_vm4, %v1422_v3  ;;  %v1522_v6 = vsel %vm1520_vm4, %v1422_v3, 0 }
  0xa4   : > { %19004 = vst [vmem:[#allocation17_spill] sm:$0xff] %v19003_v1  ;;  %v19006_v2 = vsel %vm14417_vm6, 4294967295, %v19005_v2  ;;  %vm1034_vm8 = vsmask.f32 3328  ;;  %v314_v9 = vsel %vm14412_vm5, 0, %v313_v5  ;;  %12565 = vmatpush3.bf16.msra.mxu0 %v1522_v6  ;;  %v422_v23 = vld [vmem:[%s14393_s17 + $0x10] sm:$0xff]  ;;  %vm14451_vm9 = vmand %vm298_vm0, %vm364_vm3 }
  0xa5   : > { %19007 = vst [vmem:[#allocation18_spill] sm:$0xff] %v19006_v2  ;;  %315 = vst [vmem:[#allocation2 + $0xc] sm:$0x1] %v314_v9  ;;  %v369_v13 = vld [vmem:[#allocation2 + $0x14] sm:$0x1]  ;;  %13689 = vmatprep.subr.msk.bf16.mxu0 %vm1520_vm4, %v14421_v4  ;;  %v424_v29 = vld [vmem:[%s14393_s17 + $0x20] sm:$0xff]  ;;  %v12195_v36 = vpack.c.bf16 %v422_v23, %v422_v23 }
  0xa6   : > { %v310_v7 = vld [vmem:[#allocation2] sm:$0x1]  ;;  %v370_v16 = vsel %vm14417_vm6, 0, %v369_v13  ;;  %v316_v21 = vld [vmem:[#allocation2 + $0x18] sm:$0x1]  ;;  %v423_v28 = vld [vmem:[%s14393_s17 + $0x18] sm:$0xff]  ;;  %v12197_v50 = vpack.c.bf16 %v424_v29, %v424_v29 }
  0xa7   : > { %v311_v10 = vsel %vm14412_vm5, 0, %v310_v7  ;;  %v986_v12 = vld [vmem:[#allocation2 + $0x4] sm:$0xf]  ;;  %371 = vst [vmem:[#allocation2 + $0x14] sm:$0x1] %v370_v16  ;;  %v317_v26 = vsel %vm14412_vm5, 0, %v316_v21  ;;  %v12196_v37 = vpack.c.bf16 %v423_v28, %v423_v28  ;;  %vm14459_vm11 = vmor %vm308_vm2, %vm548_vm7 }
  0xa8   : > { %v366_v8 = vld [vmem:[#allocation2 + $0x8] sm:$0x1]  ;;  %312 = vst [vmem:[#allocation2] sm:$0x1] %v311_v10  ;;  %v1047_v14 = vshll.u32 %v986_v12, 16  ;;  %v1051_v15 = vshrl.u32 %v986_v12, 16 }
  0xa9   : > { %v367_v11 = vsel %vm14417_vm6, 0, %v366_v8  ;;  %v372_v22 = vld [vmem:[#allocation2 + $0x20] sm:$0x1]  ;;  %v551_v30 = vshrl.u32 %v12193_v19, 16  ;;  %v554_v31 = vshll.u32 %v12193_v19, 16  ;;  %v559_v32 = vshrl.u32 %v12194_v20, 16 }
  0xaa   : > { %368 = vst [vmem:[#allocation2 + $0x8] sm:$0x1] %v367_v11  ;;  %v14438_v24 = vrot.slane %v1047_v14, 5  ;;  %v1053_v25 = vrot.slane %v1051_v15, 4  ;;  %v373_v27 = vsel %vm14417_vm6, 0, %v372_v22  ;;  %v562_v33 = vshll.u32 %v12194_v20, 16 }
  0xab   : > { %318 = vst [vmem:[#allocation2 + $0x18] sm:$0x1] %v317_v26  ;;  %374 = vst [vmem:[#allocation2 + $0x20] sm:$0x1] %v373_v27  ;;  %v319_v34 = vld [vmem:[#allocation2 + $0x24] sm:$0x1] }
  0xac   : > { %v1054_v35 = vor.u32 %v1053_v25, %v14438_v24  ;;  %v320_v38 = vsel %vm14412_vm5, 0, %v319_v34  ;;  %v375_v39 = vld [vmem:[#allocation2 + $0x2c] sm:$0x1]  ;;  %v19008_v40 = vmov 0  ;;  %vm1035_vm10 = vsmask.f32 7440 }
  0xad   : > { %v19009_v40 = vsel %vm14451_vm9, 4294967295, %v19008_v40  ;;  %v553_v41 = vrot.slane %v551_v30, 7  ;;  %v561_v42 = vrot.slane %v559_v32, 7  ;;  %321 = vst [vmem:[#allocation2 + $0x24] sm:$0x1] %v320_v38  ;;  %v376_v43 = vsel %vm14417_vm6, 0, %v375_v39  ;;  %vm14466_vm13 = vmor %vm1034_vm8, %vm1035_vm10 }
  0xae   : > { %19010 = vst [vmem:[#allocation19_spill] sm:$0xff] %v19009_v40  ;;  %v19011_v44 = vmov 0  ;;  %v873_v45 = vld [vmem:[#allocation2 + $0xc] sm:$0xf]  ;;  %v568_v46 = vshrl.u32 %v12195_v36, 16  ;;  %v571_v47 = vshll.u32 %v12195_v36, 16 }
  0xaf   : > { %v19012_v44 = vsel %vm14459_vm11, 4294967295, %v19011_v44  ;;  %v576_v48 = vshrl.u32 %v12196_v37, 16  ;;  %377 = vst [vmem:[#allocation2 + $0x2c] sm:$0x1] %v376_v43  ;;  %v425_v49 = vld [vmem:[%s14393_s17 + $0x28] sm:$0xff]  ;;  %v556_v53 = vor.u32 %v554_v31, %v553_v41  ;;  %v557_v54 = vrot.slane %v553_v41, 4 }
  0xb0   : > { %19013 = vst [vmem:[#allocation20_spill] sm:$0xff] %v19012_v44  ;;  %v985_v51 = vld [vmem:[#allocation2] sm:$0xf]  ;;  %v564_v55 = vor.u32 %v562_v33, %v561_v42  ;;  %v566_v56 = vrot.slane %v561_v42, 4  ;;  %v1055_v59 = vrot.slane %v1054_v35, 4  ;;  %vm1471_vm12 = vcmask 31744  }
  0xb1   : > { %v1018_v52 = vld [vmem:[#allocation2 + $0x8] sm:$0x1]  ;;  %v1038_v57 = vshrl.u32 %v985_v51, 16  ;;  %v1041_v58 = vshll.u32 %v985_v51, 16  ;;  %v877_v61 = vld [vmem:[#allocation2 + $0x14] sm:$0x1]  ;;  %v874_v0 = vsel %vm14451_vm9, %v556_v53, %v873_v45  ;;  %v12198_v15 = vpack.c.bf16 %v425_v49, %v425_v49 }
  0xb2   : > { %v1057_v60 = vshll.u32 %v1018_v52, 16  ;;  %v19014_v62 = vmov 0  ;;  %v565_v63 = vsel %vm14459_vm11, %v557_v54, %v564_v55  ;;  %v878_v3 = vsel %vm14412_vm5, %v566_v56, %v877_v61  ;;  %875 = vst [vmem:[#allocation2 + $0xc] sm:$0xf] %v874_v0  ;;  %v880_v10 = vld [vmem:[#allocation2 + $0x18] sm:$0xf] }
  0xb3   : > { %v19015_v62 = vsel %vm14466_vm13, 4294967295, %v19014_v62  ;;  %v570_v5 = vrot.slane %v568_v46, 7  ;;  %v1040_v6 = vrot.slane %v1038_v57, 4  ;;  %v1043_v7 = vrot.slane %v1041_v58, 5  ;;  %876 = vst.msk [vmem:[#allocation2 + $0x10] sm:$0xf] %vm298_vm0, %v565_v63 }
  0xb4   : > { %19016 = vst [vmem:[#allocation21_spill] sm:$0xff] %v19015_v62  ;;  %v1059_v8 = vrot.slane %v1057_v60, 5  ;;  %879 = vst [vmem:[#allocation2 + $0x14] sm:$0x1] %v878_v3  ;;  %v578_v9 = vrot.slane %v576_v48, 7  ;;  %v579_v13 = vshll.u32 %v12196_v37, 16 }
  0xb5   : > { %v573_v11 = vor.u32 %v571_v47, %v570_v5  ;;  %v574_v12 = vrot.slane %v570_v5, 4  ;;  %v884_v14 = vld [vmem:[#allocation2 + $0x20] sm:$0x1]  ;;  %v1044_v16 = vor.u32 %v1043_v7, %v1040_v6  ;;  %v585_v19 = vshrl.u32 %v12197_v50, 16  ;;  %v322_v20 = vld [vmem:[#allocation2 + $0x30] sm:$0x1] }
  0xb6   : > { %v1060_v17 = vsel %vm14466_vm13, %v1055_v59, %v1059_v8  ;;  %v583_v18 = vrot.slane %v578_v9, 4  ;;  %v378_v21 = vld [vmem:[#allocation2 + $0x38] sm:$0x1]  ;;  %v581_v22 = vor.u32 %v579_v13, %v578_v9  ;;  %v588_v25 = vshll.u32 %v12197_v50, 16  ;;  %v426_v31 = vld [vmem:[%s14393_s17 + $0x30] sm:$0xff]  ;;  %v427_v32 = vld [vmem:[%s14393_s17 + $0x38] sm:$0xff] }
  0xb7   : > { %v881_v23 = vsel %vm14451_vm9, %v573_v11, %v880_v10  ;;  %v593_v26 = vshrl.u32 %v12198_v15, 16  ;;  %v1045_v27 = vrot.slane %v1044_v16, 4  ;;  %v587_v29 = vrot.slane %v585_v19, 7  ;;  %v887_v42 = vld [vmem:[#allocation2 + $0x24] sm:$0xf]  ;;  %v428_v43 = vld [vmem:[%s14393_s17 + $0x40] sm:$0xff] }
  0xb8   : > { %882 = vst [vmem:[#allocation2 + $0x18] sm:$0xf] %v881_v23  ;;  %v885_v28 = vsel %vm14412_vm5, %v583_v18, %v884_v14  ;;  %v596_v30 = vshll.u32 %v12198_v15, 16  ;;  %v582_v33 = vsel %vm14459_vm11, %v574_v12, %v581_v22  ;;  %v323_v35 = vsel %vm14412_vm5, 0, %v322_v20  ;;  %v891_v54 = vld [vmem:[#allocation2 + $0x2c] sm:$0x1] }
  0xb9   : > { %886 = vst [vmem:[#allocation2 + $0x20] sm:$0x1] %v885_v28  ;;  %v595_v34 = vrot.slane %v593_v26, 7  ;;  %v379_v36 = vsel %vm14417_vm6, 0, %v378_v21  ;;  %v1050_v37 = vsel %vm14466_vm13, %v1045_v27, %v14438_v24  ;;  %v14496_v38 = vsel %vm1520_vm4, %v14421_v4, 0  ;;  %s18664_s24 = scalar_lea.vmem [#allocation12], %s11443_s29 }
  0xba   : > { %883 = vst.msk [vmem:[#allocation2 + $0x1c] sm:$0xf] %vm298_vm0, %v582_v33  ;;  %v590_v39 = vor.u32 %v588_v25, %v587_v29  ;;  %v591_v41 = vrot.slane %v587_v29, 4  ;;  %324 = vst [vmem:[#allocation2 + $0x30] sm:$0x1] %v323_v35  ;;  %v11481_v45 = vcombine.low %v1050_v37, %v1060_v17  ;;  %v12199_v50 = vpack.c.bf16 %v426_v31, %v426_v31  ;;  %s12257_s26 = sshll.u32 %s14197_s22, 12 }
  0xbb   : > { %380 = vst [vmem:[#allocation2 + $0x38] sm:$0x1] %v379_v36  ;;  %v987_v46 = vld [vmem:[#allocation2 + $0xc] sm:$0xf]  ;;  %v988_v47 = vld [vmem:[#allocation2 + $0x10] sm:$0xf]  ;;  %v598_v49 = vor.u32 %v596_v30, %v595_v34  ;;  %v14500_v51 = vpack.c.bf16 %v427_v32, %v427_v32  ;;  %v14505_v58 = vpack.c.bf16 %v428_v43, %v428_v43  ;;  %s18794_s15 = scalar_lea.hbm %s18875_s5, %s12257_s26 }
  0xbc   : > { %v1019_v48 = vld [vmem:[#allocation2 + $0x14] sm:$0x1]  ;;  %v1062_v24 = vshrl.u32 %v987_v46, 16  ;;  %v1065_v52 = vshll.u32 %v987_v46, 16  ;;  %v1071_v4 = vshll.u32 %v988_v47, 16  ;;  %v1075_v53 = vshrl.u32 %v988_v47, 16  ;;  %12566 = vmatprep.mubr.msk.bf16.mxu0 %vm1471_vm12, %v11481_v45 }
  0xbd   : > { %v1081_v55 = vshll.u32 %v1019_v48, 16  ;;  %v599_v56 = vsel %vm14459_vm11, %v591_v41, %v598_v49  ;;  %v600_v57 = vrot.slane %v595_v34, 4  ;;  %v888_v5 = vsel %vm14451_vm9, %v590_v39, %v887_v42  ;;  %v325_v32 = vld [vmem:[#allocation2 + $0x3c] sm:$0x1]  ;;  %v381_v39 = vld [vmem:[#allocation2 + $0x44] sm:$0x1] }
  0xbe   : > { %v1064_v59 = vrot.slane %v1062_v24, 4  ;;  %v1067_v60 = vrot.slane %v1065_v52, 5  ;;  %v1073_v61 = vrot.slane %v1071_v4, 5  ;;  %v1077_v63 = vrot.slane %v1075_v53, 4  ;;  %890 = vst.msk [vmem:[#allocation2 + $0x28] sm:$0xf] %vm298_vm0, %v599_v56 }
  0xbf   : > { %v1083_v0 = vrot.slane %v1081_v55, 5  ;;  %v989_v3 = vld [vmem:[#allocation2 + $0x18] sm:$0xf]  ;;  %v892_v6 = vsel %vm14412_vm5, %v600_v57, %v891_v54  ;;  %v602_v7 = vshrl.u32 %v12199_v50, 16  ;;  %889 = vst [vmem:[#allocation2 + $0x24] sm:$0xf] %v888_v5 }
  0xc0   : > { %v1068_v8 = vor.u32 %v1067_v60, %v1064_v59  ;;  %v1078_v9 = vor.u32 %v1077_v63, %v1073_v61  ;;  %v1020_v10 = vld [vmem:[#allocation2 + $0x20] sm:$0x1]  ;;  %v1086_v11 = vshrl.u32 %v989_v3, 16  ;;  %v1089_v12 = vshll.u32 %v989_v3, 16  ;;  %893 = vst [vmem:[#allocation2 + $0x2c] sm:$0x1] %v892_v6 }
  0xc1   : > { %v990_v13 = vld [vmem:[#allocation2 + $0x1c] sm:$0xf]  ;;  %v1105_v14 = vshll.u32 %v1020_v10, 16  ;;  %v604_v15 = vrot.slane %v602_v7, 7  ;;  %v605_v16 = vshll.u32 %v12199_v50, 16  ;;  %v610_v17 = vshrl.u32 %v14500_v51, 16 }
  0xc2   : > { %v1069_v18 = vrot.slane %v1068_v8, 4  ;;  %v1079_v19 = vrot.slane %v1078_v9, 4  ;;  %v1088_v20 = vrot.slane %v1086_v11, 4  ;;  %v1091_v21 = vrot.slane %v1089_v12, 5  ;;  %v894_v31 = vld [vmem:[#allocation2 + $0x30] sm:$0xf] }
  0xc3   : > { %v1095_v22 = vshll.u32 %v990_v13, 16  ;;  %v1099_v23 = vshrl.u32 %v990_v13, 16  ;;  %v1107_v25 = vrot.slane %v1105_v14, 5  ;;  %v607_v26 = vor.u32 %v605_v16, %v604_v15  ;;  %v898_v46 = vld [vmem:[#allocation2 + $0x38] sm:$0x1]  ;;  %v429_v60 = vld [vmem:[%s14393_s17 + $0x48] sm:$0xff] }
  0xc4   : > { %v1074_v27 = vsel %vm14466_vm13, %v1069_v18, %v1073_v61  ;;  %v1084_v28 = vsel %vm14466_vm13, %v1079_v19, %v1083_v0  ;;  %v1092_v29 = vor.u32 %v1091_v21, %v1088_v20  ;;  %v608_v30 = vrot.slane %v604_v15, 4  ;;  %v328_v61 = vld [vmem:[#allocation2 + $0x48] sm:$0x1]  ;;  %v384_v5 = vld [vmem:[#allocation2 + $0x50] sm:$0x1]  ;;  %s11321_s11 = sshll.u32 %s18664_s24, 4  ;;  %s18798_s11 = int_to_ptr.vmem [resolvable:$true] %s11321_s11 }
  0xc5   : > { %v11482_v33 = vcombine.low %v1074_v27, %v1084_v28  ;;  %v1097_v34 = vrot.slane %v1095_v22, 5  ;;  %v1101_v35 = vrot.slane %v1099_v23, 4  ;;  %v992_v36 = vld [vmem:[#allocation2 + $0x28] sm:$0xf]  ;;  %v612_v37 = vrot.slane %v610_v17, 7  ;;  %v431_v15 = vld [vmem:[%s14393_s17 + $0x58] sm:$0xff] }
  0xc6   : > { %v1093_v41 = vrot.slane %v1092_v29, 4  ;;  %v1119_v42 = vshll.u32 %v992_v36, 16  ;;  %v1123_v43 = vshrl.u32 %v992_v36, 16  ;;  %v613_v45 = vshll.u32 %v14500_v51, 16  ;;  %v991_v48 = vld [vmem:[#allocation2 + $0x24] sm:$0xf] }
  0xc7   : > { %12567 = vmatmul.mubr.msk.bf16.vlgmr.msra.gmra.mrb[0].mxu0 %vm1471_vm12, %v11482_v33  ;;  %v1102_v47 = vor.u32 %v1101_v35, %v1097_v34  ;;  %v1021_v49 = vld [vmem:[#allocation2 + $0x2c] sm:$0x1]  ;;  %v617_v50 = vrot.slane %v612_v37, 4  ;;  %v895_v24 = vsel %vm14451_vm9, %v607_v26, %v894_v31  ;;  %v326_v52 = vsel %vm14412_vm5, 0, %v325_v32  ;;  %v331_v16 = vld [vmem:[#allocation2 + $0x54] sm:$0x1] }
  0xc8   : > { %12599 = vmatpush3.bf16.msra.mxu0 %v14496_v38  ;;  %v1098_v4 = vsel %vm14466_vm13, %v1093_v41, %v1097_v34  ;;  %v1110_v51 = vshrl.u32 %v991_v48, 16  ;;  %v1113_v53 = vshll.u32 %v991_v48, 16  ;;  %v1121_v54 = vrot.slane %v1119_v42, 5  ;;  %896 = vst [vmem:[#allocation2 + $0x30] sm:$0xf] %v895_v24  ;;  %v430_v14 = vld [vmem:[%s14393_s17 + $0x50] sm:$0xff] }
  0xc9   : > { %327 = vst [vmem:[#allocation2 + $0x3c] sm:$0x1] %v326_v52  ;;  %v1103_v55 = vrot.slane %v1102_v47, 4  ;;  %v1125_v56 = vrot.slane %v1123_v43, 4  ;;  %v1129_v57 = vshll.u32 %v1021_v49, 16  ;;  %v615_v59 = vor.u32 %v613_v45, %v612_v37  ;;  %v432_v31 = vld [vmem:[%s14393_s17 + $0x60] sm:$0xff] }
  0xca   : > { %v1112_v63 = vrot.slane %v1110_v51, 4  ;;  %v1115_v0 = vrot.slane %v1113_v53, 5  ;;  %v899_v38 = vsel %vm14412_vm5, %v617_v50, %v898_v46  ;;  %v382_v3 = vsel %vm14417_vm6, 0, %v381_v39  ;;  %v2141_v36 = vld [vmem:[#allocation6 + $0x4] sm:$0x3]  ;;  %s11308_s22 = scalar_lea.sflag [#allocation5], %s14387_s23 }
  0xcb   : > { %v1108_v6 = vsel %vm14466_vm13, %v1103_v55, %v1107_v25  ;;  %v1126_v7 = vor.u32 %v1125_v56, %v1121_v54  ;;  %v1131_v8 = vrot.slane %v1129_v57, 5  ;;  %v616_v9 = vsel %vm14459_vm11, %v608_v30, %v615_v59  ;;  %900 = vst [vmem:[#allocation2 + $0x38] sm:$0x1] %v899_v38  ;;  %383 = vst [vmem:[#allocation2 + $0x44] sm:$0x1] %v382_v3  ;;  %v433_v59 = vld [vmem:[%s14393_s17 + $0x68] sm:$0xff] }
  0xcc   : > { %v11483_v10 = vcombine.low %v1098_v4, %v1108_v6  ;;  %v1116_v11 = vor.u32 %v1115_v0, %v1112_v63  ;;  %897 = vst.msk [vmem:[#allocation2 + $0x34] sm:$0xf] %vm298_vm0, %v616_v9  ;;  %v12202_v12 = vpack.c.bf16 %v429_v60, %v429_v60  ;;  %v619_v13 = vshrl.u32 %v14505_v58, 16  ;;  %13690 = vmatprep.subr.msk.bf16.mxu0 %vm1520_vm4, %v2141_v36  ;;  %v387_v49 = vld [vmem:[#allocation2 + $0x5c] sm:$0x1]  ;;  %s14057_s30 = scalar_lea.vmem %s18798_s11, 4096 }
  0xcd   : > { %v1127_v17 = vrot.slane %v1126_v7, 4  ;;  %v622_v18 = vshll.u32 %v14505_v58, 16  ;;  %v329_v19 = vsel %vm14412_vm5, 0, %v328_v61  ;;  %v385_v20 = vsel %vm14417_vm6, 0, %v384_v5  ;;  %v334_v3 = vld [vmem:[#allocation2 + $0x60] sm:$0x1]  ;;  %p14058_p3 = scmp.ne.s32.totalorder %s18798_s11, %s14057_s30 }
  0xce   : > { %12570 = vmatprep.mubr.msk.bf16.mxu0 %vm1471_vm12, %v11483_v10  ;;  %v1117_v21 = vrot.slane %v1116_v11, 4  ;;  %v621_v22 = vrot.slane %v619_v13, 7  ;;  %v627_v23 = vshrl.u32 %v12202_v12, 16  ;;  %v630_v25 = vshll.u32 %v12202_v12, 16  ;;  %330 = vst [vmem:[#allocation2 + $0x48] sm:$0x1] %v329_v19 }
  0xcf   : > { %386 = vst [vmem:[#allocation2 + $0x50] sm:$0x1] %v385_v20  ;;  %v1132_v26 = vsel %vm14466_vm13, %v1127_v17, %v1131_v8  ;;  %v993_v27 = vld [vmem:[#allocation2 + $0x30] sm:$0xf]  ;;  %v12203_v28 = vpack.c.bf16 %v430_v14, %v430_v14  ;;  %v14547_v29 = vpack.c.bf16 %v431_v15, %v431_v15  ;;  %v332_v30 = vsel %vm14412_vm5, 0, %v331_v16  ;;  %p14059_p5 = pnand %p14058_p3, %p14335_p10  ;;  %s14143_s9 = smov [#allocation12]  }
  0xd0   : > { %v901_v58 = vld [vmem:[#allocation2 + $0x3c] sm:$0xf]  ;;  %v1122_v32 = vsel %vm14466_vm13, %v1117_v21, %v1121_v54  ;;  %v1134_v33 = vshrl.u32 %v993_v27, 16  ;;  %v1137_v34 = vshll.u32 %v993_v27, 16  ;;  %v624_v35 = vor.u32 %v622_v18, %v621_v22  ;;  %333 = vst [vmem:[#allocation2 + $0x54] sm:$0x1] %v332_v30 }
  0xd1   : > { %v11484_v37 = vcombine.low %v1122_v32, %v1132_v26  ;;  %v625_v39 = vrot.slane %v621_v22, 4  ;;  %v629_v41 = vrot.slane %v627_v23, 7  ;;  %v636_v42 = vshrl.u32 %v12203_v28, 16  ;;  %v390_v13 = vld [vmem:[#allocation2 + $0x68] sm:$0x1]  ;;  %p14060_p7 = pneg %p14059_p5  ;;  %s14061_s10 = sshll.u32 %s14143_s9, 4  ;;  %s14062_s10 = int_to_ptr.vmem [resolvable:$false] %s14061_s10 }
  0xd2   : > { %v1022_v43 = vld [vmem:[#allocation2 + $0x38] sm:$0x1]  ;;  %v1136_v45 = vrot.slane %v1134_v33, 4  ;;  %v1139_v46 = vrot.slane %v1137_v34, 5  ;;  %v902_v47 = vsel %vm14451_vm9, %v624_v35, %v901_v58  ;;  %v905_v48 = vld [vmem:[#allocation2 + $0x44] sm:$0x1]  ;;  %v12205_v50 = vpack.c.bf16 %v432_v31, %v432_v31  ;;  %p14064_p12 = scmp.lt.s32.totalorder %s18798_s11, %s14062_s10 }
  0xd3   : > { %12571 = vmatmul.mubr.msk.bf16.gmra.mrb[4].mxu0 %vm1471_vm12, %v11484_v37  ;;  %v994_v24 = vld [vmem:[#allocation2 + $0x34] sm:$0xf]  ;;  %v1153_v52 = vshll.u32 %v1022_v43, 16  ;;  %v632_v4 = vor.u32 %v630_v25, %v629_v41  ;;  %v634_v51 = vrot.slane %v629_v41, 4  ;;  %903 = vst [vmem:[#allocation2 + $0x3c] sm:$0xf] %v902_v47  ;;  %v12206_v12 = vpack.c.bf16 %v433_v59, %v433_v59 }
  0xd4   : > { %v638_v53 = vrot.slane %v636_v42, 7  ;;  %v1140_v54 = vor.u32 %v1139_v46, %v1136_v45  ;;  %v1143_v55 = vshll.u32 %v994_v24, 16  ;;  %v1147_v56 = vshrl.u32 %v994_v24, 16  ;;  %v434_v33 = vld [vmem:[%s14393_s17 + $0x70] sm:$0xff]  ;;  %s14063_s12 = scalar_lea.vmem %s14062_s10, 8192 }
  0xd5   : > { %v639_v57 = vshll.u32 %v12203_v28, 16  ;;  %v1155_v60 = vrot.slane %v1153_v52, 5  ;;  %v633_v61 = vsel %vm14459_vm11, %v625_v39, %v632_v4  ;;  %v906_v63 = vsel %vm14412_vm5, %v634_v51, %v905_v48  ;;  %v908_v38 = vld [vmem:[#allocation2 + $0x48] sm:$0xf]  ;;  %p14065_p2 = scmp.lt.s32.totalorder %s14063_s12, %s14057_s30 }
  0xd6   : > { %v642_v0 = vrot.slane %v638_v53, 4  ;;  %v1141_v5 = vrot.slane %v1140_v54, 4  ;;  %v1145_v6 = vrot.slane %v1143_v55, 5  ;;  %v1149_v7 = vrot.slane %v1147_v56, 4  ;;  %904 = vst.msk [vmem:[#allocation2 + $0x40] sm:$0xf] %vm298_vm0, %v633_v61 }
  0xd7   : > { %907 = vst [vmem:[#allocation2 + $0x44] sm:$0x1] %v906_v63  ;;  %v641_v8 = vor.u32 %v639_v57, %v638_v53  ;;  %v644_v9 = vshrl.u32 %v14547_v29, 16  ;;  %v647_v10 = vshll.u32 %v14547_v29, 16  ;;  %v388_v11 = vsel %vm14417_vm6, 0, %v387_v49  ;;  %v435_v54 = vld [vmem:[%s14393_s17 + $0x78] sm:$0xff]  ;;  %p14066_p1 = por %p14065_p2, %p14064_p12 }
  0xd8   : > { %v1146_v14 = vsel %vm14466_vm13, %v1141_v5, %v1145_v6  ;;  %v1150_v15 = vor.u32 %v1149_v7, %v1145_v6  ;;  %389 = vst [vmem:[#allocation2 + $0x5c] sm:$0x1] %v388_v11  ;;  %v653_v17 = vshrl.u32 %v12205_v50, 16  ;;  %v912_v19 = vld [vmem:[#allocation2 + $0x50] sm:$0x1]  ;;  %v656_v20 = vshll.u32 %v12205_v50, 16 }
  0xd9   : > { %v909_v16 = vsel %vm14451_vm9, %v641_v8, %v908_v38  ;;  %v646_v18 = vrot.slane %v644_v9, 7  ;;  %v661_v21 = vshrl.u32 %v12206_v12, 16  ;;  %v664_v22 = vshll.u32 %v12206_v12, 16  ;;  %v915_v27 = vld [vmem:[#allocation2 + $0x54] sm:$0xf]  ;;  %p14067_p13 = pnand %p14066_p1, %p14060_p7 }
  0xda   : > { %910 = vst [vmem:[#allocation2 + $0x48] sm:$0xf] %v909_v16  ;;  %v1151_v23 = vrot.slane %v1150_v15, 4  ;;  %v995_v25 = vld [vmem:[#allocation2 + $0x3c] sm:$0xf]  ;;  %v655_v26 = vrot.slane %v653_v17, 7  ;;  %v12208_v6 = vpack.c.bf16 %v435_v54, %v435_v54 }
  0xdb   : > { %v335_v58 = vsel %vm14412_vm5, 0, %v334_v3  ;;  %v391_v28 = vsel %vm14417_vm6, 0, %v390_v13  ;;  %v1158_v29 = vshrl.u32 %v995_v25, 16  ;;  %v1161_v30 = vshll.u32 %v995_v25, 16  ;;  %v337_v8 = vld [vmem:[#allocation2 + $0x6c] sm:$0x1] }
  0xdc   : > { %v649_v31 = vor.u32 %v647_v10, %v646_v18  ;;  %v651_v32 = vrot.slane %v646_v18, 4  ;;  %336 = vst [vmem:[#allocation2 + $0x60] sm:$0x1] %v335_v58  ;;  %392 = vst [vmem:[#allocation2 + $0x68] sm:$0x1] %v391_v28  ;;  %v1156_v34 = vsel %vm14466_vm13, %v1151_v23, %v1155_v60  ;;  %v658_v35 = vor.u32 %v656_v20, %v655_v26  ;;  %v436_v10 = vld [vmem:[%s14393_s17 + $0x80] sm:$0xff] }
  0xdd   : > { %v659_v36 = vrot.slane %v655_v26, 4  ;;  %v663_v37 = vrot.slane %v661_v21, 7  ;;  %v11485_v39 = vcombine.low %v1146_v14, %v1156_v34  ;;  %v996_v41 = vld [vmem:[#allocation2 + $0x40] sm:$0xf]  ;;  %v1160_v43 = vrot.slane %v1158_v29, 4 }
  0xde   : > { %v1023_v42 = vld [vmem:[#allocation2 + $0x44] sm:$0x1]  ;;  %v1163_v45 = vrot.slane %v1161_v30, 5  ;;  %v650_v46 = vsel %vm14459_vm11, %v642_v0, %v649_v31  ;;  %v1167_v47 = vshll.u32 %v996_v41, 16  ;;  %v1171_v48 = vshrl.u32 %v996_v41, 16 }
  0xdf   : > { %v1177_v49 = vshll.u32 %v1023_v42, 16  ;;  %911 = vst.msk [vmem:[#allocation2 + $0x4c] sm:$0xf] %vm298_vm0, %v650_v46  ;;  %v913_v50 = vsel %vm14412_vm5, %v651_v32, %v912_v19  ;;  %12574 = vmatprep.mubr.msk.bf16.mxu0 %vm1471_vm12, %v11485_v39  ;;  %v666_v52 = vor.u32 %v664_v22, %v663_v37  ;;  %v668_v4 = vrot.slane %v663_v37, 4  ;;  %v919_v53 = vld [vmem:[#allocation2 + $0x5c] sm:$0x1] }
  0xe0   : > { %v1164_v24 = vor.u32 %v1163_v45, %v1160_v43  ;;  %914 = vst [vmem:[#allocation2 + $0x50] sm:$0x1] %v913_v50  ;;  %v916_v51 = vsel %vm14451_vm9, %v658_v35, %v915_v27  ;;  %v1169_v55 = vrot.slane %v1167_v47, 5  ;;  %v1173_v56 = vrot.slane %v1171_v48, 4  ;;  %v393_v9 = vld [vmem:[#allocation2 + $0x74] sm:$0x1] }
  0xe1   : > { %v1179_v57 = vrot.slane %v1177_v49, 5  ;;  %v14588_v59 = vld [vmem:[#allocation2 + $0x48] sm:$0xf]  ;;  %917 = vst [vmem:[#allocation2 + $0x54] sm:$0xf] %v916_v51  ;;  %v12207_v60 = vpack.c.bf16 %v434_v33, %v434_v33  ;;  %v667_v38 = vsel %vm14459_vm11, %v659_v36, %v666_v52  ;;  %v920_v5 = vsel %vm14412_vm5, %v668_v4, %v919_v53  ;;  %v437_v20 = vld [vmem:[%s14393_s17 + $0x88] sm:$0xff] }
  0xe2   : > { %v1165_v61 = vrot.slane %v1164_v24, 4  ;;  %v1182_v63 = vshrl.u32 %v14588_v59, 16  ;;  %v1185_v0 = vshll.u32 %v14588_v59, 16  ;;  %v1174_v3 = vor.u32 %v1173_v56, %v1169_v55  ;;  %918 = vst.msk [vmem:[#allocation2 + $0x58] sm:$0xf] %vm298_vm0, %v667_v38 }
  0xe3   : > { %v670_v7 = vshrl.u32 %v12207_v60, 16  ;;  %921 = vst [vmem:[#allocation2 + $0x5c] sm:$0x1] %v920_v5  ;;  %v673_v14 = vshll.u32 %v12207_v60, 16  ;;  %v678_v17 = vshrl.u32 %v12208_v6, 16  ;;  %v681_v18 = vshll.u32 %v12208_v6, 16 }
  0xe4   : > { %v1170_v11 = vsel %vm14466_vm13, %v1165_v61, %v1169_v55  ;;  %v1184_v12 = vrot.slane %v1182_v63, 4  ;;  %v1187_v13 = vrot.slane %v1185_v0, 5  ;;  %v1175_v15 = vrot.slane %v1174_v3, 4  ;;  %v922_v19 = vld [vmem:[#allocation2 + $0x60] sm:$0xf] }
  0xe5   : > { %v672_v16 = vrot.slane %v670_v7, 7  ;;  %v338_v23 = vsel %vm14412_vm5, 0, %v337_v8  ;;  %v394_v25 = vsel %vm14417_vm6, 0, %v393_v9  ;;  %v14607_v26 = vpack.c.bf16 %v436_v10, %v436_v10  ;;  %v926_v47 = vld [vmem:[#allocation2 + $0x68] sm:$0x1]  ;;  %v439_v8 = vld [vmem:[%s14393_s17 + $0x98] sm:$0xff] }
  0xe6   : > { %v14601_v21 = vld [vmem:[#allocation2 + $0x4c] sm:$0xf]  ;;  %v1188_v22 = vor.u32 %v1187_v13, %v1184_v12  ;;  %v1180_v27 = vsel %vm14466_vm13, %v1175_v15, %v1179_v57  ;;  %339 = vst [vmem:[#allocation2 + $0x6c] sm:$0x1] %v338_v23  ;;  %395 = vst [vmem:[#allocation2 + $0x74] sm:$0x1] %v394_v25  ;;  %v12210_v48 = vpack.c.bf16 %v437_v20, %v437_v20 }
  0xe7   : > { %v1024_v58 = vld [vmem:[#allocation2 + $0x50] sm:$0x1]  ;;  %v1191_v28 = vshll.u32 %v14601_v21, 16  ;;  %v1195_v29 = vshrl.u32 %v14601_v21, 16  ;;  %v675_v30 = vor.u32 %v673_v14, %v672_v16  ;;  %v11486_v31 = vcombine.low %v1170_v11, %v1180_v27  ;;  %v340_v56 = vld [vmem:[#allocation2 + $0x78] sm:$0x1] }
  0xe8   : > { %v1189_v32 = vrot.slane %v1188_v22, 4  ;;  %v1201_v33 = vshll.u32 %v1024_v58, 16  ;;  %v14613_v34 = vld [vmem:[#allocation2 + $0x54] sm:$0xf]  ;;  %v676_v35 = vrot.slane %v672_v16, 4  ;;  %v680_v45 = vrot.slane %v678_v17, 7 }
  0xe9   : > { %v1193_v36 = vrot.slane %v1191_v28, 5  ;;  %v1197_v37 = vrot.slane %v1195_v29, 4  ;;  %v1206_v39 = vshrl.u32 %v14613_v34, 16  ;;  %v1209_v41 = vshll.u32 %v14613_v34, 16  ;;  %12575 = vmatmul.mubr.msk.bf16.gmra.mrb[8].mxu0 %vm1471_vm12, %v11486_v31  ;;  %v14618_v43 = vld [vmem:[#allocation2 + $0x58] sm:$0xf] }
  0xea   : > { %v1203_v42 = vrot.slane %v1201_v33, 5  ;;  %v923_v46 = vsel %vm14451_vm9, %v675_v30, %v922_v19  ;;  %v1025_v24 = vld [vmem:[#allocation2 + $0x5c] sm:$0x1]  ;;  %v1215_v51 = vshll.u32 %v14618_v43, 16  ;;  %v1219_v53 = vshrl.u32 %v14618_v43, 16  ;;  %v438_v7 = vld [vmem:[%s14393_s17 + $0x90] sm:$0xff] }
  0xeb   : > { %v1194_v49 = vsel %vm14466_vm13, %v1189_v32, %v1193_v36  ;;  %v1198_v50 = vor.u32 %v1197_v37, %v1193_v36  ;;  %v1208_v52 = vrot.slane %v1206_v39, 4  ;;  %v1211_v4 = vrot.slane %v1209_v41, 5  ;;  %924 = vst [vmem:[#allocation2 + $0x60] sm:$0xf] %v923_v46  ;;  %v396_v6 = vld [vmem:[#allocation2 + $0x80] sm:$0x1] }
  0xec   : > { %v1225_v54 = vshll.u32 %v1025_v24, 16  ;;  %v683_v55 = vor.u32 %v681_v18, %v680_v45  ;;  %v685_v61 = vrot.slane %v680_v45, 4  ;;  %v687_v63 = vshrl.u32 %v14607_v26, 16  ;;  %v343_v33 = vld [vmem:[#allocation2 + $0x84] sm:$0x1] }
  0xed   : > { %v1199_v57 = vrot.slane %v1198_v50, 4  ;;  %v1212_v60 = vor.u32 %v1211_v4, %v1208_v52  ;;  %v1217_v0 = vrot.slane %v1215_v51, 5  ;;  %v1221_v38 = vrot.slane %v1219_v53, 4  ;;  %v929_v13 = vld [vmem:[#allocation2 + $0x6c] sm:$0xf] }
  0xee   : > { %v1227_v3 = vrot.slane %v1225_v54, 5  ;;  %v684_v5 = vsel %vm14459_vm11, %v676_v35, %v683_v55  ;;  %v927_v11 = vsel %vm14412_vm5, %v685_v61, %v926_v47  ;;  %v689_v12 = vrot.slane %v687_v63, 7  ;;  %v933_v22 = vld [vmem:[#allocation2 + $0x74] sm:$0x1]  ;;  %v399_v52 = vld [vmem:[#allocation2 + $0x8c] sm:$0x1] }
  0xef   : > { %v1204_v9 = vsel %vm14466_vm13, %v1199_v57, %v1203_v42  ;;  %v1213_v10 = vrot.slane %v1212_v60, 4  ;;  %925 = vst.msk [vmem:[#allocation2 + $0x64] sm:$0xf] %vm298_vm0, %v684_v5  ;;  %v1222_v15 = vor.u32 %v1221_v38, %v1217_v0  ;;  %928 = vst [vmem:[#allocation2 + $0x68] sm:$0x1] %v927_v11  ;;  %v690_v16 = vshll.u32 %v14607_v26, 16 }
  0xf0   : > { %v11487_v14 = vcombine.low %v1194_v49, %v1204_v9  ;;  %v695_v17 = vshrl.u32 %v12210_v48, 16  ;;  %v693_v19 = vrot.slane %v689_v12, 4  ;;  %v698_v20 = vshll.u32 %v12210_v48, 16 }
  0xf1   : > { %v1218_v18 = vsel %vm14466_vm13, %v1213_v10, %v1217_v0  ;;  %v341_v23 = vsel %vm14412_vm5, 0, %v340_v56  ;;  %v1223_v25 = vrot.slane %v1222_v15, 4  ;;  %v692_v58 = vor.u32 %v690_v16, %v689_v12  ;;  %v440_v56 = vld [vmem:[%s14393_s17 + $0xa0] sm:$0xff]  ;;  %v346_v0 = vld [vmem:[#allocation2 + $0x90] sm:$0x1] }
  0xf2   : > { %12578 = vmatprep.mubr.msk.bf16.mxu0 %vm1471_vm12, %v11487_v14  ;;  %v14642_v27 = vld [vmem:[#allocation2 + $0x60] sm:$0xf]  ;;  %v697_v28 = vrot.slane %v695_v17, 7  ;;  %342 = vst [vmem:[#allocation2 + $0x78] sm:$0x1] %v341_v23  ;;  %v397_v26 = vsel %vm14417_vm6, 0, %v396_v6  ;;  %v12211_v31 = vpack.c.bf16 %v438_v7, %v438_v7  ;;  %v12212_v32 = vpack.c.bf16 %v439_v8, %v439_v8 }
  0xf3   : > { %v1230_v29 = vshrl.u32 %v14642_v27, 16  ;;  %v1233_v30 = vshll.u32 %v14642_v27, 16  ;;  %398 = vst [vmem:[#allocation2 + $0x80] sm:$0x1] %v397_v26  ;;  %v1228_v35 = vsel %vm14466_vm13, %v1223_v25, %v1227_v3  ;;  %v930_v39 = vsel %vm14451_vm9, %v692_v58, %v929_v13  ;;  %v441_v8 = vld [vmem:[%s14393_s17 + $0xa8] sm:$0xff] }
  0xf4   : > { %v700_v36 = vor.u32 %v698_v20, %v697_v28  ;;  %v702_v37 = vrot.slane %v697_v28, 4  ;;  %v11488_v41 = vcombine.low %v1218_v18, %v1228_v35  ;;  %931 = vst [vmem:[#allocation2 + $0x6c] sm:$0xf] %v930_v39  ;;  %v704_v46 = vshrl.u32 %v12211_v31, 16  ;;  %v442_v18 = vld [vmem:[%s14393_s17 + $0xb0] sm:$0xff] }
  0xf5   : > { %v1232_v42 = vrot.slane %v1230_v29, 4  ;;  %v1235_v45 = vrot.slane %v1233_v30, 5  ;;  %v707_v50 = vshll.u32 %v12211_v31, 16  ;;  %v712_v24 = vshrl.u32 %v12212_v32, 16 }
  0xf6   : > { %v14652_v47 = vld [vmem:[#allocation2 + $0x64] sm:$0xf]  ;;  %v701_v48 = vsel %vm14459_vm11, %v693_v19, %v700_v36  ;;  %v934_v49 = vsel %vm14412_vm5, %v702_v37, %v933_v22  ;;  %12579 = vmatmul.mubr.msk.bf16.gmra.mrb[12].mxu0 %vm1471_vm12, %v11488_v41  ;;  %v14659_v4 = vld [vmem:[#allocation2 + $0x68] sm:$0x1]  ;;  %v706_v55 = vrot.slane %v704_v46, 7  ;;  %v715_v61 = vshll.u32 %v12212_v32, 16 }
  0xf7   : > { %v1236_v51 = vor.u32 %v1235_v45, %v1232_v42  ;;  %v1239_v53 = vshll.u32 %v14652_v47, 16  ;;  %v1243_v54 = vshrl.u32 %v14652_v47, 16  ;;  %932 = vst.msk [vmem:[#allocation2 + $0x70] sm:$0xf] %vm298_vm0, %v701_v48  ;;  %935 = vst [vmem:[#allocation2 + $0x74] sm:$0x1] %v934_v49  ;;  %v12213_v25 = vpack.c.bf16 %v440_v56, %v440_v56 }
  0xf8   : > { %v1249_v57 = vshll.u32 %v14659_v4, 16  ;;  %v714_v60 = vrot.slane %v712_v24, 7  ;;  %v344_v63 = vsel %vm14412_vm5, 0, %v343_v33  ;;  %v709_v6 = vor.u32 %v707_v50, %v706_v55  ;;  %v443_v19 = vld [vmem:[%s14393_s17 + $0xb8] sm:$0xff]  ;;  %v444_v24 = vld [vmem:[%s14393_s17 + $0xc0] sm:$0xff] }
  0xf9   : > { %v1237_v38 = vrot.slane %v1236_v51, 4  ;;  %v1241_v3 = vrot.slane %v1239_v53, 5  ;;  %v1245_v5 = vrot.slane %v1243_v54, 4  ;;  %v936_v7 = vld [vmem:[#allocation2 + $0x78] sm:$0xf]  ;;  %v710_v10 = vrot.slane %v706_v55, 4 }
  0xfa   : > { %345 = vst [vmem:[#allocation2 + $0x84] sm:$0x1] %v344_v63  ;;  %v1251_v9 = vrot.slane %v1249_v57, 5  ;;  %v717_v11 = vor.u32 %v715_v61, %v714_v60  ;;  %v719_v12 = vrot.slane %v714_v60, 4  ;;  %v940_v13 = vld [vmem:[#allocation2 + $0x80] sm:$0x1]  ;;  %v937_v16 = vsel %vm14451_vm9, %v709_v6, %v936_v7 }
  0xfb   : > { %v1242_v14 = vsel %vm14466_vm13, %v1237_v38, %v1241_v3  ;;  %v1246_v15 = vor.u32 %v1245_v5, %v1241_v3  ;;  %v400_v17 = vsel %vm14417_vm6, 0, %v399_v52  ;;  %v14677_v20 = vld [vmem:[#allocation2 + $0x6c] sm:$0xf]  ;;  %938 = vst [vmem:[#allocation2 + $0x78] sm:$0xf] %v937_v16  ;;  %v12214_v58 = vpack.c.bf16 %v441_v8, %v441_v8  ;;  %v445_v52 = vld [vmem:[%s14393_s17 + $0xc8] sm:$0xff] }
  0xfc   : > { %v718_v22 = vsel %vm14459_vm11, %v710_v10, %v717_v11  ;;  %v941_v23 = vsel %vm14412_vm5, %v719_v12, %v940_v13  ;;  %401 = vst [vmem:[#allocation2 + $0x8c] sm:$0x1] %v400_v17  ;;  %v1254_v26 = vshrl.u32 %v14677_v20, 16  ;;  %v1257_v29 = vshll.u32 %v14677_v20, 16  ;;  %v402_v5 = vld [vmem:[#allocation2 + $0x98] sm:$0x1] }
  0xfd   : > { %v1247_v28 = vrot.slane %v1246_v15, 4  ;;  %939 = vst.msk [vmem:[#allocation2 + $0x7c] sm:$0xf] %vm298_vm0, %v718_v22  ;;  %942 = vst [vmem:[#allocation2 + $0x80] sm:$0x1] %v941_v23  ;;  %v347_v30 = vsel %vm14412_vm5, 0, %v346_v0  ;;  %v14692_v36 = vpack.c.bf16 %v442_v18, %v442_v18  ;;  %v14694_v37 = vpack.c.bf16 %v443_v19, %v443_v19 }
  0xfe   : > { %v14688_v31 = vld [vmem:[#allocation2 + $0x70] sm:$0xf]  ;;  %v14690_v32 = vld [vmem:[#allocation2 + $0x74] sm:$0x1]  ;;  %v721_v33 = vshrl.u32 %v12213_v25, 16  ;;  %v724_v35 = vshll.u32 %v12213_v25, 16  ;;  %v14706_v6 = vpack.c.bf16 %v444_v24, %v444_v24  ;;  %v14708_v7 = vpack.c.bf16 %v445_v52, %v445_v52 }
  0xff   : > { %348 = vst [vmem:[#allocation2 + $0x90] sm:$0x1] %v347_v30  ;;  %v1252_v39 = vsel %vm14466_vm13, %v1247_v28, %v1251_v9  ;;  %v1256_v41 = vrot.slane %v1254_v26, 4  ;;  %v1259_v42 = vrot.slane %v1257_v29, 5  ;;  %v1263_v45 = vshll.u32 %v14688_v31, 16 }
 0x100   : > { %v11489_v46 = vcombine.low %v1242_v14, %v1252_v39  ;;  %v1267_v48 = vshrl.u32 %v14688_v31, 16  ;;  %v1273_v49 = vshll.u32 %v14690_v32, 16  ;;  %v723_v50 = vrot.slane %v721_v33, 7  ;;  %v349_v30 = vld [vmem:[#allocation2 + $0x9c] sm:$0x1] }
 0x101   : > { %v1260_v51 = vor.u32 %v1259_v42, %v1256_v41  ;;  %v1265_v53 = vrot.slane %v1263_v45, 5  ;;  %v729_v54 = vshrl.u32 %v12214_v58, 16  ;;  %v732_v55 = vshll.u32 %v12214_v58, 16  ;;  %v943_v56 = vld [vmem:[#allocation2 + $0x84] sm:$0xf] }
 0x102   : > { %12582 = vmatprep.mubr.msk.bf16.mxu0 %vm1471_vm12, %v11489_v46  ;;  %v1269_v57 = vrot.slane %v1267_v48, 4  ;;  %v1275_v60 = vrot.slane %v1273_v49, 5  ;;  %v726_v61 = vor.u32 %v724_v35, %v723_v50  ;;  %v727_v63 = vrot.slane %v723_v50, 4  ;;  %v14704_v38 = vld [vmem:[#allocation2 + $0x78] sm:$0xf] }
 0x103   : > { %v1261_v0 = vrot.slane %v1260_v51, 4  ;;  %v731_v3 = vrot.slane %v729_v54, 7  ;;  %v1278_v11 = vshrl.u32 %v14704_v38, 16  ;;  %v1281_v12 = vshll.u32 %v14704_v38, 16  ;;  %v947_v18 = vld [vmem:[#allocation2 + $0x8c] sm:$0x1] }
 0x104   : > { %v1270_v8 = vor.u32 %v1269_v57, %v1265_v53  ;;  %v14710_v9 = vld [vmem:[#allocation2 + $0x7c] sm:$0xf]  ;;  %v14712_v10 = vld [vmem:[#allocation2 + $0x80] sm:$0x1]  ;;  %v944_v13 = vsel %vm14451_vm9, %v726_v61, %v943_v56  ;;  %v403_v41 = vsel %vm14417_vm6, 0, %v402_v5  ;;  %v738_v49 = vshrl.u32 %v14692_v36, 16 }
 0x105   : > { %v1266_v14 = vsel %vm14466_vm13, %v1261_v0, %v1265_v53  ;;  %v1287_v15 = vshll.u32 %v14710_v9, 16  ;;  %v1291_v16 = vshrl.u32 %v14710_v9, 16  ;;  %v1297_v17 = vshll.u32 %v14712_v10, 16  ;;  %945 = vst [vmem:[#allocation2 + $0x84] sm:$0xf] %v944_v13  ;;  %v446_v0 = vld [vmem:[%s14393_s17 + $0xd0] sm:$0xff] }
 0x106   : > { %v1271_v19 = vrot.slane %v1270_v8, 4  ;;  %v1280_v22 = vrot.slane %v1278_v11, 4  ;;  %v1283_v23 = vrot.slane %v1281_v12, 5  ;;  %v734_v25 = vor.u32 %v732_v55, %v731_v3  ;;  %v405_v42 = vld [vmem:[#allocation2 + $0xa4] sm:$0x1] }
 0x107   : > { %v1289_v58 = vrot.slane %v1287_v15, 5  ;;  %v1293_v28 = vrot.slane %v1291_v16, 4  ;;  %v1299_v26 = vrot.slane %v1297_v17, 5  ;;  %v736_v29 = vrot.slane %v731_v3, 4  ;;  %404 = vst [vmem:[#allocation2 + $0x98] sm:$0x1] %v403_v41 }
 0x108   : > { %v1276_v33 = vsel %vm14466_vm13, %v1271_v19, %v1275_v60  ;;  %v1284_v35 = vor.u32 %v1283_v23, %v1280_v22  ;;  %v735_v39 = vsel %vm14459_vm11, %v727_v63, %v734_v25  ;;  %v741_v24 = vshll.u32 %v14692_v36, 16  ;;  %v950_v53 = vld [vmem:[#allocation2 + $0x90] sm:$0xf] }
 0x109   : > { %v11490_v45 = vcombine.low %v1266_v14, %v1276_v33  ;;  %v1294_v46 = vor.u32 %v1293_v28, %v1289_v58  ;;  %946 = vst.msk [vmem:[#allocation2 + $0x88] sm:$0xf] %vm298_vm0, %v735_v39  ;;  %v948_v48 = vsel %vm14412_vm5, %v736_v29, %v947_v18  ;;  %v746_v52 = vshrl.u32 %v14694_v37, 16 }
 0x10a   : > { %v1285_v50 = vrot.slane %v1284_v35, 4  ;;  %949 = vst [vmem:[#allocation2 + $0x8c] sm:$0x1] %v948_v48  ;;  %v749_v51 = vshll.u32 %v14694_v37, 16  ;;  %v740_v55 = vrot.slane %v738_v49, 7  ;;  %v350_v56 = vsel %vm14412_vm5, 0, %v349_v30 }
 0x10b   : > { %12583 = vmatmul.mubr.msk.bf16.gmra.mrb[16].mxu0 %vm1471_vm12, %v11490_v45  ;;  %v1295_v54 = vrot.slane %v1294_v46, 4  ;;  %v406_v57 = vsel %vm14417_vm6, 0, %v405_v42  ;;  %v748_v61 = vrot.slane %v746_v52, 7  ;;  %351 = vst [vmem:[#allocation2 + $0x9c] sm:$0x1] %v350_v56  ;;  %v755_v37 = vshrl.u32 %v14706_v6, 16 }
 0x10c   : > { %v1290_v60 = vsel %vm14466_vm13, %v1285_v50, %v1289_v58  ;;  %v14743_v36 = vld [vmem:[#allocation2 + $0x84] sm:$0xf]  ;;  %407 = vst [vmem:[#allocation2 + $0xa4] sm:$0x1] %v406_v57  ;;  %v758_v63 = vshll.u32 %v14706_v6, 16  ;;  %v743_v11 = vor.u32 %v741_v24, %v740_v55  ;;  %v744_v13 = vrot.slane %v740_v55, 4 }
 0x10d   : > { %v1300_v3 = vsel %vm14466_vm13, %v1295_v54, %v1299_v26  ;;  %v1302_v5 = vshrl.u32 %v14743_v36, 16  ;;  %v1305_v8 = vshll.u32 %v14743_v36, 16  ;;  %v751_v14 = vor.u32 %v749_v51, %v748_v61  ;;  %v352_v6 = vld [vmem:[#allocation2 + $0xa8] sm:$0x1]  ;;  %v408_v26 = vld [vmem:[#allocation2 + $0xb0] sm:$0x1] }
 0x10e   : > { %v11491_v12 = vcombine.low %v1290_v60, %v1300_v3  ;;  %v753_v15 = vrot.slane %v748_v61, 4  ;;  %v951_v18 = vsel %vm14451_vm9, %v743_v11, %v950_v53  ;;  %v757_v19 = vrot.slane %v755_v37, 7  ;;  %v954_v25 = vld [vmem:[#allocation2 + $0x98] sm:$0x1]  ;;  %v447_v48 = vld [vmem:[%s14393_s17 + $0xd8] sm:$0xff] }
 0x10f   : > { %v1304_v16 = vrot.slane %v1302_v5, 4  ;;  %v1307_v17 = vrot.slane %v1305_v8, 5  ;;  %v752_v23 = vsel %vm14459_vm11, %v744_v13, %v751_v14  ;;  %952 = vst [vmem:[#allocation2 + $0x90] sm:$0xf] %v951_v18  ;;  %v763_v58 = vshrl.u32 %v14708_v7, 16 }
 0x110   : > { %12586 = vmatprep.mubr.msk.bf16.mxu0 %vm1471_vm12, %v11491_v12  ;;  %v14755_v22 = vld [vmem:[#allocation2 + $0x88] sm:$0xf]  ;;  %v766_v28 = vshll.u32 %v14708_v7, 16  ;;  %v14761_v29 = vpack.c.bf16 %v446_v0, %v446_v0  ;;  %953 = vst.msk [vmem:[#allocation2 + $0x94] sm:$0xf] %vm298_vm0, %v752_v23  ;;  %v955_v41 = vsel %vm14412_vm5, %v753_v15, %v954_v25  ;;  %v760_v45 = vor.u32 %v758_v63, %v757_v19 }
 0x111   : > { %v14763_v30 = vld [vmem:[#allocation2 + $0x8c] sm:$0x1]  ;;  %v1308_v33 = vor.u32 %v1307_v17, %v1304_v16  ;;  %v1311_v35 = vshll.u32 %v14755_v22, 16  ;;  %v1315_v39 = vshrl.u32 %v14755_v22, 16  ;;  %956 = vst [vmem:[#allocation2 + $0x98] sm:$0x1] %v955_v41  ;;  %v12220_v0 = vpack.c.bf16 %v447_v48, %v447_v48 }
 0x112   : > { %v1321_v42 = vshll.u32 %v14763_v30, 16  ;;  %v761_v7 = vrot.slane %v757_v19, 4  ;;  %v765_v46 = vrot.slane %v763_v58, 7  ;;  %v957_v52 = vld [vmem:[#allocation2 + $0x9c] sm:$0xf]  ;;  %v353_v51 = vsel %vm14412_vm5, 0, %v352_v6 }
 0x113   : > { %v1309_v49 = vrot.slane %v1308_v33, 4  ;;  %v1313_v50 = vrot.slane %v1311_v35, 5  ;;  %v1317_v24 = vrot.slane %v1315_v39, 4  ;;  %v958_v56 = vsel %vm14451_vm9, %v760_v45, %v957_v52  ;;  %v961_v57 = vld [vmem:[#allocation2 + $0xa4] sm:$0x1]  ;;  %v448_v45 = vld [vmem:[%s14393_s17 + $0xe0] sm:$0xff] }
 0x114   : > { %v1323_v53 = vrot.slane %v1321_v42, 5  ;;  %v768_v54 = vor.u32 %v766_v28, %v765_v46  ;;  %v770_v55 = vrot.slane %v765_v46, 4  ;;  %354 = vst [vmem:[#allocation2 + $0xa8] sm:$0x1] %v353_v51  ;;  %v355_v60 = vld [vmem:[#allocation2 + $0xb4] sm:$0x1] }
 0x115   : > { %v1314_v61 = vsel %vm14466_vm13, %v1309_v49, %v1313_v50  ;;  %v1318_v37 = vor.u32 %v1317_v24, %v1313_v50  ;;  %959 = vst [vmem:[#allocation2 + $0x9c] sm:$0xf] %v958_v56  ;;  %v409_v63 = vsel %vm14417_vm6, 0, %v408_v26  ;;  %v411_v3 = vld [vmem:[#allocation2 + $0xbc] sm:$0x1]  ;;  %v772_v11 = vshrl.u32 %v14761_v29, 16 }
 0x116   : > { %v769_v5 = vsel %vm14459_vm11, %v761_v7, %v768_v54  ;;  %v962_v8 = vsel %vm14412_vm5, %v770_v55, %v961_v57  ;;  %410 = vst [vmem:[#allocation2 + $0xb0] sm:$0x1] %v409_v63  ;;  %v775_v12 = vshll.u32 %v14761_v29, 16  ;;  %v14786_v14 = vld [vmem:[#allocation2 + $0x90] sm:$0xf]  ;;  %v780_v15 = vshrl.u32 %v12220_v0, 16 }
 0x117   : > { %v1319_v13 = vrot.slane %v1318_v37, 4  ;;  %960 = vst.msk [vmem:[#allocation2 + $0xa0] sm:$0xf] %vm298_vm0, %v769_v5  ;;  %963 = vst [vmem:[#allocation2 + $0xa4] sm:$0x1] %v962_v8  ;;  %v783_v16 = vshll.u32 %v12220_v0, 16 }
 0x118   : > { %v356_v17 = vsel %vm14412_vm5, 0, %v355_v60  ;;  %v14791_v18 = vld [vmem:[#allocation2 + $0x94] sm:$0xf]  ;;  %v1326_v19 = vshrl.u32 %v14786_v14, 16  ;;  %v1329_v6 = vshll.u32 %v14786_v14, 16  ;;  %v774_v23 = vrot.slane %v772_v11, 7 }
 0x119   : > { %357 = vst [vmem:[#allocation2 + $0xb4] sm:$0x1] %v356_v17  ;;  %v412_v25 = vsel %vm14417_vm6, 0, %v411_v3  ;;  %v1324_v58 = vsel %vm14466_vm13, %v1319_v13, %v1323_v53  ;;  %v14799_v28 = vld [vmem:[#allocation2 + $0x98] sm:$0x1]  ;;  %v1335_v26 = vshll.u32 %v14791_v18, 16  ;;  %v12221_v11 = vpack.c.bf16 %v448_v45, %v448_v45 }
 0x11a   : > { %v1339_v29 = vshrl.u32 %v14791_v18, 16  ;;  %v782_v33 = vrot.slane %v780_v15, 7  ;;  %413 = vst [vmem:[#allocation2 + $0xbc] sm:$0x1] %v412_v25  ;;  %v11492_v35 = vcombine.low %v1314_v61, %v1324_v58  ;;  %v1328_v39 = vrot.slane %v1326_v19, 4  ;;  %v449_v24 = vld [vmem:[%s14393_s17 + $0xe8] sm:$0xff] }
 0x11b   : > { %v1331_v41 = vrot.slane %v1329_v6, 5  ;;  %v1345_v42 = vshll.u32 %v14799_v28, 16  ;;  %v1337_v7 = vrot.slane %v1335_v26, 5  ;;  %v777_v48 = vor.u32 %v775_v12, %v774_v23  ;;  %v964_v50 = vld [vmem:[#allocation2 + $0xa8] sm:$0xf] }
 0x11c   : > { %v1341_v46 = vrot.slane %v1339_v29, 4  ;;  %v778_v49 = vrot.slane %v774_v23, 4  ;;  %12587 = vmatmul.mubr.msk.bf16.gmra.mrb[20].mxu0 %vm1471_vm12, %v11492_v35  ;;  %v14807_v53 = vld [vmem:[#allocation2 + $0x9c] sm:$0xf]  ;;  %v785_v54 = vor.u32 %v783_v16, %v782_v33  ;;  %v787_v55 = vrot.slane %v782_v33, 4 }
 0x11d   : > { %v1332_v52 = vor.u32 %v1331_v41, %v1328_v39  ;;  %v1347_v51 = vrot.slane %v1345_v42, 5  ;;  %v1350_v57 = vshrl.u32 %v14807_v53, 16  ;;  %v1353_v60 = vshll.u32 %v14807_v53, 16  ;;  %v968_v37 = vld [vmem:[#allocation2 + $0xb0] sm:$0x1] }
 0x11e   : > { %v1342_v56 = vor.u32 %v1341_v46, %v1337_v7  ;;  %v965_v61 = vsel %vm14451_vm9, %v777_v48, %v964_v50  ;;  %v14813_v0 = vld [vmem:[#allocation2 + $0xa0] sm:$0xf]  ;;  %v14815_v3 = vld [vmem:[#allocation2 + $0xa4] sm:$0x1]  ;;  %v786_v5 = vsel %vm14459_vm11, %v778_v49, %v785_v54  ;;  %v969_v8 = vsel %vm14412_vm5, %v787_v55, %v968_v37 }
 0x11f   : > { %v1333_v63 = vrot.slane %v1332_v52, 4  ;;  %966 = vst [vmem:[#allocation2 + $0xa8] sm:$0xf] %v965_v61  ;;  %v1352_v13 = vrot.slane %v1350_v57, 4  ;;  %v1355_v15 = vrot.slane %v1353_v60, 5  ;;  %v1359_v16 = vshll.u32 %v14813_v0, 16 }
 0x120   : > { %v1343_v12 = vrot.slane %v1342_v56, 4  ;;  %967 = vst.msk [vmem:[#allocation2 + $0xac] sm:$0xf] %vm298_vm0, %v786_v5  ;;  %970 = vst [vmem:[#allocation2 + $0xb0] sm:$0x1] %v969_v8  ;;  %v1363_v19 = vshrl.u32 %v14813_v0, 16  ;;  %v12222_v23 = vpack.c.bf16 %v449_v24, %v449_v24 }
 0x121   : > { %v1338_v17 = vsel %vm14466_vm13, %v1333_v63, %v1337_v7  ;;  %v1369_v6 = vshll.u32 %v14815_v3, 16  ;;  %v1356_v58 = vor.u32 %v1355_v15, %v1352_v13  ;;  %v1361_v26 = vrot.slane %v1359_v16, 5  ;;  %v971_v52 = vld [vmem:[#allocation2 + $0xb4] sm:$0xf]  ;;  %v975_v8 = vld [vmem:[#allocation2 + $0xbc] sm:$0x1] }
 0x122   : > { %v1348_v25 = vsel %vm14466_vm13, %v1343_v12, %v1347_v51  ;;  %v789_v29 = vshrl.u32 %v12221_v11, 16  ;;  %v1365_v35 = vrot.slane %v1363_v19, 4  ;;  %v792_v39 = vshll.u32 %v12221_v11, 16 }
 0x123   : > { %v11493_v33 = vcombine.low %v1338_v17, %v1348_v25  ;;  %v1357_v41 = vrot.slane %v1356_v58, 4  ;;  %v797_v45 = vshrl.u32 %v12222_v23, 16  ;;  %v1371_v46 = vrot.slane %v1369_v6, 5 }
 0x124   : > { %v791_v42 = vrot.slane %v789_v29, 7  ;;  %v1366_v7 = vor.u32 %v1365_v35, %v1361_v26  ;;  %v800_v48 = vshll.u32 %v12222_v23, 16  ;;  %vm2025_vm14 = vcmask 1042432  }
 0x125   : > { %12590 = vmatprep.mubr.msk.bf16.mxu0 %vm1471_vm12, %v11493_v33  ;;  %v799_v24 = vrot.slane %v797_v45, 7  ;;  %v1362_v51 = vsel %vm14466_vm13, %v1357_v41, %v1361_v26  ;;  %vm2026_vm15 = vcmask 1046532  }
 0x126   : > { %v14830_v49 = vld [vmem:[#allocation2 + $0xa8] sm:$0xf]  ;;  %v795_v50 = vrot.slane %v791_v42, 4  ;;  %v1367_v54 = vrot.slane %v1366_v7, 4  ;;  %v794_v60 = vor.u32 %v792_v39, %v791_v42  ;;  %vm14940_vm1 = vmor %vm2025_vm14, %vm2026_vm15 }
 0x127   : > { %v14834_v55 = vld [vmem:[#allocation2 + $0xac] sm:$0xf]  ;;  %v14836_v56 = vld [vmem:[#allocation2 + $0xb0] sm:$0x1]  ;;  %v1374_v57 = vshrl.u32 %v14830_v49, 16  ;;  %v1377_v61 = vshll.u32 %v14830_v49, 16  ;;  %v802_v13 = vor.u32 %v800_v48, %v799_v24 }
 0x128   : > { %v1383_v37 = vshll.u32 %v14834_v55, 16  ;;  %v1387_v63 = vshrl.u32 %v14834_v55, 16  ;;  %v1393_v5 = vshll.u32 %v14836_v56, 16  ;;  %v1372_v11 = vsel %vm14466_vm13, %v1367_v54, %v1371_v46  ;;  %v2831_v40 = vld [vmem:[#allocation2 + $0xa8] sm:$0xf] }
 0x129   : > { %v1376_v12 = vrot.slane %v1374_v57, 4  ;;  %v804_v15 = vrot.slane %v799_v24, 4  ;;  %v11494_v16 = vcombine.low %v1362_v51, %v1372_v11  ;;  %v1379_v17 = vrot.slane %v1377_v61, 5  ;;  %v15301_v2 = vld [vmem:[#allocation2 + $0xb0] sm:$0x1] }
 0x12a   : > { %v1385_v19 = vrot.slane %v1383_v37, 5  ;;  %v1389_v6 = vrot.slane %v1387_v63, 4  ;;  %v803_v23 = vsel %vm14459_vm11, %v795_v50, %v802_v13  ;;  %v972_v25 = vsel %vm14451_vm9, %v794_v60, %v971_v52 }
 0x12b   : > { %v976_v58 = vsel %vm14412_vm5, %v804_v15, %v975_v8  ;;  %12591 = vmatmul.mubr.msk.bf16.gmra.mrb[24].mxu0 %vm1471_vm12, %v11494_v16  ;;  %v1380_v26 = vor.u32 %v1379_v17, %v1376_v12  ;;  %v1395_v33 = vrot.slane %v1393_v5, 5  ;;  %973 = vst [vmem:[#allocation2 + $0xb4] sm:$0xf] %v972_v25  ;;  %974 = vst.msk [vmem:[#allocation2 + $0xb8] sm:$0xf] %vm298_vm0, %v803_v23 }
 0x12c   : > { %v1390_v29 = vor.u32 %v1389_v6, %v1385_v19  ;;  %977 = vst [vmem:[#allocation2 + $0xbc] sm:$0x1] %v976_v58  ;;  %v14873_v16 = vld [vmem:[#allocation2 + $0x4] sm:$0xf]  ;;  %v13886_v17 = vld [vmem:[#allocation2] sm:$0xf] }
 0x12d   : > { %v1381_v35 = vrot.slane %v1380_v26, 4  ;;  %v13887_v23 = vld [vmem:[#allocation2 + $0xc] sm:$0xf]  ;;  %v14878_v25 = vld [vmem:[#allocation2 + $0x10] sm:$0xf] }
 0x12e   : > { %v1391_v39 = vrot.slane %v1390_v29, 4  ;;  %v11514_v58 = vcombine.low %v13887_v23, %v14878_v25  ;;  %v13889_v26 = vld [vmem:[#allocation2 + $0x18] sm:$0xf]  ;;  %v14881_v29 = vld [vmem:[#allocation2 + $0x1c] sm:$0xf] }
 0x12f   : > { %v1386_v41 = vsel %vm14466_vm13, %v1381_v35, %v1385_v19  ;;  %v11513_v19 = vcombine.low %v13886_v17, %v14873_v16  ;;  %v13891_v35 = vld [vmem:[#allocation6 + $0x4] sm:$0x3]  ;;  %v1977_v23 = vld [vmem:[#allocation2] sm:$0xe] }
 0x130   : > { %v1396_v42 = vsel %vm14466_vm13, %v1391_v39, %v1395_v33  ;;  %v11515_v33 = vcombine.low %v13889_v26, %v14881_v29  ;;  %v2239_v39 = vsel %vm1520_vm4, %v13891_v35, 0  ;;  %v13898_v35 = vld [vmem:[#allocation2 + $0x8] sm:$0x1] }
 0x131   : > { %v11495_v45 = vcombine.low %v1386_v41, %v1396_v42  ;;  %v14885_v41 = vld [vmem:[#allocation6 + $0x6] sm:$0x3]  ;;  %v14891_v42 = vld [vmem:[#allocation2 + $0x28] sm:$0xf] }
 0x132   : > { %v14858_v7 = vld [vmem:[#allocation2 + $0xb4] sm:$0xf]  ;;  %v14860_v46 = vld [vmem:[#allocation2 + $0xb8] sm:$0xf] }
 0x133   : > { %12594 = vmatprep.mubr.msk.bf16.mxu0 %vm1471_vm12, %v11495_v45  ;;  %v14862_v48 = vld [vmem:[#allocation2 + $0xbc] sm:$0x1]  ;;  %v1398_v50 = vshrl.u32 %v14858_v7, 16  ;;  %v1401_v24 = vshll.u32 %v14858_v7, 16  ;;  %v1407_v52 = vshll.u32 %v14860_v46, 16  ;;  %v1411_v51 = vshrl.u32 %v14860_v46, 16 }
 0x134   : > { %v1417_v54 = vshll.u32 %v14862_v48, 16  ;;  %v13893_v45 = vld [vmem:[#allocation2 + $0x24] sm:$0xf] }
 0x135   : > { %v1400_v57 = vrot.slane %v1398_v50, 4  ;;  %v1403_v60 = vrot.slane %v1401_v24, 5  ;;  %v1409_v61 = vrot.slane %v1407_v52, 5  ;;  %v1413_v37 = vrot.slane %v1411_v51, 4  ;;  %v13894_v24 = vld [vmem:[#allocation2 + $0x30] sm:$0xf] }
 0x136   : > { %v1419_v8 = vrot.slane %v1417_v54, 5  ;;  %v11516_v50 = vcombine.low %v13893_v45, %v14891_v42  ;;  %v14894_v52 = vld [vmem:[#allocation2 + $0x34] sm:$0xf]  ;;  %v13896_v54 = vld [vmem:[#allocation2 + $0x3c] sm:$0xf] }
 0x137   : > { %v1404_v63 = vor.u32 %v1403_v60, %v1400_v57  ;;  %v1414_v5 = vor.u32 %v1413_v37, %v1409_v61  ;;  %v11517_v51 = vcombine.low %v13894_v24, %v14894_v52  ;;  %v14899_v57 = vld [vmem:[#allocation2 + $0x40] sm:$0xf]  ;;  %v11520_v37 = vcombine.low %v14613_v34, %v14618_v43 }
 0x138   : > { %v11518_v60 = vcombine.low %v13896_v54, %v14899_v57  ;;  %v358_v34 = vld [vmem:[#allocation2 + $0xc0] sm:$0x1]  ;;  %v11525_v43 = vcombine.low %v14786_v14, %v14791_v18  ;;  %v19017_v54 = vmov 0 }
 0x139   : > { %v1405_v11 = vrot.slane %v1404_v63, 4  ;;  %v1415_v12 = vrot.slane %v1414_v5, 4  ;;  %v11521_v63 = vcombine.low %v14642_v27, %v14652_v47  ;;  %v11522_v5 = vcombine.low %v14677_v20, %v14688_v31 }
 0x13a   : > { %v359_v27 = vsel %vm14412_vm5, 0, %v358_v34  ;;  %v19018_v54 = vsel %vm14940_vm1, 4294967295, %v19017_v54  ;;  %v11528_v34 = vcombine.low %v14858_v7, %v14860_v46 }
 0x13b   : > { %v1410_v13 = vsel %vm14466_vm13, %v1405_v11, %v1409_v61  ;;  %v1420_v15 = vsel %vm14466_vm13, %v1415_v12, %v1419_v8  ;;  %v11519_v61 = vcombine.low %v14588_v59, %v14601_v21  ;;  %v11523_v59 = vcombine.low %v14704_v38, %v14710_v9  ;;  %v450_v8 = vld [vmem:[%s14393_s17 + $0xf0] sm:$0xff]  ;;  %v451_v11 = vld [vmem:[%s14393_s17 + $0xf8] sm:$0xff]  ;;  %360 = vst [vmem:[#allocation2 + $0xc0] sm:$0x1] %v359_v27 }
 0x13c   : > { %v11496_v6 = vcombine.low %v1410_v13, %v1420_v15  ;;  %v11524_v21 = vcombine.low %v14743_v36, %v14755_v22  ;;  %v12223_v20 = vpack.c.bf16 %v450_v8, %v450_v8  ;;  %v12224_v12 = vpack.c.bf16 %v451_v11, %v451_v11  ;;  %19019 = vst [vmem:[#allocation22_spill] sm:$0xff] %v19018_v54  ;;  %v6330_v54 = vld [vmem:[#allocation2 + $0x74] sm:$0x1] }
 0x13d   : > { %v2030_v36 = vrot.slane %v14873_v16, 5  ;;  %v11527_v16 = vcombine.low %v14830_v49, %v14834_v55  ;;  %v2037_v49 = vrot.slane %v14878_v25, 5 }
 0x13e   : > { %12595 = vmatmul.mubr.msk.bf16.gmra.mrb[28].mxu0 %vm1471_vm12, %v11496_v6  ;;  %v806_v38 = vshrl.u32 %v12223_v20, 16  ;;  %v814_v13 = vshrl.u32 %v12224_v12, 16  ;;  %v809_v17 = vshll.u32 %v12223_v20, 16  ;;  %v817_v14 = vshll.u32 %v12224_v12, 16  ;;  %v13900_v20 = vld [vmem:[#allocation2 + $0x20] sm:$0x1] }
 0x13f   : > { %12600 = vmatprep.mubr.msk.bf16.mxu0 %vm1471_vm12, %v11513_v19  ;;  %v11526_v6 = vcombine.low %v14807_v53, %v14813_v0  ;;  %v2032_v24 = vrot.slane %v2030_v36, 4  ;;  %v2039_v8 = vrot.slane %v2037_v49, 4  ;;  %v2047_v12 = vrot.slane %v13900_v20, 5 }
 0x140   : > { %v808_v15 = vrot.slane %v806_v38, 7  ;;  %v14929_v19 = vrot.slane %v814_v13, 7  ;;  %v2051_v13 = vrot.slane %v14891_v42, 5 }
 0x142   : > { %v812_v26 = vrot.slane %v808_v15, 4  ;;  %v978_v45 = vld [vmem:[#allocation2 + $0xc0] sm:$0xf] }
 0x146   : > { %12601 = vmatmul.mubr.msk.bf16.vlgmr.msra.gmra.mrb[0].mxu0 %vm1471_vm12, %v11514_v58  ;;  %v811_v58 = vor.u32 %v809_v17, %v808_v15  ;;  %v1980_v15 = vld [vmem:[#allocation2 + $0x24] sm:$0xe]  ;;  %v2058_v17 = vrot.slane %v14894_v52, 5 }
 0x147   : > { %12633 = vmatpush3.bf16.msra.mxu0 %v2239_v39  ;;  %12604 = vmatprep.mubr.msk.bf16.mxu0 %vm1471_vm12, %v11515_v33  ;;  %v819_v33 = vor.u32 %v817_v14, %v14929_v19  ;;  %v2033_v39 = vrot.slane %v13898_v35, 5  ;;  %v1981_v14 = vld [vmem:[#allocation2 + $0x30] sm:$0xe] }
 0x148   : > { %13691 = vmatprep.subr.msk.bf16.mxu0 %vm1520_vm4, %v14885_v41  ;;  %v979_v53 = vsel %vm14451_vm9, %v811_v58, %v978_v45  ;;  %v11548_v58 = vrot.slane %v1980_v15, 9  ;;  %v11549_v42 = vrot.slane %v1981_v14, 9  ;;  %v13902_v45 = vld [vmem:[#allocation2 + $0x38] sm:$0x1]  ;;  %v2086_v15 = vrot.slane %v14652_v47, 5 }
 0x149   : > { %980 = vst [vmem:[#allocation2 + $0xc0] sm:$0xf] %v979_v53  ;;  %v2065_v53 = vrot.slane %v14899_v57, 5 }
 0x14a   : > { %v2052_v52 = vsel %vm14940_vm1, %v11548_v58, %v2051_v13 }
 0x14e   : > { %12605 = vmatmul.mubr.msk.bf16.gmra.mrb[4].mxu0 %vm1471_vm12, %v11516_v50  ;;  %v11545_v50 = vrot.slane %v1977_v23, 9 }
 0x14f   : > { %12608 = vmatprep.mubr.msk.bf16.mxu0 %vm1471_vm12, %v11517_v51  ;;  %v820_v51 = vsel %vm14459_vm11, %v812_v26, %v819_v33  ;;  %v2053_v26 = vrot.slane %v2051_v13, 4  ;;  %v13901_v33 = vld [vmem:[#allocation2 + $0x2c] sm:$0x1] }
 0x150   : > { %981 = vst.msk [vmem:[#allocation2 + $0xc4] sm:$0xf] %vm298_vm0, %v820_v51  ;;  %v2054_v35 = vrot.slane %v13901_v33, 5 }
 0x152   : > { %v2055_v51 = vsel %vm14940_vm1, %v2053_v26, %v2054_v35  ;;  %v13907_v26 = vld [vmem:[#allocation2 + $0x5c] sm:$0x1] }
 0x153   : > { %v2082_v33 = vrot.slane %v13907_v26, 5 }
 0x156   : > { %12609 = vmatmul.mubr.msk.bf16.gmra.mrb[8].mxu0 %vm1471_vm12, %v11518_v60  ;;  %v2031_v60 = vsel %vm14940_vm1, %v11545_v50, %v2030_v36  ;;  %v2061_v50 = vrot.slane %v13902_v45, 5  ;;  %v2093_v45 = vrot.slane %v14688_v31, 5  ;;  %v2103_v31 = vrot.slane %v14712_v10, 5 }
 0x157   : > { %12612 = vmatprep.mubr.msk.bf16.mxu0 %vm1471_vm12, %v11519_v61  ;;  %v2034_v61 = vsel %vm14940_vm1, %v2032_v24, %v2033_v39  ;;  %v2597_v39 = vsel %vm1520_vm4, %v14885_v41, 0  ;;  %v14969_v24 = vld [vmem:[#allocation6 + $0x8] sm:$0x3]  ;;  %v2059_v41 = vsel %vm14940_vm1, %v11549_v42, %v2058_v17  ;;  %v2089_v42 = vrot.slane %v14659_v4, 5 }
 0x158   : > { %v2100_v4 = vrot.slane %v14710_v9, 5  ;;  %v2114_v10 = vrot.slane %v14791_v18, 5 }
 0x15e   : > { %12613 = vmatmul.mubr.msk.bf16.gmra.mrb[12].mxu0 %vm1471_vm12, %v11520_v37  ;;  %v1978_v37 = vld [vmem:[#allocation2 + $0xc] sm:$0xe] }
 0x15f   : > { %12616 = vmatprep.mubr.msk.bf16.mxu0 %vm1471_vm12, %v11521_v63  ;;  %v1979_v63 = vld [vmem:[#allocation2 + $0x18] sm:$0xe]  ;;  %v11546_v27 = vrot.slane %v1978_v37, 9 }
 0x160   : > { %v11547_v11 = vrot.slane %v1979_v63, 9  ;;  %v1983_v63 = vld [vmem:[#allocation2 + $0x48] sm:$0xe] }
 0x161   : > { %v2038_v38 = vsel %vm14940_vm1, %v11546_v27, %v2037_v49  ;;  %v11551_v57 = vrot.slane %v1983_v63, 9 }
 0x166   : > { %12617 = vmatmul.mubr.msk.bf16.gmra.mrb[16].mxu0 %vm1471_vm12, %v11522_v5  ;;  %v2044_v5 = vrot.slane %v14881_v29, 5 }
 0x167   : > { %12620 = vmatprep.mubr.msk.bf16.mxu0 %vm1471_vm12, %v11523_v59  ;;  %v13899_v59 = vld [vmem:[#allocation2 + $0x14] sm:$0x1] }
 0x168   : > { %v2046_v25 = vrot.slane %v2044_v5, 4  ;;  %v2045_v7 = vsel %vm14940_vm1, %v11547_v11, %v2044_v5  ;;  %v11564_v5 = vcombine.low %v2052_v52, %v2055_v51  ;;  %v13905_v11 = vld [vmem:[#allocation2 + $0x50] sm:$0x1]  ;;  %v1986_v51 = vld [vmem:[#allocation2 + $0x6c] sm:$0xe] }
 0x16a   : > { %v2048_v36 = vsel %vm14940_vm1, %v2046_v25, %v2047_v12  ;;  %v2075_v25 = vrot.slane %v13905_v11, 5 }
 0x16b   : > { %v11563_v23 = vcombine.low %v2045_v7, %v2048_v36  ;;  %v1984_v36 = vld [vmem:[#allocation2 + $0x54] sm:$0xe] }
 0x16e   : > { %12621 = vmatmul.mubr.msk.bf16.gmra.mrb[20].mxu0 %vm1471_vm12, %v11524_v21  ;;  %v2040_v21 = vrot.slane %v13899_v59, 5 }
 0x16f   : > { %12624 = vmatprep.mubr.msk.bf16.mxu0 %vm1471_vm12, %v11525_v43  ;;  %v11561_v43 = vcombine.low %v2031_v60, %v2034_v61  ;;  %v1982_v60 = vld [vmem:[#allocation2 + $0x3c] sm:$0xe]  ;;  %v13903_v61 = vld [vmem:[#allocation2 + $0x4c] sm:$0xf] }
 0x170   : > { %v2041_v29 = vsel %vm14940_vm1, %v2039_v8, %v2040_v21  ;;  %v2072_v37 = vrot.slane %v13903_v61, 5  ;;  %v11550_v21 = vrot.slane %v1982_v60, 9  ;;  %v11554_v60 = vrot.slane %v1986_v51, 9  ;;  %v414_v51 = vld [vmem:[#allocation2 + $0xc8] sm:$0x1] }
 0x171   : > { %v2095_v61 = vrot.slane %v2093_v45, 4 }
 0x172   : > { %v2074_v8 = vrot.slane %v2072_v37, 4  ;;  %v2066_v20 = vsel %vm14940_vm1, %v11550_v21, %v2065_v53  ;;  %v2073_v13 = vsel %vm14940_vm1, %v11551_v57, %v2072_v37  ;;  %v2096_v37 = vrot.slane %v14690_v32, 5 }
 0x173   : > { %v2107_v21 = vrot.slane %v14755_v22, 5  ;;  %v2117_v22 = vrot.slane %v14799_v28, 5  ;;  %v2128_v28 = vrot.slane %v14834_v55, 5 }
 0x174   : > { %v2076_v7 = vsel %vm14940_vm1, %v2074_v8, %v2075_v25  ;;  %v2097_v9 = vsel %vm14940_vm1, %v2095_v61, %v2096_v37  ;;  %v13802_v61 = vld [vmem:[#allocation2 + $0x18] sm:$0xff]  }
 0x175   : > { %v2109_v25 = vrot.slane %v2107_v21, 4 }
 0x176   : > { %12625 = vmatmul.mubr.msk.bf16.gmra.mrb[24].mxu0 %vm1471_vm12, %v11526_v6  ;;  %v11562_v6 = vcombine.low %v2038_v38, %v2041_v29  ;;  %v13906_v38 = vld [vmem:[#allocation2 + $0x58] sm:$0xf] }
 0x177   : > { %12628 = vmatprep.mubr.msk.bf16.mxu0 %vm1471_vm12, %v11527_v16  ;;  %v2060_v16 = vrot.slane %v2058_v17, 4  ;;  %v2079_v29 = vrot.slane %v13906_v38, 5  ;;  %v1985_v17 = vld [vmem:[#allocation2 + $0x60] sm:$0xe]  ;;  %v2116_v38 = vrot.slane %v2114_v10, 4 }
 0x178   : > { %v11553_v35 = vrot.slane %v1985_v17, 9 }
 0x179   : > { %v2062_v49 = vsel %vm14940_vm1, %v2060_v16, %v2061_v50  ;;  %v2081_v58 = vrot.slane %v2079_v29, 4 }
 0x17a   : > { %v11565_v59 = vcombine.low %v2059_v41, %v2062_v49  ;;  %v2087_v50 = vsel %vm14940_vm1, %v11553_v35, %v2086_v15 }
 0x17b   : > { %v2083_v47 = vsel %vm14940_vm1, %v2081_v58, %v2082_v33  ;;  %v2124_v58 = vrot.slane %v14815_v3, 5  ;;  %v2130_v33 = vrot.slane %v2128_v28, 4 }
 0x17e   : > { %12629 = vmatmul.mubr.msk.bf16.gmra.mrb[28].mxu0 %vm1471_vm12, %v11528_v34  ;;  %v2067_v34 = vrot.slane %v2065_v53, 4  ;;  %v1987_v53 = vld [vmem:[#allocation2 + $0x78] sm:$0xe] }
 0x17f   : > { %12634 = vmatprep.mubr.msk.bf16.mxu0 %vm1471_vm12, %v11561_v43  ;;  %v13904_v43 = vld [vmem:[#allocation2 + $0x44] sm:$0x1]  ;;  %v11555_v63 = vrot.slane %v1987_v53, 9  ;;  %v415_v53 = vsel %vm14417_vm6, 0, %v414_v51 }
 0x180   : > { %v2068_v27 = vrot.slane %v13904_v43, 5  ;;  %v1988_v43 = vld [vmem:[#allocation2 + $0x84] sm:$0xe]  ;;  %416 = vst [vmem:[#allocation2 + $0xc8] sm:$0x1] %v415_v53 }
 0x181   : > { %v11556_v11 = vrot.slane %v1988_v43, 9  ;;  %v15077_v43 = vld [vmem:[#allocation2 + $0x10] sm:$0xf] }
 0x182   : > { %v2069_v12 = vsel %vm14940_vm1, %v2067_v34, %v2068_v27  ;;  %v2101_v34 = vsel %vm14940_vm1, %v11555_v63, %v2100_v4  ;;  %v1989_v27 = vld [vmem:[#allocation2 + $0x90] sm:$0xe]  ;;  %v13803_v63 = vld [vmem:[#allocation2 + $0x24] sm:$0xff]  }
 0x183   : > { %v11566_v14 = vcombine.low %v2066_v20, %v2069_v12  ;;  %v2110_v20 = vrot.slane %v14763_v30, 5  ;;  %v11557_v12 = vrot.slane %v1989_v27, 9  ;;  %v2118_v30 = vsel %vm14940_vm1, %v2116_v38, %v2117_v22 }
 0x185   : > { %v2111_v18 = vsel %vm14940_vm1, %v2109_v25, %v2110_v20  ;;  %v2854_v25 = vshrl.u32 %v15077_v43, 16  ;;  %v2795_v20 = vld [vmem:[#allocation2 + $0x18] sm:$0xf] }
 0x186   : > { %12635 = vmatmul.mubr.msk.bf16.vlgmr.msra.gmra.mrb[0].mxu0 %vm1471_vm12, %v11562_v6  ;;  %v11567_v6 = vcombine.low %v2073_v13, %v2076_v7  ;;  %v2121_v13 = vrot.slane %v14813_v0, 5  ;;  %v2115_v7 = vsel %vm14940_vm1, %v11557_v12, %v2114_v10  ;;  %v2131_v0 = vrot.slane %v14836_v56, 5  ;;  %v13810_v10 = vld [vmem:[#allocation2 + $0x78] sm:$0xff]  }
 0x187   : > { %12667 = vmatpush3.bf16.msra.mxu0 %v2597_v39  ;;  %12638 = vmatprep.mubr.msk.bf16.mxu0 %vm1471_vm12, %v11563_v23  ;;  %v11552_v23 = vrot.slane %v1984_v36, 9  ;;  %v2088_v39 = vrot.slane %v2086_v15, 4  ;;  %v1990_v36 = vld [vmem:[#allocation2 + $0x9c] sm:$0xe]  ;;  %v1991_v15 = vld [vmem:[#allocation2 + $0xa8] sm:$0xe] }
 0x188   : > { %13692 = vmatprep.subr.msk.bf16.mxu0 %vm1520_vm4, %v14969_v24  ;;  %v11559_v26 = vrot.slane %v1991_v15, 9  ;;  %v2132_v3 = vsel %vm14940_vm1, %v2130_v33, %v2131_v0  ;;  %v15081_v12 = vld [vmem:[#allocation2 + $0x1c] sm:$0xf]  ;;  %v2798_v15 = vld [vmem:[#allocation2 + $0x24] sm:$0xf] }
 0x189   : > { %v2080_v16 = vsel %vm14940_vm1, %v11552_v23, %v2079_v29  ;;  %v2090_v52 = vsel %vm14940_vm1, %v2088_v39, %v2089_v42  ;;  %v2108_v29 = vsel %vm14940_vm1, %v11556_v11, %v2107_v21  ;;  %v2123_v23 = vrot.slane %v2121_v13, 4  ;;  %v13807_v21 = vld [vmem:[#allocation2 + $0x54] sm:$0xff]  }
 0x18a   : > { %v11568_v41 = vcombine.low %v2080_v16, %v2083_v47  ;;  %v11569_v49 = vcombine.low %v2087_v50, %v2090_v52  ;;  %v11572_v17 = vcombine.low %v2108_v29, %v2111_v18  ;;  %v2135_v39 = vrot.slane %v14860_v46, 5  ;;  %v1992_v16 = vld [vmem:[#allocation2 + $0xb4] sm:$0xe] }
 0x18b   : > { %v2125_v55 = vsel %vm14940_vm1, %v2123_v23, %v2124_v58  ;;  %v2129_v42 = vsel %vm14940_vm1, %v11559_v26, %v2128_v28  ;;  %v2138_v52 = vrot.slane %v14862_v48, 5  ;;  %v821_v48 = vrot.slane %v14929_v19, 4  ;;  %v13804_v19 = vld [vmem:[#allocation2 + $0x30] sm:$0xff]   ;;  %v13813_v26 = vld [vmem:[#allocation2 + $0x9c] sm:$0xff]  }
 0x18c   : > { %v11575_v47 = vcombine.low %v2129_v42, %v2132_v3  ;;  %v2137_v50 = vrot.slane %v2135_v39, 4  ;;  %v2850_v11 = vshll.u32 %v15077_v43, 16  ;;  %v2865_v29 = vshrl.u32 %v2795_v20, 16 }
 0x18d   : > { %v2868_v18 = vshll.u32 %v2795_v20, 16  ;;  %v2878_v28 = vshrl.u32 %v15081_v12, 16  ;;  %v2889_v42 = vshrl.u32 %v2798_v15, 16  ;;  %v2892_v3 = vshll.u32 %v2798_v15, 16  ;;  %v2807_v20 = vld [vmem:[#allocation2 + $0x48] sm:$0xf] }
 0x18e   : > { %12639 = vmatmul.mubr.msk.bf16.gmra.mrb[4].mxu0 %vm1471_vm12, %v11564_v5  ;;  %v2102_v5 = vrot.slane %v2100_v4, 4  ;;  %v2139_v4 = vsel %vm14940_vm1, %v2137_v50, %v2138_v52  ;;  %v2867_v23 = vrot.slane %v2865_v29, 4  ;;  %v2801_v50 = vld [vmem:[#allocation2 + $0x30] sm:$0xf]  ;;  %v15103_v52 = vld [vmem:[#allocation2 + $0x34] sm:$0xf] }
 0x18f   : > { %12642 = vmatprep.mubr.msk.bf16.mxu0 %vm1471_vm12, %v11565_v59  ;;  %v2094_v59 = vsel %vm14940_vm1, %v11554_v60, %v2093_v45  ;;  %v11560_v45 = vrot.slane %v1992_v16, 9  ;;  %v982_v60 = vld [vmem:[#allocation2 + $0xc8] sm:$0x1]  ;;  %v2870_v58 = vrot.slane %v2868_v18, 5 }
 0x190   : > { %v2104_v32 = vsel %vm14940_vm1, %v2102_v5, %v2103_v31  ;;  %v11570_v57 = vcombine.low %v2094_v59, %v2097_v9  ;;  %v983_v37 = vsel %vm14412_vm5, %v821_v48, %v982_v60  ;;  %v3323_v5 = vsel %vm1520_vm4, %v14969_v24, 0  ;;  %v15065_v31 = vld [vmem:[#allocation6 + $0xa] sm:$0x3]  ;;  %v13806_v9 = vld [vmem:[#allocation2 + $0x48] sm:$0xff]  }
 0x191   : > { %v11571_v8 = vcombine.low %v2101_v34, %v2104_v32  ;;  %v2136_v46 = vsel %vm14940_vm1, %v11560_v45, %v2135_v39  ;;  %984 = vst [vmem:[#allocation2 + $0xc8] sm:$0x1] %v983_v37  ;;  %v13805_v59 = vld [vmem:[#allocation2 + $0x3c] sm:$0xff]   ;;  %v13809_v34 = vld [vmem:[#allocation2 + $0x6c] sm:$0xff]   ;;  %v2880_v39 = vrot.slane %v2878_v28, 4  ;;  %v2894_v48 = vrot.slane %v2892_v3, 5 }
 0x192   : > { %v13808_v24 = vld [vmem:[#allocation2 + $0x60] sm:$0xff]   ;;  %v2792_v32 = vld [vmem:[#allocation2 + $0xc] sm:$0xf] }
 0x193   : > { %v2841_v27 = vshrl.u32 %v2792_v32, 16  ;;  %v15109_v37 = vld [vmem:[#allocation2 + $0x40] sm:$0xf] }
 0x195   : > { %v2843_v38 = vrot.slane %v2841_v27, 4  ;;  %v13815_v27 = vld [vmem:[#allocation2 + $0xb4] sm:$0xff]  }
 0x196   : > { %12643 = vmatmul.mubr.msk.bf16.gmra.mrb[8].mxu0 %vm1471_vm12, %v11566_v14  ;;  %v11573_v14 = vcombine.low %v2115_v7, %v2118_v30  ;;  %v15087_v7 = vrot.slane %v2850_v11, 5  ;;  %v2856_v30 = vrot.slane %v2854_v25, 4  ;;  %v2946_v11 = vshll.u32 %v15109_v37, 16 }
 0x197   : > { %12646 = vmatprep.mubr.msk.bf16.mxu0 %vm1471_vm12, %v11567_v6  ;;  %v11558_v6 = vrot.slane %v1990_v36, 9  ;;  %v2874_v36 = vshll.u32 %v15081_v12, 16  ;;  %v2950_v25 = vshrl.u32 %v15109_v37, 16 }
 0x198   : > { %v2857_v0 = vor.u32 %v2856_v30, %v15087_v7 }
 0x199   : > { %v2122_v35 = vsel %vm14940_vm1, %v11558_v6, %v2121_v13  ;;  %v15085_v13 = vld [vmem:[#allocation2 + $0x14] sm:$0x1] }
 0x19a   : > { %v11574_v56 = vcombine.low %v2122_v35, %v2125_v55  ;;  %v2860_v6 = vshll.u32 %v15085_v13, 16  ;;  %v15095_v35 = vld [vmem:[#allocation2 + $0x20] sm:$0x1]  ;;  %v15097_v55 = vrot.slane %v2874_v36, 5 }
 0x19b   : > { %v2884_v45 = vshll.u32 %v15095_v35, 16 }
 0x19c   : > { %v2881_v53 = vor.u32 %v2880_v39, %v15097_v55  ;;  %v15135_v39 = vrot.slane %v2946_v11, 5 }
 0x19e   : > { %12647 = vmatmul.mubr.msk.bf16.gmra.mrb[12].mxu0 %vm1471_vm12, %v11568_v41  ;;  %v11576_v41 = vcombine.low %v2136_v46, %v2139_v4  ;;  %v2858_v46 = vrot.slane %v2857_v0, 4  ;;  %v2862_v4 = vrot.slane %v2860_v6, 5  ;;  %v15133_v0 = vld [vmem:[#allocation2 + $0x44] sm:$0x1] }
 0x19f   : > { %12650 = vmatprep.mubr.msk.bf16.mxu0 %vm1471_vm12, %v11569_v49  ;;  %v13801_v49 = vld [vmem:[#allocation2 + $0xc] sm:$0xff]  }
 0x1a6   : > { %12651 = vmatmul.mubr.msk.bf16.gmra.mrb[16].mxu0 %vm1471_vm12, %v11570_v57  ;;  %v2844_v57 = vshll.u32 %v2792_v32, 16 }
 0x1a7   : > { %12654 = vmatprep.mubr.msk.bf16.mxu0 %vm1471_vm12, %v11571_v8  ;;  %v13811_v8 = vld [vmem:[#allocation2 + $0x84] sm:$0xff]  }
 0x1a8   : > { %v2846_v22 = vrot.slane %v2844_v57, 5 }
 0x1aa   : > { %v2847_v33 = vor.u32 %v2846_v22, %v2843_v38  ;;  %v2882_v38 = vrot.slane %v2881_v53, 4  ;;  %v13816_v53 = vld [vmem:[#allocation2 + $0xc0] sm:$0xff]  }
 0x1ac   : > { %v2848_v51 = vrot.slane %v2847_v33, 4 }
 0x1ae   : > { %12655 = vmatmul.mubr.msk.bf16.gmra.mrb[20].mxu0 %vm1471_vm12, %v11572_v17  ;;  %v15091_v17 = vld [vmem:[#allocation2 + $0x28] sm:$0xf]  ;;  %v2853_v57 = vsel %vm14466_vm13, %v2848_v51, %v15087_v7  ;;  %v15127_v7 = vld [vmem:[#allocation2 + $0x38] sm:$0x1] }
 0x1af   : > { %12658 = vmatprep.mubr.msk.bf16.mxu0 %vm1471_vm12, %v11573_v14  ;;  %v13812_v14 = vld [vmem:[#allocation2 + $0x90] sm:$0xff]   ;;  %v2898_v16 = vshll.u32 %v15091_v17, 16 }
 0x1b1   : > { %v15107_v60 = vrot.slane %v2898_v16, 5 }
 0x1b6   : > { %12659 = vmatmul.mubr.msk.bf16.gmra.mrb[24].mxu0 %vm1471_vm12, %v11574_v56  ;;  %v2902_v56 = vshrl.u32 %v15091_v17, 16 }
 0x1b7   : > { %12662 = vmatprep.mubr.msk.bf16.mxu0 %vm1471_vm12, %v11575_v47  ;;  %v2871_v47 = vor.u32 %v2870_v58, %v2867_v23  ;;  %v2961_v23 = vshrl.u32 %v2807_v20, 16  ;;  %v2964_v58 = vshll.u32 %v2807_v20, 16 }
 0x1be   : > { %12663 = vmatmul.mubr.msk.bf16.gmra.mrb[28].mxu0 %vm1471_vm12, %v11576_v41  ;;  %v2804_v41 = vld [vmem:[#allocation2 + $0x3c] sm:$0xf] }
 0x1bf   : > { %12668 = vmatprep.mubr.msk.bf16.mxu0 %vm1471_vm12, %v13801_v49  ;;  %v2891_v49 = vrot.slane %v2889_v42, 4  ;;  %v2937_v32 = vshrl.u32 %v2804_v41, 16  ;;  %v2952_v42 = vrot.slane %v2950_v25, 4  ;;  %v2813_v25 = vld [vmem:[#allocation2 + $0x60] sm:$0xf] }
 0x1c1   : > { %v2895_v22 = vor.u32 %v2894_v48, %v2891_v49  ;;  %v2956_v49 = vshll.u32 %v15133_v0, 16  ;;  %v2963_v48 = vrot.slane %v2961_v23, 4  ;;  %v3009_v23 = vshrl.u32 %v2813_v25, 16 }
 0x1c3   : > { %v2896_v16 = vrot.slane %v2895_v22, 4  ;;  %v2958_v22 = vrot.slane %v2956_v49, 5  ;;  %v2816_v49 = vld [vmem:[#allocation2 + $0x6c] sm:$0xf] }
 0x1c6   : > { %12669 = vmatmul.mubr.msk.bf16.vlgmr.msra.gmra.mrb[0].mxu0 %vm1471_vm12, %v13802_v61  ;;  %v2904_v61 = vrot.slane %v2902_v56, 4 }
 0x1c7   : > { %12701 = vmatpush3.bf16.msra.mxu0 %v3323_v5  ;;  %12672 = vmatprep.mubr.msk.bf16.mxu0 %vm1471_vm12, %v13803_v63  ;;  %v15111_v63 = vld [vmem:[#allocation2 + $0x2c] sm:$0x1]  ;;  %v2913_v5 = vshrl.u32 %v2801_v50, 16 }
 0x1c8   : > { %13693 = vmatprep.subr.msk.bf16.mxu0 %vm1520_vm4, %v15065_v31  ;;  %v2905_v29 = vor.u32 %v2904_v61, %v15107_v60  ;;  %v2908_v18 = vshll.u32 %v15111_v63, 16  ;;  %v2966_v61 = vrot.slane %v2964_v58, 5  ;;  %v3012_v58 = vshll.u32 %v2813_v25, 16 }
 0x1c9   : > { %v2915_v30 = vrot.slane %v2913_v5, 4  ;;  %v15148_v5 = vld [vmem:[#allocation2 + $0x58] sm:$0xf] }
 0x1ca   : > { %v2906_v56 = vrot.slane %v2905_v29, 4  ;;  %v2998_v11 = vshrl.u32 %v15148_v5, 16  ;;  %v15163_v29 = vld [vmem:[#allocation2 + $0x64] sm:$0xf] }
 0x1ce   : > { %12673 = vmatmul.mubr.msk.bf16.gmra.mrb[4].mxu0 %vm1471_vm12, %v13804_v19  ;;  %v2916_v19 = vshll.u32 %v2801_v50, 16  ;;  %v15143_v50 = vsel %vm1520_vm4, %v15065_v31, 0 }
 0x1cf   : > { %12676 = vmatprep.mubr.msk.bf16.mxu0 %vm1471_vm12, %v13805_v59  ;;  %v2922_v59 = vshll.u32 %v15103_v52, 16 }
 0x1d0   : > { %v2918_v36 = vrot.slane %v2916_v19, 5 }
 0x1d1   : > { %v15124_v28 = vrot.slane %v2922_v59, 5  ;;  %v2953_v59 = vor.u32 %v2952_v42, %v15135_v39 }
 0x1d2   : > { %v2919_v51 = vor.u32 %v2918_v36, %v2915_v30 }
 0x1d6   : > { %12677 = vmatmul.mubr.msk.bf16.gmra.mrb[8].mxu0 %vm1471_vm12, %v13806_v9  ;;  %v2926_v9 = vshrl.u32 %v15103_v52, 16 }
 0x1d7   : > { %12680 = vmatprep.mubr.msk.bf16.mxu0 %vm1471_vm12, %v13807_v21  ;;  %v13814_v21 = vld [vmem:[#allocation2 + $0xa8] sm:$0xff]  }
 0x1d8   : > { %v2928_v15 = vrot.slane %v2926_v9, 4 }
 0x1de   : > { %12681 = vmatmul.mubr.msk.bf16.gmra.mrb[12].mxu0 %vm1471_vm12, %v13808_v24  ;;  %v2872_v24 = vrot.slane %v2871_v47, 4  ;;  %v2910_v47 = vrot.slane %v2908_v18, 5  ;;  %v2954_v18 = vrot.slane %v2953_v59, 4  ;;  %v3011_v59 = vrot.slane %v3009_v23, 4 }
 0x1df   : > { %12684 = vmatprep.mubr.msk.bf16.mxu0 %vm1471_vm12, %v13809_v34  ;;  %v2886_v34 = vrot.slane %v2884_v45, 5  ;;  %v15139_v45 = vld [vmem:[#allocation2 + $0x4c] sm:$0xf] }
 0x1e0   : > { %v2877_v33 = vsel %vm14466_vm13, %v2872_v24, %v15097_v55  ;;  %v2929_v55 = vor.u32 %v2928_v15, %v15124_v28  ;;  %v2970_v31 = vshll.u32 %v15139_v45, 16  ;;  %v2974_v9 = vshrl.u32 %v15139_v45, 16 }
 0x1e1   : > { %v2887_v3 = vsel %vm14466_vm13, %v2882_v38, %v2886_v34  ;;  %v2911_v24 = vsel %vm14466_vm13, %v2906_v56, %v2910_v47  ;;  %v15158_v34 = vld [vmem:[#allocation2 + $0x50] sm:$0x1]  ;;  %v3022_v56 = vshrl.u32 %v15163_v29, 16 }
 0x1e2   : > { %v11626_v19 = vcombine.low %v2877_v33, %v2887_v3  ;;  %v2930_v20 = vrot.slane %v2929_v55, 4  ;;  %v15166_v30 = vrot.slane %v2970_v31, 5  ;;  %v2976_v36 = vrot.slane %v2974_v9, 4  ;;  %v15169_v33 = vld [vmem:[#allocation2 + $0x5c] sm:$0x1] }
 0x1e3   : > { %v2980_v15 = vshll.u32 %v15158_v34, 16  ;;  %v3000_v3 = vrot.slane %v2998_v11, 4  ;;  %v3014_v31 = vrot.slane %v3012_v58, 5  ;;  %v2819_v9 = vld [vmem:[#allocation2 + $0x78] sm:$0xf]  ;;  %v3036_v11 = vshll.u32 %v2816_v49, 16 }
 0x1e5   : > { %v3015_v23 = vor.u32 %v3014_v31, %v3011_v59  ;;  %v15228_v31 = vld [vmem:[#allocation2 + $0x88] sm:$0xf] }
 0x1e6   : > { %12685 = vmatmul.mubr.msk.bf16.gmra.mrb[16].mxu0 %vm1471_vm12, %v13810_v10  ;;  %v2940_v10 = vshll.u32 %v2804_v41, 16 }
 0x1e7   : > { %12688 = vmatprep.mubr.msk.bf16.mxu0 %vm1471_vm12, %v13811_v8  ;;  %v2863_v8 = vsel %vm14466_vm13, %v2858_v46, %v2862_v4  ;;  %v2932_v46 = vshll.u32 %v15127_v7, 16  ;;  %v2810_v4 = vld [vmem:[#allocation2 + $0x54] sm:$0xf] }
 0x1e8   : > { %v2942_v6 = vrot.slane %v2940_v10, 5  ;;  %v2988_v10 = vshll.u32 %v2810_v4, 16 }
 0x1ee   : > { %12689 = vmatmul.mubr.msk.bf16.gmra.mrb[20].mxu0 %vm1471_vm12, %v13812_v14  ;;  %v2939_v14 = vrot.slane %v2937_v32, 4  ;;  %v2985_v32 = vshrl.u32 %v2810_v4, 16 }
 0x1ef   : > { %12692 = vmatprep.mubr.msk.bf16.mxu0 %vm1471_vm12, %v13813_v26  ;;  %v11625_v26 = vcombine.low %v2853_v57, %v2863_v8  ;;  %v2934_v57 = vrot.slane %v2932_v46, 5  ;;  %v2994_v8 = vshll.u32 %v15148_v5, 16  ;;  %v2959_v46 = vsel %vm14466_vm13, %v2954_v18, %v2958_v22 }
 0x1f0   : > { %v2943_v41 = vor.u32 %v2942_v6, %v2939_v14  ;;  %v2987_v14 = vrot.slane %v2985_v32, 4  ;;  %v2990_v6 = vrot.slane %v2988_v10, 5  ;;  %v3024_v32 = vrot.slane %v3022_v56, 4  ;;  %v15196_v10 = vld [vmem:[#allocation2 + $0x7c] sm:$0xf] }
 0x1f1   : > { %v15171_v42 = vrot.slane %v2994_v8, 5  ;;  %v3033_v8 = vshrl.u32 %v2816_v49, 16  ;;  %v3060_v18 = vshll.u32 %v2819_v9, 16 }
 0x1f2   : > { %v2944_v38 = vrot.slane %v2943_v41, 4  ;;  %v15188_v41 = vrot.slane %v2980_v15, 5 }
 0x1f3   : > { %v3035_v56 = vrot.slane %v3033_v8, 4  ;;  %v3016_v8 = vrot.slane %v3015_v23, 4 }
 0x1f4   : > { %v2949_v55 = vsel %vm14466_vm13, %v2944_v38, %v15135_v39  ;;  %v3001_v39 = vor.u32 %v3000_v3, %v15171_v42  ;;  %v2822_v3 = vld [vmem:[#allocation2 + $0x84] sm:$0xf] }
 0x1f5   : > { %v11629_v38 = vcombine.low %v2949_v55, %v2959_v46 }
 0x1f6   : > { %12693 = vmatmul.mubr.msk.bf16.gmra.mrb[24].mxu0 %vm1471_vm12, %v13814_v21  ;;  %v2901_v21 = vsel %vm14466_vm13, %v2896_v16, %v15107_v60  ;;  %v2967_v60 = vor.u32 %v2966_v61, %v2963_v48  ;;  %v3018_v16 = vshll.u32 %v15163_v29, 16  ;;  %v15190_v48 = vld [vmem:[#allocation2 + $0x70] sm:$0xf]  ;;  %v3004_v61 = vshll.u32 %v15169_v33, 16 }
 0x1f7   : > { %12696 = vmatprep.mubr.msk.bf16.mxu0 %vm1471_vm12, %v13815_v27  ;;  %v2920_v27 = vrot.slane %v2919_v51, 4  ;;  %v2935_v51 = vsel %vm14466_vm13, %v2930_v20, %v2934_v57  ;;  %v15201_v57 = vld [vmem:[#allocation2 + $0x68] sm:$0x1]  ;;  %v3042_v25 = vshll.u32 %v15190_v48, 16  ;;  %v3046_v20 = vshrl.u32 %v15190_v48, 16 }
 0x1f8   : > { %v15185_v4 = vrot.slane %v2967_v60, 4  ;;  %v3057_v60 = vshrl.u32 %v2819_v9, 16  ;;  %v3006_v15 = vrot.slane %v3004_v61, 5  ;;  %v3081_v9 = vshrl.u32 %v2822_v3, 16 }
 0x1f9   : > { %v2925_v47 = vsel %vm14466_vm13, %v2920_v27, %v15124_v28  ;;  %v2991_v28 = vor.u32 %v2990_v6, %v2987_v14  ;;  %v15198_v27 = vld [vmem:[#allocation6 + $0xc] sm:$0x3]  ;;  %v3070_v14 = vshrl.u32 %v15196_v10, 16  ;;  %v3002_v6 = vrot.slane %v3001_v39, 4 }
 0x1fa   : > { %v2973_v55 = vsel %vm14466_vm13, %v15185_v4, %v15166_v30  ;;  %v3059_v49 = vrot.slane %v3057_v60, 4  ;;  %v3084_v39 = vshll.u32 %v2822_v3, 16  ;;  %v3090_v60 = vshll.u32 %v15228_v31, 16 }
 0x1fb   : > { %v3072_v59 = vrot.slane %v3070_v14, 4  ;;  %v2825_v14 = vld [vmem:[#allocation2 + $0x90] sm:$0xf] }
 0x1fe   : > { %12697 = vmatmul.mubr.msk.bf16.gmra.mrb[28].mxu0 %vm1471_vm12, %v13816_v53  ;;  %v2977_v53 = vor.u32 %v2976_v36, %v15166_v30  ;;  %v2992_v36 = vrot.slane %v2991_v28, 4  ;;  %v3062_v28 = vrot.slane %v3060_v18, 5  ;;  %v3007_v30 = vsel %vm14466_vm13, %v3002_v6, %v3006_v15 }
 0x1ff   : > { %12702 = vmatprep.mubr.msk.bf16.mxu0 %vm1471_vm12, %v11625_v26  ;;  %v11627_v26 = vcombine.low %v2901_v21, %v2911_v24  ;;  %v11628_v21 = vcombine.low %v2925_v47, %v2935_v51  ;;  %v15194_v24 = vrot.slane %v3018_v16, 5  ;;  %v15213_v16 = vld [vmem:[#allocation2 + $0x74] sm:$0x1]  ;;  %v15215_v47 = vrot.slane %v3042_v25, 5 }
 0x200   : > { %v2978_v22 = vrot.slane %v2977_v53, 4  ;;  %v3048_v51 = vrot.slane %v3046_v20, 4  ;;  %v15224_v53 = vld [vmem:[#allocation2 + $0x80] sm:$0x1]  ;;  %v3063_v18 = vor.u32 %v3062_v28, %v3059_v49  ;;  %v3083_v15 = vrot.slane %v3081_v9, 4 }
 0x201   : > { %v3025_v58 = vor.u32 %v3024_v32, %v15194_v24  ;;  %v2997_v32 = vsel %vm14466_vm13, %v2992_v36, %v15171_v42  ;;  %v3094_v42 = vshrl.u32 %v15228_v31, 16  ;;  %v3105_v28 = vshrl.u32 %v2825_v14, 16 }
 0x202   : > { %v2983_v46 = vsel %vm14466_vm13, %v2978_v22, %v15188_v41  ;;  %v3052_v41 = vshll.u32 %v15213_v16, 16  ;;  %v3049_v20 = vor.u32 %v3048_v51, %v15215_v47  ;;  %v3076_v22 = vshll.u32 %v15224_v53, 16 }
 0x203   : > { %v11631_v6 = vcombine.low %v2997_v32, %v3007_v30  ;;  %v15250_v51 = vrot.slane %v3090_v60, 5  ;;  %v3096_v49 = vrot.slane %v3094_v42, 4  ;;  %v15254_v32 = vld [vmem:[#allocation2 + $0x8c] sm:$0x1] }
 0x204   : > { %v3054_v23 = vrot.slane %v3052_v41, 5  ;;  %v3050_v3 = vrot.slane %v3049_v20, 4  ;;  %v3100_v42 = vshll.u32 %v15254_v32, 16 }
 0x205   : > { %v3097_v60 = vor.u32 %v3096_v49, %v15250_v51  ;;  %v15278_v49 = vld [vmem:[#allocation2 + $0xa4] sm:$0x1] }
 0x206   : > { %12703 = vmatmul.mubr.msk.bf16.vlgmr.msra.gmra.mrb[0].mxu0 %vm1471_vm12, %v11626_v19  ;;  %v3066_v19 = vshll.u32 %v15196_v10, 16  ;;  %19021 = vst [vmem:[#allocation24_spill] sm:$0xff] %v15278_v49 }
 0x207   : > { %12735 = vmatpush3.bf16.msra.mxu0 %v15143_v50  ;;  %12706 = vmatprep.mubr.msk.bf16.mxu0 %vm1471_vm12, %v11627_v26  ;;  %v3028_v50 = vshll.u32 %v15201_v57, 16  ;;  %v3038_v26 = vrot.slane %v3036_v11, 5  ;;  %v3026_v11 = vrot.slane %v3025_v58, 4  ;;  %v3021_v58 = vsel %vm14466_vm13, %v3016_v8, %v15194_v24 }
 0x208   : > { %13694 = vmatprep.subr.msk.bf16.mxu0 %vm1520_vm4, %v15198_v27  ;;  %v15226_v61 = vrot.slane %v3066_v19, 5  ;;  %v3086_v19 = vrot.slane %v3084_v39, 5  ;;  %v3078_v39 = vrot.slane %v3076_v22, 5 }
 0x209   : > { %v3030_v4 = vrot.slane %v3028_v50, 5  ;;  %v3039_v25 = vor.u32 %v3038_v26, %v3035_v56  ;;  %v15248_v56 = vld [vmem:[#allocation2 + $0x94] sm:$0xf]  ;;  %v2828_v26 = vld [vmem:[#allocation2 + $0x9c] sm:$0xf] }
 0x20a   : > { %v3073_v36 = vor.u32 %v3072_v59, %v15226_v61  ;;  %v3108_v59 = vshll.u32 %v2825_v14, 16  ;;  %v3087_v24 = vor.u32 %v3086_v19, %v3083_v15  ;;  %v3114_v30 = vshll.u32 %v15248_v56, 16  ;;  %v15274_v14 = vld [vmem:[#allocation2 + $0x98] sm:$0x1] }
 0x20b   : > { %v3040_v50 = vrot.slane %v3039_v25, 4  ;;  %v3129_v41 = vshrl.u32 %v2828_v26, 16  ;;  %v3132_v8 = vshll.u32 %v2828_v26, 16  ;;  %v3055_v25 = vsel %vm14466_vm13, %v3050_v3, %v3054_v23  ;;  %19020 = vst [vmem:[#allocation23_spill] sm:$0xff] %v15274_v14 }
 0x20c   : > { %v3074_v9 = vrot.slane %v3073_v36, 4  ;;  %v3110_v36 = vrot.slane %v3108_v59, 5  ;;  %v3088_v19 = vrot.slane %v3087_v24, 4 }
 0x20e   : > { %12707 = vmatmul.mubr.msk.bf16.gmra.mrb[4].mxu0 %vm1471_vm12, %v11628_v21  ;;  %v11630_v21 = vcombine.low %v2973_v55, %v2983_v46  ;;  %v15252_v55 = vld [vmem:[#allocation2 + $0xa0] sm:$0xf]  ;;  %v3064_v46 = vrot.slane %v3063_v18, 4  ;;  %v3107_v18 = vrot.slane %v3105_v28, 4 }
 0x20f   : > { %12710 = vmatprep.mubr.msk.bf16.mxu0 %vm1471_vm12, %v11629_v38  ;;  %v3031_v38 = vsel %vm14466_vm13, %v3026_v11, %v3030_v4  ;;  %v3118_v4 = vshrl.u32 %v15248_v56, 16  ;;  %v3045_v11 = vsel %vm14466_vm13, %v3040_v50, %v15215_v47  ;;  %v3138_v20 = vshll.u32 %v15252_v55, 16 }
 0x210   : > { %v3142_v22 = vshrl.u32 %v15252_v55, 16  ;;  %v3069_v15 = vsel %vm14466_vm13, %v3064_v46, %v15226_v61  ;;  %v3079_v47 = vsel %vm14466_vm13, %v3074_v9, %v3078_v39  ;;  %v3134_v50 = vrot.slane %v3132_v8, 5  ;;  %v15283_v39 = vld [vmem:[#allocation2 + $0xac] sm:$0xf]  ;;  %v15287_v8 = vld [vmem:[#allocation2 + $0xb8] sm:$0xf] }
 0x211   : > { %v3120_v23 = vrot.slane %v3118_v4, 4  ;;  %v11632_v3 = vcombine.low %v3021_v58, %v3031_v38  ;;  %v11633_v26 = vcombine.low %v3045_v11, %v3055_v25  ;;  %v15280_v28 = vrot.slane %v3138_v20, 5  ;;  %19022 = vst [vmem:[#allocation25_spill] sm:$0xff] %v15283_v39 }
 0x212   : > { %v3144_v59 = vrot.slane %v3142_v22, 4  ;;  %v3098_v61 = vrot.slane %v3097_v60, 4  ;;  %v3102_v46 = vrot.slane %v3100_v42, 5  ;;  %v3111_v44 = vor.u32 %v3110_v36, %v3107_v18 }
 0x213   : > { %v3124_v9 = vshll.u32 %v15274_v14, 16  ;;  %v11634_v24 = vcombine.low %v3069_v15, %v3079_v47  ;;  %v3148_v58 = vshll.u32 %v15278_v49, 16  ;;  %v3153_v38 = vshrl.u32 %v2831_v40, 16  ;;  %v15303_v14 = vld [vmem:[#allocation2 + $0xc4] sm:$0xf] }
 0x214   : > { %v3145_v11 = vor.u32 %v3144_v59, %v15280_v28  ;;  %v3156_v25 = vshll.u32 %v2831_v40, 16  ;;  %v3162_v20 = vshll.u32 %v15283_v39, 16  ;;  %v3166_v22 = vshrl.u32 %v15283_v39, 16 }
 0x215   : > { %v3093_v60 = vsel %vm14466_vm13, %v3088_v19, %v15250_v51  ;;  %v3103_v42 = vsel %vm14466_vm13, %v3098_v61, %v3102_v46  ;;  %v3112_v18 = vrot.slane %v3111_v44, 4  ;;  %v3126_v36 = vrot.slane %v3124_v9, 5  ;;  %v2837_v61 = vld [vmem:[#allocation2 + $0xc0] sm:$0xf] }
 0x216   : > { %12711 = vmatmul.mubr.msk.bf16.gmra.mrb[8].mxu0 %vm1471_vm12, %v11630_v21  ;;  %v15276_v21 = vrot.slane %v3114_v30, 5  ;;  %v3190_v40 = vshrl.u32 %v15287_v8, 16  ;;  %v3155_v59 = vrot.slane %v3153_v38, 4  ;;  %v3158_v39 = vrot.slane %v3156_v25, 5  ;;  %v15311_v38 = vld [vmem:[#allocation2 + $0xbc] sm:$0x1] }
 0x217   : > { %12714 = vmatprep.mubr.msk.bf16.mxu0 %vm1471_vm12, %v11631_v6  ;;  %v3131_v6 = vrot.slane %v3129_v41, 4  ;;  %v2834_v41 = vld [vmem:[#allocation2 + $0xb4] sm:$0xf]  ;;  %v3164_v51 = vrot.slane %v3162_v20, 5  ;;  %v3168_v19 = vrot.slane %v3166_v22, 4  ;;  %v11635_v49 = vcombine.low %v3093_v60, %v3103_v42 }
 0x218   : > { %v3121_v30 = vor.u32 %v3120_v23, %v15276_v21  ;;  %v3177_v15 = vshrl.u32 %v2834_v41, 16  ;;  %v3180_v47 = vshll.u32 %v2834_v41, 16  ;;  %v3186_v23 = vshll.u32 %v15287_v8, 16 }
 0x219   : > { %v3135_v4 = vor.u32 %v3134_v50, %v3131_v6  ;;  %v3192_v41 = vrot.slane %v3190_v40, 4  ;;  %v3159_v20 = vor.u32 %v3158_v39, %v3155_v59  ;;  %v3169_v22 = vor.u32 %v3168_v19, %v3164_v51 }
 0x21a   : > { %v3122_v6 = vrot.slane %v3121_v30, 4  ;;  %v3179_v44 = vrot.slane %v3177_v15, 4  ;;  %v3182_v46 = vrot.slane %v3180_v47, 5  ;;  %v3188_v9 = vrot.slane %v3186_v23, 5 }
 0x21b   : > { %v3136_v50 = vrot.slane %v3135_v4, 4  ;;  %v3117_v30 = vsel %vm14466_vm13, %v3112_v18, %v15276_v21  ;;  %v3201_v21 = vshrl.u32 %v2837_v61, 16  ;;  %v3204_v60 = vshll.u32 %v2837_v61, 16  ;;  %v15323_v61 = vld [vmem:[#allocation2 + $0xc8] sm:$0x1] }
 0x21c   : > { %v3127_v4 = vsel %vm14466_vm13, %v3122_v6, %v3126_v36  ;;  %v3210_v42 = vshll.u32 %v15303_v14, 16  ;;  %v3214_v18 = vshrl.u32 %v15303_v14, 16  ;;  %v3183_v36 = vor.u32 %v3182_v46, %v3179_v44 }
 0x21d   : > { %v3193_v15 = vor.u32 %v3192_v41, %v3188_v9  ;;  %v11636_v47 = vcombine.low %v3117_v30, %v3127_v4  ;;  %v3170_v40 = vrot.slane %v3169_v22, 4  ;;  %v3206_v39 = vrot.slane %v3204_v60, 5 }
 0x21e   : > { %12715 = vmatmul.mubr.msk.bf16.gmra.mrb[12].mxu0 %vm1471_vm12, %v11632_v3  ;;  %v3150_v3 = vrot.slane %v3148_v58, 5  ;;  %v3172_v58 = vshll.u32 %v15301_v2, 16  ;;  %v3216_v59 = vrot.slane %v3214_v18, 4  ;;  %v3220_v4 = vshll.u32 %v15323_v61, 16  ;;  %v361_v18 = vld [vmem:[#allocation2 + $0xcc] sm:$0x1] }
 0x21f   : > { %12718 = vmatprep.mubr.msk.bf16.mxu0 %vm1471_vm12, %v11633_v26  ;;  %v3146_v26 = vrot.slane %v3145_v11, 4  ;;  %v3141_v11 = vsel %vm14466_vm13, %v3136_v50, %v15280_v28  ;;  %v3160_v28 = vrot.slane %v3159_v20, 4  ;;  %v3203_v50 = vrot.slane %v3201_v21, 4  ;;  %v3518_v20 = vld [vmem:[#allocation2 + $0xc] sm:$0xe] }
 0x220   : > { %v3174_v6 = vrot.slane %v3172_v58, 5 }
 0x221   : > { %v3151_v25 = vsel %vm14466_vm13, %v3146_v26, %v3150_v3  ;;  %v3212_v3 = vrot.slane %v3210_v42, 5  ;;  %v3194_v26 = vrot.slane %v3193_v15, 4  ;;  %v3165_v44 = vsel %vm14466_vm13, %v3160_v28, %v3164_v51 }
 0x222   : > { %v11637_v23 = vcombine.low %v3141_v11, %v3151_v25  ;;  %v3175_v46 = vsel %vm14466_vm13, %v3170_v40, %v3174_v6  ;;  %v3207_v41 = vor.u32 %v3206_v39, %v3203_v50  ;;  %v3584_v25 = vrot.slane %v15077_v43, 5  ;;  %v3519_v40 = vld [vmem:[#allocation2 + $0x18] sm:$0xe]  ;;  %v3520_v50 = vld [vmem:[#allocation2 + $0x24] sm:$0xe] }
 0x223   : > { %v3217_v30 = vor.u32 %v3216_v59, %v3212_v3  ;;  %v11638_v22 = vcombine.low %v3165_v44, %v3175_v46  ;;  %v3222_v42 = vrot.slane %v3220_v4, 5  ;;  %v3598_v6 = vrot.slane %v15091_v17, 5  ;;  %v3521_v4 = vld [vmem:[#allocation2 + $0x30] sm:$0xe] }
 0x224   : > { %v3208_v21 = vrot.slane %v3207_v41, 4  ;;  %v3586_v15 = vrot.slane %v3584_v25, 4  ;;  %v3605_v41 = vrot.slane %v15103_v52, 5 }
 0x225   : > { %v3218_v60 = vrot.slane %v3217_v30, 4  ;;  %v3600_v44 = vrot.slane %v3598_v6, 4 }
 0x226   : > { %12719 = vmatmul.mubr.msk.bf16.gmra.mrb[16].mxu0 %vm1471_vm12, %v11634_v24  ;;  %v3196_v24 = vshll.u32 %v15311_v38, 16  ;;  %v3213_v43 = vsel %vm14466_vm13, %v3208_v21, %v3212_v3  ;;  %v3594_v3 = vrot.slane %v15095_v35, 5  ;;  %v4152_v21 = vsel %vm1520_vm4, %v15198_v27, 0 }
 0x227   : > { %12722 = vmatprep.mubr.msk.bf16.mxu0 %vm1471_vm12, %v11635_v49  ;;  %v3184_v49 = vrot.slane %v3183_v36, 4  ;;  %v11657_v36 = vrot.slane %v3518_v20, 9  ;;  %v11660_v20 = vrot.slane %v3521_v4, 9 }
 0x228   : > { %v3198_v19 = vrot.slane %v3196_v24, 5  ;;  %v3587_v24 = vrot.slane %v15085_v13, 5 }
 0x229   : > { %v3189_v58 = vsel %vm14466_vm13, %v3184_v49, %v3188_v9  ;;  %v3223_v9 = vsel %vm14466_vm13, %v3218_v60, %v3222_v42  ;;  %v3585_v28 = vsel %vm14940_vm1, %v11657_v36, %v3584_v25  ;;  %v11658_v49 = vrot.slane %v3519_v40, 9 }
 0x22a   : > { %v3199_v11 = vsel %vm14466_vm13, %v3194_v26, %v3198_v19  ;;  %v3588_v13 = vsel %vm14940_vm1, %v3586_v15, %v3587_v24  ;;  %v11640_v39 = vcombine.low %v3213_v43, %v3223_v9  ;;  %v11659_v19 = vrot.slane %v3520_v50, 9  ;;  %v3523_v15 = vld [vmem:[#allocation2 + $0x48] sm:$0xe] }
 0x22b   : > { %v11639_v51 = vcombine.low %v3189_v58, %v3199_v11  ;;  %v11673_v59 = vcombine.low %v3585_v28, %v3588_v13  ;;  %v3522_v58 = vld [vmem:[#allocation2 + $0x3c] sm:$0xe]  ;;  %v3615_v42 = vrot.slane %v15133_v0, 5  ;;  %v3619_v36 = vrot.slane %v15139_v45, 5 }
 0x22c   : > { %v3599_v30 = vsel %vm14940_vm1, %v11659_v19, %v3598_v6  ;;  %v11661_v52 = vrot.slane %v3522_v58, 9  ;;  %v3626_v24 = vrot.slane %v15148_v5, 5  ;;  %v3622_v13 = vrot.slane %v15158_v34, 5  ;;  %v3528_v58 = vld [vmem:[#allocation2 + $0x84] sm:$0xe] }
 0x22d   : > { %v3621_v28 = vrot.slane %v3619_v36, 4  ;;  %v3629_v6 = vrot.slane %v15169_v33, 5  ;;  %v3640_v33 = vrot.slane %v15190_v48, 5 }
 0x22e   : > { %12723 = vmatmul.mubr.msk.bf16.gmra.mrb[20].mxu0 %vm1471_vm12, %v11636_v47  ;;  %v362_v47 = vsel %vm14412_vm5, 0, %v361_v18  ;;  %v15370_v18 = vld [vmem:[#allocation6 + $0xe] sm:$0x3]  ;;  %v3628_v40 = vrot.slane %v3626_v24, 4 }
 0x22f   : > { %12726 = vmatprep.mubr.msk.bf16.mxu0 %vm1471_vm12, %v11637_v23  ;;  %363 = vst [vmem:[#allocation2 + $0xcc] sm:$0x1] %v362_v47  ;;  %v3591_v23 = vrot.slane %v15081_v12, 5  ;;  %v3601_v12 = vrot.slane %v15111_v63, 5  ;;  %v3612_v63 = vrot.slane %v15109_v37, 5  ;;  %v3606_v37 = vsel %vm14940_vm1, %v11660_v20, %v3605_v41 }
 0x230   : > { %v3524_v47 = vld [vmem:[#allocation2 + $0x54] sm:$0xe]  ;;  %v3623_v50 = vsel %vm14940_vm1, %v3621_v28, %v3622_v13  ;;  %v3630_v34 = vsel %vm14940_vm1, %v3628_v40, %v3629_v6  ;;  %v19024_v28 = vld [vmem:[#allocation24_spill] sm:$0xff] }
 0x231   : > { %v3593_v26 = vrot.slane %v3591_v23, 4  ;;  %v3592_v46 = vsel %vm14940_vm1, %v11658_v49, %v3591_v23  ;;  %v3602_v35 = vsel %vm14940_vm1, %v3600_v44, %v3601_v12  ;;  %v3614_v60 = vrot.slane %v3612_v63, 4  ;;  %v3525_v49 = vld [vmem:[#allocation2 + $0x60] sm:$0xe] }
 0x232   : > { %v11675_v25 = vcombine.low %v3599_v30, %v3602_v35  ;;  %v3613_v27 = vsel %vm14940_vm1, %v11661_v52, %v3612_v63  ;;  %v11662_v23 = vrot.slane %v3523_v15, 9  ;;  %v11663_v45 = vrot.slane %v3524_v47, 9  ;;  %v3527_v63 = vld [vmem:[#allocation2 + $0x78] sm:$0xe]  ;;  %v19023_v47 = vld [vmem:[#allocation23_spill] sm:$0xff] }
 0x233   : > { %v3595_v17 = vsel %vm14940_vm1, %v3593_v26, %v3594_v3  ;;  %v3616_v0 = vsel %vm14940_vm1, %v3614_v60, %v3615_v42  ;;  %v3526_v26 = vld [vmem:[#allocation2 + $0x6c] sm:$0xe]  ;;  %v11664_v44 = vrot.slane %v3525_v49, 9  ;;  %v3647_v35 = vrot.slane %v15196_v10, 5 }
 0x234   : > { %v11674_v11 = vcombine.low %v3592_v46, %v3595_v17  ;;  %v11677_v9 = vcombine.low %v3613_v27, %v3616_v0  ;;  %v3620_v5 = vsel %vm14940_vm1, %v11662_v23, %v3619_v36  ;;  %v3636_v46 = vrot.slane %v15201_v57, 5  ;;  %v3530_v36 = vld [vmem:[#allocation2 + $0x9c] sm:$0xe] }
 0x235   : > { %v11678_v3 = vcombine.low %v3620_v5, %v3623_v50  ;;  %v11665_v17 = vrot.slane %v3526_v26, 9  ;;  %v11666_v20 = vrot.slane %v3527_v63, 9  ;;  %v3657_v10 = vrot.slane %v15254_v32, 5  ;;  %v3531_v50 = vld [vmem:[#allocation2 + $0xa8] sm:$0xe] }
 0x236   : > { %12727 = vmatmul.mubr.msk.bf16.gmra.mrb[24].mxu0 %vm1471_vm12, %v11638_v22  ;;  %v3607_v22 = vrot.slane %v3605_v41, 4  ;;  %v3642_v41 = vrot.slane %v3640_v33, 4  ;;  %v3661_v42 = vrot.slane %v15248_v56, 5  ;;  %v3668_v32 = vrot.slane %v15252_v55, 5 }
 0x237   : > { %12730 = vmatprep.mubr.msk.bf16.mxu0 %vm1471_vm12, %v11639_v51  ;;  %v3608_v51 = vrot.slane %v15127_v7, 5  ;;  %v3641_v4 = vsel %vm14940_vm1, %v11665_v17, %v3640_v33  ;;  %v3648_v60 = vsel %vm14940_vm1, %v11666_v20, %v3647_v35  ;;  %v3671_v56 = vrot.slane %v19024_v28, 5  ;;  %v13819_v20 = vld [vmem:[#allocation2 + $0x30] sm:$0xff]  }
 0x238   : > { %v3670_v23 = vrot.slane %v3668_v32, 4  ;;  %v11670_v33 = vrot.slane %v3531_v50, 9  ;;  %v3689_v17 = vrot.slane %v15303_v14, 5 }
 0x239   : > { %v3609_v7 = vsel %vm14940_vm1, %v3607_v22, %v3608_v51  ;;  %v3649_v22 = vrot.slane %v3647_v35, 4  ;;  %v3650_v51 = vrot.slane %v15224_v53, 5 }
 0x23a   : > { %v11676_v43 = vcombine.low %v3606_v37, %v3609_v7  ;;  %v3529_v7 = vld [vmem:[#allocation2 + $0x90] sm:$0xe]  ;;  %v3672_v5 = vsel %vm14940_vm1, %v3670_v23, %v3671_v56  ;;  %v3691_v35 = vrot.slane %v3689_v17, 4 }
 0x23b   : > { %v11668_v15 = vrot.slane %v3529_v7, 9 }
 0x23d   : > { %v3662_v13 = vsel %vm14940_vm1, %v11668_v15, %v3661_v42  ;;  %v13826_v15 = vld [vmem:[#allocation2 + $0x84] sm:$0xff]  }
 0x23e   : > { %12731 = vmatmul.mubr.msk.bf16.gmra.mrb[28].mxu0 %vm1471_vm12, %v11640_v39  ;;  %v3633_v39 = vrot.slane %v15163_v29, 5  ;;  %v3643_v29 = vrot.slane %v15213_v16, 5  ;;  %v3654_v16 = vrot.slane %v15228_v31, 5  ;;  %v3651_v31 = vsel %vm14940_vm1, %v3649_v22, %v3650_v51  ;;  %v15468_v51 = vld [vmem:[#allocation6 + $0x10] sm:$0x3] }
 0x23f   : > { %12736 = vmatprep.mubr.msk.bf16.mxu0 %vm1471_vm12, %v11673_v59  ;;  %v3627_v59 = vsel %vm14940_vm1, %v11663_v45, %v3626_v24  ;;  %v11682_v27 = vcombine.low %v3648_v60, %v3651_v31  ;;  %v3663_v24 = vrot.slane %v3661_v42, 4  ;;  %v19025_v45 = vld [vmem:[#allocation25_spill] sm:$0xff]  ;;  %v4878_v22 = vsel %vm1520_vm4, %v15370_v18, 0  ;;  %v13825_v31 = vld [vmem:[#allocation2 + $0x78] sm:$0xff]  }
 0x240   : > { %v11679_v19 = vcombine.low %v3627_v59, %v3630_v34  ;;  %v3635_v12 = vrot.slane %v3633_v39, 4  ;;  %v3634_v30 = vsel %vm14940_vm1, %v11664_v44, %v3633_v39  ;;  %v3644_v57 = vsel %vm14940_vm1, %v3642_v41, %v3643_v29  ;;  %v3532_v59 = vld [vmem:[#allocation2 + $0xb4] sm:$0xe]  ;;  %v3533_v29 = vld [vmem:[#allocation2 + $0xc0] sm:$0xe] }
 0x241   : > { %v3656_v52 = vrot.slane %v3654_v16, 4  ;;  %v3675_v40 = vrot.slane %v19025_v45, 5  ;;  %v3682_v39 = vrot.slane %v15287_v8, 5  ;;  %v13823_v60 = vld [vmem:[#allocation2 + $0x60] sm:$0xff]   ;;  %v4347_v42 = vld [vmem:[#allocation2 + $0x18] sm:$0xf] }
 0x242   : > { %v3637_v48 = vsel %vm14940_vm1, %v3635_v12, %v3636_v46  ;;  %v3685_v12 = vrot.slane %v15311_v38, 5  ;;  %v4399_v7 = vshll.u32 %v4347_v42, 16  ;;  %v15488_v45 = vld [vmem:[#allocation2 + $0x20] sm:$0x1] }
 0x243   : > { %v3658_v53 = vsel %vm14940_vm1, %v3656_v52, %v3657_v10  ;;  %v3677_v26 = vrot.slane %v3675_v40, 4  ;;  %v3684_v44 = vrot.slane %v3682_v39, 4  ;;  %v3676_v46 = vsel %vm14940_vm1, %v11670_v33, %v3675_v40  ;;  %v13821_v52 = vld [vmem:[#allocation2 + $0x48] sm:$0xff]   ;;  %v13822_v10 = vld [vmem:[#allocation2 + $0x54] sm:$0xff]   ;;  %v4353_v40 = vld [vmem:[#allocation2 + $0x30] sm:$0xf] }
 0x246   : > { %12737 = vmatmul.mubr.msk.bf16.vlgmr.msra.gmra.mrb[0].mxu0 %vm1471_vm12, %v11674_v11  ;;  %v11680_v11 = vcombine.low %v3634_v30, %v3637_v48  ;;  %v11672_v48 = vrot.slane %v3533_v29, 9  ;;  %v15502_v29 = vld [vmem:[#allocation2 + $0x40] sm:$0xf] }
 0x247   : > { %12769 = vmatpush3.bf16.msra.mxu0 %v4152_v21  ;;  %12740 = vmatprep.mubr.msk.bf16.mxu0 %vm1471_vm12, %v11675_v25  ;;  %v11681_v25 = vcombine.low %v3641_v4, %v3644_v57  ;;  %v11667_v21 = vrot.slane %v3528_v58, 9  ;;  %v3692_v4 = vrot.slane %v15323_v61, 5  ;;  %v417_v57 = vld [vmem:[#allocation2 + $0xd4] sm:$0x1]  ;;  %v13818_v61 = vld [vmem:[#allocation2 + $0x24] sm:$0xff]  }
 0x248   : > { %13695 = vmatprep.subr.msk.bf16.mxu0 %vm1520_vm4, %v15370_v18  ;;  %v3690_v14 = vsel %vm14940_vm1, %v11672_v48, %v3689_v17  ;;  %v418_v58 = vsel %vm14417_vm6, 0, %v417_v57  ;;  %v13824_v18 = vld [vmem:[#allocation2 + $0x6c] sm:$0xff]  }
 0x249   : > { %v3655_v37 = vsel %vm14940_vm1, %v11667_v21, %v3654_v16  ;;  %v3693_v63 = vsel %vm14940_vm1, %v3691_v35, %v3692_v4  ;;  %419 = vst [vmem:[#allocation2 + $0xd4] sm:$0x1] %v418_v58  ;;  %v13820_v21 = vld [vmem:[#allocation2 + $0x3c] sm:$0xff]   ;;  %v13829_v17 = vld [vmem:[#allocation2 + $0xa8] sm:$0xff]   ;;  %v15506_v16 = vld [vmem:[#allocation2 + $0x38] sm:$0x1] }
 0x24a   : > { %v11683_v0 = vcombine.low %v3655_v37, %v3658_v53  ;;  %v15478_v37 = vld [vmem:[#allocation2 + $0x1c] sm:$0xf]  ;;  %v4396_v53 = vshrl.u32 %v4347_v42, 16 }
 0x24e   : > { %12741 = vmatmul.mubr.msk.bf16.gmra.mrb[4].mxu0 %vm1471_vm12, %v11676_v43  ;;  %v3664_v43 = vrot.slane %v19023_v47, 5  ;;  %v4398_v47 = vrot.slane %v4396_v53, 4 }
 0x24f   : > { %12744 = vmatprep.mubr.msk.bf16.mxu0 %vm1471_vm12, %v11677_v9  ;;  %v11669_v9 = vrot.slane %v3530_v36, 9  ;;  %v4409_v36 = vshrl.u32 %v15478_v37, 16 }
 0x250   : > { %v3665_v55 = vsel %vm14940_vm1, %v3663_v24, %v3664_v43  ;;  %v13827_v24 = vld [vmem:[#allocation2 + $0x90] sm:$0xff]   ;;  %v4401_v43 = vrot.slane %v4399_v7, 5  ;;  %v15524_v7 = vld [vmem:[#allocation2 + $0x4c] sm:$0xf] }
 0x251   : > { %v3669_v6 = vsel %vm14940_vm1, %v11669_v9, %v3668_v32  ;;  %v11684_v34 = vcombine.low %v3662_v13, %v3665_v55  ;;  %v4405_v32 = vshll.u32 %v15478_v37, 16  ;;  %v4411_v56 = vrot.slane %v4409_v36, 4 }
 0x252   : > { %v11685_v49 = vcombine.low %v3669_v6, %v3672_v5  ;;  %v4402_v6 = vor.u32 %v4401_v43, %v4398_v47  ;;  %v13831_v43 = vld [vmem:[#allocation2 + $0xc0] sm:$0xff]  }
 0x253   : > { %v4407_v28 = vrot.slane %v4405_v32, 5  ;;  %v13830_v32 = vld [vmem:[#allocation2 + $0xb4] sm:$0xff]  }
 0x256   : > { %12745 = vmatmul.mubr.msk.bf16.gmra.mrb[8].mxu0 %vm1471_vm12, %v11678_v3  ;;  %v3678_v3 = vrot.slane %v15301_v2, 5  ;;  %v3686_v2 = vsel %vm14940_vm1, %v3684_v44, %v3685_v12  ;;  %v13828_v44 = vld [vmem:[#allocation2 + $0x9c] sm:$0xff]  }
 0x257   : > { %12748 = vmatprep.mubr.msk.bf16.mxu0 %vm1471_vm12, %v11679_v19  ;;  %v11671_v19 = vrot.slane %v3532_v59, 9  ;;  %v4412_v59 = vor.u32 %v4411_v56, %v4407_v28  ;;  %v4501_v56 = vshll.u32 %v15524_v7, 16 }
 0x258   : > { %v3679_v8 = vsel %vm14940_vm1, %v3677_v26, %v3678_v3  ;;  %v4444_v3 = vshrl.u32 %v4353_v40, 16 }
 0x259   : > { %v3683_v41 = vsel %vm14940_vm1, %v11671_v19, %v3682_v39  ;;  %v11686_v38 = vcombine.low %v3676_v46, %v3679_v8  ;;  %v15492_v39 = vld [vmem:[#allocation2 + $0x34] sm:$0xf]  ;;  %v4447_v19 = vshll.u32 %v4353_v40, 16  ;;  %v4356_v8 = vld [vmem:[#allocation2 + $0x3c] sm:$0xf] }
 0x25a   : > { %v11687_v30 = vcombine.low %v3683_v41, %v3686_v2  ;;  %v4453_v12 = vshll.u32 %v15492_v39, 16  ;;  %v4457_v46 = vshrl.u32 %v15492_v39, 16  ;;  %v4446_v4 = vrot.slane %v4444_v3, 4 }
 0x25b   : > { %v4449_v57 = vrot.slane %v4447_v19, 5  ;;  %v15546_v19 = vld [vmem:[#allocation2 + $0xd0] sm:$0xf] }
 0x25c   : > { %v15508_v58 = vrot.slane %v4453_v12, 5 }
 0x25e   : > { %12749 = vmatmul.mubr.msk.bf16.gmra.mrb[12].mxu0 %vm1471_vm12, %v11680_v11  ;;  %v11688_v11 = vcombine.low %v3690_v14, %v3693_v63  ;;  %v4468_v14 = vshrl.u32 %v4356_v8, 16  ;;  %v4471_v63 = vshll.u32 %v4356_v8, 16  ;;  %v5088_v8 = vld [vmem:[#allocation2 + $0xcc] sm:$0xe] }
 0x25f   : > { %12752 = vmatprep.mubr.msk.bf16.mxu0 %vm1471_vm12, %v11681_v25  ;;  %v13817_v25 = vld [vmem:[#allocation2 + $0x18] sm:$0xff]  }
 0x260   : > { %v4470_v42 = vrot.slane %v4468_v14, 4  ;;  %v4473_v53 = vrot.slane %v4471_v63, 5 }
 0x266   : > { %12753 = vmatmul.mubr.msk.bf16.gmra.mrb[16].mxu0 %vm1471_vm12, %v11682_v27  ;;  %v4350_v27 = vld [vmem:[#allocation2 + $0x24] sm:$0xf] }
 0x267   : > { %12756 = vmatprep.mubr.msk.bf16.mxu0 %vm1471_vm12, %v11683_v0  ;;  %v15484_v0 = vld [vmem:[#allocation2 + $0x28] sm:$0xf]  ;;  %v4420_v9 = vshrl.u32 %v4350_v27, 16  ;;  %v4423_v23 = vshll.u32 %v4350_v27, 16  ;;  %v15527_v27 = vld [vmem:[#allocation2 + $0x44] sm:$0x1] }
 0x268   : > { %v4429_v13 = vshll.u32 %v15484_v0, 16  ;;  %v4433_v55 = vshrl.u32 %v15484_v0, 16 }
 0x269   : > { %v4422_v5 = vrot.slane %v4420_v9, 4  ;;  %v4425_v50 = vrot.slane %v4423_v23, 5 }
 0x26a   : > { %v15497_v33 = vrot.slane %v4429_v13, 5  ;;  %v4435_v26 = vrot.slane %v4433_v55, 4  ;;  %v4505_v13 = vshrl.u32 %v15524_v7, 16  ;;  %v4362_v55 = vld [vmem:[#allocation2 + $0x54] sm:$0xf] }
 0x26b   : > { %v4426_v41 = vor.u32 %v4425_v50, %v4422_v5  ;;  %v4474_v5 = vor.u32 %v4473_v53, %v4470_v42  ;;  %v4487_v50 = vshll.u32 %v15527_v27, 16 }
 0x26c   : > { %v4436_v35 = vor.u32 %v4435_v26, %v15497_v33 }
 0x26d   : > { %v15560_v14 = vrot.slane %v4474_v5, 4  ;;  %v15562_v63 = vrot.slane %v4487_v50, 5 }
 0x26e   : > { %12757 = vmatmul.mubr.msk.bf16.gmra.mrb[20].mxu0 %vm1471_vm12, %v11684_v34  ;;  %v4415_v34 = vshll.u32 %v15488_v45, 16 }
 0x26f   : > { %12760 = vmatprep.mubr.msk.bf16.mxu0 %vm1471_vm12, %v11685_v49  ;;  %v15495_v49 = vld [vmem:[#allocation2 + $0x2c] sm:$0x1] }
 0x270   : > { %v4439_v2 = vshll.u32 %v15495_v49, 16  ;;  %v4417_v48 = vrot.slane %v4415_v34, 5 }
 0x276   : > { %12761 = vmatmul.mubr.msk.bf16.gmra.mrb[24].mxu0 %vm1471_vm12, %v11686_v38  ;;  %v4403_v38 = vrot.slane %v4402_v6, 4 }
 0x277   : > { %12764 = vmatprep.mubr.msk.bf16.mxu0 %vm1471_vm12, %v11687_v30  ;;  %v4413_v30 = vrot.slane %v4412_v59, 4  ;;  %v15538_v59 = vld [vmem:[#allocation2 + $0x58] sm:$0xf] }
 0x27e   : > { %12765 = vmatmul.mubr.msk.bf16.gmra.mrb[28].mxu0 %vm1471_vm12, %v11688_v11  ;;  %v4459_v11 = vrot.slane %v4457_v46, 4  ;;  %v4516_v46 = vshrl.u32 %v4362_v55, 16 }
 0x27f   : > { %12770 = vmatprep.mubr.msk.bf16.mxu0 %vm1471_vm12, %v13817_v25  ;;  %v4477_v25 = vshll.u32 %v15502_v29, 16 }
 0x280   : > { %v4460_v36 = vor.u32 %v4459_v11, %v15508_v58  ;;  %v4518_v42 = vrot.slane %v4516_v46, 4  ;;  %v4371_v46 = vld [vmem:[#allocation2 + $0x78] sm:$0xf] }
 0x286   : > { %12771 = vmatmul.mubr.msk.bf16.vlgmr.msra.gmra.mrb[0].mxu0 %vm1471_vm12, %v13818_v61  ;;  %v4481_v61 = vshrl.u32 %v15502_v29, 16 }
 0x287   : > { %12803 = vmatpush3.bf16.msra.mxu0 %v4878_v22  ;;  %12774 = vmatprep.mubr.msk.bf16.mxu0 %vm1471_vm12, %v13819_v20  ;;  %v15513_v20 = vrot.slane %v4426_v41, 4  ;;  %v4359_v22 = vld [vmem:[#allocation2 + $0x48] sm:$0xf] }
 0x288   : > { %13696 = vmatprep.subr.msk.bf16.mxu0 %vm1520_vm4, %v15468_v51  ;;  %v4492_v47 = vshrl.u32 %v4359_v22, 16  ;;  %v4495_v9 = vshll.u32 %v4359_v22, 16  ;;  %v4365_v22 = vld [vmem:[#allocation2 + $0x60] sm:$0xf] }
 0x28a   : > { %v4494_v3 = vrot.slane %v4492_v47, 4  ;;  %v4497_v12 = vrot.slane %v4495_v9, 5  ;;  %v4543_v47 = vshll.u32 %v4365_v22, 16 }
 0x28e   : > { %12775 = vmatmul.mubr.msk.bf16.gmra.mrb[4].mxu0 %vm1471_vm12, %v13820_v21  ;;  %v4408_v21 = vsel %vm14466_vm13, %v4403_v38, %v4407_v28  ;;  %v4432_v28 = vsel %vm14466_vm13, %v15513_v20, %v15497_v33  ;;  %v4461_v33 = vrot.slane %v4460_v36, 4  ;;  %v15555_v38 = vrot.slane %v4501_v56, 5  ;;  %v15584_v36 = vld [vmem:[#allocation2 + $0x5c] sm:$0x1] }
 0x28f   : > { %12778 = vmatprep.mubr.msk.bf16.mxu0 %vm1471_vm12, %v13821_v52  ;;  %v4418_v52 = vsel %vm14466_vm13, %v4413_v30, %v4417_v48  ;;  %v4507_v30 = vrot.slane %v4505_v13, 4  ;;  %v4519_v48 = vshll.u32 %v4362_v55, 16  ;;  %v4529_v20 = vshrl.u32 %v15538_v59, 16 }
 0x290   : > { %v11737_v23 = vcombine.low %v4408_v21, %v4418_v52  ;;  %v15568_v21 = vld [vmem:[#allocation2 + $0x64] sm:$0xf]  ;;  %v5348_v13 = vsel %vm1520_vm4, %v15468_v51, 0 }
 0x291   : > { %v4521_v53 = vrot.slane %v4519_v48, 5  ;;  %v4553_v9 = vshrl.u32 %v15568_v21, 16 }
 0x296   : > { %12779 = vmatmul.mubr.msk.bf16.gmra.mrb[8].mxu0 %vm1471_vm12, %v13822_v10  ;;  %v15519_v10 = vrot.slane %v4436_v35, 4  ;;  %v11784_v35 = vrot.slane %v5088_v8, 9 }
 0x297   : > { %12782 = vmatprep.mubr.msk.bf16.mxu0 %vm1471_vm12, %v13823_v60  ;;  %v15521_v60 = vrot.slane %v4439_v2, 5  ;;  %v15553_v2 = vld [vmem:[#allocation2 + $0x50] sm:$0x1] }
 0x299   : > { %v4442_v34 = vsel %vm14466_vm13, %v15519_v10, %v15521_v60  ;;  %v4498_v10 = vor.u32 %v4497_v12, %v4494_v3  ;;  %v4511_v60 = vshll.u32 %v15553_v2, 16  ;;  %v4368_v3 = vld [vmem:[#allocation2 + $0x6c] sm:$0xf]  ;;  %v15605_v12 = vld [vmem:[#allocation2 + $0x70] sm:$0xf] }
 0x29a   : > { %v11738_v56 = vcombine.low %v4432_v28, %v4442_v34  ;;  %v4522_v34 = vor.u32 %v4521_v53, %v4518_v42  ;;  %v4374_v53 = vld [vmem:[#allocation2 + $0x84] sm:$0xf] }
 0x29b   : > { %v4499_v50 = vrot.slane %v4498_v10, 4 }
 0x29e   : > { %12783 = vmatmul.mubr.msk.bf16.gmra.mrb[12].mxu0 %vm1471_vm12, %v13824_v18  ;;  %v4450_v18 = vor.u32 %v4449_v57, %v4446_v4  ;;  %v13832_v4 = vld [vmem:[#allocation2 + $0xcc] sm:$0xff]  }
 0x29f   : > { %12786 = vmatprep.mubr.msk.bf16.mxu0 %vm1471_vm12, %v13825_v31  ;;  %v4463_v31 = vshll.u32 %v15506_v16, 16 }
 0x2a0   : > { %v4451_v40 = vrot.slane %v4450_v18, 4 }
 0x2a1   : > { %v4465_v6 = vrot.slane %v4463_v31, 5  ;;  %v4508_v31 = vor.u32 %v4507_v30, %v15555_v38  ;;  %v15609_v30 = vld [vmem:[#allocation2 + $0x7c] sm:$0xf] }
 0x2a2   : > { %v4456_v57 = vsel %vm14466_vm13, %v4451_v40, %v15508_v58  ;;  %v4531_v40 = vrot.slane %v4529_v20, 4  ;;  %v15618_v20 = vrot.slane %v4522_v34, 4 }
 0x2a3   : > { %v4509_v28 = vrot.slane %v4508_v31, 4 }
 0x2a6   : > { %12787 = vmatmul.mubr.msk.bf16.gmra.mrb[16].mxu0 %vm1471_vm12, %v13826_v15  ;;  %v15529_v15 = vrot.slane %v4477_v25, 5  ;;  %v4466_v25 = vsel %vm14466_vm13, %v4461_v33, %v4465_v6  ;;  %v4513_v33 = vrot.slane %v4511_v60, 5 }
 0x2a7   : > { %12790 = vmatprep.mubr.msk.bf16.mxu0 %vm1471_vm12, %v13827_v24  ;;  %v4483_v24 = vrot.slane %v4481_v61, 4  ;;  %v4525_v61 = vshll.u32 %v15538_v59, 16  ;;  %v11739_v6 = vcombine.low %v4456_v57, %v4466_v25  ;;  %v4567_v57 = vshll.u32 %v4368_v3, 16 }
 0x2a8   : > { %v4480_v5 = vsel %vm14466_vm13, %v15560_v14, %v15529_v15  ;;  %v4573_v14 = vshll.u32 %v15605_v12, 16  ;;  %v4591_v25 = vshll.u32 %v4371_v46, 16  ;;  %v4514_v10 = vsel %vm14466_vm13, %v4509_v28, %v4513_v33  ;;  %v15631_v28 = vld [vmem:[#allocation2 + $0x74] sm:$0x1] }
 0x2a9   : > { %v4484_v26 = vor.u32 %v4483_v24, %v15529_v15  ;;  %v4540_v24 = vshrl.u32 %v4365_v22, 16  ;;  %v15591_v55 = vrot.slane %v4525_v61, 5  ;;  %v4504_v61 = vsel %vm14466_vm13, %v4499_v50, %v15555_v38 }
 0x2aa   : > { %v4597_v22 = vshll.u32 %v15609_v30, 16  ;;  %v4569_v38 = vrot.slane %v4567_v57, 5 }
 0x2ab   : > { %v15574_v58 = vrot.slane %v4484_v26, 4  ;;  %v15598_v26 = vld [vmem:[#allocation2 + $0x68] sm:$0x1]  ;;  %v4542_v8 = vrot.slane %v4540_v24, 4  ;;  %v4532_v48 = vor.u32 %v4531_v40, %v15591_v55  ;;  %v15629_v40 = vrot.slane %v4573_v14, 5 }
 0x2ac   : > { %v15633_v34 = vrot.slane %v4597_v22, 5  ;;  %v4377_v22 = vld [vmem:[#allocation2 + $0x90] sm:$0xf] }
 0x2ad   : > { %v4490_v51 = vsel %vm14466_vm13, %v15574_v58, %v15562_v63  ;;  %v4577_v63 = vshrl.u32 %v15605_v12, 16  ;;  %v4601_v58 = vshrl.u32 %v15609_v30, 16  ;;  %v4533_v24 = vrot.slane %v4532_v48, 4 }
 0x2ae   : > { %12791 = vmatmul.mubr.msk.bf16.gmra.mrb[20].mxu0 %vm1471_vm12, %v13828_v44  ;;  %v15548_v44 = vld [vmem:[#allocation2 + $0xd4] sm:$0x1]  ;;  %v11740_v48 = vcombine.low %v4480_v5, %v4490_v51 }
 0x2af   : > { %12794 = vmatprep.mubr.msk.bf16.mxu0 %vm1471_vm12, %v13829_v17  ;;  %v5244_v17 = vrot.slane %v15546_v19, 5  ;;  %v5247_v41 = vrot.slane %v15548_v44, 5  ;;  %v4579_v50 = vrot.slane %v4577_v63, 4 }
 0x2b1   : > { %v5246_v11 = vrot.slane %v5244_v17, 4  ;;  %v15572_v52 = vsel %vm14940_vm1, %v11784_v35, %v5244_v17  ;;  %v4545_v17 = vrot.slane %v4543_v47, 5  ;;  %v4559_v35 = vshll.u32 %v15598_v26, 16 }
 0x2b2   : > { %19027 = vst [vmem:[#allocation23_spill] sm:$0xff] %v15572_v52  ;;  %v4580_v63 = vor.u32 %v4579_v50, %v15629_v40 }
 0x2b3   : > { %v15579_v18 = vsel %vm14940_vm1, %v5246_v11, %v5247_v41  ;;  %v4555_v41 = vrot.slane %v4553_v9, 4  ;;  %v4588_v11 = vshrl.u32 %v4371_v46, 16  ;;  %v4546_v31 = vor.u32 %v4545_v17, %v4542_v8  ;;  %v15626_v9 = vld [vmem:[#allocation2 + $0x88] sm:$0xf] }
 0x2b4   : > { %19028 = vst [vmem:[#allocation24_spill] sm:$0xff] %v15579_v18  ;;  %v4561_v47 = vrot.slane %v4559_v35, 5  ;;  %v4615_v46 = vshll.u32 %v4374_v53, 16  ;;  %v11741_v35 = vcombine.low %v4504_v61, %v4514_v10 }
 0x2b5   : > { %v4590_v33 = vrot.slane %v4588_v11, 4  ;;  %v4547_v8 = vrot.slane %v4546_v31, 4  ;;  %v4583_v11 = vshll.u32 %v15631_v28, 16 }
 0x2b6   : > { %12795 = vmatmul.mubr.msk.bf16.gmra.mrb[24].mxu0 %vm1471_vm12, %v13830_v32  ;;  %v4617_v10 = vrot.slane %v4615_v46, 5 }
 0x2b7   : > { %12798 = vmatprep.mubr.msk.bf16.mxu0 %vm1471_vm12, %v13831_v43  ;;  %v4549_v43 = vshll.u32 %v15568_v21, 16 }
 0x2b9   : > { %v15607_v15 = vrot.slane %v4549_v43, 5 }
 0x2bb   : > { %v4556_v42 = vor.u32 %v4555_v41, %v15607_v15  ;;  %v15635_v41 = vld [vmem:[#allocation2 + $0x80] sm:$0x1] }
 0x2bc   : > { %v4607_v51 = vshll.u32 %v15635_v41, 16 }
 0x2bd   : > { %v4557_v17 = vrot.slane %v4556_v42, 4 }
 0x2be   : > { %12799 = vmatmul.mubr.msk.bf16.gmra.mrb[28].mxu0 %vm1471_vm12, %v13832_v4  ;;  %v4564_v4 = vshrl.u32 %v4368_v3, 16  ;;  %v4593_v3 = vrot.slane %v4591_v25, 5 }
 0x2bf   : > { %12804 = vmatprep.mubr.msk.bf16.mxu0 %vm1471_vm12, %v11737_v23  ;;  %v4535_v23 = vshll.u32 %v15584_v36, 16 }
 0x2c0   : > { %v4566_v43 = vrot.slane %v4564_v4, 4  ;;  %v4528_v4 = vsel %vm14466_vm13, %v15618_v20, %v15591_v55  ;;  %v4594_v25 = vor.u32 %v4593_v3, %v4590_v33  ;;  %v4552_v55 = vsel %vm14466_vm13, %v4547_v8, %v15607_v15  ;;  %v4380_v8 = vld [vmem:[#allocation2 + $0x9c] sm:$0xf] }
 0x2c1   : > { %v4537_v60 = vrot.slane %v4535_v23, 5  ;;  %v4603_v23 = vrot.slane %v4601_v58, 4  ;;  %v15647_v58 = vld [vmem:[#allocation2 + $0x94] sm:$0xf]  ;;  %v4562_v20 = vsel %vm14466_vm13, %v4557_v17, %v4561_v47  ;;  %v4581_v15 = vrot.slane %v4580_v63, 4 }
 0x2c2   : > { %v4570_v14 = vor.u32 %v4569_v38, %v4566_v43  ;;  %v4645_v43 = vshll.u32 %v15647_v58, 16  ;;  %v4649_v38 = vshrl.u32 %v15647_v58, 16  ;;  %v4585_v33 = vrot.slane %v4583_v11, 5 }
 0x2c3   : > { %v4538_v57 = vsel %vm14466_vm13, %v4533_v24, %v4537_v60  ;;  %v4604_v5 = vor.u32 %v4603_v23, %v15633_v34  ;;  %v15656_v60 = vld [vmem:[#allocation2 + $0x8c] sm:$0x1]  ;;  %v4639_v24 = vshll.u32 %v4377_v22, 16  ;;  %v4595_v3 = vrot.slane %v4594_v25, 4 }
 0x2c4   : > { %v4571_v50 = vrot.slane %v4570_v14, 4  ;;  %v4609_v23 = vrot.slane %v4607_v51, 5  ;;  %v4631_v46 = vshll.u32 %v15656_v60, 16  ;;  %v11742_v17 = vcombine.low %v4528_v4, %v4538_v57  ;;  %v15677_v51 = vld [vmem:[#allocation2 + $0xac] sm:$0xf] }
 0x2c5   : > { %v4605_v47 = vrot.slane %v4604_v5, 4  ;;  %v15670_v14 = vrot.slane %v4645_v43, 5  ;;  %v4651_v63 = vrot.slane %v4649_v38, 4  ;;  %v4586_v25 = vsel %vm14466_vm13, %v4581_v15, %v4585_v33  ;;  %v4383_v5 = vld [vmem:[#allocation2 + $0xa8] sm:$0xf] }
 0x2c6   : > { %12805 = vmatmul.mubr.msk.bf16.vlgmr.msra.gmra.mrb[0].mxu0 %vm1471_vm12, %v11738_v56  ;;  %v4612_v56 = vshrl.u32 %v4374_v53, 16  ;;  %v4636_v53 = vshrl.u32 %v4377_v22, 16  ;;  %v15668_v22 = vld [vmem:[#allocation2 + $0x98] sm:$0x1]  ;;  %v4576_v11 = vsel %vm14466_vm13, %v4571_v50, %v15629_v40  ;;  %v4660_v4 = vshrl.u32 %v4380_v8, 16 }
 0x2c7   : > { %12837 = vmatpush3.bf16.msra.mxu0 %v5348_v13  ;;  %12808 = vmatprep.mubr.msk.bf16.mxu0 %vm1471_vm12, %v11739_v6  ;;  %v4621_v13 = vshll.u32 %v15626_v9, 16  ;;  %v4625_v6 = vshrl.u32 %v15626_v9, 16  ;;  %v4663_v57 = vshll.u32 %v4380_v8, 16  ;;  %v4655_v40 = vshll.u32 %v15668_v22, 16  ;;  %v15695_v8 = vld [vmem:[#allocation2 + $0xa4] sm:$0x1] }
 0x2c8   : > { %v4614_v61 = vrot.slane %v4612_v56, 4  ;;  %v4638_v32 = vrot.slane %v4636_v53, 4  ;;  %v4684_v43 = vshrl.u32 %v4383_v5, 16  ;;  %v4687_v38 = vshll.u32 %v4383_v5, 16 }
 0x2c9   : > { %v15658_v31 = vrot.slane %v4621_v13, 5  ;;  %v4627_v42 = vrot.slane %v4625_v6, 4  ;;  %v11743_v13 = vcombine.low %v4552_v55, %v4562_v20  ;;  %v4633_v20 = vrot.slane %v4631_v46, 5 }
 0x2ca   : > { %v4618_v56 = vor.u32 %v4617_v10, %v4614_v61  ;;  %v4600_v61 = vsel %vm14466_vm13, %v4595_v3, %v15633_v34  ;;  %v4610_v10 = vsel %vm14466_vm13, %v4605_v47, %v4609_v23  ;;  %v4693_v50 = vshll.u32 %v15677_v51, 16 }
 0x2cb   : > { %v4628_v6 = vor.u32 %v4627_v42, %v15658_v31  ;;  %v4697_v34 = vshrl.u32 %v15677_v51, 16  ;;  %v4652_v33 = vor.u32 %v4651_v63, %v15670_v14  ;;  %v4662_v3 = vrot.slane %v4660_v4, 4 }
 0x2cc   : > { %v4619_v55 = vrot.slane %v4618_v56, 4  ;;  %v4665_v47 = vrot.slane %v4663_v57, 5  ;;  %v11744_v23 = vcombine.low %v4576_v11, %v4586_v25  ;;  %v11745_v56 = vcombine.low %v4600_v61, %v4610_v10  ;;  %v4386_v25 = vld [vmem:[#allocation2 + $0xb4] sm:$0xf] }
 0x2cd   : > { %v4629_v42 = vrot.slane %v4628_v6, 4  ;;  %v4657_v6 = vrot.slane %v4655_v40, 5  ;;  %v4689_v63 = vrot.slane %v4687_v38, 5  ;;  %v15703_v4 = vrot.slane %v4693_v50, 5  ;;  %v15710_v38 = vld [vmem:[#allocation2 + $0xc4] sm:$0xf] }
 0x2ce   : > { %12809 = vmatmul.mubr.msk.bf16.gmra.mrb[4].mxu0 %vm1471_vm12, %v11740_v48  ;;  %v15666_v48 = vld [vmem:[#allocation2 + $0xa0] sm:$0xf]  ;;  %v4624_v46 = vsel %vm14466_vm13, %v4619_v55, %v15658_v31  ;;  %v4699_v11 = vrot.slane %v4697_v34, 4  ;;  %v4653_v61 = vrot.slane %v4652_v33, 4  ;;  %v4666_v31 = vor.u32 %v4665_v47, %v4662_v3  ;;  %v15706_v55 = vld [vmem:[#allocation2 + $0xb8] sm:$0xf] }
 0x2cf   : > { %12812 = vmatprep.mubr.msk.bf16.mxu0 %vm1471_vm12, %v11741_v35  ;;  %v4641_v35 = vrot.slane %v4639_v24, 5  ;;  %v4669_v53 = vshll.u32 %v15666_v48, 16  ;;  %v4673_v24 = vshrl.u32 %v15666_v48, 16  ;;  %v4679_v10 = vshll.u32 %v15695_v8, 16  ;;  %19030 = vst [vmem:[#allocation18_spill] sm:$0xff] %v15706_v55  ;;  %19031 = vst [vmem:[#allocation26_spill] sm:$0xff] %v15710_v38 }
 0x2d0   : > { %v4700_v34 = vor.u32 %v4699_v11, %v15703_v4  ;;  %v4721_v33 = vshrl.u32 %v15706_v55, 16  ;;  %v4658_v47 = vsel %vm14466_vm13, %v4653_v61, %v4657_v6 }
 0x2d1   : > { %v4642_v15 = vor.u32 %v4641_v35, %v4638_v32  ;;  %v15699_v5 = vrot.slane %v4669_v53, 5  ;;  %v15701_v32 = vld [vmem:[#allocation2 + $0xb0] sm:$0x1]  ;;  %v4686_v35 = vrot.slane %v4684_v43, 4  ;;  %v4708_v53 = vshrl.u32 %v4386_v25, 16 }
 0x2d2   : > { %19029 = vst [vmem:[#allocation25_spill] sm:$0xff] %v15701_v32  ;;  %v4389_v43 = vld [vmem:[#allocation2 + $0xc0] sm:$0xf]  ;;  %v4701_v52 = vrot.slane %v4700_v34, 4 }
 0x2d3   : > { %v4643_v57 = vrot.slane %v4642_v15, 4  ;;  %v4690_v50 = vor.u32 %v4689_v63, %v4686_v35  ;;  %v4717_v15 = vshll.u32 %v15706_v55, 16  ;;  %v4741_v35 = vshll.u32 %v15710_v38, 16 }
 0x2d4   : > { %v4745_v63 = vshrl.u32 %v15710_v38, 16  ;;  %v4710_v1 = vrot.slane %v4708_v53, 4  ;;  %v15731_v53 = vld [vmem:[#allocation2 + $0xc8] sm:$0x1] }
 0x2d5   : > { %v4648_v3 = vsel %vm14466_vm13, %v4643_v57, %v15670_v14  ;;  %v4719_v55 = vrot.slane %v4717_v15, 5  ;;  %v15724_v57 = vld [vmem:[#allocation2 + $0xbc] sm:$0x1] }
 0x2d6   : > { %12813 = vmatmul.mubr.msk.bf16.gmra.mrb[8].mxu0 %vm1471_vm12, %v11742_v17  ;;  %v4634_v17 = vsel %vm14466_vm13, %v4629_v42, %v4633_v20  ;;  %v4703_v20 = vshll.u32 %v15701_v32, 16  ;;  %v4723_v32 = vrot.slane %v4721_v33, 4  ;;  %v11747_v14 = vcombine.low %v4648_v3, %v4658_v47 }
 0x2d7   : > { %12816 = vmatprep.mubr.msk.bf16.mxu0 %vm1471_vm12, %v11743_v13  ;;  %v4675_v13 = vrot.slane %v4673_v24, 4  ;;  %v11746_v42 = vcombine.low %v4624_v46, %v4634_v17  ;;  %v4711_v24 = vshll.u32 %v4386_v25, 16  ;;  %v4667_v46 = vrot.slane %v4666_v31, 4 }
 0x2d8   : > { %v4681_v17 = vrot.slane %v4679_v10, 5  ;;  %v4705_v25 = vrot.slane %v4703_v20, 5  ;;  %v4743_v31 = vrot.slane %v4741_v35, 5  ;;  %v4747_v10 = vrot.slane %v4745_v63, 4 }
 0x2d9   : > { %v4676_v40 = vor.u32 %v4675_v13, %v15699_v5  ;;  %v4732_v13 = vshrl.u32 %v4389_v43, 16  ;;  %v4713_v18 = vrot.slane %v4711_v24, 5  ;;  %v4672_v38 = vsel %vm14466_vm13, %v4667_v46, %v15699_v5 }
 0x2da   : > { %v4724_v34 = vor.u32 %v4723_v32, %v4719_v55  ;;  %v4727_v15 = vshll.u32 %v15724_v57, 16  ;;  %v4751_v47 = vshll.u32 %v15731_v53, 16 }
 0x2db   : > { %v4677_v11 = vrot.slane %v4676_v40, 4  ;;  %v4734_v6 = vrot.slane %v4732_v13, 4  ;;  %v4714_v40 = vor.u32 %v4713_v18, %v4710_v1  ;;  %v4765_v1 = vshll.u32 %v15546_v19, 16 }
 0x2dc   : > { %v4769_v18 = vshrl.u32 %v15546_v19, 16  ;;  %v4725_v13 = vrot.slane %v4724_v34, 4 }
 0x2dd   : > { %v4682_v20 = vsel %vm14466_vm13, %v4677_v11, %v4681_v17  ;;  %v4715_v17 = vrot.slane %v4714_v40, 4  ;;  %v4767_v35 = vrot.slane %v4765_v1, 5  ;;  %v5073_v40 = vld [vmem:[#allocation2 + $0x18] sm:$0xe]  ;;  %v5142_v1 = vrot.slane %v15488_v45, 5 }
 0x2de   : > { %12817 = vmatmul.mubr.msk.bf16.gmra.mrb[12].mxu0 %vm1471_vm12, %v11744_v23  ;;  %v4735_v23 = vshll.u32 %v4389_v43, 16  ;;  %v4392_v43 = vld [vmem:[#allocation2 + $0xcc] sm:$0xf]  ;;  %v11748_v46 = vcombine.low %v4672_v38, %v4682_v20  ;;  %v4771_v63 = vrot.slane %v4769_v18, 4  ;;  %v5139_v20 = vrot.slane %v15478_v37, 5 }
 0x2df   : > { %12820 = vmatprep.mubr.msk.bf16.mxu0 %vm1471_vm12, %v11745_v56  ;;  %v4691_v56 = vrot.slane %v4690_v50, 4  ;;  %v4706_v50 = vsel %vm14466_vm13, %v4701_v52, %v4705_v25  ;;  %v4756_v5 = vshrl.u32 %v4392_v43, 16  ;;  %v4759_v33 = vshll.u32 %v4392_v43, 16 }
 0x2e0   : > { %v4737_v61 = vrot.slane %v4735_v23, 5  ;;  %v4729_v52 = vrot.slane %v4727_v15, 5  ;;  %v4720_v19 = vsel %vm14466_vm13, %v4715_v17, %v4719_v55  ;;  %v5153_v45 = vrot.slane %v15492_v39, 5 }
 0x2e1   : > { %v4696_v24 = vsel %vm14466_vm13, %v4691_v56, %v15703_v4  ;;  %v4758_v32 = vrot.slane %v4756_v5, 4  ;;  %v4761_v23 = vrot.slane %v4759_v33, 5  ;;  %v4753_v56 = vrot.slane %v4751_v47, 5  ;;  %v5075_v47 = vld [vmem:[#allocation2 + $0x30] sm:$0xe] }
 0x2e2   : > { %v4738_v3 = vor.u32 %v4737_v61, %v4734_v6  ;;  %v11749_v4 = vcombine.low %v4696_v24, %v4706_v50  ;;  %v4730_v38 = vsel %vm14466_vm13, %v4725_v13, %v4729_v52  ;;  %v4772_v6 = vor.u32 %v4771_v63, %v4767_v35 }
 0x2e3   : > { %v4775_v61 = vshll.u32 %v15548_v44, 16  ;;  %v11750_v24 = vcombine.low %v4720_v19, %v4730_v38  ;;  %v11769_v5 = vrot.slane %v5073_v40, 9  ;;  %v5141_v33 = vrot.slane %v5139_v20, 4 }
 0x2e4   : > { %v4739_v11 = vrot.slane %v4738_v3, 4  ;;  %v4773_v34 = vrot.slane %v4772_v6, 4  ;;  %v5149_v52 = vrot.slane %v15495_v49, 5  ;;  %v5160_v63 = vrot.slane %v15502_v29, 5 }
 0x2e5   : > { %v4777_v15 = vrot.slane %v4775_v61, 5  ;;  %v5140_v18 = vsel %vm14940_vm1, %v11769_v5, %v5139_v20  ;;  %v5143_v3 = vsel %vm14940_vm1, %v5141_v33, %v5142_v1  ;;  %v5163_v61 = vrot.slane %v15527_v27, 5 }
 0x2e6   : > { %12821 = vmatmul.mubr.msk.bf16.gmra.mrb[16].mxu0 %vm1471_vm12, %v11746_v42  ;;  %v4748_v42 = vor.u32 %v4747_v10, %v4743_v31  ;;  %v4744_v10 = vsel %vm14466_vm13, %v4739_v11, %v4743_v31  ;;  %v5146_v31 = vrot.slane %v15484_v0, 5  ;;  %v5156_v0 = vrot.slane %v15506_v16, 5 }
 0x2e7   : > { %12824 = vmatprep.mubr.msk.bf16.mxu0 %vm1471_vm12, %v11747_v14  ;;  %v4762_v14 = vor.u32 %v4761_v23, %v4758_v32  ;;  %v4778_v37 = vsel %vm14466_vm13, %v4773_v34, %v4777_v15  ;;  %v11771_v32 = vrot.slane %v5075_v47, 9  ;;  %v5155_v23 = vrot.slane %v5153_v45, 4 }
 0x2e8   : > { %v4749_v25 = vrot.slane %v4748_v42, 4  ;;  %v5074_v42 = vld [vmem:[#allocation2 + $0x24] sm:$0xe]  ;;  %v5148_v13 = vrot.slane %v5146_v31, 4  ;;  %v5167_v16 = vrot.slane %v15524_v7, 5  ;;  %v5162_v6 = vrot.slane %v5160_v63, 4 }
 0x2e9   : > { %v4763_v50 = vrot.slane %v4762_v14, 4  ;;  %v11770_v17 = vrot.slane %v5074_v42, 9  ;;  %v5154_v11 = vsel %vm14940_vm1, %v11771_v32, %v5153_v45  ;;  %v5157_v49 = vsel %vm14940_vm1, %v5155_v23, %v5156_v0  ;;  %v5080_v42 = vld [vmem:[#allocation2 + $0x6c] sm:$0xe]  ;;  %v5081_v45 = vld [vmem:[#allocation2 + $0x78] sm:$0xe] }
 0x2ea   : > { %v4754_v43 = vsel %vm14466_vm13, %v4749_v25, %v4753_v56  ;;  %v5150_v39 = vsel %vm14940_vm1, %v5148_v13, %v5149_v52  ;;  %v5076_v25 = vld [vmem:[#allocation2 + $0x3c] sm:$0xe]  ;;  %v5077_v56 = vld [vmem:[#allocation2 + $0x48] sm:$0xe]  ;;  %v11787_v38 = vcombine.low %v5154_v11, %v5157_v49  ;;  %v5170_v29 = vrot.slane %v15553_v2, 5 }
 0x2eb   : > { %v11751_v55 = vcombine.low %v4744_v10, %v4754_v43  ;;  %v4768_v44 = vsel %vm14466_vm13, %v4763_v50, %v4767_v35  ;;  %v5147_v35 = vsel %vm14940_vm1, %v11770_v17, %v5146_v31  ;;  %v11772_v14 = vrot.slane %v5076_v25, 9  ;;  %v5079_v50 = vld [vmem:[#allocation2 + $0x60] sm:$0xe] }
 0x2ec   : > { %v11786_v19 = vcombine.low %v5147_v35, %v5150_v39  ;;  %v11773_v10 = vrot.slane %v5077_v56, 9  ;;  %v5169_v43 = vrot.slane %v5167_v16, 4  ;;  %v5164_v7 = vsel %vm14940_vm1, %v5162_v6, %v5163_v61  ;;  %v5082_v39 = vld [vmem:[#allocation2 + $0x84] sm:$0xe] }
 0x2ed   : > { %v5161_v20 = vsel %vm14940_vm1, %v11772_v14, %v5160_v63  ;;  %v5174_v40 = vrot.slane %v15538_v59, 5  ;;  %v5181_v2 = vrot.slane %v15568_v21, 5  ;;  %v5177_v1 = vrot.slane %v15584_v36, 5  ;;  %v5083_v63 = vld [vmem:[#allocation2 + $0x90] sm:$0xe] }
 0x2ee   : > { %12825 = vmatmul.mubr.msk.bf16.gmra.mrb[20].mxu0 %vm1471_vm12, %v11748_v46  ;;  %v11752_v46 = vcombine.low %v4768_v44, %v4778_v37  ;;  %v5171_v27 = vsel %vm14940_vm1, %v5169_v43, %v5170_v29  ;;  %v11788_v34 = vcombine.low %v5161_v20, %v5164_v7  ;;  %v11775_v44 = vrot.slane %v5079_v50, 9  ;;  %v5085_v43 = vld [vmem:[#allocation2 + $0xa8] sm:$0xe] }
 0x2ef   : > { %12828 = vmatprep.mubr.msk.bf16.mxu0 %vm1471_vm12, %v11749_v4  ;;  %v11785_v4 = vcombine.low %v5140_v18, %v5143_v3  ;;  %v5176_v33 = vrot.slane %v5174_v40, 4  ;;  %v5183_v37 = vrot.slane %v5181_v2, 4  ;;  %v5184_v59 = vrot.slane %v15598_v26, 5 }
 0x2f0   : > { %v5188_v18 = vrot.slane %v15605_v12, 5  ;;  %v5182_v3 = vsel %vm14940_vm1, %v11775_v44, %v5181_v2  ;;  %v5195_v26 = vrot.slane %v15609_v30, 5  ;;  %v5191_v13 = vrot.slane %v15631_v28, 5  ;;  %v19032_v2 = vld [vmem:[#allocation25_spill] sm:$0xff] }
 0x2f1   : > { %v5178_v21 = vsel %vm14940_vm1, %v5176_v33, %v5177_v1  ;;  %v5185_v36 = vsel %vm14940_vm1, %v5183_v37, %v5184_v59  ;;  %v11777_v52 = vrot.slane %v5081_v45, 9  ;;  %v5198_v12 = vrot.slane %v15635_v41, 5  ;;  %v5086_v33 = vld [vmem:[#allocation2 + $0xb4] sm:$0xe]  ;;  %v19034_v1 = vld [vmem:[#allocation26_spill] sm:$0xff] }
 0x2f2   : > { %v5190_v17 = vrot.slane %v5188_v18, 4  ;;  %v5197_v32 = vrot.slane %v5195_v26, 4  ;;  %v5202_v0 = vrot.slane %v15626_v9, 5  ;;  %v5209_v41 = vrot.slane %v15647_v58, 5  ;;  %v5087_v37 = vld [vmem:[#allocation2 + $0xc0] sm:$0xe] }
 0x2f3   : > { %v5196_v35 = vsel %vm14940_vm1, %v11777_v52, %v5195_v26  ;;  %v11778_v25 = vrot.slane %v5082_v39, 9  ;;  %v5205_v56 = vrot.slane %v15656_v60, 5  ;;  %v5212_v9 = vrot.slane %v15668_v22, 5 }
 0x2f4   : > { %v5192_v30 = vsel %vm14940_vm1, %v5190_v17, %v5191_v13  ;;  %v5199_v28 = vsel %vm14940_vm1, %v5197_v32, %v5198_v12  ;;  %v5216_v6 = vrot.slane %v15666_v48, 5  ;;  %v5223_v22 = vrot.slane %v15677_v51, 5  ;;  %v19036_v13 = vld [vmem:[#allocation24_spill] sm:$0xff]  ;;  %v15871_v32 = vld [vmem:[#allocation8] ss:$0 sm:$0xff] }
 0x2f5   : > { %v11793_v49 = vcombine.low %v5196_v35, %v5199_v28  ;;  %v5203_v14 = vsel %vm14940_vm1, %v11778_v25, %v5202_v0  ;;  %v5226_v48 = vrot.slane %v19032_v2, 5  ;;  %v5237_v44 = vrot.slane %v19034_v1, 5 }
 0x2f6   : > { %12829 = vmatmul.mubr.msk.bf16.gmra.mrb[24].mxu0 %vm1471_vm12, %v11750_v24  ;;  %v5168_v24 = vsel %vm14940_vm1, %v11773_v10, %v5167_v16  ;;  %v5204_v16 = vrot.slane %v5202_v0, 4  ;;  %v5084_v10 = vld [vmem:[#allocation2 + $0x9c] sm:$0xe]  ;;  %v5240_v26 = vrot.slane %v15731_v53, 5  ;;  %v19035_v53 = vld [vmem:[#allocation23_spill] sm:$0xff] }
 0x2f7   : > { %12832 = vmatprep.mubr.msk.bf16.mxu0 %vm1471_vm12, %v11751_v55  ;;  %v5078_v55 = vld [vmem:[#allocation2 + $0x54] sm:$0xe]  ;;  %v11789_v15 = vcombine.low %v5168_v24, %v5171_v27  ;;  %v11780_v7 = vrot.slane %v5084_v10, 9  ;;  %v5219_v24 = vrot.slane %v15695_v8, 5  ;;  %v11781_v27 = vrot.slane %v5085_v43, 9 }
 0x2f8   : > { %v11774_v5 = vrot.slane %v5078_v55, 9  ;;  %v5206_v58 = vsel %vm14940_vm1, %v5204_v16, %v5205_v56  ;;  %v5225_v55 = vrot.slane %v5223_v22, 4  ;;  %v19037_v52 = vcombine.low %v19035_v53, %v19036_v13 }
 0x2f9   : > { %v11794_v29 = vcombine.low %v5203_v14, %v5206_v58  ;;  %v5217_v50 = vsel %vm14940_vm1, %v11780_v7, %v5216_v6 }
 0x2fa   : > { %v5175_v31 = vsel %vm14940_vm1, %v11774_v5, %v5174_v40  ;;  %v5218_v40 = vrot.slane %v5216_v6, 4  ;;  %v5224_v5 = vsel %vm14940_vm1, %v11781_v27, %v5223_v22  ;;  %v5227_v8 = vsel %vm14940_vm1, %v5225_v55, %v5226_v48 }
 0x2fb   : > { %v11790_v47 = vcombine.low %v5175_v31, %v5178_v21  ;;  %v11797_v31 = vcombine.low %v5224_v5, %v5227_v8  ;;  %v11782_v21 = vrot.slane %v5086_v33, 9 }
 0x2fc   : > { %v5220_v51 = vsel %vm14940_vm1, %v5218_v40, %v5219_v24 }
 0x2fd   : > { %v11796_v59 = vcombine.low %v5217_v50, %v5220_v51 }
 0x2fe   : > { %12833 = vmatmul.mubr.msk.bf16.gmra.mrb[28].mxu0 %vm1471_vm12, %v11752_v46  ;;  %v11791_v46 = vcombine.low %v5182_v3, %v5185_v36  ;;  %v5233_v3 = vrot.slane %v15724_v57, 5  ;;  %v11783_v36 = vrot.slane %v5087_v37, 9 }
 0x2ff   : > { %12838 = vmatprep.mubr.msk.bf16.mxu0 %vm1471_vm12, %v11785_v4  ;;  %v11776_v4 = vrot.slane %v5080_v42, 9  ;;  %v5239_v42 = vrot.slane %v5237_v44, 4 }
 0x301   : > { %v5189_v23 = vsel %vm14940_vm1, %v11776_v4, %v5188_v18  ;;  %v5241_v57 = vsel %vm14940_vm1, %v5239_v42, %v5240_v26 }
 0x302   : > { %v11792_v11 = vcombine.low %v5189_v23, %v5192_v30 }
 0x306   : > { %12839 = vmatmul.mubr.msk.bf16.vlgmr.msra.gmra.mrb[0].mxu0 %vm1471_vm12, %v11786_v19  ;;  %v11779_v19 = vrot.slane %v5083_v63, 9 }
 0x307   : > { %12842 = vmatprep.mubr.msk.bf16.mxu0 %vm1471_vm12, %v11787_v38  ;;  %v5211_v38 = vrot.slane %v5209_v41, 4 }
 0x308   : > { %v5210_v61 = vsel %vm14940_vm1, %v11779_v19, %v5209_v41 }
 0x309   : > { %v5213_v60 = vsel %vm14940_vm1, %v5211_v38, %v5212_v9 }
 0x30a   : > { %v11795_v20 = vcombine.low %v5210_v61, %v5213_v60 }
 0x30e   : > { %12843 = vmatmul.mubr.msk.bf16.gmra.mrb[4].mxu0 %vm1471_vm12, %v11788_v34  ;;  %v19033_v34 = vld [vmem:[#allocation18_spill] sm:$0xff] }
 0x30f   : > { %12846 = vmatprep.mubr.msk.bf16.mxu0 %vm1471_vm12, %v11789_v15  ;;  %v5230_v15 = vrot.slane %v19033_v34, 5 }
 0x311   : > { %v5232_v18 = vrot.slane %v5230_v15, 4  ;;  %v5231_v45 = vsel %vm14940_vm1, %v11782_v21, %v5230_v15 }
 0x316   : > { %12847 = vmatmul.mubr.msk.bf16.gmra.mrb[8].mxu0 %vm1471_vm12, %v11790_v47  ;;  %v5234_v47 = vsel %vm14940_vm1, %v5232_v18, %v5233_v3 }
 0x317   : > { %12850 = vmatprep.mubr.msk.bf16.mxu0 %vm1471_vm12, %v11791_v46  ;;  %v5238_v46 = vsel %vm14940_vm1, %v11783_v36, %v5237_v44  ;;  %v11798_v4 = vcombine.low %v5231_v45, %v5234_v47 }
 0x318   : > { %v11799_v17 = vcombine.low %v5238_v46, %v5241_v57 }
 0x31e   : > { %12851 = vmatmul.mubr.msk.bf16.gmra.mrb[12].mxu0 %vm1471_vm12, %v11792_v11 }
 0x31f   : > { %12854 = vmatprep.mubr.msk.bf16.mxu0 %vm1471_vm12, %v11793_v49 }
 0x326   : > { %12855 = vmatmul.mubr.msk.bf16.gmra.mrb[16].mxu0 %vm1471_vm12, %v11794_v29 }
 0x327   : > { %12858 = vmatprep.mubr.msk.bf16.mxu0 %vm1471_vm12, %v11795_v20 }
 0x32e   : > { %12859 = vmatmul.mubr.msk.bf16.gmra.mrb[20].mxu0 %vm1471_vm12, %v11796_v59 }
 0x32f   : > { %12862 = vmatprep.mubr.msk.bf16.mxu0 %vm1471_vm12, %v11797_v31 }
 0x336   : > { %12863 = vmatmul.mubr.msk.bf16.gmra.mrb[24].mxu0 %vm1471_vm12, %v11798_v4 }
 0x337   : > { %12866 = vmatprep.mubr.msk.bf16.mxu0 %vm1471_vm12, %v11799_v17 }
 0x33e   : > { %12867 = vmatmul.mubr.msk.bf16.gmra.mrb[28].mxu0 %vm1471_vm12, %v19037_v52 }
 0x3d9   : > { %v12840_v12 = vpop.f32.mrb[0].mxu0 }
 0x3da   : > { %v5384_v23 = vpop.f32.mrb[1].mxu0  ;;  %v15874_v30 = vadd.f32 %v12840_v12, %v15871_v32 }
 0x3db   : > { %v15877_v0 = vadd.f32 %v15871_v32, %v5384_v23  ;;  %v12841_v35 = vpop.f32.mrb[2].mxu0 }
 0x3dc   : > { %v5387_v28 = vpop.f32.mrb[3].mxu0  ;;  %v15882_v41 = vadd.f32 %v12841_v35, %v15871_v32  ;;  %v5654_v11 = vmul.f32 %v15874_v30, %v15874_v30  ;;  %v5585_v19 = vsel %vm1471_vm12, %v15874_v30, 0.0 }
 0x3dd   : > { %v5652_v39 = vmul.f32 %v15877_v0, %v15877_v0  ;;  %v15885_v63 = vadd.f32 %v15871_v32, %v5387_v28  ;;  %v5582_v49 = vsel %vm1471_vm12, %v15877_v0, 0.0 }
 0x3de   : > { %v5655_v9 = vmul.f32 %v15882_v41, %v15882_v41  ;;  %v5687_v10 = vsel %vm1471_vm12, %v5654_v11, 0.0  ;;  %v5587_v22 = vsel %vm1471_vm12, %v15882_v41, 0.0 }
 0x3df   : > { %v5583_v25 = vsel %vm1471_vm12, %v15885_v63, 0.0  ;;  %v5653_v16 = vmul.f32 %v15885_v63, %v15885_v63  ;;  %v5684_v38 = vsel %vm1471_vm12, %v5652_v39, 0.0 }
 0x3e0   : > { %v5584_v56 = vadd.f32 %v5583_v25, %v5582_v49  ;;  %v5689_v27 = vsel %vm1471_vm12, %v5655_v9, 0.0 }
 0x3e1   : > { %v5685_v14 = vsel %vm1471_vm12, %v5653_v16, 0.0  ;;  %v12844_v58 = vpop.f32.mrb[4].mxu0 }
 0x3e2   : > { %v5586_v6 = vadd.f32 %v5585_v19, %v5584_v56  ;;  %v5686_v61 = vadd.f32 %v5685_v14, %v5684_v38  ;;  %v5400_v60 = vpop.f32.mrb[5].mxu0  ;;  %v15908_v7 = vadd.f32 %v12844_v58, %v15871_v32 }
 0x3e3   : > { %v15905_v43 = vadd.f32 %v15871_v32, %v5400_v60  ;;  %v12845_v29 = vpop.f32.mrb[6].mxu0 }
 0x3e4   : > { %v5688_v20 = vadd.f32 %v5687_v10, %v5686_v61  ;;  %v5588_v40 = vadd.f32 %v5587_v22, %v5586_v6  ;;  %v5403_v24 = vpop.f32.mrb[7].mxu0  ;;  %v15919_v34 = vadd.f32 %v12845_v29, %v15871_v32  ;;  %v5658_v8 = vmul.f32 %v15908_v7, %v15908_v7 }
 0x3e5   : > { %v5589_v55 = vsel %vm1471_vm12, %v15905_v43, 0.0  ;;  %v5656_v2 = vmul.f32 %v15905_v43, %v15905_v43  ;;  %v15916_v48 = vadd.f32 %v15871_v32, %v5403_v24  ;;  %v5593_v37 = vsel %vm1471_vm12, %v15908_v7, 0.0 }
 0x3e6   : > { %v5590_v50 = vadd.f32 %v5589_v55, %v5588_v40  ;;  %v5690_v51 = vadd.f32 %v5689_v27, %v5688_v20  ;;  %v5659_v31 = vmul.f32 %v15919_v34, %v15919_v34  ;;  %v5595_v36 = vsel %vm1471_vm12, %v15919_v34, 0.0 }
 0x3e7   : > { %v5691_v15 = vsel %vm1471_vm12, %v5656_v2, 0.0  ;;  %v5591_v5 = vsel %vm1471_vm12, %v15916_v48, 0.0  ;;  %v5657_v44 = vmul.f32 %v15916_v48, %v15916_v48  ;;  %v5695_v47 = vsel %vm1471_vm12, %v5658_v8, 0.0 }
 0x3e8   : > { %v5692_v33 = vadd.f32 %v5691_v15, %v5690_v51  ;;  %v5592_v1 = vadd.f32 %v5591_v5, %v5590_v50  ;;  %v5697_v12 = vsel %vm1471_vm12, %v5659_v31, 0.0 }
 0x3e9   : > { %v12848_v59 = vpop.f32.mrb[8].mxu0  ;;  %v5693_v18 = vsel %vm1471_vm12, %v5657_v44, 0.0 }
 0x3ea   : > { %v5594_v21 = vadd.f32 %v5593_v37, %v5592_v1  ;;  %v5416_v3 = vpop.f32.mrb[9].mxu0  ;;  %v5694_v42 = vadd.f32 %v5693_v18, %v5692_v33  ;;  %v15940_v46 = vadd.f32 %v12848_v59, %v15871_v32 }
 0x3eb   : > { %v15936_v26 = vadd.f32 %v15871_v32, %v5416_v3  ;;  %v12849_v45 = vpop.f32.mrb[10].mxu0 }
 0x3ec   : > { %v5596_v57 = vadd.f32 %v5595_v36, %v5594_v21  ;;  %v5419_v4 = vpop.f32.mrb[11].mxu0  ;;  %v5696_v17 = vadd.f32 %v5695_v47, %v5694_v42  ;;  %v15951_v35 = vadd.f32 %v12849_v45, %v15871_v32  ;;  %v5662_v25 = vmul.f32 %v15940_v46, %v15940_v46 }
 0x3ed   : > { %v5597_v53 = vsel %vm1471_vm12, %v15936_v26, 0.0  ;;  %v5660_v13 = vmul.f32 %v15936_v26, %v15936_v26  ;;  %v15947_v52 = vadd.f32 %v15871_v32, %v5419_v4  ;;  %v5601_v56 = vsel %vm1471_vm12, %v15940_v46, 0.0 }
 0x3ee   : > { %v5598_v23 = vadd.f32 %v5597_v53, %v5596_v57  ;;  %v5698_v28 = vadd.f32 %v5697_v12, %v5696_v17  ;;  %v5663_v14 = vmul.f32 %v15951_v35, %v15951_v35  ;;  %v5603_v61 = vsel %vm1471_vm12, %v15951_v35, 0.0 }
 0x3ef   : > { %v5699_v39 = vsel %vm1471_vm12, %v5660_v13, 0.0  ;;  %v5599_v11 = vsel %vm1471_vm12, %v15947_v52, 0.0  ;;  %v5661_v49 = vmul.f32 %v15947_v52, %v15947_v52  ;;  %v5703_v29 = vsel %vm1471_vm12, %v5662_v25, 0.0 }
 0x3f0   : > { %v5600_v16 = vadd.f32 %v5599_v11, %v5598_v23  ;;  %v5700_v19 = vadd.f32 %v5699_v39, %v5698_v28  ;;  %v5705_v51 = vsel %vm1471_vm12, %v5663_v14, 0.0 }
 0x3f1   : > { %v5701_v38 = vsel %vm1471_vm12, %v5661_v49, 0.0  ;;  %v12852_v9 = vpop.f32.mrb[12].mxu0 }
 0x3f2   : > { %v5602_v58 = vadd.f32 %v5601_v56, %v5600_v16  ;;  %v5432_v6 = vpop.f32.mrb[13].mxu0  ;;  %v5702_v60 = vadd.f32 %v5701_v38, %v5700_v19  ;;  %v15972_v20 = vadd.f32 %v12852_v9, %v15871_v32 }
 0x3f3   : > { %v15968_v10 = vadd.f32 %v15871_v32, %v5432_v6  ;;  %v12853_v22 = vpop.f32.mrb[14].mxu0 }
 0x3f4   : > { %v5604_v40 = vadd.f32 %v5603_v61, %v5602_v58  ;;  %v5435_v24 = vpop.f32.mrb[15].mxu0  ;;  %v5704_v27 = vadd.f32 %v5703_v29, %v5702_v60  ;;  %v15983_v5 = vadd.f32 %v12853_v22, %v15871_v32  ;;  %v5666_v37 = vmul.f32 %v15972_v20, %v15972_v20 }
 0x3f5   : > { %v5605_v55 = vsel %vm1471_vm12, %v15968_v10, 0.0  ;;  %v5664_v2 = vmul.f32 %v15968_v10, %v15968_v10  ;;  %v15979_v50 = vadd.f32 %v15871_v32, %v5435_v24  ;;  %v5609_v31 = vsel %vm1471_vm12, %v15972_v20, 0.0 }
 0x3f6   : > { %v5606_v15 = vadd.f32 %v5605_v55, %v5604_v40  ;;  %v5706_v8 = vadd.f32 %v5705_v51, %v5704_v27  ;;  %v5667_v36 = vmul.f32 %v15983_v5, %v15983_v5  ;;  %v5611_v47 = vsel %vm1471_vm12, %v15983_v5, 0.0 }
 0x3f7   : > { %v5707_v33 = vsel %vm1471_vm12, %v5664_v2, 0.0  ;;  %v5607_v1 = vsel %vm1471_vm12, %v15979_v50, 0.0  ;;  %v5665_v44 = vmul.f32 %v15979_v50, %v15979_v50  ;;  %v5711_v53 = vsel %vm1471_vm12, %v5666_v37, 0.0 }
 0x3f8   : > { %v5608_v59 = vadd.f32 %v5607_v1, %v5606_v15  ;;  %v5708_v21 = vadd.f32 %v5707_v33, %v5706_v8  ;;  %v5713_v25 = vsel %vm1471_vm12, %v5667_v36, 0.0 }
 0x3f9   : > { %v5709_v18 = vsel %vm1471_vm12, %v5665_v44, 0.0  ;;  %v12856_v3 = vpop.f32.mrb[16].mxu0 }
 0x3fa   : > { %v5610_v42 = vadd.f32 %v5609_v31, %v5608_v59  ;;  %v5448_v45 = vpop.f32.mrb[17].mxu0  ;;  %v5710_v57 = vadd.f32 %v5709_v18, %v5708_v21  ;;  %v16004_v13 = vadd.f32 %v12856_v3, %v15871_v32 }
 0x3fb   : > { %v16000_v4 = vadd.f32 %v15871_v32, %v5448_v45  ;;  %v12857_v17 = vpop.f32.mrb[18].mxu0 }
 0x3fc   : > { %v5612_v12 = vadd.f32 %v5611_v47, %v5610_v42  ;;  %v5451_v23 = vpop.f32.mrb[19].mxu0  ;;  %v5712_v28 = vadd.f32 %v5711_v53, %v5710_v57  ;;  %v16015_v56 = vadd.f32 %v12857_v17, %v15871_v32  ;;  %v5670_v58 = vmul.f32 %v16004_v13, %v16004_v13 }
 0x3fd   : > { %v5613_v39 = vsel %vm1471_vm12, %v16000_v4, 0.0  ;;  %v5668_v11 = vmul.f32 %v16000_v4, %v16000_v4  ;;  %v16011_v49 = vadd.f32 %v15871_v32, %v5451_v23  ;;  %v5617_v61 = vsel %vm1471_vm12, %v16004_v13, 0.0 }
 0x3fe   : > { %v5614_v16 = vadd.f32 %v5613_v39, %v5612_v12  ;;  %v5714_v19 = vadd.f32 %v5713_v25, %v5712_v28  ;;  %v5671_v40 = vmul.f32 %v16015_v56, %v16015_v56  ;;  %v5619_v55 = vsel %vm1471_vm12, %v16015_v56, 0.0 }
 0x3ff   : > { %v5715_v38 = vsel %vm1471_vm12, %v5668_v11, 0.0  ;;  %v5615_v9 = vsel %vm1471_vm12, %v16011_v49, 0.0  ;;  %v5669_v14 = vmul.f32 %v16011_v49, %v16011_v49  ;;  %v5719_v8 = vsel %vm1471_vm12, %v5670_v58, 0.0 }
 0x400   : > { %v5616_v6 = vadd.f32 %v5615_v9, %v5614_v16  ;;  %v5716_v60 = vadd.f32 %v5715_v38, %v5714_v19  ;;  %v5721_v18 = vsel %vm1471_vm12, %v5671_v40, 0.0 }
 0x401   : > { %v5717_v22 = vsel %vm1471_vm12, %v5669_v14, 0.0  ;;  %v12860_v29 = vpop.f32.mrb[20].mxu0 }
 0x402   : > { %v5618_v24 = vadd.f32 %v5617_v61, %v5616_v6  ;;  %v5464_v27 = vpop.f32.mrb[21].mxu0  ;;  %v5718_v2 = vadd.f32 %v5717_v22, %v5716_v60  ;;  %v16036_v33 = vadd.f32 %v12860_v29, %v15871_v32  ;;  %v6816_v22 = vld [vmem:[#allocation9 + $0x2] sm:$0x3] }
 0x403   : > { %v16032_v51 = vadd.f32 %v15871_v32, %v5464_v27  ;;  %v12861_v15 = vpop.f32.mrb[22].mxu0  ;;  %13697 = vmatprep.subr.msk.bf16.mxu1 %vm1520_vm4, %v6816_v22 }
 0x404   : > { %v5620_v1 = vadd.f32 %v5619_v55, %v5618_v24  ;;  %v5467_v44 = vpop.f32.mrb[23].mxu0  ;;  %v5720_v37 = vadd.f32 %v5719_v8, %v5718_v2  ;;  %v16047_v36 = vadd.f32 %v12861_v15, %v15871_v32  ;;  %v5674_v17 = vmul.f32 %v16036_v33, %v16036_v33  ;;  %v6382_v55 = vld [vmem:[#allocation2] sm:$0xf] }
 0x405   : > { %v5621_v59 = vsel %vm1471_vm12, %v16032_v51, 0.0  ;;  %v5672_v31 = vmul.f32 %v16032_v51, %v16032_v51  ;;  %v16043_v21 = vadd.f32 %v15871_v32, %v5467_v44  ;;  %v5625_v12 = vsel %vm1471_vm12, %v16036_v33, 0.0 }
 0x406   : > { %v5622_v3 = vadd.f32 %v5621_v59, %v5620_v1  ;;  %v5722_v42 = vadd.f32 %v5721_v18, %v5720_v37  ;;  %v5675_v11 = vmul.f32 %v16047_v36, %v16047_v36  ;;  %v5627_v38 = vsel %vm1471_vm12, %v16047_v36, 0.0  ;;  %v6383_v18 = vld [vmem:[#allocation2 + $0x4] sm:$0xf] }
 0x407   : > { %v5723_v45 = vsel %vm1471_vm12, %v5672_v31, 0.0  ;;  %v5623_v47 = vsel %vm1471_vm12, %v16043_v21, 0.0  ;;  %v5673_v57 = vmul.f32 %v16043_v21, %v16043_v21  ;;  %v5727_v6 = vsel %vm1471_vm12, %v5674_v17, 0.0 }
 0x408   : > { %v5624_v53 = vadd.f32 %v5623_v47, %v5622_v3  ;;  %v5724_v23 = vadd.f32 %v5723_v45, %v5722_v42  ;;  %v5729_v2 = vsel %vm1471_vm12, %v5675_v11, 0.0  ;;  %v6414_v3 = vld [vmem:[#allocation9] sm:$0x3]  ;;  %v6914_v45 = vsel %vm1520_vm4, %v6816_v22, 0 }
 0x409   : > { %v5725_v28 = vsel %vm1471_vm12, %v5673_v57, 0.0  ;;  %v12864_v39 = vpop.f32.mrb[24].mxu0  ;;  %v6432_v47 = vshrl.u32 %v6382_v55, 16  ;;  %12871 = vmatpush3.bf16.msra.mxu1 %v6914_v45 }
 0x40a   : > { %v5626_v25 = vadd.f32 %v5625_v12, %v5624_v53  ;;  %v16062_v16 = vadd.f32 %v12864_v39, %v15871_v32  ;;  %v5480_v19 = vpop.f32.mrb[25].mxu0  ;;  %v5726_v9 = vadd.f32 %v5725_v28, %v5724_v23  ;;  %v6435_v23 = vshll.u32 %v6382_v55, 16  ;;  %13698 = vmatprep.subr.msk.bf16.mxu1 %vm1520_vm4, %v6414_v3 }
 0x40b   : > { %v16067_v14 = vadd.f32 %v15871_v32, %v5480_v19  ;;  %v12865_v58 = vpop.f32.mrb[26].mxu0  ;;  %v6441_v19 = vshll.u32 %v6383_v18, 16 }
 0x40c   : > { %v5628_v61 = vadd.f32 %v5627_v38, %v5626_v25  ;;  %v5483_v60 = vpop.f32.mrb[27].mxu0  ;;  %v5728_v29 = vadd.f32 %v5727_v6, %v5726_v9  ;;  %v5678_v15 = vmul.f32 %v16062_v16, %v16062_v16  ;;  %v16082_v1 = vadd.f32 %v12865_v58, %v15871_v32 }
 0x40d   : > { %v5629_v40 = vsel %vm1471_vm12, %v16067_v14, 0.0  ;;  %v5676_v24 = vmul.f32 %v16067_v14, %v16067_v14  ;;  %v16075_v27 = vadd.f32 %v15871_v32, %v5483_v60  ;;  %v5633_v57 = vsel %vm1471_vm12, %v16062_v16, 0.0 }
 0x40e   : > { %v5630_v8 = vadd.f32 %v5629_v40, %v5628_v61  ;;  %v5730_v44 = vadd.f32 %v5729_v2, %v5728_v29  ;;  %v5735_v28 = vsel %vm1471_vm12, %v5678_v15, 0.0  ;;  %v5679_v39 = vmul.f32 %v16082_v1, %v16082_v1 }
 0x40f   : > { %v5731_v37 = vsel %vm1471_vm12, %v5676_v24, 0.0  ;;  %v5631_v59 = vsel %vm1471_vm12, %v16075_v27, 0.0  ;;  %v5677_v31 = vmul.f32 %v16075_v27, %v16075_v27  ;;  %v5635_v38 = vsel %vm1471_vm12, %v16082_v1, 0.0 }
 0x410   : > { %v5632_v42 = vadd.f32 %v5631_v59, %v5630_v8  ;;  %v5732_v17 = vadd.f32 %v5731_v37, %v5730_v44  ;;  %v6434_v29 = vrot.slane %v6432_v47, 4  ;;  %v6437_v40 = vrot.slane %v6435_v23, 5 }
 0x411   : > { %v5733_v53 = vsel %vm1471_vm12, %v5677_v31, 0.0  ;;  %v12868_v12 = vpop.f32.mrb[28].mxu0  ;;  %v6445_v24 = vshrl.u32 %v6383_v18, 16  ;;  %v5737_v44 = vsel %vm1471_vm12, %v5679_v39, 0.0  ;;  %v6415_v31 = vld [vmem:[#allocation2 + $0x8] sm:$0x1] }
 0x412   : > { %v5634_v11 = vadd.f32 %v5633_v57, %v5632_v42  ;;  %v5496_v25 = vpop.f32.mrb[29].mxu0  ;;  %v5734_v9 = vadd.f32 %v5733_v53, %v5732_v17  ;;  %v16100_v58 = vadd.f32 %v12868_v12, %v15871_v32  ;;  %v6443_v3 = vrot.slane %v6441_v19, 5 }
 0x413   : > { %v16103_v6 = vadd.f32 %v15871_v32, %v5496_v25  ;;  %v12869_v61 = vpop.f32.mrb[30].mxu0  ;;  %v6438_v53 = vor.u32 %v6437_v40, %v6434_v29  ;;  %v6447_v12 = vrot.slane %v6445_v24, 4  ;;  %v6451_v39 = vshll.u32 %v6415_v31, 16 }
 0x414   : > { %v5636_v60 = vadd.f32 %v5635_v38, %v5634_v11  ;;  %v5499_v22 = vpop.f32.mrb[31].mxu0  ;;  %v5736_v55 = vadd.f32 %v5735_v28, %v5734_v9  ;;  %v16114_v59 = vadd.f32 %v12869_v61, %v15871_v32  ;;  %v5682_v57 = vmul.f32 %v16100_v58, %v16100_v58 }
 0x415   : > { %v5637_v2 = vsel %vm1471_vm12, %v16103_v6, 0.0  ;;  %v5680_v15 = vmul.f32 %v16103_v6, %v16103_v6  ;;  %v16110_v8 = vadd.f32 %v15871_v32, %v5499_v22  ;;  %v5641_v32 = vsel %vm1471_vm12, %v16100_v58, 0.0 }
 0x416   : > { %v5638_v37 = vadd.f32 %v5637_v2, %v5636_v60  ;;  %v5738_v42 = vadd.f32 %v5737_v44, %v5736_v55  ;;  %v5683_v11 = vmul.f32 %v16114_v59, %v16114_v59  ;;  %v6439_v19 = vrot.slane %v6438_v53, 4 }
 0x417   : > { %v5739_v18 = vsel %vm1471_vm12, %v5680_v15, 0.0  ;;  %v5639_v45 = vsel %vm1471_vm12, %v16110_v8, 0.0  ;;  %v5681_v47 = vmul.f32 %v16110_v8, %v16110_v8  ;;  %v6448_v38 = vor.u32 %v6447_v12, %v6443_v3 }
 0x418   : > { %v5640_v17 = vadd.f32 %v5639_v45, %v5638_v37  ;;  %v5740_v23 = vadd.f32 %v5739_v18, %v5738_v42  ;;  %v5643_v9 = vsel %vm1471_vm12, %v16114_v59, 0.0  ;;  %v6453_v60 = vrot.slane %v6451_v39, 5 }
 0x419   : > { %v5741_v28 = vsel %vm1471_vm12, %v5681_v47, 0.0  ;;  %v5743_v22 = vsel %vm1471_vm12, %v5682_v57, 0.0  ;;  %v6444_v40 = vsel %vm14466_vm13, %v6439_v19, %v6443_v3  ;;  %v6449_v24 = vrot.slane %v6448_v38, 4 }
 0x41a   : > { %v5642_v25 = vadd.f32 %v5641_v32, %v5640_v17  ;;  %v5742_v61 = vadd.f32 %v5741_v28, %v5740_v23  ;;  %v5745_v2 = vsel %vm1471_vm12, %v5683_v11, 0.0 }
 0x41b   : > { %v6454_v44 = vsel %vm14466_vm13, %v6449_v24, %v6453_v60 }
 0x41c   : > { %v5644_v29 = vadd.f32 %v5643_v9, %v5642_v25  ;;  %v5744_v55 = vadd.f32 %v5743_v22, %v5742_v61  ;;  %v11850_v31 = vcombine.low %v6444_v40, %v6454_v44 }
 0x41e   : > { %v5645_v15 = vrot.slane %v5644_v29, 4  ;;  %v5746_v37 = vadd.f32 %v5745_v2, %v5744_v55  ;;  %12872 = vmatprep.mubr.msk.bf16.mxu1 %vm1471_vm12, %v11850_v31 }
 0x420   : > { %v5646_v42 = vadd.f32 %v5645_v15, %v5644_v29  ;;  %v5747_v18 = vrot.slane %v5746_v37, 4 }
 0x422   : > { %v5647_v45 = vrot.slane %v5646_v42, 2  ;;  %v5748_v47 = vadd.f32 %v5747_v18, %v5746_v37 }
 0x424   : > { %v5648_v57 = vadd.f32 %v5647_v45, %v5646_v42  ;;  %v5749_v17 = vrot.slane %v5748_v47, 2 }
 0x426   : > { %v5649_v53 = vrot.slane %v5648_v57, 1  ;;  %v5750_v3 = vadd.f32 %v5749_v17, %v5748_v47 }
 0x428   : > { %v5650_v12 = vadd.f32 %v5649_v53, %v5648_v57  ;;  %v5751_v32 = vrot.slane %v5750_v3, 1 }
 0x42a   : > { %v16137_v23 = vmul.f32 0.00390625, %v5650_v12  ;;  %v5752_v28 = vadd.f32 %v5751_v32, %v5750_v3 }
 0x42c   : > { %v5754_v39 = vmul.f32 %v16137_v23, %v16137_v23  ;;  %v5785_v11 = vsub.f32 %v16103_v6, %v16137_v23  ;;  %v5786_v25 = vsub.f32 %v16110_v8, %v16137_v23  ;;  %v5753_v19 = vmul.f32 0.00390625, %v5752_v28 }
 0x42d   : > { %v5766_v9 = vsub.f32 %v15947_v52, %v16137_v23  ;;  %v5769_v61 = vsub.f32 %v15968_v10, %v16137_v23  ;;  %v5770_v60 = vsub.f32 %v15979_v50, %v16137_v23  ;;  %v5771_v22 = vsub.f32 %v15972_v20, %v16137_v23 }
 0x42e   : > { %v5755_v38 = vsub.f32 %v5753_v19, %v5754_v39  ;;  %v5772_v6 = vsub.f32 %v15983_v5, %v16137_v23  ;;  %v5773_v8 = vsub.f32 %v16000_v4, %v16137_v23  ;;  %v5774_v40 = vsub.f32 %v16011_v49, %v16137_v23 }
 0x42f   : > { %v5775_v52 = vsub.f32 %v16004_v13, %v16137_v23  ;;  %v5776_v10 = vsub.f32 %v16015_v56, %v16137_v23  ;;  %v5777_v50 = vsub.f32 %v16032_v51, %v16137_v23  ;;  %v5778_v20 = vsub.f32 %v16043_v21, %v16137_v23 }
 0x430   : > { %v5756_v29 = vmax.f32 %v5755_v38, 0.0  ;;  %v5779_v5 = vsub.f32 %v16036_v33, %v16137_v23  ;;  %v5780_v4 = vsub.f32 %v16047_v36, %v16137_v23  ;;  %v5781_v49 = vsub.f32 %v16067_v14, %v16137_v23 }
 0x431   : > { %v5782_v13 = vsub.f32 %v16075_v27, %v16137_v23  ;;  %v5783_v56 = vsub.f32 %v16062_v16, %v16137_v23  ;;  %v5784_v51 = vsub.f32 %v16082_v1, %v16137_v23  ;;  %v5787_v21 = vsub.f32 %v16100_v58, %v16137_v23 }
 0x432   : > { %v5789_v24 = vadd.f32 1e-05, %v5756_v29  ;;  %v5788_v33 = vsub.f32 %v16114_v59, %v16137_v23  ;;  %v5757_v36 = vsub.f32 %v15877_v0, %v16137_v23  ;;  %v5758_v14 = vsub.f32 %v15885_v63, %v16137_v23 }
 0x433   : > { %v5759_v27 = vsub.f32 %v15874_v30, %v16137_v23  ;;  %v5760_v16 = vsub.f32 %v15882_v41, %v16137_v23  ;;  %v5761_v1 = vsub.f32 %v15905_v43, %v16137_v23  ;;  %v5762_v58 = vsub.f32 %v15916_v48, %v16137_v23 }
 0x434   : > { %13881 = vrsqrt.f32 %v5789_v24  ;;  %v5763_v59 = vsub.f32 %v15908_v7, %v16137_v23  ;;  %v5764_v0 = vsub.f32 %v15919_v34, %v16137_v23  ;;  %v5765_v63 = vsub.f32 %v15936_v26, %v16137_v23 }
 0x435   : > { %v5767_v30 = vsub.f32 %v15940_v46, %v16137_v23  ;;  %v5768_v41 = vsub.f32 %v15951_v35, %v16137_v23 }
 0x43e   : > { %v13882_v55 = vpop.eup %13881 }
 0x43f   : > { %v5819_v43 = vmul.f32 %v13882_v55, %v5785_v11  ;;  %v5820_v2 = vmul.f32 %v13882_v55, %v5786_v25  ;;  %v16205_v15 = vmul.f32 %v13882_v55, %v5757_v36  ;;  %v16207_v48 = vmul.f32 %v13882_v55, %v5758_v14 }
 0x440   : > { %v16209_v7 = vmul.f32 %v13882_v55, %v5759_v27  ;;  %v16211_v44 = vmul.f32 %v13882_v55, %v5760_v16  ;;  %v16213_v34 = vmul.f32 %v13882_v55, %v5761_v1  ;;  %v16215_v37 = vmul.f32 %v13882_v55, %v5762_v58 }
 0x441   : > { %v5851_v26 = vmax.f32 %v5819_v43, 0.0  ;;  %v5852_v31 = vmax.f32 %v5820_v2, 0.0  ;;  %v16217_v46 = vmul.f32 %v13882_v55, %v5763_v59  ;;  %v16219_v42 = vmul.f32 %v13882_v55, %v5764_v0 }
 0x442   : > { %v16221_v35 = vmul.f32 %v13882_v55, %v5765_v63  ;;  %v16223_v18 = vmul.f32 %v13882_v55, %v5766_v9  ;;  %v16225_v45 = vmul.f32 %v13882_v55, %v5767_v30  ;;  %v16227_v47 = vmul.f32 %v13882_v55, %v5768_v41 }
 0x443   : > { %v16229_v57 = vpack.c.bf16 %v5851_v26, %v5851_v26  ;;  %v12254_v17 = vpack.c.bf16 %v5852_v31, %v5852_v31  ;;  %v16231_v53 = vmul.f32 %v13882_v55, %v5769_v61  ;;  %v16233_v3 = vmul.f32 %v13882_v55, %v5770_v60 }
 0x444   : > { %v16235_v12 = vmul.f32 %v13882_v55, %v5771_v22  ;;  %v16237_v32 = vmul.f32 %v13882_v55, %v5772_v6  ;;  %v16239_v23 = vmul.f32 %v13882_v55, %v5773_v8  ;;  %v16241_v28 = vmul.f32 %v13882_v55, %v5774_v40  ;;  %v6372_v40 = vld [vmem:[#allocation2 + $0xbc] sm:$0x1] }
 0x445   : > { %v6190_v39 = vshrl.u32 %v16229_v57, 16  ;;  %v6198_v11 = vshrl.u32 %v12254_v17, 16  ;;  %v6201_v25 = vshll.u32 %v12254_v17, 16  ;;  %v6193_v19 = vshll.u32 %v16229_v57, 16 }
 0x446   : > { %v16245_v38 = vmul.f32 %v13882_v55, %v5775_v52  ;;  %v16247_v9 = vmul.f32 %v13882_v55, %v5776_v10  ;;  %v16249_v61 = vmul.f32 %v13882_v55, %v5777_v50  ;;  %v16251_v60 = vmul.f32 %v13882_v55, %v5778_v20 }
 0x447   : > { %v16253_v22 = vrot.slane %v6190_v39, 7  ;;  %v6200_v29 = vrot.slane %v6198_v11, 7  ;;  %v16255_v6 = vmul.f32 %v13882_v55, %v5779_v5  ;;  %v16257_v8 = vmul.f32 %v13882_v55, %v5780_v4 }
 0x448   : > { %v16259_v24 = vmul.f32 %v13882_v55, %v5781_v49  ;;  %v16261_v36 = vmul.f32 %v13882_v55, %v5782_v13  ;;  %v16263_v52 = vmul.f32 %v13882_v55, %v5783_v56  ;;  %v16265_v10 = vmul.f32 %v13882_v55, %v5784_v51  ;;  %v6375_v13 = vld [vmem:[#allocation2 + $0xc0] sm:$0xf] }
 0x449   : > { %v6196_v50 = vrot.slane %v16253_v22, 4  ;;  %v6203_v20 = vor.u32 %v6201_v25, %v6200_v29  ;;  %v6205_v14 = vrot.slane %v6200_v29, 4  ;;  %v16268_v27 = vmul.f32 %v13882_v55, %v5787_v21 }
 0x44a   : > { %v16270_v16 = vmul.f32 %v13882_v55, %v5788_v33  ;;  %v5823_v5 = vmax.f32 %v16205_v15, 0.0  ;;  %v5824_v4 = vmax.f32 %v16207_v48, 0.0  ;;  %v5825_v49 = vmax.f32 %v16209_v7, 0.0 }
 0x44b   : > { %v6204_v56 = vsel %vm14459_vm11, %v6196_v50, %v6203_v20  ;;  %v6373_v51 = vsel %vm14412_vm5, %v6205_v14, %v6372_v40  ;;  %v5826_v58 = vmax.f32 %v16211_v44, 0.0  ;;  %v5827_v59 = vmax.f32 %v16213_v34, 0.0 }
 0x44c   : > { %6371 = vst.msk [vmem:[#allocation2 + $0xb8] sm:$0xf] %vm298_vm0, %v6204_v56  ;;  %6374 = vst [vmem:[#allocation2 + $0xbc] sm:$0x1] %v6373_v51  ;;  %v5828_v21 = vmax.f32 %v16215_v37, 0.0  ;;  %v5829_v33 = vmax.f32 %v16217_v46, 0.0 }
 0x44d   : > { %v5830_v55 = vmax.f32 %v16219_v42, 0.0  ;;  %v5831_v0 = vmax.f32 %v16221_v35, 0.0  ;;  %v5832_v63 = vmax.f32 %v16223_v18, 0.0  ;;  %v5833_v30 = vmax.f32 %v16225_v45, 0.0 }
 0x44e   : > { %v5834_v41 = vmax.f32 %v16227_v47, 0.0  ;;  %v5835_v43 = vmax.f32 %v16231_v53, 0.0  ;;  %v5836_v2 = vmax.f32 %v16233_v3, 0.0  ;;  %v5837_v15 = vmax.f32 %v16235_v12, 0.0 }
 0x44f   : > { %v5838_v48 = vmax.f32 %v16237_v32, 0.0  ;;  %v5839_v7 = vmax.f32 %v16239_v23, 0.0  ;;  %v5840_v44 = vmax.f32 %v16241_v28, 0.0  ;;  %v5841_v34 = vmax.f32 %v16245_v38, 0.0 }
 0x450   : > { %v5842_v37 = vmax.f32 %v16247_v9, 0.0  ;;  %v5843_v26 = vmax.f32 %v16249_v61, 0.0  ;;  %v5844_v31 = vmax.f32 %v16251_v60, 0.0  ;;  %v5845_v46 = vmax.f32 %v16255_v6, 0.0 }
 0x451   : > { %v5846_v42 = vmax.f32 %v16257_v8, 0.0  ;;  %v5847_v35 = vmax.f32 %v16259_v24, 0.0  ;;  %v5848_v18 = vmax.f32 %v16261_v36, 0.0  ;;  %v5849_v45 = vmax.f32 %v16263_v52, 0.0 }
 0x452   : > { %v5850_v47 = vmax.f32 %v16265_v10, 0.0  ;;  %v5853_v17 = vmax.f32 %v16268_v27, 0.0  ;;  %v5854_v53 = vmax.f32 %v16270_v16, 0.0  ;;  %v12225_v3 = vpack.c.bf16 %v5823_v5, %v5823_v5 }
 0x453   : > { %v12226_v12 = vpack.c.bf16 %v5824_v4, %v5824_v4  ;;  %v12227_v32 = vpack.c.bf16 %v5825_v49, %v5825_v49  ;;  %v12228_v23 = vpack.c.bf16 %v5826_v58, %v5826_v58  ;;  %v12229_v28 = vpack.c.bf16 %v5827_v59, %v5827_v59 }
 0x454   : > { %v12230_v39 = vpack.c.bf16 %v5828_v21, %v5828_v21  ;;  %v16307_v11 = vpack.c.bf16 %v5829_v33, %v5829_v33  ;;  %v16309_v25 = vpack.c.bf16 %v5830_v55, %v5830_v55  ;;  %v16311_v38 = vpack.c.bf16 %v5831_v0, %v5831_v0 }
 0x455   : > { %v16313_v9 = vpack.c.bf16 %v5832_v63, %v5832_v63  ;;  %v16315_v61 = vpack.c.bf16 %v5833_v30, %v5833_v30  ;;  %v16317_v60 = vpack.c.bf16 %v5834_v41, %v5834_v41  ;;  %v16319_v29 = vpack.c.bf16 %v5835_v43, %v5835_v43 }
 0x456   : > { %v16321_v6 = vpack.c.bf16 %v5836_v2, %v5836_v2  ;;  %v16323_v8 = vpack.c.bf16 %v5837_v15, %v5837_v15  ;;  %v16325_v40 = vpack.c.bf16 %v5838_v48, %v5838_v48  ;;  %v16327_v24 = vpack.c.bf16 %v5839_v7, %v5839_v7 }
 0x457   : > { %v16329_v36 = vpack.c.bf16 %v5840_v44, %v5840_v44  ;;  %v16331_v52 = vpack.c.bf16 %v5841_v34, %v5841_v34  ;;  %v16333_v10 = vpack.c.bf16 %v5842_v37, %v5842_v37  ;;  %v16335_v50 = vpack.c.bf16 %v5843_v26, %v5843_v26 }
 0x458   : > { %v16337_v20 = vpack.c.bf16 %v5844_v31, %v5844_v31  ;;  %v16339_v14 = vpack.c.bf16 %v5845_v46, %v5845_v46  ;;  %v16341_v27 = vpack.c.bf16 %v5846_v42, %v5846_v42  ;;  %v16343_v16 = vpack.c.bf16 %v5847_v35, %v5847_v35 }
 0x459   : > { %v16345_v5 = vpack.c.bf16 %v5848_v18, %v5848_v18  ;;  %v16347_v4 = vpack.c.bf16 %v5849_v45, %v5849_v45  ;;  %v16349_v49 = vpack.c.bf16 %v5850_v47, %v5850_v47  ;;  %v16351_v56 = vpack.c.bf16 %v5853_v17, %v5853_v17 }
 0x45a   : > { %v16353_v51 = vpack.c.bf16 %v5854_v53, %v5854_v53  ;;  %v5952_v58 = vshrl.u32 %v12225_v3, 16  ;;  %v5955_v59 = vshll.u32 %v12225_v3, 16  ;;  %v5960_v21 = vshrl.u32 %v12226_v12, 16 }
 0x45b   : > { %v5963_v33 = vshll.u32 %v12226_v12, 16  ;;  %v5969_v55 = vshrl.u32 %v12227_v32, 16  ;;  %v5972_v63 = vshll.u32 %v12227_v32, 16  ;;  %v5977_v30 = vshrl.u32 %v12228_v23, 16 }
 0x45c   : > { %v5954_v0 = vrot.slane %v5952_v58, 7  ;;  %v5980_v41 = vshll.u32 %v12228_v23, 16  ;;  %v16355_v43 = vrot.slane %v5960_v21, 7  ;;  %v5986_v15 = vshrl.u32 %v12229_v28, 16 }
 0x45d   : > { %v5971_v2 = vrot.slane %v5969_v55, 7  ;;  %v5989_v48 = vshll.u32 %v12229_v28, 16  ;;  %v16359_v34 = vrot.slane %v5977_v30, 7  ;;  %v5994_v37 = vshrl.u32 %v12230_v39, 16 }
 0x45e   : > { %v16357_v7 = vor.u32 %v5955_v59, %v5954_v0  ;;  %v5958_v44 = vrot.slane %v5954_v0, 4  ;;  %v5965_v26 = vor.u32 %v5963_v33, %v16355_v43  ;;  %v5967_v31 = vrot.slane %v16355_v43, 4 }
 0x45f   : > { %v16363_v46 = vor.u32 %v5972_v63, %v5971_v2  ;;  %v5975_v42 = vrot.slane %v5971_v2, 4  ;;  %v5982_v35 = vor.u32 %v5980_v41, %v16359_v34  ;;  %v5988_v45 = vrot.slane %v5986_v15, 7 }
 0x460   : > { %v16367_v47 = vrot.slane %v5994_v37, 7  ;;  %v5966_v17 = vsel %vm14459_vm11, %v5958_v44, %v5965_v26  ;;  %v5997_v53 = vshll.u32 %v12230_v39, 16  ;;  %v6003_v3 = vshrl.u32 %v16307_v11, 16 }
 0x461   : > { %v6006_v12 = vshll.u32 %v16307_v11, 16  ;;  %v5983_v32 = vsel %vm14459_vm11, %v5975_v42, %v5982_v35  ;;  %v16375_v23 = vor.u32 %v5989_v48, %v5988_v45  ;;  %v5992_v28 = vrot.slane %v5988_v45, 4  ;;  %6273 = vst.msk [vmem:[#allocation2 + $0x10] sm:$0xf] %vm298_vm0, %v5966_v17 }
 0x462   : > { %v5999_v59 = vor.u32 %v5997_v53, %v16367_v47  ;;  %v6005_v21 = vrot.slane %v6003_v3, 7  ;;  %v6011_v33 = vshrl.u32 %v16309_v25, 16  ;;  %v6014_v39 = vshll.u32 %v16309_v25, 16  ;;  %6280 = vst.msk [vmem:[#allocation2 + $0x1c] sm:$0xf] %vm298_vm0, %v5983_v32 }
 0x463   : > { %v6020_v11 = vshrl.u32 %v16311_v38, 16  ;;  %v6023_v55 = vshll.u32 %v16311_v38, 16  ;;  %v6028_v0 = vshrl.u32 %v16313_v9, 16  ;;  %v6031_v63 = vshll.u32 %v16313_v9, 16  ;;  %v13908_v9 = vld [vmem:[#allocation2 + $0xc] sm:$0xf] }
 0x464   : > { %v6000_v30 = vsel %vm14459_vm11, %v5992_v28, %v5999_v59  ;;  %v16389_v41 = vor.u32 %v6006_v12, %v6005_v21  ;;  %v6009_v2 = vrot.slane %v6005_v21, 4  ;;  %v16391_v15 = vrot.slane %v6011_v33, 7 }
 0x465   : > { %v6022_v48 = vrot.slane %v6020_v11, 7  ;;  %v16393_v25 = vrot.slane %v6028_v0, 7  ;;  %v6037_v44 = vshrl.u32 %v16315_v61, 16  ;;  %v6040_v37 = vshll.u32 %v16315_v61, 16  ;;  %6287 = vst.msk [vmem:[#allocation2 + $0x28] sm:$0xf] %vm298_vm0, %v6000_v30 }
 0x466   : > { %v6016_v38 = vor.u32 %v6014_v39, %v16391_v15  ;;  %v6045_v26 = vshrl.u32 %v16317_v60, 16  ;;  %v6048_v42 = vshll.u32 %v16317_v60, 16  ;;  %v6054_v32 = vshrl.u32 %v16319_v29, 16 }
 0x467   : > { %v16402_v35 = vor.u32 %v6023_v55, %v6022_v48  ;;  %v6026_v45 = vrot.slane %v6022_v48, 4  ;;  %v6033_v17 = vor.u32 %v6031_v63, %v16393_v25  ;;  %v6039_v3 = vrot.slane %v6037_v44, 7  ;;  %v6316_v55 = vld [vmem:[#allocation2 + $0x5c] sm:$0x1] }
 0x468   : > { %v6017_v61 = vsel %vm14459_vm11, %v6009_v2, %v6016_v38  ;;  %v16408_v12 = vrot.slane %v6045_v26, 7  ;;  %v6057_v60 = vshll.u32 %v16319_v29, 16  ;;  %v6062_v59 = vshrl.u32 %v16321_v6, 16 }
 0x469   : > { %v6034_v28 = vsel %vm14459_vm11, %v6026_v45, %v6033_v17  ;;  %v6065_v21 = vshll.u32 %v16321_v6, 16  ;;  %6294 = vst.msk [vmem:[#allocation2 + $0x34] sm:$0xf] %vm298_vm0, %v6017_v61  ;;  %v16417_v33 = vor.u32 %v6040_v37, %v6039_v3  ;;  %v6043_v39 = vrot.slane %v6039_v3, 4 }
 0x46a   : > { %v6050_v11 = vor.u32 %v6048_v42, %v16408_v12  ;;  %6301 = vst.msk [vmem:[#allocation2 + $0x40] sm:$0xf] %vm298_vm0, %v6034_v28  ;;  %v6056_v0 = vrot.slane %v6054_v32, 7  ;;  %v16422_v63 = vrot.slane %v6062_v59, 7  ;;  %v6071_v29 = vshrl.u32 %v16323_v8, 16 }
 0x46b   : > { %v6074_v30 = vshll.u32 %v16323_v8, 16  ;;  %v6079_v2 = vshrl.u32 %v16325_v40, 16  ;;  %v6082_v48 = vshll.u32 %v16325_v40, 16  ;;  %v6088_v44 = vshrl.u32 %v16327_v24, 16  ;;  %v6302_v42 = vld [vmem:[#allocation2 + $0x44] sm:$0x1] }
 0x46c   : > { %v6051_v6 = vsel %vm14459_vm11, %v6043_v39, %v6050_v11  ;;  %v16431_v37 = vor.u32 %v6057_v60, %v6056_v0  ;;  %v6060_v38 = vrot.slane %v6056_v0, 4  ;;  %v6067_v26 = vor.u32 %v6065_v21, %v16422_v63  ;;  %v6305_v39 = vld [vmem:[#allocation2 + $0x48] sm:$0xf] }
 0x46d   : > { %6308 = vst.msk [vmem:[#allocation2 + $0x4c] sm:$0xf] %vm298_vm0, %v6051_v6  ;;  %v6073_v45 = vrot.slane %v6071_v29, 7  ;;  %v16436_v8 = vrot.slane %v6079_v2, 7  ;;  %v6090_v17 = vrot.slane %v6088_v44, 7  ;;  %v6091_v61 = vshll.u32 %v16327_v24, 16 }
 0x46e   : > { %v6068_v40 = vsel %vm14459_vm11, %v6060_v38, %v6067_v26  ;;  %v6096_v3 = vshrl.u32 %v16329_v36, 16  ;;  %v6099_v32 = vshll.u32 %v16329_v36, 16  ;;  %v6105_v28 = vshrl.u32 %v16331_v52, 16 }
 0x46f   : > { %v16444_v60 = vor.u32 %v6074_v30, %v6073_v45  ;;  %v6077_v59 = vrot.slane %v6073_v45, 4  ;;  %v6084_v21 = vor.u32 %v6082_v48, %v16436_v8  ;;  %6315 = vst.msk [vmem:[#allocation2 + $0x58] sm:$0xf] %vm298_vm0, %v6068_v40  ;;  %v16449_v11 = vor.u32 %v6091_v61, %v6090_v17 }
 0x470   : > { %v6094_v24 = vrot.slane %v6090_v17, 4  ;;  %v16451_v0 = vrot.slane %v6096_v3, 7  ;;  %v6107_v29 = vrot.slane %v6105_v28, 7  ;;  %v6108_v6 = vshll.u32 %v16331_v52, 16 }
 0x471   : > { %v6085_v36 = vsel %vm14459_vm11, %v6077_v59, %v6084_v21  ;;  %v6113_v30 = vshrl.u32 %v16333_v10, 16  ;;  %v6116_v2 = vshll.u32 %v16333_v10, 16  ;;  %v6122_v26 = vshrl.u32 %v16335_v50, 16  ;;  %v6284_v59 = vld [vmem:[#allocation2 + $0x24] sm:$0xf] }
 0x472   : > { %v6101_v48 = vor.u32 %v6099_v32, %v16451_v0  ;;  %v6111_v38 = vrot.slane %v6107_v29, 4  ;;  %6322 = vst.msk [vmem:[#allocation2 + $0x64] sm:$0xf] %vm298_vm0, %v6085_v36  ;;  %v16462_v45 = vor.u32 %v6108_v6, %v6107_v29  ;;  %v6125_v61 = vshll.u32 %v16335_v50, 16 }
 0x473   : > { %v16464_v17 = vrot.slane %v6113_v30, 7  ;;  %v6130_v52 = vshrl.u32 %v16337_v20, 16  ;;  %v6124_v40 = vrot.slane %v6122_v26, 7  ;;  %v6133_v3 = vshll.u32 %v16337_v20, 16 }
 0x474   : > { %v6102_v10 = vsel %vm14459_vm11, %v6094_v24, %v6101_v48  ;;  %v6139_v32 = vshrl.u32 %v16339_v14, 16  ;;  %v6142_v29 = vshll.u32 %v16339_v14, 16  ;;  %v6147_v24 = vshrl.u32 %v16341_v27, 16 }
 0x475   : > { %v6118_v28 = vor.u32 %v6116_v2, %v16464_v17  ;;  %v16474_v21 = vrot.slane %v6130_v52, 7  ;;  %6329 = vst.msk [vmem:[#allocation2 + $0x70] sm:$0xf] %vm298_vm0, %v6102_v10  ;;  %v16478_v50 = vor.u32 %v6125_v61, %v6124_v40  ;;  %v6128_v36 = vrot.slane %v6124_v40, 4 }
 0x476   : > { %v6141_v6 = vrot.slane %v6139_v32, 7  ;;  %v6150_v48 = vshll.u32 %v16341_v27, 16  ;;  %v16488_v52 = vrot.slane %v6147_v24, 7  ;;  %v6156_v61 = vshrl.u32 %v16343_v16, 16 }
 0x477   : > { %v6119_v20 = vsel %vm14459_vm11, %v6111_v38, %v6118_v28  ;;  %v6135_v30 = vor.u32 %v6133_v3, %v16474_v21  ;;  %v6159_v38 = vshll.u32 %v16343_v16, 16  ;;  %v6164_v40 = vshrl.u32 %v16345_v5, 16 }
 0x478   : > { %v16486_v26 = vor.u32 %v6142_v29, %v6141_v6  ;;  %v6145_v14 = vrot.slane %v6141_v6, 4  ;;  %6336 = vst.msk [vmem:[#allocation2 + $0x7c] sm:$0xf] %vm298_vm0, %v6119_v20  ;;  %v6167_v3 = vshll.u32 %v16345_v5, 16  ;;  %v6152_v27 = vor.u32 %v6150_v48, %v16488_v52  ;;  %v6277_v20 = vld [vmem:[#allocation2 + $0x18] sm:$0xf] }
 0x479   : > { %v6136_v10 = vsel %vm14459_vm11, %v6128_v36, %v6135_v30  ;;  %v6158_v28 = vrot.slane %v6156_v61, 7  ;;  %v6173_v29 = vshrl.u32 %v16347_v4, 16  ;;  %v16501_v6 = vrot.slane %v6164_v40, 7  ;;  %v6281_v30 = vld [vmem:[#allocation2 + $0x20] sm:$0x1] }
 0x47a   : > { %6343 = vst.msk [vmem:[#allocation2 + $0x88] sm:$0xf] %vm298_vm0, %v6136_v10  ;;  %v6176_v24 = vshll.u32 %v16347_v4, 16  ;;  %v6181_v36 = vshrl.u32 %v16349_v49, 16  ;;  %v6184_v16 = vshll.u32 %v16349_v49, 16  ;;  %v6153_v48 = vsel %vm14459_vm11, %v6145_v14, %v6152_v27 }
 0x47b   : > { %v6274_v5 = vld [vmem:[#allocation2 + $0x14] sm:$0x1]  ;;  %v16508_v32 = vor.u32 %v6159_v38, %v6158_v28  ;;  %v6162_v61 = vrot.slane %v6158_v28, 4  ;;  %v6175_v2 = vrot.slane %v6173_v29, 7  ;;  %v6288_v10 = vld [vmem:[#allocation2 + $0x2c] sm:$0x1]  ;;  %v6169_v40 = vor.u32 %v6167_v3, %v16501_v6 }
 0x47c   : > { %v16512_v44 = vrot.slane %v6181_v36, 7  ;;  %v16517_v49 = vor.u32 %v6193_v19, %v16253_v22  ;;  %6350 = vst.msk [vmem:[#allocation2 + $0x94] sm:$0xf] %vm298_vm0, %v6153_v48  ;;  %v6291_v14 = vld [vmem:[#allocation2 + $0x30] sm:$0xf]  ;;  %v6207_v29 = vshrl.u32 %v16351_v56, 16  ;;  %v6271_v18 = vsel %vm14451_vm9, %v16357_v7, %v13908_v9 }
 0x47d   : > { %v6295_v38 = vld [vmem:[#allocation2 + $0x38] sm:$0x1]  ;;  %v16520_v27 = vor.u32 %v6176_v24, %v6175_v2  ;;  %v6179_v28 = vrot.slane %v6175_v2, 4  ;;  %v6210_v3 = vshll.u32 %v16351_v56, 16  ;;  %v6298_v4 = vld [vmem:[#allocation2 + $0x3c] sm:$0xf]  ;;  %v6170_v57 = vsel %vm14459_vm11, %v6162_v61, %v6169_v40 }
 0x47e   : > { %19040 = vst [vmem:[#allocation25_spill] sm:$0xff] %v16517_v49  ;;  %v6309_v36 = vld [vmem:[#allocation2 + $0x50] sm:$0x1]  ;;  %v6186_v19 = vor.u32 %v6184_v16, %v16512_v44  ;;  %v6215_v48 = vshrl.u32 %v16353_v51, 16  ;;  %v16529_v24 = vld [vmem:[#allocation2 + $0x60] sm:$0xf]  ;;  %v6275_v16 = vsel %vm14412_vm5, %v5967_v31, %v6274_v5  ;;  %v6278_v43 = vsel %vm14451_vm9, %v16363_v46, %v6277_v20 }
 0x47f   : > { %v16531_v2 = vld [vmem:[#allocation2 + $0x54] sm:$0xf]  ;;  %v6209_v53 = vrot.slane %v6207_v29, 7  ;;  %v6218_v56 = vshll.u32 %v16353_v51, 16  ;;  %6357 = vst.msk [vmem:[#allocation2 + $0xa0] sm:$0xf] %vm298_vm0, %v6170_v57 }
 0x480   : > { %v6323_v61 = vld [vmem:[#allocation2 + $0x68] sm:$0x1]  ;;  %v16542_v40 = vld [vmem:[#allocation2 + $0x78] sm:$0xf]  ;;  %v6326_v22 = vld [vmem:[#allocation2 + $0x6c] sm:$0xf]  ;;  %v6187_v51 = vsel %vm14459_vm11, %v6179_v28, %v6186_v19 }
 0x481   : > { %v16546_v29 = vrot.slane %v6215_v48, 7  ;;  %6272 = vst [vmem:[#allocation2 + $0xc] sm:$0xf] %v6271_v18  ;;  %6276 = vst [vmem:[#allocation2 + $0x14] sm:$0x1] %v6275_v16  ;;  %v19042_v7 = vrot.slane %v16359_v34, 4  ;;  %v16555_v62 = vor.u32 %v6210_v3, %v6209_v53  ;;  %v6285_v18 = vsel %vm14451_vm9, %v16375_v23, %v6284_v59 }
 0x482   : > { %v6337_v9 = vld [vmem:[#allocation2 + $0x80] sm:$0x1]  ;;  %v6347_v5 = vld [vmem:[#allocation2 + $0x90] sm:$0xf]  ;;  %v6340_v57 = vld [vmem:[#allocation2 + $0x84] sm:$0xf] }
 0x483   : > { %v6282_v31 = vsel %vm14412_vm5, %v19042_v7, %v6281_v30  ;;  %v6213_v49 = vrot.slane %v6209_v53, 4  ;;  %v19043_v28 = vrot.slane %v16367_v47, 4  ;;  %6364 = vst.msk [vmem:[#allocation2 + $0xac] sm:$0xf] %vm298_vm0, %v6187_v51  ;;  %6279 = vst [vmem:[#allocation2 + $0x18] sm:$0xf] %v6278_v43  ;;  %v6220_v30 = vor.u32 %v6218_v56, %v16546_v29 }
 0x484   : > { %6283 = vst [vmem:[#allocation2 + $0x20] sm:$0x1] %v6282_v31  ;;  %v6351_v34 = vld [vmem:[#allocation2 + $0x98] sm:$0x1]  ;;  %v6344_v20 = vld [vmem:[#allocation2 + $0x8c] sm:$0x1]  ;;  %v6292_v53 = vsel %vm14451_vm9, %v16389_v41, %v6291_v14  ;;  %v6306_v41 = vsel %vm14451_vm9, %v16417_v33, %v6305_v39 }
 0x485   : > { %v6289_v46 = vsel %vm14412_vm5, %v19043_v28, %v6288_v10  ;;  %v6222_v3 = vrot.slane %v16546_v29, 4  ;;  %v19044_v23 = vrot.slane %v16391_v15, 4  ;;  %6286 = vst [vmem:[#allocation2 + $0x24] sm:$0xf] %v6285_v18  ;;  %v6361_v59 = vld [vmem:[#allocation2 + $0xa8] sm:$0xf]  ;;  %v6299_v10 = vsel %vm14451_vm9, %v16402_v35, %v6298_v4 }
 0x486   : > { %6290 = vst [vmem:[#allocation2 + $0x2c] sm:$0x1] %v6289_v46  ;;  %v19045_v19 = vrot.slane %v16393_v25, 4  ;;  %v19046_v15 = vrot.slane %v16408_v12, 4  ;;  %6293 = vst [vmem:[#allocation2 + $0x30] sm:$0xf] %v6292_v53  ;;  %v6221_v35 = vsel %vm14459_vm11, %v6213_v49, %v6220_v30  ;;  %v6313_v25 = vsel %vm14451_vm9, %v16431_v37, %v16531_v2 }
 0x487   : > { %v6296_v47 = vsel %vm14412_vm5, %v19044_v23, %v6295_v38  ;;  %v6354_v38 = vld [vmem:[#allocation2 + $0x9c] sm:$0xf]  ;;  %v6365_v56 = vld [vmem:[#allocation2 + $0xb0] sm:$0x1]  ;;  %v6358_v16 = vld [vmem:[#allocation2 + $0xa4] sm:$0x1] }
 0x488   : > { %6297 = vst [vmem:[#allocation2 + $0x38] sm:$0x1] %v6296_v47  ;;  %v6303_v48 = vsel %vm14412_vm5, %v19045_v19, %v6302_v42  ;;  %v6310_v14 = vsel %vm14412_vm5, %v19046_v15, %v6309_v36  ;;  %v19047_v33 = vrot.slane %v16422_v63, 4  ;;  %v6320_v42 = vsel %vm14451_vm9, %v16444_v60, %v16529_v24  ;;  %6300 = vst [vmem:[#allocation2 + $0x3c] sm:$0xf] %v6299_v10 }
 0x489   : > { %6304 = vst [vmem:[#allocation2 + $0x44] sm:$0x1] %v6303_v48  ;;  %6311 = vst [vmem:[#allocation2 + $0x50] sm:$0x1] %v6310_v14  ;;  %v6368_v39 = vld [vmem:[#allocation2 + $0xb4] sm:$0xf]  ;;  %v6334_v36 = vsel %vm14451_vm9, %v16462_v45, %v16542_v40 }
 0x48a   : > { %v6317_v12 = vsel %vm14412_vm5, %v19047_v33, %v6316_v55  ;;  %6307 = vst [vmem:[#allocation2 + $0x48] sm:$0xf] %v6306_v41  ;;  %v6379_v4 = vld [vmem:[#allocation2 + $0xc8] sm:$0x1]  ;;  %v19048_v49 = vrot.slane %v16436_v8, 4  ;;  %v6327_v55 = vsel %vm14451_vm9, %v16449_v11, %v6326_v22  ;;  %v19049_v63 = vrot.slane %v16451_v0, 4 }
 0x48b   : > { %6318 = vst [vmem:[#allocation2 + $0x5c] sm:$0x1] %v6317_v12  ;;  %6378 = vst.msk [vmem:[#allocation2 + $0xc4] sm:$0xf] %vm298_vm0, %v6221_v35  ;;  %v19050_v8 = vrot.slane %v16464_v17, 4  ;;  %v19051_v0 = vrot.slane %v16474_v21, 4  ;;  %v6348_v22 = vsel %vm14451_vm9, %v16486_v26, %v6347_v5  ;;  %v6355_v21 = vsel %vm14451_vm9, %v16508_v32, %v6354_v38 }
 0x48c   : > { %v6324_v37 = vsel %vm14412_vm5, %v19048_v49, %v6323_v61  ;;  %v6331_v60 = vsel %vm14412_vm5, %v19049_v63, %v6330_v54  ;;  %6314 = vst [vmem:[#allocation2 + $0x54] sm:$0xf] %v6313_v25  ;;  %6321 = vst [vmem:[#allocation2 + $0x60] sm:$0xf] %v6320_v42  ;;  %v6341_v54 = vsel %vm14451_vm9, %v16478_v50, %v6340_v57  ;;  %v16632_v24 = vld [vmem:[#allocation2 + $0x10] sm:$0xf] }
 0x48d   : > { %6325 = vst [vmem:[#allocation2 + $0x68] sm:$0x1] %v6324_v37  ;;  %6332 = vst [vmem:[#allocation2 + $0x74] sm:$0x1] %v6331_v60  ;;  %v6338_v11 = vsel %vm14412_vm5, %v19050_v8, %v6337_v9  ;;  %v6345_v45 = vsel %vm14412_vm5, %v19051_v0, %v6344_v20  ;;  %v19052_v17 = vrot.slane %v16488_v52, 4  ;;  %v19053_v2 = vrot.slane %v16501_v6, 4 }
 0x48e   : > { %6328 = vst [vmem:[#allocation2 + $0x6c] sm:$0xf] %v6327_v55  ;;  %6335 = vst [vmem:[#allocation2 + $0x78] sm:$0xf] %v6334_v36  ;;  %v6362_v61 = vsel %vm14451_vm9, %v16520_v27, %v6361_v59  ;;  %v16648_v40 = vld [vmem:[#allocation2 + $0xc] sm:$0xf]  ;;  %v6376_v27 = vsel %vm14451_vm9, %v16555_v62, %v6375_v13  ;;  %v6380_v43 = vsel %vm14412_vm5, %v6222_v3, %v6379_v4 }
 0x48f   : > { %6339 = vst [vmem:[#allocation2 + $0x80] sm:$0x1] %v6338_v11  ;;  %6346 = vst [vmem:[#allocation2 + $0x8c] sm:$0x1] %v6345_v45  ;;  %v6352_v50 = vsel %vm14412_vm5, %v19052_v17, %v6351_v34  ;;  %v6359_v26 = vsel %vm14412_vm5, %v19053_v2, %v6358_v16  ;;  %v16650_v52 = vld [vmem:[#allocation2 + $0x14] sm:$0x1] }
 0x490   : > { %6342 = vst [vmem:[#allocation2 + $0x84] sm:$0xf] %v6341_v54  ;;  %6349 = vst [vmem:[#allocation2 + $0x90] sm:$0xf] %v6348_v22  ;;  %v19054_v51 = vrot.slane %v16512_v44, 4  ;;  %v19055_v6 = vld [vmem:[#allocation25_spill] sm:$0xff] }
 0x491   : > { %6353 = vst [vmem:[#allocation2 + $0x98] sm:$0x1] %v6352_v50  ;;  %6360 = vst [vmem:[#allocation2 + $0xa4] sm:$0x1] %v6359_v26  ;;  %v6369_v29 = vsel %vm14451_vm9, %v19055_v6, %v6368_v39  ;;  %v16664_v7 = vld [vmem:[#allocation2 + $0x18] sm:$0xf] }
 0x492   : > { %v6366_v32 = vsel %vm14412_vm5, %v19054_v51, %v6365_v56  ;;  %6356 = vst [vmem:[#allocation2 + $0x9c] sm:$0xf] %v6355_v21  ;;  %6363 = vst [vmem:[#allocation2 + $0xa8] sm:$0xf] %v6362_v61  ;;  %v6456_v44 = vshrl.u32 %v16648_v40, 16  ;;  %v6459_v31 = vshll.u32 %v16648_v40, 16 }
 0x493   : > { %6367 = vst [vmem:[#allocation2 + $0xb0] sm:$0x1] %v6366_v32  ;;  %6381 = vst [vmem:[#allocation2 + $0xc8] sm:$0x1] %v6380_v43  ;;  %v6465_v9 = vshll.u32 %v16632_v24, 16  ;;  %v6469_v58 = vshrl.u32 %v16632_v24, 16 }
 0x494   : > { %6370 = vst [vmem:[#allocation2 + $0xb4] sm:$0xf] %v6369_v29  ;;  %6377 = vst [vmem:[#allocation2 + $0xc0] sm:$0xf] %v6376_v27  ;;  %v16670_v62 = vld [vmem:[#allocation2 + $0x1c] sm:$0xf] }
 0x495   : > { %v6475_v1 = vshll.u32 %v16650_v52, 16  ;;  %v13909_v5 = vld [vmem:[#allocation9] sm:$0x3]  ;;  %v16674_v18 = vld [vmem:[#allocation2 + $0x20] sm:$0x1]  ;;  %v6480_v28 = vshrl.u32 %v16664_v7, 16 }
 0x496   : > { %v7206_v57 = vsel %vm1520_vm4, %v13909_v5, 0  ;;  %19056 = vst [vmem:[#allocation18_spill] sm:$0xff] %v16674_v18  ;;  %v6458_v46 = vrot.slane %v6456_v44, 4  ;;  %v6461_v34 = vrot.slane %v6459_v31, 5  ;;  %v6467_v20 = vrot.slane %v6465_v9, 5 }
 0x497   : > { %v6471_v30 = vrot.slane %v6469_v58, 4  ;;  %v16677_v3 = vld [vmem:[#allocation2 + $0x24] sm:$0xf]  ;;  %v6477_v53 = vrot.slane %v6475_v1, 5  ;;  %v6482_v23 = vrot.slane %v6480_v28, 4  ;;  %v6483_v47 = vshll.u32 %v16664_v7, 16 }
 0x498   : > { %v6489_v59 = vshll.u32 %v16670_v62, 16  ;;  %v6462_v10 = vor.u32 %v6461_v34, %v6458_v46  ;;  %v6493_v48 = vshrl.u32 %v16670_v62, 16  ;;  %v6499_v41 = vshll.u32 %v16674_v18, 16  ;;  %v16683_v15 = vld [vmem:[#allocation2 + $0x28] sm:$0xf] }
 0x499   : > { %v6472_v19 = vor.u32 %v6471_v30, %v6467_v20  ;;  %v6485_v14 = vrot.slane %v6483_v47, 5  ;;  %v6504_v56 = vshrl.u32 %v16677_v3, 16  ;;  %v6507_v16 = vshll.u32 %v16677_v3, 16  ;;  %v16687_v42 = vld [vmem:[#allocation2 + $0x2c] sm:$0x1] }
 0x49a   : > { %v6491_v38 = vrot.slane %v6489_v59, 5  ;;  %v6463_v35 = vrot.slane %v6462_v10, 4  ;;  %v6495_v33 = vrot.slane %v6493_v48, 4  ;;  %v6501_v12 = vrot.slane %v6499_v41, 5  ;;  %v16690_v37 = vld [vmem:[#allocation2 + $0x30] sm:$0xf] }
 0x49b   : > { %v6473_v25 = vrot.slane %v6472_v19, 4  ;;  %v6486_v13 = vor.u32 %v6485_v14, %v6482_v23  ;;  %v6506_v39 = vrot.slane %v6504_v56, 4  ;;  %v6509_v4 = vrot.slane %v6507_v16, 5  ;;  %v16697_v11 = vld [vmem:[#allocation2 + $0x34] sm:$0xf] }
 0x49c   : > { %v6513_v49 = vshll.u32 %v16683_v15, 16  ;;  %v6468_v63 = vsel %vm14466_vm13, %v6463_v35, %v6467_v20  ;;  %v6496_v36 = vor.u32 %v6495_v33, %v6491_v38  ;;  %v6517_v8 = vshrl.u32 %v16683_v15, 16  ;;  %v16699_v17 = vld [vmem:[#allocation9 + $0x4] sm:$0x3]  ;;  %v16702_v26 = vld [vmem:[#allocation2 + $0x38] sm:$0x1] }
 0x49d   : > { %v6478_v60 = vsel %vm14466_vm13, %v6473_v25, %v6477_v53  ;;  %v6487_v0 = vrot.slane %v6486_v13, 4  ;;  %v6510_v45 = vor.u32 %v6509_v4, %v6506_v39  ;;  %v6523_v2 = vshll.u32 %v16687_v42, 16  ;;  %v16710_v27 = vld [vmem:[#allocation2 + $0x3c] sm:$0xf]  ;;  %v16714_v58 = vld [vmem:[#allocation2 + $0x40] sm:$0xf] }
 0x49e   : > { %v11851_v54 = vcombine.low %v6468_v63, %v6478_v60  ;;  %v6515_v22 = vrot.slane %v6513_v49, 5  ;;  %v6497_v50 = vrot.slane %v6496_v36, 4  ;;  %v6519_v21 = vrot.slane %v6517_v8, 4  ;;  %v16722_v30 = vld [vmem:[#allocation2 + $0x44] sm:$0x1] }
 0x49f   : > { %v6528_v61 = vshrl.u32 %v16690_v37, 16  ;;  %v6492_v51 = vsel %vm14466_vm13, %v6487_v0, %v6491_v38  ;;  %v6511_v32 = vrot.slane %v6510_v45, 4  ;;  %v6531_v6 = vshll.u32 %v16690_v37, 16  ;;  %v16729_v19 = vld [vmem:[#allocation2 + $0x48] sm:$0xf] }
 0x4a0   : > { %12873 = vmatmul.mubr.msk.bf16.vlgmr.msra.gmra.mrb[0].mxu1 %vm1471_vm12, %v11851_v54  ;;  %v6537_v29 = vshll.u32 %v16697_v11, 16  ;;  %v6502_v43 = vsel %vm14466_vm13, %v6497_v50, %v6501_v12  ;;  %v6520_v44 = vor.u32 %v6519_v21, %v6515_v22  ;;  %v6525_v31 = vrot.slane %v6523_v2, 5  ;;  %v16733_v56 = vld [vmem:[#allocation2 + $0x4c] sm:$0xf]  ;;  %v16740_v60 = vld [vmem:[#allocation2 + $0x50] sm:$0x1] }
 0x4a1   : > { %12905 = vmatpush3.bf16.msra.mxu1 %v7206_v57  ;;  %v6530_v9 = vrot.slane %v6528_v61, 4  ;;  %v11852_v1 = vcombine.low %v6492_v51, %v6502_v43  ;;  %v6516_v5 = vsel %vm14466_vm13, %v6511_v32, %v6515_v22  ;;  %v6533_v28 = vrot.slane %v6531_v6, 5  ;;  %v16744_v54 = vld [vmem:[#allocation2 + $0x54] sm:$0xf]  ;;  %v16750_v43 = vld [vmem:[#allocation2 + $0x58] sm:$0xf] }
 0x4a2   : > { %v6539_v46 = vrot.slane %v6537_v29, 5  ;;  %13699 = vmatprep.subr.msk.bf16.mxu1 %vm1520_vm4, %v16699_v17  ;;  %v6521_v34 = vrot.slane %v6520_v44, 4  ;;  %v6541_v57 = vshrl.u32 %v16697_v11, 16  ;;  %v6547_v20 = vshll.u32 %v16702_v26, 16 }
 0x4a3   : > { %v6552_v53 = vshrl.u32 %v16710_v27, 16  ;;  %12876 = vmatprep.mubr.msk.bf16.mxu1 %vm1471_vm12, %v11852_v1  ;;  %v6534_v23 = vor.u32 %v6533_v28, %v6530_v9  ;;  %v6555_v47 = vshll.u32 %v16710_v27, 16  ;;  %v6561_v59 = vshll.u32 %v16714_v58, 16  ;;  %v16755_v28 = vld [vmem:[#allocation2 + $0x5c] sm:$0x1] }
 0x4a4   : > { %v6565_v10 = vshrl.u32 %v16714_v58, 16  ;;  %v6526_v48 = vsel %vm14466_vm13, %v6521_v34, %v6525_v31  ;;  %v6543_v41 = vrot.slane %v6541_v57, 4  ;;  %v6549_v14 = vrot.slane %v6547_v20, 5 }
 0x4a5   : > { %v6554_v38 = vrot.slane %v6552_v53, 4  ;;  %v11853_v16 = vcombine.low %v6516_v5, %v6526_v48  ;;  %v6535_v35 = vrot.slane %v6534_v23, 4  ;;  %v6557_v25 = vrot.slane %v6555_v47, 5 }
 0x4a6   : > { %v6563_v33 = vrot.slane %v6561_v59, 5  ;;  %v6544_v12 = vor.u32 %v6543_v41, %v6539_v46  ;;  %v6567_v13 = vrot.slane %v6565_v10, 4  ;;  %v6571_v39 = vshll.u32 %v16722_v30, 16 }
 0x4a7   : > { %v6576_v4 = vshrl.u32 %v16729_v19, 16  ;;  %v6540_v49 = vsel %vm14466_vm13, %v6535_v35, %v6539_v46  ;;  %v6558_v63 = vor.u32 %v6557_v25, %v6554_v38  ;;  %v6579_v36 = vshll.u32 %v16729_v19, 16  ;;  %v16757_v46 = vld [vmem:[#allocation2 + $0x60] sm:$0xf]  ;;  %v16766_v38 = vld [vmem:[#allocation2 + $0x64] sm:$0xf] }
 0x4a8   : > { %12877 = vmatmul.mubr.msk.bf16.gmra.mrb[4].mxu1 %vm1471_vm12, %v11853_v16  ;;  %v6585_v8 = vshll.u32 %v16733_v56, 16  ;;  %v6545_v0 = vrot.slane %v6544_v12, 4  ;;  %v6568_v45 = vor.u32 %v6567_v13, %v6563_v33  ;;  %v6573_v22 = vrot.slane %v6571_v39, 5  ;;  %v16772_v12 = vld [vmem:[#allocation2 + $0x68] sm:$0x1] }
 0x4a9   : > { %v6578_v50 = vrot.slane %v6576_v4, 4  ;;  %v6559_v21 = vrot.slane %v6558_v63, 4  ;;  %v6581_v2 = vrot.slane %v6579_v36, 5  ;;  %v6589_v51 = vshrl.u32 %v16733_v56, 16  ;;  %v16775_v36 = vld [vmem:[#allocation2 + $0x6c] sm:$0xf] }
 0x4aa   : > { %v6587_v61 = vrot.slane %v6585_v8, 5  ;;  %v6550_v32 = vsel %vm14466_vm13, %v6545_v0, %v6549_v14  ;;  %v6569_v6 = vrot.slane %v6568_v45, 4  ;;  %v6595_v29 = vshll.u32 %v16740_v60, 16 }
 0x4ab   : > { %v6600_v44 = vshrl.u32 %v16744_v54, 16  ;;  %v11854_v31 = vcombine.low %v6540_v49, %v6550_v32  ;;  %v6564_v9 = vsel %vm14466_vm13, %v6559_v21, %v6563_v33  ;;  %v6582_v1 = vor.u32 %v6581_v2, %v6578_v50  ;;  %v16784_v32 = vld [vmem:[#allocation2 + $0x74] sm:$0x1] }
 0x4ac   : > { %v6591_v5 = vrot.slane %v6589_v51, 4  ;;  %v6574_v34 = vsel %vm14466_vm13, %v6569_v6, %v6573_v22  ;;  %v6597_v57 = vrot.slane %v6595_v29, 5  ;;  %v6603_v53 = vshll.u32 %v16744_v54, 16  ;;  %v16782_v51 = vld [vmem:[#allocation2 + $0x70] sm:$0xf] }
 0x4ad   : > { %v6602_v20 = vrot.slane %v6600_v44, 4  ;;  %12880 = vmatprep.mubr.msk.bf16.mxu1 %vm1471_vm12, %v11854_v31  ;;  %v11855_v23 = vcombine.low %v6564_v9, %v6574_v34  ;;  %v6583_v47 = vrot.slane %v6582_v1, 4  ;;  %v6609_v10 = vshll.u32 %v16750_v43, 16  ;;  %v16787_v9 = vld [vmem:[#allocation2 + $0x78] sm:$0xf] }
 0x4ae   : > { %v6592_v59 = vor.u32 %v6591_v5, %v6587_v61  ;;  %v6605_v48 = vrot.slane %v6603_v53, 5  ;;  %v6613_v41 = vshrl.u32 %v16750_v43, 16  ;;  %v6619_v14 = vshll.u32 %v16755_v28, 16 }
 0x4af   : > { %v6624_v16 = vshrl.u32 %v16757_v46, 16  ;;  %v6588_v35 = vsel %vm14466_vm13, %v6583_v47, %v6587_v61  ;;  %v6611_v33 = vrot.slane %v6609_v10, 5  ;;  %v6627_v13 = vshll.u32 %v16757_v46, 16 }
 0x4b0   : > { %12881 = vmatmul.mubr.msk.bf16.gmra.mrb[8].mxu1 %vm1471_vm12, %v11855_v23  ;;  %v6593_v25 = vrot.slane %v6592_v59, 4  ;;  %v6606_v39 = vor.u32 %v6605_v48, %v6602_v20  ;;  %v6615_v4 = vrot.slane %v6613_v41, 4  ;;  %v6621_v49 = vrot.slane %v6619_v14, 5  ;;  %v16793_v20 = vld [vmem:[#allocation2 + $0x7c] sm:$0xf] }
 0x4b1   : > { %v6626_v63 = vrot.slane %v6624_v16, 4  ;;  %v6629_v0 = vrot.slane %v6627_v13, 5  ;;  %v6633_v45 = vshll.u32 %v16766_v38, 16  ;;  %v6637_v22 = vshrl.u32 %v16766_v38, 16  ;;  %v16800_v16 = vld [vmem:[#allocation2 + $0x80] sm:$0x1] }
 0x4b2   : > { %v6598_v8 = vsel %vm14466_vm13, %v6593_v25, %v6597_v57  ;;  %v6607_v21 = vrot.slane %v6606_v39, 4  ;;  %v6616_v2 = vor.u32 %v6615_v4, %v6611_v33  ;;  %v6643_v61 = vshll.u32 %v16772_v12, 16  ;;  %v16804_v39 = vld [vmem:[#allocation2 + $0x84] sm:$0xf] }
 0x4b3   : > { %v11856_v50 = vcombine.low %v6588_v35, %v6598_v8  ;;  %v6630_v6 = vor.u32 %v6629_v0, %v6626_v63  ;;  %v6635_v29 = vrot.slane %v6633_v45, 5  ;;  %v6639_v44 = vrot.slane %v6637_v22, 4  ;;  %v16807_v0 = vld [vmem:[#allocation2 + $0x88] sm:$0xf] }
 0x4b4   : > { %v6648_v31 = vshrl.u32 %v16775_v36, 16  ;;  %v6612_v1 = vsel %vm14466_vm13, %v6607_v21, %v6611_v33  ;;  %v6617_v5 = vrot.slane %v6616_v2, 4  ;;  %v6645_v34 = vrot.slane %v6643_v61, 5 }
 0x4b5   : > { %12884 = vmatprep.mubr.msk.bf16.mxu1 %vm1471_vm12, %v11856_v50  ;;  %v6651_v57 = vshll.u32 %v16775_v36, 16  ;;  %v6631_v53 = vrot.slane %v6630_v6, 4  ;;  %v6640_v23 = vor.u32 %v6639_v44, %v6635_v29  ;;  %v6657_v59 = vshll.u32 %v16782_v51, 16 }
 0x4b6   : > { %v6650_v47 = vrot.slane %v6648_v31, 4  ;;  %v6622_v10 = vsel %vm14466_vm13, %v6617_v5, %v6621_v49  ;;  %v6661_v41 = vshrl.u32 %v16782_v51, 16  ;;  %v6667_v14 = vshll.u32 %v16784_v32, 16 }
 0x4b7   : > { %v6653_v48 = vrot.slane %v6651_v57, 5  ;;  %v11857_v35 = vcombine.low %v6612_v1, %v6622_v10  ;;  %v6636_v25 = vsel %vm14466_vm13, %v6631_v53, %v6635_v29  ;;  %v6641_v33 = vrot.slane %v6640_v23, 4  ;;  %v16816_v57 = vld [vmem:[#allocation2 + $0x8c] sm:$0x1]  ;;  %v16818_v53 = vld [vmem:[#allocation2 + $0x90] sm:$0xf] }
 0x4b8   : > { %v6659_v13 = vrot.slane %v6657_v59, 5  ;;  %v6663_v63 = vrot.slane %v6661_v41, 4  ;;  %v6669_v8 = vrot.slane %v6667_v14, 5  ;;  %v6672_v49 = vshrl.u32 %v16787_v9, 16  ;;  %19058 = vst [vmem:[#allocation26_spill] sm:$0xff] %v16816_v57 }
 0x4b9   : > { %v6654_v4 = vor.u32 %v6653_v48, %v6650_v47  ;;  %12885 = vmatmul.mubr.msk.bf16.gmra.mrb[12].mxu1 %vm1471_vm12, %v11857_v35  ;;  %v6646_v45 = vsel %vm14466_vm13, %v6641_v33, %v6645_v34  ;;  %v6675_v22 = vshll.u32 %v16787_v9, 16  ;;  %v6681_v50 = vshll.u32 %v16793_v20, 16  ;;  %v16825_v10 = vld [vmem:[#allocation2 + $0x94] sm:$0xf] }
 0x4ba   : > { %v6685_v21 = vshrl.u32 %v16793_v20, 16  ;;  %v11858_v2 = vcombine.low %v6636_v25, %v6646_v45  ;;  %v6664_v6 = vor.u32 %v6663_v63, %v6659_v13  ;;  %v6674_v29 = vrot.slane %v6672_v49, 4 }
 0x4bb   : > { %v6655_v61 = vrot.slane %v6654_v4, 4  ;;  %v6677_v44 = vrot.slane %v6675_v22, 5  ;;  %v6683_v31 = vrot.slane %v6681_v50, 5  ;;  %v6691_v5 = vshll.u32 %v16800_v16, 16  ;;  %v16831_v50 = vld [vmem:[#allocation2 + $0x98] sm:$0x1] }
 0x4bc   : > { %v6687_v1 = vrot.slane %v6685_v21, 4  ;;  %12888 = vmatprep.mubr.msk.bf16.mxu1 %vm1471_vm12, %v11858_v2  ;;  %v6665_v23 = vrot.slane %v6664_v6, 4  ;;  %v6696_v47 = vshrl.u32 %v16804_v39, 16  ;;  %v6699_v59 = vshll.u32 %v16804_v39, 16  ;;  %19059 = vst [vmem:[#allocation23_spill] sm:$0xff] %v16831_v50 }
 0x4bd   : > { %v6660_v34 = vsel %vm14466_vm13, %v6655_v61, %v6659_v13  ;;  %v6678_v48 = vor.u32 %v6677_v44, %v6674_v29  ;;  %v6693_v14 = vrot.slane %v6691_v5, 5  ;;  %v6705_v35 = vshll.u32 %v16807_v0, 16  ;;  %v16833_v21 = vld [vmem:[#allocation2 + $0x9c] sm:$0xf] }
 0x4be   : > { %v6688_v41 = vor.u32 %v6687_v1, %v6683_v31  ;;  %v6670_v25 = vsel %vm14466_vm13, %v6665_v23, %v6669_v8  ;;  %v6698_v33 = vrot.slane %v6696_v47, 4  ;;  %v6701_v4 = vrot.slane %v6699_v59, 5 }
 0x4bf   : > { %v6709_v63 = vshrl.u32 %v16807_v0, 16  ;;  %v11859_v13 = vcombine.low %v6660_v34, %v6670_v25  ;;  %v6679_v49 = vrot.slane %v6678_v48, 4  ;;  %v6707_v22 = vrot.slane %v6705_v35, 5  ;;  %v16844_v48 = vld [vmem:[#allocation2 + $0xa0] sm:$0xf] }
 0x4c0   : > { %v6689_v45 = vrot.slane %v6688_v41, 4  ;;  %v6702_v2 = vor.u32 %v6701_v4, %v6698_v33  ;;  %v6715_v6 = vshll.u32 %v16816_v57, 16  ;;  %v6720_v29 = vshrl.u32 %v16818_v53, 16  ;;  %v16882_v57 = vld [vmem:[#allocation2 + $0xbc] sm:$0x1] }
 0x4c1   : > { %v6711_v61 = vrot.slane %v6709_v63, 4  ;;  %12889 = vmatmul.mubr.msk.bf16.gmra.mrb[16].mxu1 %vm1471_vm12, %v11859_v13  ;;  %v6684_v8 = vsel %vm14466_vm13, %v6679_v49, %v6683_v31  ;;  %v6723_v1 = vshll.u32 %v16818_v53, 16  ;;  %v6729_v5 = vshll.u32 %v16825_v10, 16  ;;  %v16851_v63 = vld [vmem:[#allocation2 + $0xa4] sm:$0x1] }
 0x4c2   : > { %v6694_v44 = vsel %vm14466_vm13, %v6689_v45, %v6693_v14  ;;  %v6703_v23 = vrot.slane %v6702_v2, 4  ;;  %v6717_v59 = vrot.slane %v6715_v6, 5  ;;  %v6722_v41 = vrot.slane %v6720_v29, 4  ;;  %19060 = vst [vmem:[#allocation24_spill] sm:$0xff] %v16851_v63  ;;  %v16856_v6 = vld [vmem:[#allocation2 + $0xa8] sm:$0xf] }
 0x4c3   : > { %v11860_v34 = vcombine.low %v6684_v8, %v6694_v44  ;;  %v6712_v47 = vor.u32 %v6711_v61, %v6707_v22  ;;  %v6725_v35 = vrot.slane %v6723_v1, 5  ;;  %v6731_v25 = vrot.slane %v6729_v5, 5 }
 0x4c4   : > { %v6733_v33 = vshrl.u32 %v16825_v10, 16  ;;  %v6708_v31 = vsel %vm14466_vm13, %v6703_v23, %v6707_v22  ;;  %v6739_v4 = vshll.u32 %v16831_v50, 16  ;;  %v6744_v13 = vshrl.u32 %v16833_v21, 16 }
 0x4c5   : > { %12892 = vmatprep.mubr.msk.bf16.mxu1 %vm1471_vm12, %v11860_v34  ;;  %v6713_v14 = vrot.slane %v6712_v47, 4  ;;  %v6726_v49 = vor.u32 %v6725_v35, %v6722_v41  ;;  %v6747_v2 = vshll.u32 %v16833_v21, 16  ;;  %v6753_v61 = vshll.u32 %v16844_v48, 16  ;;  %v16861_v47 = vld [vmem:[#allocation2 + $0xac] sm:$0xf] }
 0x4c6   : > { %v6735_v45 = vrot.slane %v6733_v33, 4  ;;  %v6741_v8 = vrot.slane %v6739_v4, 5  ;;  %v6746_v22 = vrot.slane %v6744_v13, 4  ;;  %v6757_v44 = vshrl.u32 %v16844_v48, 16  ;;  %v16868_v13 = vld [vmem:[#allocation2 + $0xb0] sm:$0x1] }
 0x4c7   : > { %v6718_v29 = vsel %vm14466_vm13, %v6713_v14, %v6717_v59  ;;  %v6727_v5 = vrot.slane %v6726_v49, 4  ;;  %v6749_v23 = vrot.slane %v6747_v2, 5  ;;  %v6755_v41 = vrot.slane %v6753_v61, 5 }
 0x4c8   : > { %v11861_v1 = vcombine.low %v6708_v31, %v6718_v29  ;;  %v6736_v34 = vor.u32 %v6735_v45, %v6731_v25  ;;  %v6759_v35 = vrot.slane %v6757_v44, 4  ;;  %v6763_v33 = vshll.u32 %v16851_v63, 16  ;;  %v16872_v29 = vld [vmem:[#allocation2 + $0xb4] sm:$0xf] }
 0x4c9   : > { %v6768_v18 = vshrl.u32 %v16856_v6, 16  ;;  %v6732_v59 = vsel %vm14466_vm13, %v6727_v5, %v6731_v25  ;;  %v6750_v4 = vor.u32 %v6749_v23, %v6746_v22  ;;  %v6771_v31 = vshll.u32 %v16856_v6, 16  ;;  %v16877_v5 = vld [vmem:[#allocation2 + $0xb8] sm:$0xf] }
 0x4ca   : > { %12893 = vmatmul.mubr.msk.bf16.gmra.mrb[20].mxu1 %vm1471_vm12, %v11861_v1  ;;  %v6737_v14 = vrot.slane %v6736_v34, 4  ;;  %v6760_v49 = vor.u32 %v6759_v35, %v6755_v41  ;;  %v6765_v45 = vrot.slane %v6763_v33, 5  ;;  %v6777_v61 = vshll.u32 %v16861_v47, 16 }
 0x4cb   : > { %v6770_v2 = vrot.slane %v6768_v18, 4  ;;  %v6751_v1 = vrot.slane %v6750_v4, 4  ;;  %v6773_v63 = vrot.slane %v6771_v31, 5  ;;  %v6781_v25 = vshrl.u32 %v16861_v47, 16 }
 0x4cc   : > { %v6742_v44 = vsel %vm14466_vm13, %v6737_v14, %v6741_v8  ;;  %v6761_v34 = vrot.slane %v6760_v49, 4  ;;  %v6779_v23 = vrot.slane %v6777_v61, 5  ;;  %v6787_v35 = vshll.u32 %v16868_v13, 16 }
 0x4cd   : > { %v11862_v22 = vcombine.low %v6732_v59, %v6742_v44  ;;  %v6756_v18 = vsel %vm14466_vm13, %v6751_v1, %v6755_v41  ;;  %v6774_v33 = vor.u32 %v6773_v63, %v6770_v2  ;;  %v6783_v50 = vrot.slane %v6781_v25, 4 }
 0x4ce   : > { %v6792_v8 = vshrl.u32 %v16872_v29, 16  ;;  %v6766_v14 = vsel %vm14466_vm13, %v6761_v34, %v6765_v45  ;;  %v6795_v59 = vshll.u32 %v16872_v29, 16  ;;  %v6801_v4 = vshll.u32 %v16877_v5, 16 }
 0x4cf   : > { %12896 = vmatprep.mubr.msk.bf16.mxu1 %vm1471_vm12, %v11862_v22  ;;  %v11863_v31 = vcombine.low %v6756_v18, %v6766_v14  ;;  %v6775_v49 = vrot.slane %v6774_v33, 4  ;;  %v6784_v61 = vor.u32 %v6783_v50, %v6779_v23  ;;  %v6805_v2 = vshrl.u32 %v16877_v5, 16 }
 0x4d0   : > { %v6794_v44 = vrot.slane %v6792_v8, 4  ;;  %v6797_v41 = vrot.slane %v6795_v59, 5  ;;  %v6803_v63 = vrot.slane %v6801_v4, 5  ;;  %v6811_v1 = vshll.u32 %v16882_v57, 16 }
 0x4d1   : > { %v6780_v25 = vsel %vm14466_vm13, %v6775_v49, %v6779_v23  ;;  %v6785_v45 = vrot.slane %v6784_v61, 4  ;;  %v6789_v22 = vrot.slane %v6787_v35, 5  ;;  %v11883_v34 = vcombine.low %v16648_v40, %v16632_v24  ;;  %v7376_v49 = vld [vmem:[#allocation2 + $0x54] sm:$0xe] }
 0x4d2   : > { %12897 = vmatmul.mubr.msk.bf16.gmra.mrb[24].mxu1 %vm1471_vm12, %v11863_v31  ;;  %v7426_v18 = vrot.slane %v16632_v24, 5  ;;  %v6798_v50 = vor.u32 %v6797_v41, %v6794_v44  ;;  %v6807_v33 = vrot.slane %v6805_v2, 4  ;;  %v6813_v14 = vrot.slane %v6811_v1, 5  ;;  %v7370_v1 = vld [vmem:[#allocation2 + $0xc] sm:$0xe] }
 0x4d3   : > { %v6790_v8 = vsel %vm14466_vm13, %v6785_v45, %v6789_v22  ;;  %v11915_v22 = vrot.slane %v7370_v1, 9  ;;  %v7372_v41 = vld [vmem:[#allocation2 + $0x24] sm:$0xe]  ;;  %v7374_v1 = vld [vmem:[#allocation2 + $0x3c] sm:$0xe]  ;;  %v7450_v4 = vrot.slane %v16702_v26, 5 }
 0x4d4   : > { %v11864_v23 = vcombine.low %v6780_v25, %v6790_v8  ;;  %v6799_v31 = vrot.slane %v6798_v50, 4  ;;  %v6808_v35 = vor.u32 %v6807_v33, %v6803_v63  ;;  %v7429_v33 = vrot.slane %v16650_v52, 5  ;;  %v7377_v26 = vld [vmem:[#allocation2 + $0x60] sm:$0xe] }
 0x4d5   : > { %v7428_v8 = vrot.slane %v7426_v18, 4  ;;  %v16938_v61 = vsel %vm14940_vm1, %v11915_v22, %v7426_v18  ;;  %v7628_v18 = vsel %vm1520_vm4, %v16699_v17, 0  ;;  %v11884_v22 = vcombine.low %v16664_v7, %v16670_v62 }
 0x4d6   : > { %12900 = vmatprep.mubr.msk.bf16.mxu1 %vm1471_vm12, %v11864_v23  ;;  %v6804_v25 = vsel %vm14466_vm13, %v6799_v31, %v6803_v63  ;;  %v6809_v45 = vrot.slane %v6808_v35, 4  ;;  %v13910_v31 = vld [vmem:[#allocation2] sm:$0xf]  ;;  %v16931_v35 = vld [vmem:[#allocation2 + $0x4] sm:$0xf]  ;;  %v7440_v23 = vrot.slane %v16683_v15, 5 }
 0x4d7   : > { %v11882_v50 = vcombine.low %v13910_v31, %v16931_v35  ;;  %v7373_v31 = vld [vmem:[#allocation2 + $0x30] sm:$0xe]  ;;  %v11919_v52 = vrot.slane %v7374_v1, 9 }
 0x4d8   : > { %v6814_v63 = vsel %vm14466_vm13, %v6809_v45, %v6813_v14  ;;  %v16942_v14 = vsel %vm14940_vm1, %v7428_v8, %v7429_v33  ;;  %v11917_v45 = vrot.slane %v7372_v41, 9  ;;  %v11918_v33 = vrot.slane %v7373_v31, 9  ;;  %v7375_v8 = vld [vmem:[#allocation2 + $0x48] sm:$0xe]  ;;  %v16972_v1 = vld [vmem:[#allocation9 + $0x6] sm:$0x3] }
 0x4d9   : > { %v11865_v44 = vcombine.low %v6804_v25, %v6814_v63  ;;  %v7442_v25 = vrot.slane %v7440_v23, 4  ;;  %v7447_v41 = vrot.slane %v16697_v11, 5  ;;  %v11920_v59 = vrot.slane %v7375_v8, 9 }
 0x4db   : > { %12901 = vmatmul.mubr.msk.bf16.gmra.mrb[28].mxu1 %vm1471_vm12, %v11865_v44  ;;  %v7443_v44 = vrot.slane %v16687_v42, 5  ;;  %v7454_v42 = vrot.slane %v16714_v58, 5  ;;  %v16967_v7 = vsel %vm14940_vm1, %v11918_v33, %v7447_v41  ;;  %v7449_v31 = vrot.slane %v7447_v41, 4 }
 0x4dc   : > { %12906 = vmatprep.mubr.msk.bf16.mxu1 %vm1471_vm12, %v11882_v50  ;;  %v16956_v50 = vsel %vm14940_vm1, %v11917_v45, %v7440_v23  ;;  %v7457_v45 = vrot.slane %v16722_v30, 5  ;;  %v11921_v33 = vrot.slane %v7376_v49, 9  ;;  %v7468_v41 = vrot.slane %v16750_v43, 5  ;;  %v7381_v49 = vld [vmem:[#allocation2 + $0x90] sm:$0xe] }
 0x4dd   : > { %v16960_v63 = vsel %vm14940_vm1, %v7442_v25, %v7443_v44  ;;  %v7456_v23 = vrot.slane %v7454_v42, 4  ;;  %v7461_v25 = vrot.slane %v16733_v56, 5  ;;  %v16976_v44 = vsel %vm14940_vm1, %v7449_v31, %v7450_v4 }
 0x4de   : > { %v16980_v17 = vsel %vm14940_vm1, %v11919_v52, %v7454_v42  ;;  %v7464_v52 = vrot.slane %v16740_v60, 5  ;;  %v7378_v42 = vld [vmem:[#allocation2 + $0x6c] sm:$0xe]  ;;  %v7470_v40 = vrot.slane %v7468_v41, 4  ;;  %v7475_v31 = vrot.slane %v16766_v38, 5 }
 0x4df   : > { %v16991_v4 = vsel %vm14940_vm1, %v7456_v23, %v7457_v45  ;;  %v7463_v8 = vrot.slane %v7461_v25, 4  ;;  %v16999_v24 = vsel %vm14940_vm1, %v11920_v59, %v7461_v25  ;;  %v7379_v23 = vld [vmem:[#allocation2 + $0x78] sm:$0xe]  ;;  %v7380_v59 = vld [vmem:[#allocation2 + $0x84] sm:$0xe]  ;;  %v11923_v25 = vrot.slane %v7378_v42, 9 }
 0x4e0   : > { %v7485_v45 = vrot.slane %v16784_v32, 5  ;;  %v11924_v55 = vrot.slane %v7379_v23, 9 }
 0x4e1   : > { %v17006_v60 = vsel %vm14940_vm1, %v7463_v8, %v7464_v52  ;;  %v7482_v8 = vrot.slane %v16782_v51, 5  ;;  %v7382_v52 = vld [vmem:[#allocation2 + $0x9c] sm:$0xe] }
 0x4e3   : > { %12907 = vmatmul.mubr.msk.bf16.vlgmr.msra.gmra.mrb[0].mxu1 %vm1471_vm12, %v11883_v34  ;;  %v7471_v34 = vrot.slane %v16755_v28, 5  ;;  %v7484_v30 = vrot.slane %v7482_v8, 4 }
 0x4e4   : > { %12939 = vmatpush3.bf16.msra.mxu1 %v7628_v18  ;;  %12910 = vmatprep.mubr.msk.bf16.mxu1 %vm1471_vm12, %v11884_v22  ;;  %v17010_v18 = vsel %vm14940_vm1, %v11921_v33, %v7468_v41  ;;  %v11922_v22 = vrot.slane %v7377_v26, 9  ;;  %v7477_v41 = vrot.slane %v7475_v31, 4  ;;  %v7478_v26 = vrot.slane %v16772_v12, 5  ;;  %v19064_v12 = vld [vmem:[#allocation26_spill] sm:$0xff] }
 0x4e5   : > { %13700 = vmatprep.subr.msk.bf16.mxu1 %vm1520_vm4, %v16972_v1  ;;  %v17017_v28 = vsel %vm14940_vm1, %v7470_v40, %v7471_v34  ;;  %v7489_v40 = vrot.slane %v16793_v20, 5  ;;  %v17035_v34 = vsel %vm14940_vm1, %v11923_v25, %v7482_v8  ;;  %v17042_v32 = vsel %vm14940_vm1, %v7484_v30, %v7485_v45 }
 0x4e6   : > { %19062 = vst [vmem:[#allocation20_spill] sm:$0xff] %v17017_v28  ;;  %v17024_v33 = vsel %vm14940_vm1, %v11922_v22, %v7475_v31  ;;  %v17031_v42 = vsel %vm14940_vm1, %v7477_v41, %v7478_v26  ;;  %v11925_v22 = vrot.slane %v7380_v59, 9  ;;  %v7496_v31 = vrot.slane %v16807_v0, 5  ;;  %v7383_v41 = vld [vmem:[#allocation2 + $0xa8] sm:$0xe]  ;;  %v19068_v59 = vld [vmem:[#allocation24_spill] sm:$0xff] }
 0x4e7   : > { %v7491_v23 = vrot.slane %v7489_v40, 4  ;;  %v7492_v28 = vrot.slane %v16800_v16, 5  ;;  %v19063_v26 = vcombine.low %v16677_v3, %v16683_v15  ;;  %v17053_v25 = vsel %vm14940_vm1, %v11924_v55, %v7489_v40  ;;  %v7384_v40 = vld [vmem:[#allocation2 + $0xb4] sm:$0xe] }
 0x4e8   : > { %v7498_v8 = vrot.slane %v7496_v31, 4  ;;  %v7499_v30 = vrot.slane %v19064_v12, 5  ;;  %v19065_v45 = vcombine.low %v16690_v37, %v16697_v11  ;;  %v17066_v15 = vsel %vm14940_vm1, %v11925_v22, %v7496_v31  ;;  %v19067_v31 = vld [vmem:[#allocation23_spill] sm:$0xff] }
 0x4e9   : > { %v17062_v3 = vsel %vm14940_vm1, %v7491_v23, %v7492_v28  ;;  %v11926_v16 = vrot.slane %v7381_v49, 9  ;;  %v7503_v55 = vrot.slane %v16825_v10, 5  ;;  %v11927_v11 = vrot.slane %v7382_v52, 9 }
 0x4ea   : > { %19066 = vst [vmem:[#allocation17_spill] sm:$0xff] %v17062_v3  ;;  %v17073_v37 = vsel %vm14940_vm1, %v7498_v8, %v7499_v30  ;;  %v7506_v23 = vrot.slane %v19067_v31, 5  ;;  %v7513_v12 = vrot.slane %v19068_v59, 5  ;;  %v11928_v3 = vrot.slane %v7383_v41, 9 }
 0x4eb   : > { %12911 = vmatmul.mubr.msk.bf16.gmra.mrb[4].mxu1 %vm1471_vm12, %v19063_v26  ;;  %v7510_v26 = vrot.slane %v16844_v48, 5  ;;  %v17080_v22 = vsel %vm14940_vm1, %v11926_v16, %v7503_v55  ;;  %v7505_v49 = vrot.slane %v7503_v55, 4  ;;  %v7517_v8 = vrot.slane %v16861_v47, 5 }
 0x4ec   : > { %12914 = vmatprep.mubr.msk.bf16.mxu1 %vm1471_vm12, %v19065_v45  ;;  %v11929_v28 = vrot.slane %v7384_v40, 9  ;;  %v7524_v16 = vrot.slane %v16877_v5, 5  ;;  %v7520_v31 = vrot.slane %v16868_v13, 5  ;;  %v19069_v40 = vcombine.low %v16710_v27, %v16714_v58 }
 0x4ed   : > { %v7512_v45 = vrot.slane %v7510_v26, 4  ;;  %v17087_v52 = vsel %vm14940_vm1, %v7505_v49, %v7506_v23  ;;  %v17091_v30 = vsel %vm14940_vm1, %v11927_v11, %v7510_v26  ;;  %v7519_v41 = vrot.slane %v7517_v8, 4 }
 0x4ee   : > { %v11942_v55 = vcombine.low %v17080_v22, %v17087_v52  ;;  %v7526_v23 = vrot.slane %v7524_v16, 4  ;;  %v7527_v11 = vrot.slane %v16882_v57, 5  ;;  %v17110_v26 = vsel %vm14940_vm1, %v11928_v3, %v7517_v8  ;;  %v8919_v3 = vld [vmem:[#allocation2 + $0x9c] sm:$0xe]  ;;  %v17354_v57 = vld [vmem:[#allocation2 + $0xac] sm:$0xf] }
 0x4ef   : > { %v17098_v59 = vsel %vm14940_vm1, %v7512_v45, %v7513_v12  ;;  %v17114_v12 = vsel %vm14940_vm1, %v7519_v41, %v7520_v31  ;;  %v19070_v13 = vcombine.low %v16729_v19, %v16733_v56  ;;  %v17124_v27 = vsel %vm14940_vm1, %v11929_v28, %v7524_v16 }
 0x4f0   : > { %v17128_v58 = vsel %vm14940_vm1, %v7526_v23, %v7527_v11  ;;  %v19071_v45 = vcombine.low %v16744_v54, %v16750_v43  ;;  %v19072_v19 = vcombine.low %v16757_v46, %v16766_v38  ;;  %v19073_v56 = vcombine.low %v16775_v36, %v16782_v51  ;;  %v7369_v38 = vld [vmem:[#allocation2] sm:$0xe]  ;;  %v13912_v36 = vld [vmem:[#allocation2 + $0x8] sm:$0x1] }
 0x4f1   : > { %v19074_v28 = vcombine.low %v16787_v9, %v16793_v20  ;;  %v19075_v54 = vcombine.low %v16804_v39, %v16807_v0  ;;  %v19076_v43 = vcombine.low %v16818_v53, %v16825_v10  ;;  %v7419_v46 = vrot.slane %v16931_v35, 5  ;;  %v7371_v35 = vld [vmem:[#allocation2 + $0x18] sm:$0xe] }
 0x4f2   : > { %v7422_v51 = vrot.slane %v13912_v36, 5  ;;  %v11914_v8 = vrot.slane %v7369_v38, 9  ;;  %v19077_v9 = vcombine.low %v16833_v21, %v16844_v48  ;;  %v19078_v20 = vcombine.low %v16856_v6, %v16861_v47  ;;  %v19080_v47 = vld [vmem:[#allocation18_spill] sm:$0xff]  ;;  %v17229_v36 = vld [vmem:[#allocation2 + $0x44] sm:$0x1] }
 0x4f3   : > { %12915 = vmatmul.mubr.msk.bf16.gmra.mrb[8].mxu1 %vm1471_vm12, %v19069_v40  ;;  %v7421_v16 = vrot.slane %v7419_v46, 4  ;;  %v7433_v53 = vrot.slane %v16670_v62, 5  ;;  %v19079_v21 = vcombine.low %v16872_v29, %v16877_v5  ;;  %v11916_v6 = vrot.slane %v7371_v35, 9  ;;  %v17182_v40 = vld [vmem:[#allocation9 + $0x8] sm:$0x3] }
 0x4f4   : > { %12918 = vmatprep.mubr.msk.bf16.mxu1 %vm1471_vm12, %v19070_v13  ;;  %v7420_v39 = vsel %vm14940_vm1, %v11914_v8, %v7419_v46  ;;  %v7436_v41 = vrot.slane %v19080_v47, 5  ;;  %v7986_v23 = vsel %vm1520_vm4, %v16972_v1, 0  ;;  %v19081_v29 = vcombine.low %v16938_v61, %v16942_v14  ;;  %v8909_v13 = vld [vmem:[#allocation2 + $0x24] sm:$0xe]  ;;  %v8912_v38 = vld [vmem:[#allocation2 + $0x48] sm:$0xe] }
 0x4f5   : > { %v7423_v0 = vsel %vm14940_vm1, %v7421_v16, %v7422_v51  ;;  %v7435_v48 = vrot.slane %v7433_v53, 4  ;;  %v7434_v62 = vsel %vm14940_vm1, %v11916_v6, %v7433_v53  ;;  %v19082_v5 = vcombine.low %v16956_v50, %v16960_v63  ;;  %v17209_v50 = vld [vmem:[#allocation2 + $0x34] sm:$0xf]  ;;  %v8910_v63 = vld [vmem:[#allocation2 + $0x30] sm:$0xe] }
 0x4f6   : > { %v11930_v10 = vcombine.low %v7420_v39, %v7423_v0  ;;  %v19083_v1 = vcombine.low %v16967_v7, %v16976_v44  ;;  %v19084_v61 = vcombine.low %v16980_v17, %v16991_v4  ;;  %v19085_v14 = vcombine.low %v16999_v24, %v17006_v60  ;;  %v17213_v7 = vld [vmem:[#allocation2 + $0x40] sm:$0xf]  ;;  %v19086_v17 = vld [vmem:[#allocation20_spill] sm:$0xff]  ;;  %v17236_v16 = vld [vmem:[#allocation2 + $0x50] sm:$0x1] }
 0x4f7   : > { %v7437_v31 = vsel %vm14940_vm1, %v7435_v48, %v7436_v41  ;;  %v12028_v44 = vrot.slane %v8909_v13, 9  ;;  %v19087_v4 = vcombine.low %v17010_v18, %v19086_v17  ;;  %v8911_v60 = vld [vmem:[#allocation2 + $0x3c] sm:$0xe]  ;;  %v8994_v46 = vrot.slane %v17209_v50, 5  ;;  %v17240_v39 = vld [vmem:[#allocation2 + $0x58] sm:$0xf] }
 0x4f8   : > { %v11932_v11 = vcombine.low %v7434_v62, %v7437_v31  ;;  %v17251_v48 = vld [vmem:[#allocation2 + $0x64] sm:$0xf]  ;;  %v9004_v31 = vrot.slane %v17229_v36, 5  ;;  %v17260_v62 = vld [vmem:[#allocation2 + $0x5c] sm:$0x1]  ;;  %v9015_v17 = vrot.slane %v17240_v39, 5 }
 0x4f9   : > { %v9064_v52 = vrot.slane %v17354_v57, 5 }
 0x4fb   : > { %12919 = vmatmul.mubr.msk.bf16.gmra.mrb[12].mxu1 %vm1471_vm12, %v19071_v45  ;;  %v17207_v45 = vld [vmem:[#allocation2 + $0x28] sm:$0xf] }
 0x4fc   : > { %12922 = vmatprep.mubr.msk.bf16.mxu1 %vm1471_vm12, %v19072_v19  ;;  %v17211_v19 = vld [vmem:[#allocation2 + $0x2c] sm:$0x1]  ;;  %v8987_v24 = vrot.slane %v17207_v45, 5 }
 0x4fd   : > { %v8990_v8 = vrot.slane %v17211_v19, 5 }
 0x4fe   : > { %v17233_v18 = vsel %vm14940_vm1, %v12028_v44, %v8987_v24  ;;  %v8989_v51 = vrot.slane %v8987_v24, 4  ;;  %v19096_v24 = vcombine.low %v17035_v34, %v17042_v32  ;;  %v17299_v34 = vld [vmem:[#allocation2 + $0x74] sm:$0x1]  ;;  %v17332_v32 = vld [vmem:[#allocation2 + $0x8c] sm:$0x1] }
 0x4ff   : > { %19089 = vst [vmem:[#allocation19_spill] sm:$0xff] %v17233_v18 }
 0x500   : > { %v17244_v0 = vsel %vm14940_vm1, %v8989_v51, %v8990_v8  ;;  %v8916_v51 = vld [vmem:[#allocation2 + $0x78] sm:$0xe]  ;;  %v19098_v8 = vld [vmem:[#allocation17_spill] sm:$0xff] }
 0x501   : > { %19090 = vst [vmem:[#allocation25_spill] sm:$0xff] %v17244_v0 }
 0x503   : > { %12923 = vmatmul.mubr.msk.bf16.gmra.mrb[16].mxu1 %vm1471_vm12, %v19073_v56  ;;  %v17219_v56 = vld [vmem:[#allocation2 + $0x38] sm:$0x1] }
 0x504   : > { %12926 = vmatprep.mubr.msk.bf16.mxu1 %vm1471_vm12, %v19074_v28  ;;  %v19088_v28 = vcombine.low %v17024_v33, %v17031_v42  ;;  %v8996_v33 = vrot.slane %v8994_v46, 4  ;;  %v8997_v42 = vrot.slane %v17219_v56, 5 }
 0x506   : > { %v17257_v47 = vsel %vm14940_vm1, %v8996_v33, %v8997_v42  ;;  %v19099_v33 = vcombine.low %v17053_v25, %v19098_v8 }
 0x507   : > { %19092 = vst [vmem:[#allocation26_spill] sm:$0xff] %v17257_v47 }
 0x50b   : > { %12927 = vmatmul.mubr.msk.bf16.gmra.mrb[20].mxu1 %vm1471_vm12, %v19075_v54  ;;  %v17226_v54 = vld [vmem:[#allocation2 + $0x4c] sm:$0xf] }
 0x50c   : > { %12930 = vmatprep.mubr.msk.bf16.mxu1 %vm1471_vm12, %v19076_v43  ;;  %v12029_v43 = vrot.slane %v8910_v63, 9  ;;  %v9008_v35 = vrot.slane %v17226_v54, 5 }
 0x50e   : > { %v17248_v53 = vsel %vm14940_vm1, %v12029_v43, %v8994_v46 }
 0x50f   : > { %19091 = vst [vmem:[#allocation22_spill] sm:$0xff] %v17248_v53  ;;  %v8315_v53 = vshrl.u32 %v17209_v50, 16 }
 0x513   : > { %12931 = vmatmul.mubr.msk.bf16.gmra.mrb[24].mxu1 %vm1471_vm12, %v19077_v9  ;;  %v12030_v9 = vrot.slane %v8911_v60, 9  ;;  %v17286_v60 = vld [vmem:[#allocation2 + $0x7c] sm:$0xf] }
 0x514   : > { %12934 = vmatprep.mubr.msk.bf16.mxu1 %vm1471_vm12, %v19078_v20  ;;  %v9001_v20 = vrot.slane %v17213_v7, 5 }
 0x516   : > { %v9003_v41 = vrot.slane %v9001_v20, 4 }
 0x518   : > { %v17275_v13 = vsel %vm14940_vm1, %v9003_v41, %v9004_v31  ;;  %v17312_v31 = vld [vmem:[#allocation2 + $0x88] sm:$0xf] }
 0x519   : > { %19094 = vst [vmem:[#allocation24_spill] sm:$0xff] %v17275_v13 }
 0x51b   : > { %12935 = vmatmul.mubr.msk.bf16.gmra.mrb[28].mxu1 %vm1471_vm12, %v19079_v21  ;;  %v8913_v21 = vld [vmem:[#allocation2 + $0x54] sm:$0xe] }
 0x51c   : > { %12940 = vmatprep.mubr.msk.bf16.mxu1 %vm1471_vm12, %v11930_v10  ;;  %v12031_v10 = vrot.slane %v8912_v38, 9  ;;  %v12032_v44 = vrot.slane %v8913_v21, 9  ;;  %v9022_v38 = vrot.slane %v17251_v48, 5 }
 0x51e   : > { %v17279_v63 = vsel %vm14940_vm1, %v12031_v10, %v9008_v35  ;;  %v17305_v42 = vsel %vm14940_vm1, %v12032_v44, %v9015_v17  ;;  %v17308_v10 = vld [vmem:[#allocation2 + $0x80] sm:$0x1]  ;;  %v9036_v44 = vrot.slane %v17286_v60, 5 }
 0x51f   : > { %19095 = vst [vmem:[#allocation18_spill] sm:$0xff] %v17279_v63  ;;  %19100 = vst [vmem:[#allocation17_spill] sm:$0xff] %v17305_v42  ;;  %v8190_v42 = vld [vmem:[#allocation2 + $0x30] sm:$0xf] }
 0x523   : > { %12941 = vmatmul.mubr.msk.bf16.vlgmr.msra.gmra.mrb[0].mxu1 %vm1471_vm12, %v19081_v29 }
 0x524   : > { %12973 = vmatpush3.bf16.msra.mxu1 %v7986_v23  ;;  %12944 = vmatprep.mubr.msk.bf16.mxu1 %vm1471_vm12, %v11932_v11  ;;  %v8914_v23 = vld [vmem:[#allocation2 + $0x60] sm:$0xe]  ;;  %v17262_v11 = vld [vmem:[#allocation2 + $0x68] sm:$0x1] }
 0x525   : > { %13701 = vmatprep.subr.msk.bf16.mxu1 %vm1520_vm4, %v17182_v40  ;;  %v12033_v46 = vrot.slane %v8914_v23, 9  ;;  %v9025_v21 = vrot.slane %v17262_v11, 5 }
 0x52b   : > { %12945 = vmatmul.mubr.msk.bf16.gmra.mrb[4].mxu1 %vm1471_vm12, %v19082_v5  ;;  %v17268_v5 = vsel %vm14940_vm1, %v12030_v9, %v9001_v20  ;;  %v9017_v9 = vrot.slane %v9015_v17, 4  ;;  %v9018_v20 = vrot.slane %v17260_v62, 5  ;;  %v8917_v17 = vld [vmem:[#allocation2 + $0x84] sm:$0xe] }
 0x52c   : > { %12948 = vmatprep.mubr.msk.bf16.mxu1 %vm1471_vm12, %v19083_v1  ;;  %19093 = vst [vmem:[#allocation23_spill] sm:$0xff] %v17268_v5  ;;  %v9010_v1 = vrot.slane %v9008_v35, 4  ;;  %v9024_v35 = vrot.slane %v9022_v38, 4  ;;  %v12036_v6 = vrot.slane %v8917_v17, 9 }
 0x52d   : > { %v17316_v23 = vsel %vm14940_vm1, %v9017_v9, %v9018_v20  ;;  %v9032_v9 = vrot.slane %v17299_v34, 5  ;;  %v8918_v20 = vld [vmem:[#allocation2 + $0x90] sm:$0xe] }
 0x52e   : > { %19101 = vst [vmem:[#allocation27_spill] sm:$0xff] %v17316_v23  ;;  %v17329_v8 = vsel %vm14940_vm1, %v9024_v35, %v9025_v21  ;;  %v17343_v35 = vld [vmem:[#allocation2 + $0xa0] sm:$0xf]  ;;  %v12037_v49 = vrot.slane %v8918_v20, 9 }
 0x52f   : > { %19103 = vst [vmem:[#allocation29_spill] sm:$0xff] %v17329_v8  ;;  %v9057_v17 = vrot.slane %v17343_v35, 5  ;;  %v17404_v8 = vld [vmem:[#allocation2 + $0xbc] sm:$0x1] }
 0x533   : > { %12949 = vmatmul.mubr.msk.bf16.gmra.mrb[8].mxu1 %vm1471_vm12, %v19084_v61  ;;  %v9011_v61 = vrot.slane %v17236_v16, 5 }
 0x534   : > { %12952 = vmatprep.mubr.msk.bf16.mxu1 %vm1471_vm12, %v19085_v14  ;;  %v17271_v14 = vld [vmem:[#allocation2 + $0x70] sm:$0xf] }
 0x535   : > { %v17292_v43 = vsel %vm14940_vm1, %v9010_v1, %v9011_v61  ;;  %v9029_v41 = vrot.slane %v17271_v14, 5  ;;  %v17320_v1 = vsel %vm14940_vm1, %v12033_v46, %v9022_v38  ;;  %v12035_v61 = vrot.slane %v8916_v51, 9  ;;  %v17334_v46 = vld [vmem:[#allocation2 + $0x98] sm:$0x1] }
 0x536   : > { %19097 = vst [vmem:[#allocation20_spill] sm:$0xff] %v17292_v43  ;;  %19102 = vst [vmem:[#allocation28_spill] sm:$0xff] %v17320_v1  ;;  %v9043_v38 = vrot.slane %v17312_v31, 5  ;;  %v9053_v20 = vrot.slane %v17334_v46, 5 }
 0x537   : > { %v17351_v29 = vsel %vm14940_vm1, %v12035_v61, %v9036_v44  ;;  %v19108_v61 = vcombine.low %v17066_v15, %v17073_v37  ;;  %v17380_v15 = vld [vmem:[#allocation2 + $0xb0] sm:$0x1] }
 0x538   : > { %19106 = vst [vmem:[#allocation32_spill] sm:$0xff] %v17351_v29  ;;  %v17395_v29 = vld [vmem:[#allocation2 + $0xc4] sm:$0xf] }
 0x53b   : > { %12953 = vmatmul.mubr.msk.bf16.gmra.mrb[12].mxu1 %vm1471_vm12, %v19087_v4  ;;  %v8915_v4 = vld [vmem:[#allocation2 + $0x6c] sm:$0xe] }
 0x53c   : > { %12956 = vmatprep.mubr.msk.bf16.mxu1 %vm1471_vm12, %v19088_v28  ;;  %v12034_v25 = vrot.slane %v8915_v4, 9  ;;  %v9038_v4 = vrot.slane %v9036_v44, 4  ;;  %v9039_v28 = vrot.slane %v17308_v10, 5  ;;  %v17367_v44 = vld [vmem:[#allocation2 + $0xa4] sm:$0x1] }
 0x53e   : > { %v17340_v51 = vsel %vm14940_vm1, %v12034_v25, %v9029_v41  ;;  %v17373_v25 = vsel %vm14940_vm1, %v12036_v6, %v9043_v38 }
 0x53f   : > { %19104 = vst [vmem:[#allocation30_spill] sm:$0xff] %v17340_v51  ;;  %19109 = vst [vmem:[#allocation34_spill] sm:$0xff] %v17373_v25  ;;  %v9059_v51 = vrot.slane %v9057_v17, 4 }
 0x543   : > { %12957 = vmatmul.mubr.msk.bf16.gmra.mrb[16].mxu1 %vm1471_vm12, %v19096_v24  ;;  %v17323_v24 = vld [vmem:[#allocation2 + $0x94] sm:$0xf] }
 0x544   : > { %12960 = vmatprep.mubr.msk.bf16.mxu1 %vm1471_vm12, %v19099_v33  ;;  %v9031_v33 = vrot.slane %v9029_v41, 4  ;;  %v17360_v41 = vsel %vm14940_vm1, %v9038_v4, %v9039_v28  ;;  %v9045_v28 = vrot.slane %v9043_v38, 4  ;;  %v9046_v4 = vrot.slane %v17332_v32, 5 }
 0x545   : > { %19107 = vst [vmem:[#allocation33_spill] sm:$0xff] %v17360_v41  ;;  %v17384_v41 = vld [vmem:[#allocation2 + $0xb8] sm:$0xf] }
 0x546   : > { %v17347_v21 = vsel %vm14940_vm1, %v9031_v33, %v9032_v9  ;;  %v9050_v33 = vrot.slane %v17323_v24, 5  ;;  %v8920_v9 = vld [vmem:[#allocation2 + $0xa8] sm:$0xe]  ;;  %v17388_v6 = vsel %vm14940_vm1, %v9045_v28, %v9046_v4  ;;  %v9060_v28 = vrot.slane %v17367_v44, 5  ;;  %v8922_v4 = vld [vmem:[#allocation2 + $0xc0] sm:$0xe] }
 0x547   : > { %19105 = vst [vmem:[#allocation31_spill] sm:$0xff] %v17347_v21  ;;  %19110 = vst [vmem:[#allocation35_spill] sm:$0xff] %v17388_v6  ;;  %v12039_v22 = vrot.slane %v8920_v9, 9  ;;  %v9066_v9 = vrot.slane %v9064_v52, 4  ;;  %v17413_v6 = vld [vmem:[#allocation2 + $0xc8] sm:$0x1] }
 0x548   : > { %v9052_v37 = vrot.slane %v9050_v33, 4  ;;  %v17392_v38 = vsel %vm14940_vm1, %v12037_v49, %v9050_v33  ;;  %v9071_v49 = vrot.slane %v17384_v41, 5 }
 0x549   : > { %19111 = vst [vmem:[#allocation36_spill] sm:$0xff] %v17392_v38  ;;  %v9078_v38 = vrot.slane %v17395_v29, 5 }
 0x54a   : > { %v17401_v21 = vsel %vm14940_vm1, %v9052_v37, %v9053_v20  ;;  %v17417_v37 = vsel %vm14940_vm1, %v9059_v51, %v9060_v28  ;;  %v17421_v20 = vsel %vm14940_vm1, %v12039_v22, %v9064_v52  ;;  %v9073_v28 = vrot.slane %v9071_v49, 4 }
 0x54b   : > { %12961 = vmatmul.mubr.msk.bf16.gmra.mrb[20].mxu1 %vm1471_vm12, %v19108_v61  ;;  %v12038_v61 = vrot.slane %v8919_v3, 9  ;;  %19112 = vst [vmem:[#allocation37_spill] sm:$0xff] %v17401_v21  ;;  %v9067_v3 = vrot.slane %v17380_v15, 5  ;;  %19114 = vst [vmem:[#allocation39_spill] sm:$0xff] %v17417_v37  ;;  %v12041_v21 = vrot.slane %v8922_v4, 9  ;;  %v9074_v22 = vrot.slane %v17404_v8, 5 }
 0x54c   : > { %12964 = vmatprep.mubr.msk.bf16.mxu1 %vm1471_vm12, %v11942_v55  ;;  %v8921_v55 = vld [vmem:[#allocation2 + $0xb4] sm:$0xe]  ;;  %19115 = vst [vmem:[#allocation40_spill] sm:$0xff] %v17421_v20  ;;  %v19117_v52 = vcombine.low %v17091_v30, %v17098_v59  ;;  %v17491_v37 = vld [vmem:[#allocation2 + $0x20] sm:$0x1] }
 0x54d   : > { %v17410_v33 = vsel %vm14940_vm1, %v12038_v61, %v9057_v17  ;;  %v12040_v25 = vrot.slane %v8921_v55, 9  ;;  %v17428_v61 = vsel %vm14940_vm1, %v9066_v9, %v9067_v3  ;;  %v9080_v55 = vrot.slane %v9078_v38, 4  ;;  %19125 = vst [vmem:[#allocation47_spill] sm:$0xff] %v17491_v37 }
 0x54e   : > { %19113 = vst [vmem:[#allocation38_spill] sm:$0xff] %v17410_v33  ;;  %19116 = vst [vmem:[#allocation41_spill] sm:$0xff] %v17428_v61  ;;  %v9081_v17 = vrot.slane %v17413_v6, 5  ;;  %v19118_v3 = vcombine.low %v17110_v26, %v17114_v12  ;;  %v17449_v9 = vsel %vm14940_vm1, %v9073_v28, %v9074_v22  ;;  %v17455_v59 = vsel %vm14940_vm1, %v12041_v21, %v9078_v38  ;;  %v13850_v28 = vld [vmem:[#allocation2 + $0x18] sm:$0xff]   ;;  %v17470_v38 = vld [vmem:[#allocation2 + $0x10] sm:$0xf] }
 0x54f   : > { %v17445_v4 = vsel %vm14940_vm1, %v12040_v25, %v9071_v49  ;;  %19120 = vst [vmem:[#allocation43_spill] sm:$0xff] %v17449_v9  ;;  %19121 = vst [vmem:[#allocation44_spill] sm:$0xff] %v17455_v59  ;;  %v13849_v25 = vld [vmem:[#allocation2 + $0xc] sm:$0xff]   ;;  %v19123_v49 = vcombine.low %v17124_v27, %v17128_v58  ;;  %v8712_v21 = vsel %vm1520_vm4, %v17182_v40, 0  ;;  %v13851_v22 = vld [vmem:[#allocation2 + $0x24] sm:$0xff]  }
 0x550   : > { %19119 = vst [vmem:[#allocation42_spill] sm:$0xff] %v17445_v4  ;;  %v17459_v26 = vsel %vm14940_vm1, %v9080_v55, %v9081_v17  ;;  %v8181_v17 = vld [vmem:[#allocation2 + $0xc] sm:$0xf]  ;;  %v8239_v55 = vshll.u32 %v17470_v38, 16  ;;  %v8184_v40 = vld [vmem:[#allocation2 + $0x18] sm:$0xf] }
 0x551   : > { %19122 = vst [vmem:[#allocation45_spill] sm:$0xff] %v17459_v26  ;;  %v8230_v27 = vshrl.u32 %v8181_v17, 16  ;;  %v8233_v58 = vshll.u32 %v8181_v17, 16  ;;  %v8254_v26 = vshrl.u32 %v8184_v40, 16  ;;  %v17486_v9 = vld [vmem:[#allocation2 + $0x14] sm:$0x1] }
 0x552   : > { %v8241_v51 = vrot.slane %v8239_v55, 5  ;;  %v13854_v33 = vld [vmem:[#allocation2 + $0x48] sm:$0xff]  }
 0x553   : > { %12965 = vmatmul.mubr.msk.bf16.gmra.mrb[24].mxu1 %vm1471_vm12, %v19117_v52  ;;  %v17472_v52 = vld [vmem:[#allocation9 + $0xa] sm:$0x3]  ;;  %v8232_v12 = vrot.slane %v8230_v27, 4  ;;  %v8235_v30 = vrot.slane %v8233_v58, 5  ;;  %v8256_v20 = vrot.slane %v8254_v26, 4 }
 0x554   : > { %12968 = vmatprep.mubr.msk.bf16.mxu1 %vm1471_vm12, %v19118_v3  ;;  %v8243_v3 = vshrl.u32 %v17470_v38, 16 }
 0x555   : > { %v8236_v4 = vor.u32 %v8235_v30, %v8232_v12 }
 0x557   : > { %v8237_v1 = vrot.slane %v8236_v4, 4  ;;  %v8302_v4 = vshrl.u32 %v8190_v42, 16 }
 0x559   : > { %v8242_v63 = vsel %vm14466_vm13, %v8237_v1, %v8241_v51  ;;  %v8304_v47 = vrot.slane %v8302_v4, 4  ;;  %v8193_v1 = vld [vmem:[#allocation2 + $0x3c] sm:$0xf] }
 0x55b   : > { %12969 = vmatmul.mubr.msk.bf16.gmra.mrb[28].mxu1 %vm1471_vm12, %v19123_v49  ;;  %v13852_v49 = vld [vmem:[#allocation2 + $0x30] sm:$0xff]  }
 0x55c   : > { %12974 = vmatprep.mubr.msk.bf16.mxu1 %vm1471_vm12, %v13849_v25  ;;  %v17480_v25 = vld [vmem:[#allocation2 + $0x1c] sm:$0xf] }
 0x55d   : > { %19124 = vst [vmem:[#allocation46_spill] sm:$0xff] %v17480_v25  ;;  %v8263_v17 = vshll.u32 %v17480_v25, 16  ;;  %v8267_v59 = vshrl.u32 %v17480_v25, 16 }
 0x55f   : > { %v17488_v58 = vrot.slane %v8263_v17, 5  ;;  %v8269_v55 = vrot.slane %v8267_v59, 4  ;;  %v8273_v59 = vshll.u32 %v17491_v37, 16 }
 0x561   : > { %v8270_v30 = vor.u32 %v8269_v55, %v17488_v58  ;;  %v8275_v13 = vrot.slane %v8273_v59, 5  ;;  %v8335_v59 = vshll.u32 %v17213_v7, 16 }
 0x563   : > { %12975 = vmatmul.mubr.msk.bf16.vlgmr.msra.gmra.mrb[0].mxu1 %vm1471_vm12, %v13850_v28  ;;  %v8245_v28 = vrot.slane %v8243_v3, 4  ;;  %v8187_v3 = vld [vmem:[#allocation2 + $0x24] sm:$0xf] }
 0x564   : > { %13007 = vmatpush3.bf16.msra.mxu1 %v8712_v21  ;;  %12978 = vmatprep.mubr.msk.bf16.mxu1 %vm1471_vm12, %v13851_v22  ;;  %v13853_v21 = vld [vmem:[#allocation2 + $0x3c] sm:$0xff]   ;;  %v8257_v22 = vshll.u32 %v8184_v40, 16  ;;  %v8249_v40 = vshll.u32 %v17486_v9, 16  ;;  %v8281_v12 = vshll.u32 %v8187_v3, 16 }
 0x565   : > { %13702 = vmatprep.subr.msk.bf16.mxu1 %vm1520_vm4, %v17472_v52  ;;  %v8246_v61 = vor.u32 %v8245_v28, %v8241_v51  ;;  %v8287_v28 = vshll.u32 %v17207_v45, 16  ;;  %v13856_v51 = vld [vmem:[#allocation2 + $0x60] sm:$0xff]  }
 0x566   : > { %v8259_v27 = vrot.slane %v8257_v22, 5  ;;  %v8251_v26 = vrot.slane %v8249_v40, 5  ;;  %v8291_v22 = vshrl.u32 %v17207_v45, 16  ;;  %v8297_v40 = vshll.u32 %v17211_v19, 16 }
 0x567   : > { %v8247_v23 = vrot.slane %v8246_v61, 4  ;;  %v8305_v61 = vshll.u32 %v8190_v42, 16  ;;  %v17504_v5 = vrot.slane %v8287_v28, 5  ;;  %v8311_v42 = vshll.u32 %v17209_v50, 16  ;;  %v8199_v28 = vld [vmem:[#allocation2 + $0x54] sm:$0xf] }
 0x568   : > { %v8260_v43 = vor.u32 %v8259_v27, %v8256_v20  ;;  %v8293_v45 = vrot.slane %v8291_v22, 4  ;;  %v8329_v50 = vshll.u32 %v8193_v1, 16 }
 0x569   : > { %v8252_v20 = vsel %vm14466_vm13, %v8247_v23, %v8251_v26  ;;  %v13857_v23 = vld [vmem:[#allocation2 + $0x6c] sm:$0xff]   ;;  %v8326_v26 = vshrl.u32 %v8193_v1, 16  ;;  %v17522_v4 = vrot.slane %v8311_v42, 5  ;;  %v8321_v42 = vshll.u32 %v17219_v56, 16 }
 0x56a   : > { %v8261_v55 = vrot.slane %v8260_v43, 4  ;;  %v17508_v0 = vcombine.low %v8242_v63, %v8252_v20  ;;  %v8339_v63 = vshrl.u32 %v17213_v7, 16  ;;  %v8387_v7 = vshrl.u32 %v17240_v39, 16 }
 0x56b   : > { %12979 = vmatmul.mubr.msk.bf16.gmra.mrb[4].mxu1 %vm1471_vm12, %v13852_v49  ;;  %v8278_v49 = vshrl.u32 %v8187_v3, 16  ;;  %v8283_v3 = vrot.slane %v8281_v12, 5  ;;  %v8196_v12 = vld [vmem:[#allocation2 + $0x48] sm:$0xf]  ;;  %v8328_v1 = vrot.slane %v8326_v26, 4 }
 0x56c   : > { %12982 = vmatprep.mubr.msk.bf16.mxu1 %vm1471_vm12, %v13853_v21  ;;  %v13855_v21 = vld [vmem:[#allocation2 + $0x54] sm:$0xff]   ;;  %v8266_v43 = vsel %vm14466_vm13, %v8261_v55, %v17488_v58  ;;  %v8294_v58 = vor.u32 %v8293_v45, %v17504_v5  ;;  %v8353_v20 = vshll.u32 %v8196_v12, 16  ;;  %v8363_v55 = vshrl.u32 %v17226_v54, 16 }
 0x56d   : > { %v8280_v27 = vrot.slane %v8278_v49, 4 }
 0x56e   : > { %v8365_v25 = vrot.slane %v8363_v55, 4 }
 0x56f   : > { %v8284_v49 = vor.u32 %v8283_v3, %v8280_v27  ;;  %v8359_v27 = vshll.u32 %v17226_v54, 16  ;;  %v8377_v3 = vshll.u32 %v8199_v28, 16  ;;  %v13859_v54 = vld [vmem:[#allocation2 + $0x84] sm:$0xff]  }
 0x571   : > { %v17534_v37 = vrot.slane %v8359_v27, 5  ;;  %v8379_v26 = vrot.slane %v8377_v3, 5  ;;  %v8345_v27 = vshll.u32 %v17229_v36, 16 }
 0x573   : > { %12983 = vmatmul.mubr.msk.bf16.gmra.mrb[8].mxu1 %vm1471_vm12, %v13854_v33  ;;  %v8271_v33 = vrot.slane %v8270_v30, 4  ;;  %v17515_v30 = vrot.slane %v8297_v40, 5  ;;  %v8383_v40 = vshll.u32 %v17240_v39, 16 }
 0x574   : > { %12986 = vmatprep.mubr.msk.bf16.mxu1 %vm1471_vm12, %v13855_v21  ;;  %v8307_v21 = vrot.slane %v8305_v61, 5  ;;  %v8350_v61 = vshrl.u32 %v8196_v12, 16  ;;  %v13858_v12 = vld [vmem:[#allocation2 + $0x78] sm:$0xff]  }
 0x575   : > { %v8276_v19 = vsel %vm14466_vm13, %v8271_v33, %v8275_v13  ;;  %v8317_v13 = vrot.slane %v8315_v53, 4  ;;  %v8374_v33 = vshrl.u32 %v8199_v28, 16  ;;  %v8285_v53 = vrot.slane %v8284_v49, 4 }
 0x576   : > { %v8308_v22 = vor.u32 %v8307_v21, %v8304_v47  ;;  %v8341_v47 = vrot.slane %v8339_v63, 4  ;;  %v17530_v45 = vcombine.low %v8266_v43, %v8276_v19  ;;  %v8352_v18 = vrot.slane %v8350_v61, 4  ;;  %v8202_v63 = vld [vmem:[#allocation2 + $0x60] sm:$0xf] }
 0x577   : > { %v8318_v21 = vor.u32 %v8317_v13, %v17522_v4  ;;  %v8355_v28 = vrot.slane %v8353_v20, 5  ;;  %v8376_v39 = vrot.slane %v8374_v33, 4  ;;  %v8295_v43 = vrot.slane %v8294_v58, 4 }
 0x578   : > { %v8309_v19 = vrot.slane %v8308_v22, 4  ;;  %v8290_v13 = vsel %vm14466_vm13, %v8285_v53, %v17504_v5  ;;  %v8323_v20 = vrot.slane %v8321_v42, 5  ;;  %v8366_v33 = vor.u32 %v8365_v25, %v17534_v37  ;;  %v8205_v42 = vld [vmem:[#allocation2 + $0x6c] sm:$0xf] }
 0x579   : > { %v8319_v61 = vrot.slane %v8318_v21, 4  ;;  %v8356_v55 = vor.u32 %v8355_v28, %v8352_v18  ;;  %v8398_v3 = vshrl.u32 %v8202_v63, 16  ;;  %v8380_v58 = vor.u32 %v8379_v26, %v8376_v39  ;;  %v13861_v39 = vld [vmem:[#allocation2 + $0x9c] sm:$0xff]  }
 0x57a   : > { %v8300_v5 = vsel %vm14466_vm13, %v8295_v43, %v17515_v30  ;;  %v8314_v36 = vsel %vm14466_vm13, %v8309_v19, %v17522_v4  ;;  %v8369_v53 = vshll.u32 %v17236_v16, 16  ;;  %v8393_v21 = vshll.u32 %v17260_v62, 16 }
 0x57b   : > { %12987 = vmatmul.mubr.msk.bf16.gmra.mrb[12].mxu1 %vm1471_vm12, %v13856_v51  ;;  %v8331_v51 = vrot.slane %v8329_v50, 5  ;;  %v17536_v50 = vrot.slane %v8383_v40, 5  ;;  %v8401_v40 = vshll.u32 %v8202_v63, 16  ;;  %v8324_v25 = vsel %vm14466_vm13, %v8319_v61, %v8323_v20 }
 0x57c   : > { %12990 = vmatprep.mubr.msk.bf16.mxu1 %vm1471_vm12, %v13857_v23  ;;  %v17528_v23 = vrot.slane %v8335_v59, 5  ;;  %v8389_v59 = vrot.slane %v8387_v7, 4  ;;  %v8407_v7 = vshll.u32 %v17251_v48, 16  ;;  %v8400_v28 = vrot.slane %v8398_v3, 4  ;;  %v8208_v3 = vld [vmem:[#allocation2 + $0x78] sm:$0xf] }
 0x57d   : > { %v8332_v49 = vor.u32 %v8331_v51, %v8328_v1  ;;  %v8411_v1 = vshrl.u32 %v17251_v48, 16  ;;  %v13860_v48 = vld [vmem:[#allocation2 + $0x90] sm:$0xff]   ;;  %v8403_v30 = vrot.slane %v8401_v40, 5  ;;  %v8381_v26 = vrot.slane %v8380_v58, 4 }
 0x57e   : > { %v8342_v56 = vor.u32 %v8341_v47, %v17528_v23  ;;  %v8390_v22 = vor.u32 %v8389_v59, %v17536_v50  ;;  %v8347_v47 = vrot.slane %v8345_v27, 5  ;;  %v17559_v4 = vrot.slane %v8407_v7, 5  ;;  %v13862_v7 = vld [vmem:[#allocation2 + $0xa8] sm:$0xff]  }
 0x57f   : > { %v8333_v18 = vrot.slane %v8332_v49, 4  ;;  %v8413_v63 = vrot.slane %v8411_v1, 4  ;;  %v8422_v43 = vshrl.u32 %v8205_v42, 16  ;;  %v8425_v19 = vshll.u32 %v8205_v42, 16 }
 0x580   : > { %v8343_v51 = vrot.slane %v8342_v56, 4  ;;  %v8391_v59 = vrot.slane %v8390_v22, 4  ;;  %v8371_v49 = vrot.slane %v8369_v53, 5  ;;  %v8395_v56 = vrot.slane %v8393_v21, 5  ;;  %v17584_v22 = vld [vmem:[#allocation2 + $0x1c] sm:$0xf] }
 0x581   : > { %v8338_v16 = vsel %vm14466_vm13, %v8333_v18, %v17528_v23  ;;  %v8431_v61 = vshll.u32 %v17271_v14, 16  ;;  %v8435_v20 = vshrl.u32 %v17271_v14, 16  ;;  %v17570_v27 = vcombine.low %v8290_v13, %v8300_v5  ;;  %19127 = vst [vmem:[#allocation21_spill] sm:$0xff] %v17584_v22  ;;  %v17594_v18 = vld [vmem:[#allocation2 + $0x28] sm:$0xf] }
 0x582   : > { %v8348_v62 = vsel %vm14466_vm13, %v8343_v51, %v8347_v47  ;;  %v8404_v23 = vor.u32 %v8403_v30, %v8400_v28  ;;  %v8386_v58 = vsel %vm14466_vm13, %v8381_v26, %v17536_v50  ;;  %v8396_v14 = vsel %vm14466_vm13, %v8391_v59, %v8395_v56  ;;  %19128 = vst [vmem:[#allocation48_spill] sm:$0xff] %v17594_v18  ;;  %v10461_v51 = vld [vmem:[#allocation2 + $0x18] sm:$0xe]  ;;  %v17608_v28 = vld [vmem:[#allocation2 + $0x20] sm:$0x1] }
 0x583   : > { %12991 = vmatmul.mubr.msk.bf16.gmra.mrb[16].mxu1 %vm1471_vm12, %v13858_v12  ;;  %v8357_v12 = vrot.slane %v8356_v55, 4  ;;  %v8414_v13 = vor.u32 %v8413_v63, %v17559_v4  ;;  %v17588_v1 = vcombine.low %v8338_v16, %v8348_v62  ;;  %v17592_v5 = vrot.slane %v8425_v19, 5  ;;  %v13863_v50 = vld [vmem:[#allocation2 + $0xb4] sm:$0xff]   ;;  %19129 = vst [vmem:[#allocation49_spill] sm:$0xff] %v17608_v28  ;;  %v17610_v30 = vld [vmem:[#allocation2 + $0x2c] sm:$0x1] }
 0x584   : > { %12994 = vmatprep.mubr.msk.bf16.mxu1 %vm1471_vm12, %v13859_v54  ;;  %v8367_v54 = vrot.slane %v8366_v33, 4  ;;  %v8417_v33 = vshll.u32 %v17262_v11, 16  ;;  %v17590_v11 = vrot.slane %v8422_v43, 4  ;;  %v17596_v47 = vrot.slane %v8431_v61, 5  ;;  %19130 = vst [vmem:[#allocation50_spill] sm:$0xff] %v17610_v30 }
 0x585   : > { %v8362_v55 = vsel %vm14466_vm13, %v8357_v12, %v17534_v37  ;;  %v17586_v37 = vcombine.low %v8314_v36, %v8324_v25  ;;  %v17598_v53 = vrot.slane %v8435_v20, 4  ;;  %v8446_v21 = vshrl.u32 %v8208_v3, 16  ;;  %v17616_v63 = vld [vmem:[#allocation2 + $0x34] sm:$0xf]  ;;  %v17621_v43 = vld [vmem:[#allocation2 + $0x84] sm:$0xf] }
 0x586   : > { %v8372_v40 = vsel %vm14466_vm13, %v8367_v54, %v8371_v49  ;;  %v8449_v42 = vshll.u32 %v8208_v3, 16  ;;  %v17602_v36 = vcombine.low %v8386_v58, %v8396_v14  ;;  %v17604_v25 = vrot.slane %v8404_v23, 4  ;;  %19131 = vst [vmem:[#allocation51_spill] sm:$0xff] %v17616_v63  ;;  %v10463_v61 = vld [vmem:[#allocation2 + $0x30] sm:$0xe] }
 0x587   : > { %v17600_v12 = vcombine.low %v8362_v55, %v8372_v40  ;;  %v17606_v54 = vrot.slane %v8417_v33, 5  ;;  %v8455_v26 = vshll.u32 %v17286_v60, 16  ;;  %v8459_v59 = vshrl.u32 %v17286_v60, 16  ;;  %v17633_v33 = vld [vmem:[#allocation2 + $0x38] sm:$0x1] }
 0x588   : > { %v10527_v16 = vrot.slane %v17584_v22, 5  ;;  %v12138_v19 = vrot.slane %v10461_v51, 9  ;;  %v10534_v56 = vrot.slane %v17594_v18, 5  ;;  %v17629_v55 = vrot.slane %v8446_v21, 4  ;;  %v17635_v3 = vld [vmem:[#allocation2 + $0x40] sm:$0xf] }
 0x589   : > { %v17631_v23 = vrot.slane %v8449_v42, 5  ;;  %19132 = vst [vmem:[#allocation52_spill] sm:$0xff] %v17635_v3  ;;  %v10530_v58 = vrot.slane %v17608_v28, 5  ;;  %v17639_v51 = vrot.slane %v8455_v26, 5  ;;  %v12140_v21 = vrot.slane %v10463_v61, 9 }
 0x58a   : > { %v10529_v40 = vrot.slane %v10527_v16, 4  ;;  %v10536_v14 = vrot.slane %v10534_v56, 4  ;;  %v10541_v42 = vrot.slane %v17616_v63, 5  ;;  %v17646_v20 = vld [vmem:[#allocation2 + $0x4c] sm:$0xf]  ;;  %v17650_v60 = vsel %vm14940_vm1, %v12138_v19, %v10527_v16 }
 0x58b   : > { %12995 = vmatmul.mubr.msk.bf16.gmra.mrb[20].mxu1 %vm1471_vm12, %v13860_v48  ;;  %v10462_v48 = vld [vmem:[#allocation2 + $0x24] sm:$0xe]  ;;  %19134 = vst [vmem:[#allocation54_spill] sm:$0xff] %v17646_v20  ;;  %19135 = vst [vmem:[#allocation55_spill] sm:$0xff] %v17650_v60  ;;  %v10465_v61 = vld [vmem:[#allocation2 + $0x48] sm:$0xe] }
 0x58c   : > { %12998 = vmatprep.mubr.msk.bf16.mxu1 %vm1471_vm12, %v13861_v39  ;;  %v17612_v39 = vrot.slane %v8414_v13, 4  ;;  %v12139_v49 = vrot.slane %v10462_v48, 9  ;;  %v10537_v13 = vrot.slane %v17610_v30, 5  ;;  %v17643_v48 = vld [vmem:[#allocation2 + $0x44] sm:$0x1]  ;;  %v17654_v62 = vsel %vm14940_vm1, %v10529_v40, %v10530_v58 }
 0x58d   : > { %19133 = vst [vmem:[#allocation53_spill] sm:$0xff] %v17643_v48  ;;  %19136 = vst [vmem:[#allocation56_spill] sm:$0xff] %v17654_v62  ;;  %v10466_v30 = vld [vmem:[#allocation2 + $0x54] sm:$0xe]  ;;  %v17665_v63 = vld [vmem:[#allocation2 + $0x50] sm:$0x1] }
 0x58e   : > { %v17658_v26 = vsel %vm14940_vm1, %v12139_v49, %v10534_v56  ;;  %19139 = vst [vmem:[#allocation59_spill] sm:$0xff] %v17665_v63  ;;  %v17667_v16 = vld [vmem:[#allocation2 + $0x58] sm:$0xf]  ;;  %v13864_v56 = vld [vmem:[#allocation2 + $0xc0] sm:$0xff]   ;;  %v17673_v58 = vld [vmem:[#allocation2 + $0x5c] sm:$0x1] }
 0x58f   : > { %19137 = vst [vmem:[#allocation57_spill] sm:$0xff] %v17658_v26  ;;  %19140 = vst [vmem:[#allocation60_spill] sm:$0xff] %v17667_v16  ;;  %v10544_v28 = vrot.slane %v17633_v33, 5  ;;  %v10548_v18 = vrot.slane %v17635_v3, 5  ;;  %v17681_v22 = vld [vmem:[#allocation2 + $0x64] sm:$0xf] }
 0x590   : > { %19141 = vst [vmem:[#allocation61_spill] sm:$0xff] %v17673_v58  ;;  %19143 = vst [vmem:[#allocation63_spill] sm:$0xff] %v17681_v22  ;;  %v10551_v19 = vrot.slane %v17643_v48, 5  ;;  %v12142_v62 = vrot.slane %v10465_v61, 9  ;;  %v10555_v40 = vrot.slane %v17646_v20, 5  ;;  %v10562_v26 = vrot.slane %v17667_v16, 5 }
 0x591   : > { %v10467_v60 = vld [vmem:[#allocation2 + $0x60] sm:$0xe]  ;;  %v17694_v48 = vld [vmem:[#allocation2 + $0x70] sm:$0xf]  ;;  %v17708_v16 = vld [vmem:[#allocation2 + $0x74] sm:$0x1] }
 0x592   : > { %19145 = vst [vmem:[#allocation65_spill] sm:$0xff] %v17694_v48  ;;  %19149 = vst [vmem:[#allocation69_spill] sm:$0xff] %v17708_v16  ;;  %v17728_v20 = vld [vmem:[#allocation2 + $0x80] sm:$0x1] }
 0x593   : > { %12999 = vmatmul.mubr.msk.bf16.gmra.mrb[24].mxu1 %vm1471_vm12, %v13862_v7  ;;  %v10464_v7 = vld [vmem:[#allocation2 + $0x3c] sm:$0xe]  ;;  %19154 = vst [vmem:[#allocation74_spill] sm:$0xff] %v17728_v20 }
 0x594   : > { %13002 = vmatprep.mubr.msk.bf16.mxu1 %vm1471_vm12, %v13863_v50  ;;  %v17641_v50 = vrot.slane %v8459_v59, 4  ;;  %v17662_v59 = vsel %vm14940_vm1, %v10536_v14, %v10537_v13  ;;  %v12141_v49 = vrot.slane %v10464_v7, 9  ;;  %v17677_v14 = vsel %vm14940_vm1, %v12140_v21, %v10541_v42 }
 0x595   : > { %19138 = vst [vmem:[#allocation58_spill] sm:$0xff] %v17662_v59  ;;  %19142 = vst [vmem:[#allocation62_spill] sm:$0xff] %v17677_v14  ;;  %v10543_v13 = vrot.slane %v10541_v42, 4  ;;  %v12143_v7 = vrot.slane %v10466_v30, 9  ;;  %v10550_v21 = vrot.slane %v10548_v18, 4  ;;  %v10558_v42 = vrot.slane %v17665_v63, 5 }
 0x596   : > { %v17700_v61 = vsel %vm14940_vm1, %v12141_v49, %v10548_v18  ;;  %v17706_v63 = vld [vmem:[#allocation2 + $0x68] sm:$0x1]  ;;  %v10564_v18 = vrot.slane %v10562_v26, 4  ;;  %v10565_v49 = vrot.slane %v17673_v58, 5  ;;  %v12144_v14 = vrot.slane %v10467_v60, 9 }
 0x597   : > { %v17688_v59 = vsel %vm14940_vm1, %v10543_v13, %v10544_v28  ;;  %19146 = vst [vmem:[#allocation66_spill] sm:$0xff] %v17700_v61  ;;  %v17704_v28 = vsel %vm14940_vm1, %v12142_v62, %v10555_v40  ;;  %v10468_v13 = vld [vmem:[#allocation2 + $0x6c] sm:$0xe]  ;;  %19148 = vst [vmem:[#allocation68_spill] sm:$0xff] %v17706_v63  ;;  %v17716_v30 = vsel %vm14940_vm1, %v12143_v7, %v10562_v26  ;;  %v17730_v7 = vld [vmem:[#allocation2 + $0x88] sm:$0xf] }
 0x598   : > { %19144 = vst [vmem:[#allocation64_spill] sm:$0xff] %v17688_v59  ;;  %19147 = vst [vmem:[#allocation67_spill] sm:$0xff] %v17704_v28  ;;  %v17719_v59 = vld [vmem:[#allocation2 + $0x7c] sm:$0xf]  ;;  %v17736_v58 = vsel %vm14940_vm1, %v10564_v18, %v10565_v49  ;;  %v12145_v62 = vrot.slane %v10468_v13, 9  ;;  %v9182_v60 = vsel %vm1520_vm4, %v17472_v52, 0 }
 0x599   : > { %19151 = vst [vmem:[#allocation71_spill] sm:$0xff] %v17716_v30  ;;  %19152 = vst [vmem:[#allocation72_spill] sm:$0xff] %v17719_v59  ;;  %v10572_v3 = vrot.slane %v17706_v63, 5  ;;  %v17746_v26 = vld [vmem:[#allocation2 + $0x94] sm:$0xf]  ;;  %v10579_v18 = vrot.slane %v17708_v16, 5 }
 0x59a   : > { %19155 = vst [vmem:[#allocation75_spill] sm:$0xff] %v17736_v58  ;;  %19157 = vst [vmem:[#allocation77_spill] sm:$0xff] %v17746_v26  ;;  %v10583_v49 = vrot.slane %v17719_v59, 5  ;;  %v17750_v28 = vld [vmem:[#allocation9 + $0xc] sm:$0x3]  ;;  %v10590_v30 = vrot.slane %v17730_v7, 5 }
 0x59b   : > { %13003 = vmatmul.mubr.msk.bf16.gmra.mrb[28].mxu1 %vm1471_vm12, %v13864_v56  ;;  %v10557_v56 = vrot.slane %v10555_v40, 4  ;;  %v10471_v63 = vld [vmem:[#allocation2 + $0x90] sm:$0xe]  ;;  %v17766_v16 = vld [vmem:[#allocation2 + $0xa0] sm:$0xf]  ;;  %v10586_v59 = vrot.slane %v17728_v20, 5 }
 0x59c   : > { %13008 = vmatprep.mubr.msk.bf16.mxu1 %vm1471_vm12, %v17508_v0  ;;  %v17712_v0 = vsel %vm14940_vm1, %v10550_v21, %v10551_v19  ;;  %v10569_v19 = vrot.slane %v17681_v22, 5  ;;  %v10469_v21 = vld [vmem:[#allocation2 + $0x78] sm:$0xe]  ;;  %19161 = vst [vmem:[#allocation81_spill] sm:$0xff] %v17766_v16 }
 0x59d   : > { %19150 = vst [vmem:[#allocation70_spill] sm:$0xff] %v17712_v0  ;;  %v17725_v40 = vsel %vm14940_vm1, %v10557_v56, %v10558_v42  ;;  %v10576_v0 = vrot.slane %v17694_v48, 5  ;;  %v10470_v42 = vld [vmem:[#allocation2 + $0x84] sm:$0xe]  ;;  %v17741_v56 = vld [vmem:[#allocation2 + $0x8c] sm:$0x1] }
 0x59e   : > { %19153 = vst [vmem:[#allocation73_spill] sm:$0xff] %v17725_v40  ;;  %19156 = vst [vmem:[#allocation76_spill] sm:$0xff] %v17741_v56  ;;  %v10571_v22 = vrot.slane %v10569_v19, 4  ;;  %v12146_v13 = vrot.slane %v10469_v21, 9  ;;  %v17752_v48 = vld [vmem:[#allocation2 + $0x98] sm:$0x1]  ;;  %v17756_v52 = vsel %vm14940_vm1, %v12144_v14, %v10569_v19 }
 0x59f   : > { %v10578_v40 = vrot.slane %v10576_v0, 4  ;;  %19158 = vst [vmem:[#allocation78_spill] sm:$0xff] %v17752_v48  ;;  %19159 = vst [vmem:[#allocation79_spill] sm:$0xff] %v17756_v52  ;;  %v12147_v58 = vrot.slane %v10470_v42, 9  ;;  %v17772_v14 = vsel %vm14940_vm1, %v12145_v62, %v10576_v0  ;;  %v10585_v42 = vrot.slane %v10583_v49, 4  ;;  %v19248_v17 = vld [vmem:[#allocation66_spill] sm:$0xff] }
 0x5a0   : > { %v17760_v61 = vsel %vm14940_vm1, %v10571_v22, %v10572_v3  ;;  %19162 = vst [vmem:[#allocation82_spill] sm:$0xff] %v17772_v14  ;;  %v10472_v3 = vld [vmem:[#allocation2 + $0x9c] sm:$0xe]  ;;  %v10592_v21 = vrot.slane %v10590_v30, 4  ;;  %v17787_v0 = vld [vmem:[#allocation2 + $0xac] sm:$0xf]  ;;  %v17791_v62 = vsel %vm14940_vm1, %v12146_v13, %v10583_v49 }
 0x5a1   : > { %19160 = vst [vmem:[#allocation80_spill] sm:$0xff] %v17760_v61  ;;  %v17776_v22 = vsel %vm14940_vm1, %v10578_v40, %v10579_v18  ;;  %19164 = vst [vmem:[#allocation84_spill] sm:$0xff] %v17791_v62  ;;  %v12148_v40 = vrot.slane %v10471_v63, 9  ;;  %v17797_v18 = vsel %vm14940_vm1, %v10585_v42, %v10586_v59  ;;  %v17801_v19 = vsel %vm14940_vm1, %v12147_v58, %v10590_v30  ;;  %v10473_v61 = vld [vmem:[#allocation2 + $0xa8] sm:$0xe] }
 0x5a2   : > { %19163 = vst [vmem:[#allocation83_spill] sm:$0xff] %v17776_v22  ;;  %19165 = vst [vmem:[#allocation85_spill] sm:$0xff] %v17797_v18  ;;  %v12149_v22 = vrot.slane %v10472_v3, 9  ;;  %v10604_v14 = vrot.slane %v17766_v16, 5  ;;  %v10474_v52 = vld [vmem:[#allocation2 + $0xb4] sm:$0xe] }
 0x5a3   : > { %13009 = vmatmul.mubr.msk.bf16.vlgmr.msra.gmra.mrb[0].mxu1 %vm1471_vm12, %v17530_v45  ;;  %v17780_v45 = vld [vmem:[#allocation2 + $0xa4] sm:$0x1]  ;;  %v17804_v13 = vld [vmem:[#allocation2 + $0xb0] sm:$0x1]  ;;  %v17806_v49 = vld [vmem:[#allocation2 + $0xb8] sm:$0xf] }
 0x5a4   : > { %13041 = vmatpush3.bf16.msra.mxu1 %v9182_v60  ;;  %13012 = vmatprep.mubr.msk.bf16.mxu1 %vm1471_vm12, %v17570_v27  ;;  %v10593_v27 = vrot.slane %v17741_v56, 5  ;;  %v10597_v60 = vrot.slane %v17746_v26, 5  ;;  %v10600_v58 = vrot.slane %v17752_v48, 5  ;;  %v9776_v30 = vld [vmem:[#allocation2 + $0xbc] sm:$0x1]  ;;  %v10606_v26 = vrot.slane %v10604_v14, 4 }
 0x5a5   : > { %13703 = vmatprep.subr.msk.bf16.mxu1 %vm1520_vm4, %v17750_v28  ;;  %v17815_v3 = vld [vmem:[#allocation2 + $0xc4] sm:$0xf]  ;;  %v10607_v63 = vrot.slane %v17780_v45, 5  ;;  %v10611_v18 = vrot.slane %v17787_v0, 5  ;;  %v12151_v62 = vrot.slane %v10474_v52, 9  ;;  %v17833_v16 = vsel %vm14940_vm1, %v12149_v22, %v10604_v14 }
 0x5a6   : > { %v17812_v59 = vsel %vm14940_vm1, %v10592_v21, %v10593_v27  ;;  %v10599_v42 = vrot.slane %v10597_v60, 4  ;;  %v17821_v56 = vsel %vm14940_vm1, %v12148_v40, %v10597_v60  ;;  %v12150_v27 = vrot.slane %v10473_v61, 9  ;;  %v10475_v48 = vld [vmem:[#allocation2 + $0xc0] sm:$0xe]  ;;  %v9779_v52 = vld [vmem:[#allocation2 + $0xc8] sm:$0x1] }
 0x5a7   : > { %v17837_v40 = vsel %vm14940_vm1, %v10606_v26, %v10607_v63  ;;  %v10618_v60 = vrot.slane %v17806_v49, 5  ;;  %v8479_v61 = vshll.u32 %v17312_v31, 16  ;;  %v10614_v20 = vrot.slane %v17804_v13, 5 }
 0x5a8   : > { %v17826_v21 = vsel %vm14940_vm1, %v10599_v42, %v10600_v58  ;;  %19167 = vst [vmem:[#allocation87_spill] sm:$0xff] %v17837_v40  ;;  %v10613_v58 = vrot.slane %v10611_v18, 4  ;;  %v10621_v26 = vrot.slane %v9776_v30, 5  ;;  %v12152_v22 = vrot.slane %v10475_v48, 9 }
 0x5a9   : > { %19166 = vst [vmem:[#allocation86_spill] sm:$0xff] %v17826_v21  ;;  %v10620_v14 = vrot.slane %v10618_v60, 4  ;;  %v10625_v63 = vrot.slane %v17815_v3, 5  ;;  %v8483_v21 = vshrl.u32 %v17312_v31, 16  ;;  %v17860_v40 = vsel %vm14940_vm1, %v12151_v62, %v10618_v60 }
 0x5aa   : > { %v17856_v42 = vsel %vm14940_vm1, %v10613_v58, %v10614_v20  ;;  %v10628_v30 = vrot.slane %v9779_v52, 5  ;;  %v8452_v20 = vor.u32 %v17631_v23, %v17629_v55  ;;  %v8462_v62 = vor.u32 %v17641_v50, %v17639_v51 }
 0x5ab   : > { %13013 = vmatmul.mubr.msk.bf16.gmra.mrb[4].mxu1 %vm1471_vm12, %v17586_v37  ;;  %v17852_v37 = vsel %vm14940_vm1, %v12150_v27, %v10611_v18  ;;  %v17866_v48 = vsel %vm14940_vm1, %v10620_v14, %v10621_v26  ;;  %v10627_v31 = vrot.slane %v10625_v63, 4  ;;  %v8410_v18 = vsel %vm14466_vm13, %v17604_v25, %v17559_v4  ;;  %v8214_v14 = vld [vmem:[#allocation2 + $0x90] sm:$0xf] }
 0x5ac   : > { %13016 = vmatprep.mubr.msk.bf16.mxu1 %vm1471_vm12, %v17588_v1  ;;  %v8420_v60 = vsel %vm14466_vm13, %v17612_v39, %v17606_v54  ;;  %v19168_v52 = vshll.u32 %v17299_v34, 16  ;;  %v17886_v4 = vsel %vm14940_vm1, %v12152_v22, %v10625_v63  ;;  %v19170_v55 = vor.u32 %v17592_v5, %v17590_v11  ;;  %v8217_v39 = vld [vmem:[#allocation2 + $0x9c] sm:$0xf] }
 0x5ad   : > { %v17890_v25 = vsel %vm14940_vm1, %v10627_v31, %v10628_v30  ;;  %v19171_v50 = vor.u32 %v17598_v53, %v17596_v47  ;;  %v8465_v34 = vshll.u32 %v17308_v10, 16  ;;  %v19172_v22 = vshrl.u32 %v17621_v43, 16 }
 0x5ae   : > { %v8443_v58 = vrot.slane %v19168_v52, 5  ;;  %19169 = vst [vmem:[#allocation88_spill] sm:$0xff] %v17890_v25  ;;  %v8429_v23 = vrot.slane %v19170_v55, 4  ;;  %v19173_v31 = vshll.u32 %v17621_v43, 16  ;;  %v17905_v52 = vrot.slane %v8479_v61, 5 }
 0x5af   : > { %v8439_v54 = vrot.slane %v19171_v50, 4  ;;  %v8472_v63 = vrot.slane %v19172_v22, 4  ;;  %v8485_v11 = vrot.slane %v8483_v21, 4  ;;  %v8453_v5 = vrot.slane %v8452_v20, 4 }
 0x5b0   : > { %v8475_v30 = vrot.slane %v19173_v31, 5  ;;  %v8463_v53 = vrot.slane %v8462_v62, 4  ;;  %v8494_v55 = vshrl.u32 %v8214_v14, 16  ;;  %v8497_v10 = vshll.u32 %v8214_v14, 16 }
 0x5b1   : > { %v8503_v50 = vshll.u32 %v17323_v24, 16  ;;  %v8507_v22 = vshrl.u32 %v17323_v24, 16  ;;  %v8518_v26 = vshrl.u32 %v8217_v39, 16  ;;  %v8521_v43 = vshll.u32 %v8217_v39, 16 }
 0x5b2   : > { %v8434_v21 = vsel %vm14466_vm13, %v8429_v23, %v17596_v47  ;;  %v8467_v61 = vrot.slane %v8465_v34, 5  ;;  %v8531_v20 = vshrl.u32 %v17343_v35, 16  ;;  %v8444_v62 = vsel %vm14466_vm13, %v8439_v54, %v8443_v58 }
 0x5b3   : > { %13017 = vmatmul.mubr.msk.bf16.gmra.mrb[8].mxu1 %vm1471_vm12, %v17600_v12  ;;  %v8527_v12 = vshll.u32 %v17343_v35, 16  ;;  %v8476_v14 = vor.u32 %v8475_v30, %v8472_v63  ;;  %v8489_v31 = vshll.u32 %v17332_v32, 16  ;;  %v8458_v24 = vsel %vm14466_vm13, %v8453_v5, %v17639_v51  ;;  %v8220_v30 = vld [vmem:[#allocation2 + $0xa8] sm:$0xf] }
 0x5b4   : > { %13020 = vmatprep.mubr.msk.bf16.mxu1 %vm1471_vm12, %v17602_v36  ;;  %v8486_v36 = vor.u32 %v8485_v11, %v17905_v52  ;;  %v8468_v47 = vsel %vm14466_vm13, %v8463_v53, %v8467_v61  ;;  %v8496_v23 = vrot.slane %v8494_v55, 4  ;;  %v8499_v34 = vrot.slane %v8497_v10, 5 }
 0x5b5   : > { %v17927_v39 = vrot.slane %v8503_v50, 5  ;;  %v8509_v35 = vrot.slane %v8507_v22, 4  ;;  %v8520_v27 = vrot.slane %v8518_v26, 4  ;;  %v8523_v1 = vrot.slane %v8521_v43, 5  ;;  %v8223_v26 = vld [vmem:[#allocation2 + $0xb4] sm:$0xf] }
 0x5b6   : > { %v12001_v58 = vcombine.low %v8410_v18, %v8420_v60  ;;  %v8529_v54 = vrot.slane %v8527_v12, 5  ;;  %v8533_v63 = vrot.slane %v8531_v20, 4  ;;  %v12002_v11 = vcombine.low %v8434_v21, %v8444_v62 }
 0x5b7   : > { %v8477_v32 = vrot.slane %v8476_v14, 4  ;;  %v8487_v25 = vrot.slane %v8486_v36, 4  ;;  %v12003_v51 = vcombine.low %v8458_v24, %v8468_v47  ;;  %v8491_v5 = vrot.slane %v8489_v31, 5 }
 0x5b8   : > { %v8500_v53 = vor.u32 %v8499_v34, %v8496_v23  ;;  %v8510_v55 = vor.u32 %v8509_v35, %v17927_v39  ;;  %v8524_v10 = vor.u32 %v8523_v1, %v8520_v27  ;;  %v8542_v50 = vshrl.u32 %v8220_v30, 16 }
 0x5b9   : > { %v8534_v22 = vor.u32 %v8533_v63, %v8529_v54  ;;  %v8545_v18 = vshll.u32 %v8220_v30, 16  ;;  %v8551_v60 = vshll.u32 %v17354_v57, 16  ;;  %v8555_v43 = vshrl.u32 %v17354_v57, 16 }
 0x5ba   : > { %v8482_v21 = vsel %vm14466_vm13, %v8477_v32, %v17905_v52  ;;  %v8492_v61 = vsel %vm14466_vm13, %v8487_v25, %v8491_v5  ;;  %v8513_v12 = vshll.u32 %v17334_v46, 16  ;;  %v8537_v20 = vshll.u32 %v17367_v44, 16 }
 0x5bb   : > { %13021 = vmatmul.mubr.msk.bf16.gmra.mrb[12].mxu1 %vm1471_vm12, %v12001_v58  ;;  %v8566_v1 = vshrl.u32 %v8223_v26, 16  ;;  %v8569_v27 = vshll.u32 %v8223_v26, 16  ;;  %v8575_v62 = vshll.u32 %v17384_v41, 16  ;;  %v8579_v14 = vshrl.u32 %v17384_v41, 16 }
 0x5bc   : > { %13024 = vmatprep.mubr.msk.bf16.mxu1 %vm1471_vm12, %v12002_v11  ;;  %v8501_v36 = vrot.slane %v8500_v53, 4  ;;  %v8511_v31 = vrot.slane %v8510_v55, 4  ;;  %v8525_v57 = vrot.slane %v8524_v10, 4  ;;  %v8544_v24 = vrot.slane %v8542_v50, 4  ;;  %v8226_v11 = vld [vmem:[#allocation2 + $0xc0] sm:$0xf] }
 0x5bd   : > { %v8535_v47 = vrot.slane %v8534_v22, 4  ;;  %v8547_v23 = vrot.slane %v8545_v18, 5  ;;  %v8553_v52 = vrot.slane %v8551_v60, 5  ;;  %v8557_v34 = vrot.slane %v8555_v43, 4 }
 0x5be   : > { %v12004_v35 = vcombine.low %v8482_v21, %v8492_v61  ;;  %v8515_v25 = vrot.slane %v8513_v12, 5  ;;  %v8539_v58 = vrot.slane %v8537_v20, 5  ;;  %v8568_v46 = vrot.slane %v8566_v1, 4 }
 0x5bf   : > { %v8571_v44 = vrot.slane %v8569_v27, 5  ;;  %v8577_v63 = vrot.slane %v8575_v62, 5  ;;  %v8581_v30 = vrot.slane %v8579_v14, 4  ;;  %v8506_v41 = vsel %vm14466_vm13, %v8501_v36, %v17927_v39 }
 0x5c0   : > { %v8516_v32 = vsel %vm14466_vm13, %v8511_v31, %v8515_v25  ;;  %v8530_v5 = vsel %vm14466_vm13, %v8525_v57, %v8529_v54  ;;  %v8548_v53 = vor.u32 %v8547_v23, %v8544_v24  ;;  %v8558_v55 = vor.u32 %v8557_v34, %v8553_v52 }
 0x5c1   : > { %v8590_v10 = vshrl.u32 %v8226_v11, 16  ;;  %v8593_v50 = vshll.u32 %v8226_v11, 16  ;;  %v8599_v26 = vshll.u32 %v17395_v29, 16  ;;  %v8603_v22 = vshrl.u32 %v17395_v29, 16 }
 0x5c2   : > { %v8572_v18 = vor.u32 %v8571_v44, %v8568_v46  ;;  %v8582_v60 = vor.u32 %v8581_v30, %v8577_v63  ;;  %v12005_v39 = vcombine.low %v8506_v41, %v8516_v32  ;;  %v8561_v43 = vshll.u32 %v17380_v15, 16 }
 0x5c3   : > { %13025 = vmatmul.mubr.msk.bf16.gmra.mrb[16].mxu1 %vm1471_vm12, %v12003_v51  ;;  %v8540_v51 = vsel %vm14466_vm13, %v8535_v47, %v8539_v58  ;;  %v8549_v61 = vrot.slane %v8548_v53, 4  ;;  %v8559_v12 = vrot.slane %v8558_v55, 4  ;;  %v8585_v54 = vshll.u32 %v17404_v8, 16 }
 0x5c4   : > { %13028 = vmatprep.mubr.msk.bf16.mxu1 %vm1471_vm12, %v12004_v35  ;;  %v12006_v21 = vcombine.low %v8530_v5, %v8540_v51  ;;  %v8592_v20 = vrot.slane %v8590_v10, 4  ;;  %v8595_v1 = vrot.slane %v8593_v50, 5  ;;  %v8601_v27 = vrot.slane %v8599_v26, 5  ;;  %v8908_v10 = vld [vmem:[#allocation2 + $0x18] sm:$0xe] }
 0x5c5   : > { %v8605_v62 = vrot.slane %v8603_v22, 4  ;;  %v8573_v14 = vrot.slane %v8572_v18, 4  ;;  %v8583_v36 = vrot.slane %v8582_v60, 4  ;;  %v8563_v29 = vrot.slane %v8561_v43, 5  ;;  %v19175_v22 = vld [vmem:[#allocation47_spill] sm:$0xff] }
 0x5c6   : > { %v8587_v31 = vrot.slane %v8585_v54, 5  ;;  %v8554_v15 = vsel %vm14466_vm13, %v8549_v61, %v8553_v52  ;;  %v8596_v24 = vor.u32 %v8595_v1, %v8592_v20  ;;  %v8973_v34 = vrot.slane %v17470_v38, 5  ;;  %v8907_v52 = vld [vmem:[#allocation2 + $0xc] sm:$0xe]  ;;  %v10168_v61 = vld [vmem:[#allocation9 + $0xe] sm:$0x3] }
 0x5c7   : > { %v8564_v57 = vsel %vm14466_vm13, %v8559_v12, %v8563_v29  ;;  %v8606_v8 = vor.u32 %v8605_v62, %v8601_v27  ;;  %v8578_v47 = vsel %vm14466_vm13, %v8573_v14, %v8577_v63  ;;  %v8609_v35 = vshll.u32 %v17413_v6, 16  ;;  %v19174_v38 = vld [vmem:[#allocation46_spill] sm:$0xff]  ;;  %v19176_v12 = vld [vmem:[#allocation19_spill] sm:$0xff]  ;;  %v19177_v54 = vld [vmem:[#allocation25_spill] sm:$0xff] }
 0x5c8   : > { %v8588_v23 = vsel %vm14466_vm13, %v8583_v36, %v8587_v31  ;;  %v12007_v25 = vcombine.low %v8554_v15, %v8564_v57  ;;  %v8597_v46 = vrot.slane %v8596_v24, 4  ;;  %v8975_v30 = vrot.slane %v8973_v34, 4  ;;  %v19179_v1 = vld [vmem:[#allocation22_spill] sm:$0xff]  ;;  %v19182_v14 = vld [vmem:[#allocation23_spill] sm:$0xff]  ;;  %v19183_v36 = vld [vmem:[#allocation24_spill] sm:$0xff] }
 0x5c9   : > { %v12008_v58 = vcombine.low %v8578_v47, %v8588_v23  ;;  %v8607_v44 = vrot.slane %v8606_v8, 4  ;;  %v8611_v11 = vrot.slane %v8609_v35, 5  ;;  %v12026_v41 = vrot.slane %v8907_v52, 9  ;;  %v19186_v31 = vld [vmem:[#allocation20_spill] sm:$0xff]  ;;  %v19188_v57 = vld [vmem:[#allocation17_spill] sm:$0xff]  ;;  %v19189_v24 = vld [vmem:[#allocation27_spill] sm:$0xff] }
 0x5ca   : > { %v8976_v63 = vrot.slane %v17486_v9, 5  ;;  %v8602_v32 = vsel %vm14466_vm13, %v8597_v46, %v8601_v27  ;;  %v8980_v5 = vrot.slane %v19174_v38, 5  ;;  %v12027_v9 = vrot.slane %v8908_v10, 9  ;;  %v19180_v27 = vld [vmem:[#allocation26_spill] sm:$0xff]  ;;  %v19191_v47 = vld [vmem:[#allocation28_spill] sm:$0xff]  ;;  %v19192_v23 = vld [vmem:[#allocation29_spill] sm:$0xff] }
 0x5cb   : > { %13029 = vmatmul.mubr.msk.bf16.gmra.mrb[20].mxu1 %vm1471_vm12, %v12005_v39  ;;  %v8612_v6 = vsel %vm14466_vm13, %v8607_v44, %v8611_v11  ;;  %v8974_v55 = vsel %vm14940_vm1, %v12026_v41, %v8973_v34  ;;  %v8983_v18 = vrot.slane %v19175_v22, 5  ;;  %v19178_v20 = vcombine.low %v19176_v12, %v19177_v54  ;;  %v19194_v35 = vld [vmem:[#allocation30_spill] sm:$0xff]  ;;  %v19197_v46 = vld [vmem:[#allocation32_spill] sm:$0xff]  ;;  %v19198_v44 = vld [vmem:[#allocation33_spill] sm:$0xff] }
 0x5cc   : > { %13032 = vmatprep.mubr.msk.bf16.mxu1 %vm1471_vm12, %v12006_v21  ;;  %v8977_v51 = vsel %vm14940_vm1, %v8975_v30, %v8976_v63  ;;  %v12009_v53 = vcombine.low %v8602_v32, %v8612_v6  ;;  %v8982_v26 = vrot.slane %v8980_v5, 4  ;;  %v8981_v39 = vsel %vm14940_vm1, %v12027_v9, %v8980_v5  ;;  %v19200_v30 = vld [vmem:[#allocation34_spill] sm:$0xff]  ;;  %v19201_v11 = vld [vmem:[#allocation35_spill] sm:$0xff]  ;;  %v19203_v63 = vld [vmem:[#allocation36_spill] sm:$0xff] }
 0x5cd   : > { %v12042_v50 = vcombine.low %v8974_v55, %v8977_v51  ;;  %v9540_v21 = vsel %vm1520_vm4, %v17750_v28, 0  ;;  %v19181_v62 = vcombine.low %v19179_v1, %v19180_v27  ;;  %v19184_v29 = vcombine.low %v19182_v14, %v19183_v36  ;;  %v19185_v28 = vld [vmem:[#allocation18_spill] sm:$0xff]  ;;  %v19204_v32 = vld [vmem:[#allocation37_spill] sm:$0xff]  ;;  %v19207_v5 = vld [vmem:[#allocation39_spill] sm:$0xff] }
 0x5ce   : > { %v8984_v60 = vsel %vm14940_vm1, %v8982_v26, %v8983_v18  ;;  %v19187_v15 = vcombine.low %v19185_v28, %v19186_v31  ;;  %v19190_v8 = vcombine.low %v19188_v57, %v19189_v24  ;;  %v19193_v34 = vcombine.low %v19191_v47, %v19192_v23  ;;  %v19206_v38 = vld [vmem:[#allocation38_spill] sm:$0xff]  ;;  %v19210_v55 = vld [vmem:[#allocation41_spill] sm:$0xff]  ;;  %v19213_v26 = vld [vmem:[#allocation43_spill] sm:$0xff] }
 0x5cf   : > { %v12043_v43 = vcombine.low %v8981_v39, %v8984_v60  ;;  %v19199_v52 = vcombine.low %v19197_v46, %v19198_v44  ;;  %v19202_v41 = vcombine.low %v19200_v30, %v19201_v11  ;;  %v19205_v6 = vcombine.low %v19203_v63, %v19204_v32  ;;  %v13865_v22 = vld [vmem:[#allocation2 + $0x18] sm:$0xff]   ;;  %v19216_v60 = vld [vmem:[#allocation45_spill] sm:$0xff]  ;;  %v13867_v12 = vld [vmem:[#allocation2 + $0x30] sm:$0xff]  }
 0x5d0   : > { %v19208_v51 = vcombine.low %v19206_v38, %v19207_v5  ;;  %v19215_v18 = vld [vmem:[#allocation44_spill] sm:$0xff]  ;;  %v13869_v1 = vld [vmem:[#allocation2 + $0x48] sm:$0xff]   ;;  %v19218_v31 = vld [vmem:[#allocation21_spill] sm:$0xff] }
 0x5d1   : > { %v19217_v39 = vcombine.low %v19215_v18, %v19216_v60  ;;  %v18051_v54 = vld [vmem:[#allocation9 + $0x10] sm:$0x3]  ;;  %v13870_v27 = vld [vmem:[#allocation2 + $0x54] sm:$0xff]   ;;  %v9797_v57 = vshrl.u32 %v19218_v31, 16  ;;  %v13874_v24 = vld [vmem:[#allocation2 + $0x84] sm:$0xff]  }
 0x5d2   : > { %v13873_v14 = vld [vmem:[#allocation2 + $0x78] sm:$0xff]   ;;  %v9738_v47 = vld [vmem:[#allocation2 + $0x24] sm:$0xf]  ;;  %v9741_v44 = vld [vmem:[#allocation2 + $0x30] sm:$0xf] }
 0x5d3   : > { %13033 = vmatmul.mubr.msk.bf16.gmra.mrb[24].mxu1 %vm1471_vm12, %v12007_v25  ;;  %v19195_v25 = vld [vmem:[#allocation31_spill] sm:$0xff]  ;;  %v9735_v36 = vld [vmem:[#allocation2 + $0x18] sm:$0xf]  ;;  %v9811_v46 = vshll.u32 %v9738_v47, 16  ;;  %v9832_v32 = vshrl.u32 %v9741_v44, 16  ;;  %v13876_v38 = vld [vmem:[#allocation2 + $0x9c] sm:$0xff]  }
 0x5d4   : > { %13036 = vmatprep.mubr.msk.bf16.mxu1 %vm1471_vm12, %v12008_v58  ;;  %v19196_v58 = vcombine.low %v19194_v35, %v19195_v25  ;;  %v9787_v28 = vshll.u32 %v9735_v36, 16  ;;  %v9799_v25 = vrot.slane %v9797_v57, 4 }
 0x5db   : > { %13037 = vmatmul.mubr.msk.bf16.gmra.mrb[28].mxu1 %vm1471_vm12, %v12009_v53  ;;  %v19209_v53 = vld [vmem:[#allocation40_spill] sm:$0xff] }
 0x5dc   : > { %13042 = vmatprep.mubr.msk.bf16.mxu1 %vm1471_vm12, %v12042_v50  ;;  %v19211_v10 = vcombine.low %v19209_v53, %v19210_v55  ;;  %v19212_v50 = vld [vmem:[#allocation42_spill] sm:$0xff]  ;;  %v19220_v53 = vld [vmem:[#allocation51_spill] sm:$0xff] }
 0x5dd   : > { %v19214_v9 = vcombine.low %v19212_v50, %v19213_v26  ;;  %v9841_v55 = vshll.u32 %v19220_v53, 16  ;;  %v13877_v50 = vld [vmem:[#allocation2 + $0xa8] sm:$0xff]   ;;  %v19221_v26 = vld [vmem:[#allocation49_spill] sm:$0xff] }
 0x5e3   : > { %13043 = vmatmul.mubr.msk.bf16.vlgmr.msra.gmra.mrb[0].mxu1 %vm1471_vm12, %v12043_v43  ;;  %v13866_v43 = vld [vmem:[#allocation2 + $0x24] sm:$0xff]  }
 0x5e4   : > { %13075 = vmatpush3.bf16.msra.mxu1 %v9540_v21  ;;  %13046 = vmatprep.mubr.msk.bf16.mxu1 %vm1471_vm12, %v19178_v20  ;;  %v10266_v21 = vsel %vm1520_vm4, %v10168_v61, 0  ;;  %v13868_v20 = vld [vmem:[#allocation2 + $0x3c] sm:$0xff]  }
 0x5e5   : > { %13704 = vmatprep.subr.msk.bf16.mxu1 %vm1520_vm4, %v10168_v61  ;;  %v13872_v61 = vld [vmem:[#allocation2 + $0x6c] sm:$0xff]  }
 0x5eb   : > { %13047 = vmatmul.mubr.msk.bf16.gmra.mrb[4].mxu1 %vm1471_vm12, %v19181_v62  ;;  %v13871_v62 = vld [vmem:[#allocation2 + $0x60] sm:$0xff]  }
 0x5ec   : > { %13050 = vmatprep.mubr.msk.bf16.mxu1 %vm1471_vm12, %v19184_v29  ;;  %v9784_v29 = vshrl.u32 %v9735_v36, 16 }
 0x5ee   : > { %v9786_v23 = vrot.slane %v9784_v29, 4 }
 0x5f3   : > { %13051 = vmatmul.mubr.msk.bf16.gmra.mrb[8].mxu1 %vm1471_vm12, %v19187_v15  ;;  %v9793_v15 = vshll.u32 %v19218_v31, 16 }
 0x5f4   : > { %13054 = vmatprep.mubr.msk.bf16.mxu1 %vm1471_vm12, %v19190_v8  ;;  %v13875_v8 = vld [vmem:[#allocation2 + $0x90] sm:$0xff]  }
 0x5f5   : > { %v9795_v35 = vrot.slane %v9793_v15, 5  ;;  %v9747_v15 = vld [vmem:[#allocation2 + $0x48] sm:$0xf] }
 0x5f7   : > { %v9800_v63 = vor.u32 %v9799_v25, %v9795_v35 }
 0x5fb   : > { %13055 = vmatmul.mubr.msk.bf16.gmra.mrb[12].mxu1 %vm1471_vm12, %v19193_v34  ;;  %v9789_v34 = vrot.slane %v9787_v28, 5 }
 0x5fc   : > { %13058 = vmatprep.mubr.msk.bf16.mxu1 %vm1471_vm12, %v19196_v58  ;;  %v9808_v58 = vshrl.u32 %v9738_v47, 16 }
 0x5fe   : > { %v9810_v5 = vrot.slane %v9808_v58, 4 }
 0x603   : > { %13059 = vmatmul.mubr.msk.bf16.gmra.mrb[16].mxu1 %vm1471_vm12, %v19199_v52  ;;  %v19219_v52 = vld [vmem:[#allocation48_spill] sm:$0xff] }
 0x604   : > { %13062 = vmatprep.mubr.msk.bf16.mxu1 %vm1471_vm12, %v19202_v41  ;;  %v9817_v30 = vshll.u32 %v19219_v52, 16  ;;  %v9821_v11 = vshrl.u32 %v19219_v52, 16  ;;  %v9790_v41 = vor.u32 %v9789_v34, %v9786_v23  ;;  %v13878_v23 = vld [vmem:[#allocation2 + $0xb4] sm:$0xff]   ;;  %v13879_v34 = vld [vmem:[#allocation2 + $0xc0] sm:$0xff]  }
 0x606   : > { %v9823_v18 = vrot.slane %v9821_v11, 4  ;;  %v9791_v60 = vrot.slane %v9790_v41, 4  ;;  %v9880_v11 = vshrl.u32 %v9747_v15, 16  ;;  %v9883_v41 = vshll.u32 %v9747_v15, 16 }
 0x608   : > { %v9796_v28 = vsel %vm14466_vm13, %v9791_v60, %v9795_v35 }
 0x60b   : > { %13063 = vmatmul.mubr.msk.bf16.gmra.mrb[20].mxu1 %vm1471_vm12, %v19205_v6  ;;  %v9835_v6 = vshll.u32 %v9741_v44, 16 }
 0x60c   : > { %13066 = vmatprep.mubr.msk.bf16.mxu1 %vm1471_vm12, %v19208_v51  ;;  %v9813_v51 = vrot.slane %v9811_v46, 5  ;;  %v19223_v46 = vld [vmem:[#allocation52_spill] sm:$0xff] }
 0x60d   : > { %v9865_v44 = vshll.u32 %v19223_v46, 16  ;;  %v9869_v52 = vshrl.u32 %v19223_v46, 16  ;;  %v9753_v46 = vld [vmem:[#allocation2 + $0x60] sm:$0xf] }
 0x60f   : > { %v9871_v60 = vrot.slane %v9869_v52, 4 }
 0x613   : > { %13067 = vmatmul.mubr.msk.bf16.gmra.mrb[24].mxu1 %vm1471_vm12, %v19211_v10  ;;  %v9845_v10 = vshrl.u32 %v19220_v53, 16 }
 0x614   : > { %13070 = vmatprep.mubr.msk.bf16.mxu1 %vm1471_vm12, %v19214_v9  ;;  %v9803_v9 = vshll.u32 %v19221_v26, 16 }
 0x61b   : > { %13071 = vmatmul.mubr.msk.bf16.gmra.mrb[28].mxu1 %vm1471_vm12, %v19217_v39  ;;  %v19222_v39 = vld [vmem:[#allocation50_spill] sm:$0xff] }
 0x61c   : > { %13076 = vmatprep.mubr.msk.bf16.mxu1 %vm1471_vm12, %v13865_v22  ;;  %v18072_v22 = vrot.slane %v9817_v30, 5 }
 0x61e   : > { %v9824_v36 = vor.u32 %v9823_v18, %v18072_v22  ;;  %v18100_v18 = vrot.slane %v9865_v44, 5 }
 0x620   : > { %v9825_v35 = vrot.slane %v9824_v36, 4 }
 0x623   : > { %13077 = vmatmul.mubr.msk.bf16.vlgmr.msra.gmra.mrb[0].mxu1 %vm1471_vm12, %v13866_v43  ;;  %v9827_v43 = vshll.u32 %v19222_v39, 16 }
 0x624   : > { %13109 = vmatpush3.bf16.msra.mxu1 %v10266_v21  ;;  %13080 = vmatprep.mubr.msk.bf16.mxu1 %vm1471_vm12, %v13867_v12  ;;  %v9744_v21 = vld [vmem:[#allocation2 + $0x3c] sm:$0xf]  ;;  %v9801_v12 = vrot.slane %v9800_v63, 4  ;;  %v9750_v63 = vld [vmem:[#allocation2 + $0x54] sm:$0xf] }
 0x625   : > { %13705 = vmatprep.subr.msk.bf16.mxu1 %vm1520_vm4, %v18051_v54  ;;  %v9856_v29 = vshrl.u32 %v9744_v21, 16  ;;  %v18082_v31 = vrot.slane %v9827_v43, 5  ;;  %v9859_v47 = vshll.u32 %v9744_v21, 16  ;;  %v9882_v43 = vrot.slane %v9880_v11, 4 }
 0x626   : > { %v9885_v21 = vrot.slane %v9883_v41, 5 }
 0x627   : > { %v9858_v30 = vrot.slane %v9856_v29, 4 }
 0x62b   : > { %13081 = vmatmul.mubr.msk.bf16.gmra.mrb[4].mxu1 %vm1471_vm12, %v13868_v20  ;;  %v9834_v20 = vrot.slane %v9832_v32, 4 }
 0x62c   : > { %13084 = vmatprep.mubr.msk.bf16.mxu1 %vm1471_vm12, %v13869_v1  ;;  %v9837_v1 = vrot.slane %v9835_v6, 5  ;;  %v19224_v6 = vld [vmem:[#allocation54_spill] sm:$0xff] }
 0x633   : > { %13085 = vmatmul.mubr.msk.bf16.gmra.mrb[8].mxu1 %vm1471_vm12, %v13870_v27  ;;  %v9814_v27 = vor.u32 %v9813_v51, %v9810_v5  ;;  %v18093_v5 = vld [vmem:[#allocation2 + $0xd0] sm:$0xf]  ;;  %v18095_v51 = vld [vmem:[#allocation2 + $0xd4] sm:$0x1] }
 0x634   : > { %13088 = vmatprep.mubr.msk.bf16.mxu1 %vm1471_vm12, %v13871_v62  ;;  %v18077_v62 = vrot.slane %v9841_v55, 5  ;;  %v9861_v55 = vrot.slane %v9859_v47, 5  ;;  %v10635_v26 = vrot.slane %v18095_v51, 5 }
 0x635   : > { %v9815_v25 = vrot.slane %v9814_v27, 4 }
 0x636   : > { %v9862_v52 = vor.u32 %v9861_v55, %v9858_v30  ;;  %v9756_v55 = vld [vmem:[#allocation2 + $0x6c] sm:$0xf] }
 0x637   : > { %v9820_v47 = vsel %vm14466_vm13, %v9815_v25, %v18072_v22  ;;  %v9872_v22 = vor.u32 %v9871_v60, %v18100_v18  ;;  %v9886_v25 = vor.u32 %v9885_v21, %v9882_v43 }
 0x639   : > { %v9887_v43 = vrot.slane %v9886_v25, 4 }
 0x63b   : > { %13089 = vmatmul.mubr.msk.bf16.gmra.mrb[12].mxu1 %vm1471_vm12, %v13872_v61  ;;  %v9847_v61 = vrot.slane %v9845_v10, 4  ;;  %v10476_v10 = vld [vmem:[#allocation2 + $0xcc] sm:$0xe] }
 0x63c   : > { %13092 = vmatprep.mubr.msk.bf16.mxu1 %vm1471_vm12, %v13873_v14  ;;  %v9805_v14 = vrot.slane %v9803_v9, 5  ;;  %v12153_v39 = vrot.slane %v10476_v10, 9 }
 0x63d   : > { %v9848_v58 = vor.u32 %v9847_v61, %v18077_v62 }
 0x63e   : > { %v9806_v57 = vsel %vm14466_vm13, %v9801_v12, %v9805_v14  ;;  %v9904_v12 = vshrl.u32 %v9750_v63, 16  ;;  %v9907_v14 = vshll.u32 %v9750_v63, 16 }
 0x63f   : > { %v12106_v32 = vcombine.low %v9796_v28, %v9806_v57  ;;  %v9849_v9 = vrot.slane %v9848_v58, 4  ;;  %v19225_v28 = vld [vmem:[#allocation60_spill] sm:$0xff] }
 0x640   : > { %v9913_v15 = vshll.u32 %v19225_v28, 16  ;;  %v9917_v57 = vshrl.u32 %v19225_v28, 16  ;;  %v9909_v11 = vrot.slane %v9907_v14, 5  ;;  %v10736_v14 = vsel %vm1520_vm4, %v18051_v54, 0 }
 0x642   : > { %v18132_v41 = vrot.slane %v9913_v15, 5  ;;  %v9919_v63 = vrot.slane %v9917_v57, 4  ;;  %v9955_v15 = vshll.u32 %v9756_v55, 16 }
 0x643   : > { %13093 = vmatmul.mubr.msk.bf16.gmra.mrb[16].mxu1 %vm1471_vm12, %v13874_v24  ;;  %v9838_v24 = vor.u32 %v9837_v1, %v9834_v20  ;;  %v13880_v1 = vld [vmem:[#allocation2 + $0xcc] sm:$0xff]  }
 0x644   : > { %13096 = vmatprep.mubr.msk.bf16.mxu1 %vm1471_vm12, %v13875_v8  ;;  %v9851_v8 = vshll.u32 %v17633_v33, 16  ;;  %v9889_v33 = vshll.u32 %v19224_v6, 16 }
 0x645   : > { %v9839_v53 = vrot.slane %v9838_v24, 4 }
 0x646   : > { %v18102_v27 = vrot.slane %v9889_v33, 5  ;;  %v9853_v29 = vrot.slane %v9851_v8, 5 }
 0x647   : > { %v9844_v2 = vsel %vm14466_vm13, %v9839_v53, %v18077_v62  ;;  %v9931_v62 = vshll.u32 %v9753_v46, 16 }
 0x648   : > { %v9854_v44 = vsel %vm14466_vm13, %v9849_v9, %v9853_v29  ;;  %v19228_v9 = vld [vmem:[#allocation59_spill] sm:$0xff]  ;;  %v9892_v54 = vsel %vm14466_vm13, %v9887_v43, %v18102_v27 }
 0x649   : > { %v12108_v10 = vcombine.low %v9844_v2, %v9854_v44  ;;  %v9899_v60 = vshll.u32 %v19228_v9, 16  ;;  %v9762_v9 = vld [vmem:[#allocation2 + $0x84] sm:$0xf] }
 0x64b   : > { %13097 = vmatmul.mubr.msk.bf16.gmra.mrb[20].mxu1 %vm1471_vm12, %v13876_v38  ;;  %v9893_v38 = vshrl.u32 %v19224_v6, 16  ;;  %v9928_v6 = vshrl.u32 %v9753_v46, 16  ;;  %v9759_v46 = vld [vmem:[#allocation2 + $0x78] sm:$0xf] }
 0x64c   : > { %13100 = vmatprep.mubr.msk.bf16.mxu1 %vm1471_vm12, %v13877_v50  ;;  %v10632_v50 = vrot.slane %v18093_v5, 5 }
 0x64d   : > { %v9895_v61 = vrot.slane %v9893_v38, 4  ;;  %v19227_v38 = vld [vmem:[#allocation63_spill] sm:$0xff] }
 0x64e   : > { %v10634_v20 = vrot.slane %v10632_v50, 4  ;;  %v18106_v36 = vsel %vm14940_vm1, %v12153_v39, %v10632_v50  ;;  %v9937_v53 = vshll.u32 %v19227_v38, 16  ;;  %v9941_v30 = vshrl.u32 %v19227_v38, 16 }
 0x64f   : > { %v9863_v50 = vrot.slane %v9862_v52, 4  ;;  %v9873_v39 = vrot.slane %v9872_v22, 4  ;;  %v19230_v52 = vld [vmem:[#allocation61_spill] sm:$0xff] }
 0x650   : > { %v18112_v24 = vsel %vm14940_vm1, %v10634_v20, %v10635_v26  ;;  %v9930_v20 = vrot.slane %v9928_v6, 4  ;;  %v18140_v29 = vrot.slane %v9937_v53, 5  ;;  %v9943_v28 = vrot.slane %v9941_v30, 4  ;;  %v19232_v30 = vld [vmem:[#allocation72_spill] sm:$0xff] }
 0x651   : > { %v12169_v8 = vcombine.low %v18106_v36, %v18112_v24  ;;  %v9868_v57 = vsel %vm14466_vm13, %v9863_v50, %v18100_v18  ;;  %v9923_v22 = vshll.u32 %v19230_v52, 16  ;;  %v9979_v53 = vshll.u32 %v9759_v46, 16 }
 0x653   : > { %13101 = vmatmul.mubr.msk.bf16.gmra.mrb[24].mxu1 %vm1471_vm12, %v13878_v23  ;;  %v9830_v23 = vsel %vm14466_vm13, %v9825_v35, %v18082_v31  ;;  %v9896_v31 = vor.u32 %v9895_v61, %v18102_v27  ;;  %v9906_v35 = vrot.slane %v9904_v12, 4  ;;  %v9920_v12 = vor.u32 %v9919_v63, %v18132_v41 }
 0x654   : > { %13104 = vmatprep.mubr.msk.bf16.mxu1 %vm1471_vm12, %v13879_v34  ;;  %v19226_v34 = vld [vmem:[#allocation53_spill] sm:$0xff]  ;;  %v12107_v33 = vcombine.low %v9820_v47, %v9830_v23  ;;  %v9952_v61 = vshrl.u32 %v9756_v55, 16  ;;  %v9901_v47 = vrot.slane %v9899_v60, 5  ;;  %v9944_v63 = vor.u32 %v9943_v28, %v18140_v29 }
 0x655   : > { %v9875_v58 = vshll.u32 %v19226_v34, 16  ;;  %v9897_v21 = vrot.slane %v9896_v31, 4  ;;  %v19229_v23 = vld [vmem:[#allocation65_spill] sm:$0xff]  ;;  %v9921_v25 = vrot.slane %v9920_v12, 4  ;;  %v9985_v55 = vshll.u32 %v19232_v30, 16 }
 0x656   : > { %v9961_v34 = vshll.u32 %v19229_v23, 16  ;;  %v9954_v6 = vrot.slane %v9952_v61, 4  ;;  %v9945_v12 = vrot.slane %v9944_v63, 4  ;;  %v9765_v61 = vld [vmem:[#allocation2 + $0x90] sm:$0xf]  ;;  %v9981_v28 = vrot.slane %v9979_v53, 5 }
 0x657   : > { %v9877_v26 = vrot.slane %v9875_v58, 5  ;;  %v9965_v58 = vshrl.u32 %v19229_v23, 16  ;;  %v9902_v18 = vsel %vm14466_vm13, %v9897_v21, %v9901_v47  ;;  %v10003_v23 = vshll.u32 %v9762_v9, 16 }
 0x658   : > { %v18159_v38 = vrot.slane %v9961_v34, 5  ;;  %v12110_v60 = vcombine.low %v9892_v54, %v9902_v18  ;;  %v10013_v34 = vshrl.u32 %v17730_v7, 16  ;;  %v10024_v54 = vshrl.u32 %v9765_v61, 16 }
 0x659   : > { %v9878_v2 = vsel %vm14466_vm13, %v9873_v39, %v9877_v26  ;;  %v9967_v27 = vrot.slane %v9965_v58, 4  ;;  %v9989_v26 = vshrl.u32 %v19232_v30, 16 }
 0x65a   : > { %v12109_v50 = vcombine.low %v9868_v57, %v9878_v2  ;;  %v10000_v57 = vshrl.u32 %v9762_v9, 16  ;;  %v10026_v30 = vrot.slane %v10024_v54, 4 }
 0x65b   : > { %13105 = vmatmul.mubr.msk.bf16.gmra.mrb[28].mxu1 %vm1471_vm12, %v13880_v1  ;;  %v9933_v1 = vrot.slane %v9931_v62, 5  ;;  %v9957_v62 = vrot.slane %v9955_v15, 5  ;;  %v18169_v15 = vrot.slane %v9985_v55, 5  ;;  %v9991_v47 = vrot.slane %v9989_v26, 4 }
 0x65c   : > { %13110 = vmatprep.mubr.msk.bf16.mxu1 %vm1471_vm12, %v12106_v32  ;;  %v9910_v32 = vor.u32 %v9909_v11, %v9906_v35  ;;  %v19231_v35 = vld [vmem:[#allocation68_spill] sm:$0xff] }
 0x65d   : > { %v9934_v31 = vor.u32 %v9933_v1, %v9930_v20  ;;  %v9947_v11 = vshll.u32 %v19231_v35, 16  ;;  %v9958_v20 = vor.u32 %v9957_v62, %v9954_v6  ;;  %v10002_v6 = vrot.slane %v10000_v57, 4 }
 0x65e   : > { %v9911_v44 = vrot.slane %v9910_v32, 4  ;;  %v9992_v62 = vor.u32 %v9991_v47, %v18169_v15 }
 0x65f   : > { %v9935_v43 = vrot.slane %v9934_v31, 4  ;;  %v9949_v21 = vrot.slane %v9947_v11, 5 }
 0x660   : > { %v9916_v39 = vsel %vm14466_vm13, %v9911_v44, %v18132_v41  ;;  %v10009_v41 = vshll.u32 %v17730_v7, 16  ;;  %v10027_v44 = vshll.u32 %v9765_v61, 16  ;;  %v9959_v7 = vrot.slane %v9958_v20, 4 }
 0x661   : > { %v9940_v58 = vsel %vm14466_vm13, %v9935_v43, %v18140_v29  ;;  %v9950_v52 = vsel %vm14466_vm13, %v9945_v12, %v9949_v21  ;;  %v10005_v29 = vrot.slane %v10003_v23, 5  ;;  %v9993_v61 = vrot.slane %v9992_v62, 4 }
 0x662   : > { %v10029_v55 = vrot.slane %v10027_v44, 5  ;;  %v9964_v43 = vsel %vm14466_vm13, %v9959_v7, %v18159_v38 }
 0x663   : > { %13111 = vmatmul.mubr.msk.bf16.vlgmr.msra.gmra.mrb[0].mxu1 %vm1471_vm12, %v12107_v33  ;;  %v9976_v33 = vshrl.u32 %v9759_v46, 16  ;;  %v19233_v46 = vld [vmem:[#allocation69_spill] sm:$0xff] }
 0x664   : > { %13143 = vmatpush3.bf16.msra.mxu1 %v10736_v14  ;;  %13114 = vmatprep.mubr.msk.bf16.mxu1 %vm1471_vm12, %v12108_v10  ;;  %v9925_v10 = vrot.slane %v9923_v22, 5  ;;  %v9968_v14 = vor.u32 %v9967_v27, %v18159_v38  ;;  %v9971_v2 = vshll.u32 %v19233_v46, 16  ;;  %v19234_v22 = vld [vmem:[#allocation74_spill] sm:$0xff]  ;;  %v10015_v27 = vrot.slane %v10013_v34, 4  ;;  %v19237_v38 = vld [vmem:[#allocation81_spill] sm:$0xff] }
 0x665   : > { %v9978_v1 = vrot.slane %v9976_v33, 4  ;;  %v9995_v18 = vshll.u32 %v19234_v22, 16  ;;  %v18185_v33 = vrot.slane %v10009_v41, 5  ;;  %v10030_v57 = vor.u32 %v10029_v55, %v10026_v30 }
 0x666   : > { %v9926_v32 = vsel %vm14466_vm13, %v9921_v25, %v9925_v10  ;;  %v19235_v25 = vld [vmem:[#allocation77_spill] sm:$0xff]  ;;  %v9969_v11 = vrot.slane %v9968_v14, 4  ;;  %v9973_v53 = vrot.slane %v9971_v2, 5  ;;  %v12112_v10 = vcombine.low %v9940_v58, %v9950_v52 }
 0x667   : > { %v10033_v31 = vshll.u32 %v19235_v25, 16  ;;  %v10037_v35 = vshrl.u32 %v19235_v25, 16  ;;  %v9982_v63 = vor.u32 %v9981_v28, %v9978_v1  ;;  %v9997_v20 = vrot.slane %v9995_v18, 5  ;;  %v9771_v1 = vld [vmem:[#allocation2 + $0xa8] sm:$0xf] }
 0x668   : > { %v9974_v21 = vsel %vm14466_vm13, %v9969_v11, %v9973_v53  ;;  %v10006_v14 = vor.u32 %v10005_v29, %v10002_v6  ;;  %v10057_v41 = vshll.u32 %v19237_v38, 16  ;;  %v10061_v58 = vshrl.u32 %v19237_v38, 16 }
 0x669   : > { %v18187_v26 = vrot.slane %v10033_v31, 5  ;;  %v10039_v9 = vrot.slane %v10037_v35, 4  ;;  %v9983_v12 = vrot.slane %v9982_v63, 4  ;;  %v10072_v46 = vshrl.u32 %v9771_v1, 16  ;;  %v19238_v35 = vld [vmem:[#allocation78_spill] sm:$0xff] }
 0x66a   : > { %v10075_v2 = vshll.u32 %v9771_v1, 16  ;;  %v12113_v54 = vcombine.low %v9964_v43, %v9974_v21  ;;  %v10081_v52 = vshll.u32 %v17787_v0, 16  ;;  %v10085_v22 = vshrl.u32 %v17787_v0, 16  ;;  %v9777_v1 = vld [vmem:[#allocation2 + $0xc0] sm:$0xf] }
 0x66b   : > { %13115 = vmatmul.mubr.msk.bf16.gmra.mrb[4].mxu1 %vm1471_vm12, %v12109_v50  ;;  %v12111_v50 = vcombine.low %v9916_v39, %v9926_v32  ;;  %v10016_v39 = vor.u32 %v10015_v27, %v18185_v33  ;;  %v19236_v32 = vld [vmem:[#allocation76_spill] sm:$0xff]  ;;  %v10040_v34 = vor.u32 %v10039_v9, %v18187_v26  ;;  %v9988_v44 = vsel %vm14466_vm13, %v9983_v12, %v18169_v15 }
 0x66c   : > { %13118 = vmatprep.mubr.msk.bf16.mxu1 %vm1471_vm12, %v12110_v60  ;;  %v9768_v60 = vld [vmem:[#allocation2 + $0x9c] sm:$0xf]  ;;  %v10019_v28 = vshll.u32 %v19236_v32, 16  ;;  %v9998_v18 = vsel %vm14466_vm13, %v9993_v61, %v9997_v20  ;;  %v10007_v25 = vrot.slane %v10006_v14, 4  ;;  %v10043_v7 = vshll.u32 %v19238_v35, 16 }
 0x66d   : > { %v10048_v47 = vshrl.u32 %v9768_v60, 16  ;;  %v10051_v23 = vshll.u32 %v9768_v60, 16  ;;  %v10017_v31 = vrot.slane %v10016_v39, 4  ;;  %v10031_v11 = vrot.slane %v10030_v57, 4 }
 0x66e   : > { %v18209_v62 = vrot.slane %v10057_v41, 5  ;;  %v10041_v29 = vrot.slane %v10040_v34, 4  ;;  %v10063_v27 = vrot.slane %v10061_v58, 4  ;;  %v10074_v53 = vrot.slane %v10072_v46, 4 }
 0x66f   : > { %v10050_v63 = vrot.slane %v10048_v47, 4  ;;  %v10053_v6 = vrot.slane %v10051_v23, 5  ;;  %v10077_v15 = vrot.slane %v10075_v2, 5  ;;  %v12114_v30 = vcombine.low %v9988_v44, %v9998_v18 }
 0x670   : > { %v10021_v55 = vrot.slane %v10019_v28, 5  ;;  %v10087_v0 = vrot.slane %v10085_v22, 4  ;;  %v10012_v9 = vsel %vm14466_vm13, %v10007_v25, %v18185_v33  ;;  %v10045_v60 = vrot.slane %v10043_v7, 5  ;;  %v9780_v22 = vld [vmem:[#allocation2 + $0xcc] sm:$0xf] }
 0x671   : > { %v10036_v21 = vsel %vm14466_vm13, %v10031_v11, %v18187_v26  ;;  %v10054_v12 = vor.u32 %v10053_v6, %v10050_v63  ;;  %v10067_v20 = vshll.u32 %v17780_v45, 16  ;;  %v10064_v14 = vor.u32 %v10063_v27, %v18209_v62 }
 0x672   : > { %v10022_v43 = vsel %vm14466_vm13, %v10017_v31, %v10021_v55  ;;  %v10046_v61 = vsel %vm14466_vm13, %v10041_v29, %v10045_v60  ;;  %v10078_v33 = vor.u32 %v10077_v15, %v10074_v53  ;;  %v10105_v57 = vshll.u32 %v17806_v49, 16 }
 0x673   : > { %13119 = vmatmul.mubr.msk.bf16.gmra.mrb[8].mxu1 %vm1471_vm12, %v12111_v50  ;;  %v18211_v50 = vrot.slane %v10081_v52, 5  ;;  %v10109_v47 = vshrl.u32 %v17806_v49, 16  ;;  %v10120_v23 = vshrl.u32 %v9777_v1, 16  ;;  %v10123_v26 = vshll.u32 %v9777_v1, 16 }
 0x674   : > { %13122 = vmatprep.mubr.msk.bf16.mxu1 %vm1471_vm12, %v12112_v10  ;;  %v9774_v10 = vld [vmem:[#allocation2 + $0xb4] sm:$0xf]  ;;  %v10129_v38 = vshll.u32 %v17815_v3, 16  ;;  %v10133_v45 = vshrl.u32 %v17815_v3, 16  ;;  %v12115_v41 = vcombine.low %v10012_v9, %v10022_v43  ;;  %v12116_v34 = vcombine.low %v10036_v21, %v10046_v61  ;;  %v13914_v61 = vld [vmem:[#allocation2 + $0xc8] sm:$0x1] }
 0x675   : > { %v10096_v39 = vshrl.u32 %v9774_v10, 16  ;;  %v10088_v32 = vor.u32 %v10087_v0, %v18211_v50  ;;  %v10099_v28 = vshll.u32 %v9774_v10, 16  ;;  %v10055_v58 = vrot.slane %v10054_v12, 4  ;;  %v13913_v0 = vld [vmem:[#allocation2 + $0xbc] sm:$0x1] }
 0x676   : > { %v10069_v46 = vrot.slane %v10067_v20, 5  ;;  %v10065_v2 = vrot.slane %v10064_v14, 4  ;;  %v10091_v44 = vshll.u32 %v17804_v13, 16  ;;  %v10107_v31 = vrot.slane %v10105_v57, 5 }
 0x677   : > { %v10098_v52 = vrot.slane %v10096_v39, 4  ;;  %v10089_v18 = vrot.slane %v10088_v32, 4  ;;  %v10101_v25 = vrot.slane %v10099_v28, 5  ;;  %v10111_v49 = vrot.slane %v10109_v47, 4 }
 0x678   : > { %v10122_v35 = vrot.slane %v10120_v23, 4  ;;  %v10125_v7 = vrot.slane %v10123_v26, 5  ;;  %v10131_v11 = vrot.slane %v10129_v38, 5  ;;  %v10135_v3 = vrot.slane %v10133_v45, 4 }
 0x679   : > { %v10144_v63 = vshrl.u32 %v9780_v22, 16  ;;  %v10147_v6 = vshll.u32 %v9780_v22, 16  ;;  %v10153_v29 = vshll.u32 %v18093_v5, 16  ;;  %v10157_v13 = vshrl.u32 %v18093_v5, 16 }
 0x67a   : > { %v10060_v27 = vsel %vm14466_vm13, %v10055_v58, %v18209_v62  ;;  %v10093_v53 = vrot.slane %v10091_v44, 5  ;;  %v10070_v15 = vsel %vm14466_vm13, %v10065_v2, %v10069_v46  ;;  %v10112_v55 = vor.u32 %v10111_v49, %v10107_v31 }
 0x67b   : > { %13123 = vmatmul.mubr.msk.bf16.gmra.mrb[12].mxu1 %vm1471_vm12, %v12113_v54  ;;  %v10079_v54 = vrot.slane %v10078_v33, 4  ;;  %v10115_v10 = vshll.u32 %v13913_v0, 16  ;;  %v10126_v5 = vor.u32 %v10125_v7, %v10122_v35  ;;  %v10136_v43 = vor.u32 %v10135_v3, %v10131_v11  ;;  %v19242_v35 = vld [vmem:[#allocation57_spill] sm:$0xff]  ;;  %v19243_v7 = vld [vmem:[#allocation58_spill] sm:$0xff] }
 0x67c   : > { %13126 = vmatprep.mubr.msk.bf16.mxu1 %vm1471_vm12, %v12114_v30  ;;  %v10102_v30 = vor.u32 %v10101_v25, %v10098_v52  ;;  %v10094_v60 = vsel %vm14466_vm13, %v10089_v18, %v10093_v53  ;;  %v10146_v21 = vrot.slane %v10144_v63, 4  ;;  %v10149_v12 = vrot.slane %v10147_v6, 5  ;;  %v19239_v25 = vld [vmem:[#allocation55_spill] sm:$0xff]  ;;  %v19245_v3 = vld [vmem:[#allocation62_spill] sm:$0xff]  ;;  %v19246_v63 = vld [vmem:[#allocation64_spill] sm:$0xff] }
 0x67d   : > { %v10084_v9 = vsel %vm14466_vm13, %v10079_v54, %v18211_v50  ;;  %v10155_v62 = vrot.slane %v10153_v29, 5  ;;  %v10159_v20 = vrot.slane %v10157_v13, 4  ;;  %v12117_v1 = vcombine.low %v10060_v27, %v10070_v15  ;;  %v19249_v29 = vld [vmem:[#allocation70_spill] sm:$0xff]  ;;  %v19251_v27 = vld [vmem:[#allocation67_spill] sm:$0xff]  ;;  %v19252_v53 = vld [vmem:[#allocation73_spill] sm:$0xff] }
 0x67e   : > { %v10139_v14 = vshll.u32 %v13914_v61, 16  ;;  %v12118_v33 = vcombine.low %v10084_v9, %v10094_v60  ;;  %v10103_v39 = vrot.slane %v10102_v30, 4  ;;  %v10113_v32 = vrot.slane %v10112_v55, 4  ;;  %v19254_v30 = vld [vmem:[#allocation71_spill] sm:$0xff]  ;;  %v19258_v9 = vld [vmem:[#allocation80_spill] sm:$0xff]  ;;  %v19267_v61 = vld [vmem:[#allocation86_spill] sm:$0xff] }
 0x67f   : > { %v10127_v28 = vrot.slane %v10126_v5, 4  ;;  %v10137_v57 = vrot.slane %v10136_v43, 4  ;;  %v10117_v50 = vrot.slane %v10115_v10, 5  ;;  %v10150_v47 = vor.u32 %v10149_v12, %v10146_v21  ;;  %v19255_v55 = vld [vmem:[#allocation75_spill] sm:$0xff]  ;;  %v19260_v5 = vld [vmem:[#allocation82_spill] sm:$0xff]  ;;  %v19263_v12 = vld [vmem:[#allocation84_spill] sm:$0xff] }
 0x680   : > { %v10160_v23 = vor.u32 %v10159_v20, %v10155_v62  ;;  %v10163_v26 = vshll.u32 %v18095_v51, 16  ;;  %v10141_v38 = vrot.slane %v10139_v14, 5  ;;  %v10108_v45 = vsel %vm14466_vm13, %v10103_v39, %v10107_v31  ;;  %v19240_v31 = vld [vmem:[#allocation56_spill] sm:$0xff]  ;;  %v19257_v10 = vld [vmem:[#allocation79_spill] sm:$0xff] }
 0x681   : > { %v10151_v46 = vrot.slane %v10150_v47, 4  ;;  %v19241_v49 = vcombine.low %v19239_v25, %v19240_v31  ;;  %v19247_v6 = vcombine.low %v19245_v3, %v19246_v63  ;;  %v19250_v13 = vcombine.low %v19248_v17, %v19249_v29  ;;  %v19261_v43 = vld [vmem:[#allocation83_spill] sm:$0xff] }
 0x682   : > { %v10142_v58 = vsel %vm14466_vm13, %v10137_v57, %v10141_v38  ;;  %v10161_v2 = vrot.slane %v10160_v23, 4  ;;  %v10165_v54 = vrot.slane %v10163_v26, 5  ;;  %v19253_v15 = vcombine.low %v19251_v27, %v19252_v53 }
 0x683   : > { %13127 = vmatmul.mubr.msk.bf16.gmra.mrb[16].mxu1 %vm1471_vm12, %v12115_v41  ;;  %v10118_v41 = vsel %vm14466_vm13, %v10113_v32, %v10117_v50  ;;  %v10156_v51 = vsel %vm14466_vm13, %v10151_v46, %v10155_v62  ;;  %v19256_v0 = vcombine.low %v19254_v30, %v19255_v55  ;;  %v19259_v60 = vcombine.low %v19257_v10, %v19258_v9  ;;  %v19264_v62 = vld [vmem:[#allocation85_spill] sm:$0xff] }
 0x684   : > { %13130 = vmatprep.mubr.msk.bf16.mxu1 %vm1471_vm12, %v12116_v34  ;;  %v10132_v34 = vsel %vm14466_vm13, %v10127_v28, %v10131_v11  ;;  %v12119_v44 = vcombine.low %v10108_v45, %v10118_v41  ;;  %v10166_v22 = vsel %vm14466_vm13, %v10161_v2, %v10165_v54  ;;  %v19244_v11 = vcombine.low %v19242_v35, %v19243_v7 }
 0x685   : > { %v12120_v52 = vcombine.low %v10132_v34, %v10142_v58  ;;  %v12121_v18 = vcombine.low %v10156_v51, %v10166_v22  ;;  %v19262_v21 = vcombine.low %v19260_v5, %v19261_v43  ;;  %v19265_v20 = vcombine.low %v19263_v12, %v19264_v62 }
 0x686   : > { %v19268_v14 = vcombine.low %v17821_v56, %v19267_v61  ;;  %v19271_v32 = vcombine.low %v17852_v37, %v17856_v42 }
 0x68b   : > { %13131 = vmatmul.mubr.msk.bf16.gmra.mrb[20].mxu1 %vm1471_vm12, %v12117_v1  ;;  %v19266_v1 = vcombine.low %v17801_v19, %v17812_v59  ;;  %v19272_v19 = vcombine.low %v17860_v40, %v17866_v48  ;;  %v19273_v59 = vld [vmem:[#allocation88_spill] sm:$0xff] }
 0x68c   : > { %13134 = vmatprep.mubr.msk.bf16.mxu1 %vm1471_vm12, %v12118_v33  ;;  %v19269_v33 = vld [vmem:[#allocation87_spill] sm:$0xff]  ;;  %v19274_v56 = vcombine.low %v17886_v4, %v19273_v59 }
 0x68d   : > { %v19270_v39 = vcombine.low %v17833_v16, %v19269_v33  ;;  %v18329_v16 = vld [vmem:[#allocation11] ss:$0 sm:$0xff] }
 0x693   : > { %13135 = vmatmul.mubr.msk.bf16.gmra.mrb[24].mxu1 %vm1471_vm12, %v12119_v44 }
 0x694   : > { %13138 = vmatprep.mubr.msk.bf16.mxu1 %vm1471_vm12, %v12120_v52 }
 0x69b   : > { %13139 = vmatmul.mubr.msk.bf16.gmra.mrb[28].mxu1 %vm1471_vm12, %v12121_v18 }
 0x69c   : > { %13144 = vmatprep.mubr.msk.bf16.mxu1 %vm1471_vm12, %v19241_v49 }
 0x6a3   : > { %13145 = vmatmul.mubr.msk.bf16.vlgmr.msra.gmra.mrb[0].mxu1 %vm1471_vm12, %v19244_v11 }
 0x6a4   : > { %13148 = vmatprep.mubr.msk.bf16.mxu1 %vm1471_vm12, %v19247_v6 }
 0x6ab   : > { %13149 = vmatmul.mubr.msk.bf16.gmra.mrb[4].mxu1 %vm1471_vm12, %v19250_v13 }
 0x6ac   : > { %13152 = vmatprep.mubr.msk.bf16.mxu1 %vm1471_vm12, %v19253_v15 }
 0x6b3   : > { %13153 = vmatmul.mubr.msk.bf16.gmra.mrb[8].mxu1 %vm1471_vm12, %v19256_v0 }
 0x6b4   : > { %13156 = vmatprep.mubr.msk.bf16.mxu1 %vm1471_vm12, %v19259_v60 }
 0x6bb   : > { %13157 = vmatmul.mubr.msk.bf16.gmra.mrb[12].mxu1 %vm1471_vm12, %v19262_v21 }
 0x6bc   : > { %13160 = vmatprep.mubr.msk.bf16.mxu1 %vm1471_vm12, %v19265_v20 }
 0x6c3   : > { %13161 = vmatmul.mubr.msk.bf16.gmra.mrb[16].mxu1 %vm1471_vm12, %v19266_v1 }
 0x6c4   : > { %13164 = vmatprep.mubr.msk.bf16.mxu1 %vm1471_vm12, %v19268_v14 }
 0x6cb   : > { %13165 = vmatmul.mubr.msk.bf16.gmra.mrb[20].mxu1 %vm1471_vm12, %v19270_v39 }
 0x6cc   : > { %13168 = vmatprep.mubr.msk.bf16.mxu1 %vm1471_vm12, %v19271_v32 }
 0x6d3   : > { %13169 = vmatmul.mubr.msk.bf16.gmra.mrb[24].mxu1 %vm1471_vm12, %v19272_v19 }
 0x6d4   : > { %13172 = vmatprep.mubr.msk.bf16.mxu1 %vm1471_vm12, %v19274_v56 }
 0x6db   : > { %13173 = vmatmul.mubr.msk.bf16.gmra.mrb[28].mxu1 %vm1471_vm12, %v12169_v8 }
 0x776   : > { %v13146_v42 = vpop.f32.mrb[0].mxu1 }
 0x777   : > { %v10772_v37 = vpop.f32.mrb[1].mxu1  ;;  %v18332_v28 = vadd.f32 %v13146_v42, %v18329_v16 }
 0x778   : > { %v18335_v40 = vadd.f32 %v18329_v16, %v10772_v37  ;;  %v13147_v48 = vpop.f32.mrb[2].mxu1 }
 0x779   : > { %v10775_v57 = vpop.f32.mrb[3].mxu1  ;;  %v18340_v50 = vadd.f32 %v13147_v48, %v18329_v16  ;;  %v11042_v24 = vmul.f32 %v18332_v28, %v18332_v28  ;;  %v10973_v38 = vsel %vm1471_vm12, %v18332_v28, 0.0 }
 0x77a   : > { %v11040_v4 = vmul.f32 %v18335_v40, %v18335_v40  ;;  %v18343_v36 = vadd.f32 %v18329_v16, %v10775_v57  ;;  %v10970_v8 = vsel %vm1471_vm12, %v18335_v40, 0.0 }
 0x77b   : > { %v11043_v41 = vmul.f32 %v18340_v50, %v18340_v50  ;;  %v11075_v44 = vsel %vm1471_vm12, %v11042_v24, 0.0  ;;  %v10975_v52 = vsel %vm1471_vm12, %v18340_v50, 0.0 }
 0x77c   : > { %v10971_v47 = vsel %vm1471_vm12, %v18343_v36, 0.0  ;;  %v11041_v23 = vmul.f32 %v18343_v36, %v18343_v36  ;;  %v11072_v45 = vsel %vm1471_vm12, %v11040_v4, 0.0 }
 0x77d   : > { %v10972_v26 = vadd.f32 %v10971_v47, %v10970_v8  ;;  %v11077_v35 = vsel %vm1471_vm12, %v11043_v41, 0.0 }
 0x77e   : > { %v11073_v34 = vsel %vm1471_vm12, %v11041_v23, 0.0  ;;  %v13150_v58 = vpop.f32.mrb[4].mxu1 }
 0x77f   : > { %v10974_v46 = vadd.f32 %v10973_v38, %v10972_v26  ;;  %v11074_v2 = vadd.f32 %v11073_v34, %v11072_v45  ;;  %v10788_v54 = vpop.f32.mrb[5].mxu1  ;;  %v18366_v25 = vadd.f32 %v13150_v58, %v18329_v16 }
 0x780   : > { %v18363_v51 = vadd.f32 %v18329_v16, %v10788_v54  ;;  %v13151_v22 = vpop.f32.mrb[6].mxu1 }
 0x781   : > { %v11076_v18 = vadd.f32 %v11075_v44, %v11074_v2  ;;  %v10976_v31 = vadd.f32 %v10975_v52, %v10974_v46  ;;  %v10791_v49 = vpop.f32.mrb[7].mxu1  ;;  %v18377_v17 = vadd.f32 %v13151_v22, %v18329_v16  ;;  %v11046_v27 = vmul.f32 %v18366_v25, %v18366_v25 }
 0x782   : > { %v10977_v7 = vsel %vm1471_vm12, %v18363_v51, 0.0  ;;  %v11044_v11 = vmul.f32 %v18363_v51, %v18363_v51  ;;  %v18374_v3 = vadd.f32 %v18329_v16, %v10791_v49  ;;  %v10981_v55 = vsel %vm1471_vm12, %v18366_v25, 0.0 }
 0x783   : > { %v10978_v63 = vadd.f32 %v10977_v7, %v10976_v31  ;;  %v11078_v6 = vadd.f32 %v11077_v35, %v11076_v18  ;;  %v11047_v10 = vmul.f32 %v18377_v17, %v18377_v17  ;;  %v10983_v43 = vsel %vm1471_vm12, %v18377_v17, 0.0 }
 0x784   : > { %v11079_v29 = vsel %vm1471_vm12, %v11044_v11, 0.0  ;;  %v10979_v13 = vsel %vm1471_vm12, %v18374_v3, 0.0  ;;  %v11045_v30 = vmul.f32 %v18374_v3, %v18374_v3  ;;  %v11083_v20 = vsel %vm1471_vm12, %v11046_v27, 0.0 }
 0x785   : > { %v11080_v53 = vadd.f32 %v11079_v29, %v11078_v6  ;;  %v10980_v15 = vadd.f32 %v10979_v13, %v10978_v63  ;;  %v11085_v59 = vsel %vm1471_vm12, %v11047_v10, 0.0 }
 0x786   : > { %v13154_v0 = vpop.f32.mrb[8].mxu1  ;;  %v11081_v60 = vsel %vm1471_vm12, %v11045_v30, 0.0 }
 0x787   : > { %v10982_v9 = vadd.f32 %v10981_v55, %v10980_v15  ;;  %v10804_v5 = vpop.f32.mrb[9].mxu1  ;;  %v11082_v21 = vadd.f32 %v11081_v60, %v11080_v53  ;;  %v18398_v1 = vadd.f32 %v13154_v0, %v18329_v16 }
 0x788   : > { %v18394_v12 = vadd.f32 %v18329_v16, %v10804_v5  ;;  %v13155_v62 = vpop.f32.mrb[10].mxu1 }
 0x789   : > { %v10984_v61 = vadd.f32 %v10983_v43, %v10982_v9  ;;  %v10807_v14 = vpop.f32.mrb[11].mxu1  ;;  %v11084_v33 = vadd.f32 %v11083_v20, %v11082_v21  ;;  %v18409_v42 = vadd.f32 %v13155_v62, %v18329_v16  ;;  %v11050_v24 = vmul.f32 %v18398_v1, %v18398_v1 }
 0x78a   : > { %v10985_v39 = vsel %vm1471_vm12, %v18394_v12, 0.0  ;;  %v11048_v32 = vmul.f32 %v18394_v12, %v18394_v12  ;;  %v18405_v19 = vadd.f32 %v18329_v16, %v10807_v14  ;;  %v10989_v47 = vsel %vm1471_vm12, %v18398_v1, 0.0 }
 0x78b   : > { %v10986_v56 = vadd.f32 %v10985_v39, %v10984_v61  ;;  %v11086_v37 = vadd.f32 %v11085_v59, %v11084_v33  ;;  %v11051_v45 = vmul.f32 %v18409_v42, %v18409_v42  ;;  %v10991_v58 = vsel %vm1471_vm12, %v18409_v42, 0.0 }
 0x78c   : > { %v11087_v48 = vsel %vm1471_vm12, %v11048_v32, 0.0  ;;  %v10987_v57 = vsel %vm1471_vm12, %v18405_v19, 0.0  ;;  %v11049_v4 = vmul.f32 %v18405_v19, %v18405_v19  ;;  %v11091_v44 = vsel %vm1471_vm12, %v11050_v24, 0.0 }
 0x78d   : > { %v10988_v8 = vadd.f32 %v10987_v57, %v10986_v56  ;;  %v11088_v23 = vadd.f32 %v11087_v48, %v11086_v37  ;;  %v11093_v11 = vsel %vm1471_vm12, %v11051_v45, 0.0 }
 0x78e   : > { %v11089_v26 = vsel %vm1471_vm12, %v11049_v4, 0.0  ;;  %v13158_v38 = vpop.f32.mrb[12].mxu1 }
 0x78f   : > { %v10990_v41 = vadd.f32 %v10989_v47, %v10988_v8  ;;  %v10820_v34 = vpop.f32.mrb[13].mxu1  ;;  %v11090_v46 = vadd.f32 %v11089_v26, %v11088_v23  ;;  %v18430_v52 = vadd.f32 %v13158_v38, %v18329_v16 }
 0x790   : > { %v18426_v2 = vadd.f32 %v18329_v16, %v10820_v34  ;;  %v13159_v54 = vpop.f32.mrb[14].mxu1 }
 0x791   : > { %v10992_v22 = vadd.f32 %v10991_v58, %v10990_v41  ;;  %v10823_v18 = vpop.f32.mrb[15].mxu1  ;;  %v11092_v31 = vadd.f32 %v11091_v44, %v11090_v46  ;;  %v18441_v6 = vadd.f32 %v13159_v54, %v18329_v16  ;;  %v11054_v15 = vmul.f32 %v18430_v52, %v18430_v52 }
 0x792   : > { %v10993_v49 = vsel %vm1471_vm12, %v18426_v2, 0.0  ;;  %v11052_v35 = vmul.f32 %v18426_v2, %v18426_v2  ;;  %v18437_v7 = vadd.f32 %v18329_v16, %v10823_v18  ;;  %v10997_v55 = vsel %vm1471_vm12, %v18430_v52, 0.0 }
 0x793   : > { %v10994_v63 = vadd.f32 %v10993_v49, %v10992_v22  ;;  %v11094_v29 = vadd.f32 %v11093_v11, %v11092_v31  ;;  %v11055_v60 = vmul.f32 %v18441_v6, %v18441_v6  ;;  %v10999_v21 = vsel %vm1471_vm12, %v18441_v6, 0.0 }
 0x794   : > { %v11095_v13 = vsel %vm1471_vm12, %v11052_v35, 0.0  ;;  %v10995_v27 = vsel %vm1471_vm12, %v18437_v7, 0.0  ;;  %v11053_v53 = vmul.f32 %v18437_v7, %v18437_v7  ;;  %v11099_v14 = vsel %vm1471_vm12, %v11054_v15, 0.0 }
 0x795   : > { %v10996_v30 = vadd.f32 %v10995_v27, %v10994_v63  ;;  %v11096_v0 = vadd.f32 %v11095_v13, %v11094_v29  ;;  %v11101_v57 = vsel %vm1471_vm12, %v11055_v60, 0.0 }
 0x796   : > { %v11097_v10 = vsel %vm1471_vm12, %v11053_v53, 0.0  ;;  %v13162_v9 = vpop.f32.mrb[16].mxu1 }
 0x797   : > { %v10998_v5 = vadd.f32 %v10997_v55, %v10996_v30  ;;  %v10836_v43 = vpop.f32.mrb[17].mxu1  ;;  %v11098_v62 = vadd.f32 %v11097_v10, %v11096_v0  ;;  %v18462_v33 = vadd.f32 %v13162_v9, %v18329_v16 }
 0x798   : > { %v18458_v20 = vadd.f32 %v18329_v16, %v10836_v43  ;;  %v13163_v61 = vpop.f32.mrb[18].mxu1 }
 0x799   : > { %v11000_v39 = vadd.f32 %v10999_v21, %v10998_v5  ;;  %v10839_v32 = vpop.f32.mrb[19].mxu1  ;;  %v11100_v59 = vadd.f32 %v11099_v14, %v11098_v62  ;;  %v18473_v24 = vadd.f32 %v13163_v61, %v18329_v16  ;;  %v11058_v38 = vmul.f32 %v18462_v33, %v18462_v33 }
 0x79a   : > { %v11001_v56 = vsel %vm1471_vm12, %v18458_v20, 0.0  ;;  %v11056_v37 = vmul.f32 %v18458_v20, %v18458_v20  ;;  %v18469_v48 = vadd.f32 %v18329_v16, %v10839_v32  ;;  %v11005_v41 = vsel %vm1471_vm12, %v18462_v33, 0.0 }
 0x79b   : > { %v11002_v4 = vadd.f32 %v11001_v56, %v11000_v39  ;;  %v11102_v8 = vadd.f32 %v11101_v57, %v11100_v59  ;;  %v11059_v54 = vmul.f32 %v18473_v24, %v18473_v24  ;;  %v11007_v18 = vsel %vm1471_vm12, %v18473_v24, 0.0 }
 0x79c   : > { %v11103_v47 = vsel %vm1471_vm12, %v11056_v37, 0.0  ;;  %v11003_v23 = vsel %vm1471_vm12, %v18469_v48, 0.0  ;;  %v11057_v26 = vmul.f32 %v18469_v48, %v18469_v48  ;;  %v11107_v11 = vsel %vm1471_vm12, %v11058_v38, 0.0 }
 0x79d   : > { %v11004_v45 = vadd.f32 %v11003_v23, %v11002_v4  ;;  %v11104_v34 = vadd.f32 %v11103_v47, %v11102_v8  ;;  %v11109_v55 = vsel %vm1471_vm12, %v11059_v54, 0.0 }
 0x79e   : > { %v11105_v58 = vsel %vm1471_vm12, %v11057_v26, 0.0  ;;  %v13166_v46 = vpop.f32.mrb[20].mxu1 }
 0x79f   : > { %v11006_v44 = vadd.f32 %v11005_v41, %v11004_v45  ;;  %v10852_v22 = vpop.f32.mrb[21].mxu1  ;;  %v11106_v31 = vadd.f32 %v11105_v58, %v11104_v34  ;;  %v18494_v63 = vadd.f32 %v13166_v46, %v18329_v16 }
 0x7a0   : > { %v18490_v49 = vadd.f32 %v18329_v16, %v10852_v22  ;;  %v13167_v35 = vpop.f32.mrb[22].mxu1 }
 0x7a1   : > { %v11008_v29 = vadd.f32 %v11007_v18, %v11006_v44  ;;  %v10855_v13 = vpop.f32.mrb[23].mxu1  ;;  %v11108_v27 = vadd.f32 %v11107_v11, %v11106_v31  ;;  %v18505_v10 = vadd.f32 %v13167_v35, %v18329_v16  ;;  %v11062_v21 = vmul.f32 %v18494_v63, %v18494_v63 }
 0x7a2   : > { %v11009_v53 = vsel %vm1471_vm12, %v18490_v49, 0.0  ;;  %v11060_v15 = vmul.f32 %v18490_v49, %v18490_v49  ;;  %v18501_v30 = vadd.f32 %v18329_v16, %v10855_v13  ;;  %v11013_v61 = vsel %vm1471_vm12, %v18494_v63, 0.0 }
 0x7a3   : > { %v11010_v0 = vadd.f32 %v11009_v53, %v11008_v29  ;;  %v11110_v9 = vadd.f32 %v11109_v55, %v11108_v27  ;;  %v11063_v59 = vmul.f32 %v18505_v10, %v18505_v10  ;;  %v11015_v57 = vsel %vm1471_vm12, %v18505_v10, 0.0 }
 0x7a4   : > { %v11111_v60 = vsel %vm1471_vm12, %v11060_v15, 0.0  ;;  %v11011_v5 = vsel %vm1471_vm12, %v18501_v30, 0.0  ;;  %v11061_v43 = vmul.f32 %v18501_v30, %v18501_v30  ;;  %v11115_v23 = vsel %vm1471_vm12, %v11062_v21, 0.0 }
 0x7a5   : > { %v11012_v62 = vadd.f32 %v11011_v5, %v11010_v0  ;;  %v11112_v14 = vadd.f32 %v11111_v60, %v11110_v9  ;;  %v11117_v54 = vsel %vm1471_vm12, %v11063_v59, 0.0 }
 0x7a6   : > { %v11113_v39 = vsel %vm1471_vm12, %v11061_v43, 0.0  ;;  %v13170_v32 = vpop.f32.mrb[24].mxu1 }
 0x7a7   : > { %v11014_v56 = vadd.f32 %v11013_v61, %v11012_v62  ;;  %v10868_v37 = vpop.f32.mrb[25].mxu1  ;;  %v11114_v4 = vadd.f32 %v11113_v39, %v11112_v14  ;;  %v18526_v26 = vadd.f32 %v13170_v32, %v18329_v16 }
 0x7a8   : > { %v18522_v8 = vadd.f32 %v18329_v16, %v10868_v37  ;;  %v13171_v47 = vpop.f32.mrb[26].mxu1 }
 0x7a9   : > { %v11016_v38 = vadd.f32 %v11015_v57, %v11014_v56  ;;  %v10871_v45 = vpop.f32.mrb[27].mxu1  ;;  %v11116_v41 = vadd.f32 %v11115_v23, %v11114_v4  ;;  %v18537_v22 = vadd.f32 %v13171_v47, %v18329_v16  ;;  %v11066_v29 = vmul.f32 %v18526_v26, %v18526_v26 }
 0x7aa   : > { %v11017_v34 = vsel %vm1471_vm12, %v18522_v8, 0.0  ;;  %v11064_v58 = vmul.f32 %v18522_v8, %v18522_v8  ;;  %v18533_v46 = vadd.f32 %v18329_v16, %v10871_v45  ;;  %v11021_v27 = vsel %vm1471_vm12, %v18526_v26, 0.0 }
 0x7ab   : > { %v11018_v44 = vadd.f32 %v11017_v34, %v11016_v38  ;;  %v11118_v18 = vadd.f32 %v11117_v54, %v11116_v41  ;;  %v11067_v0 = vmul.f32 %v18537_v22, %v18537_v22  ;;  %v11023_v5 = vsel %vm1471_vm12, %v18537_v22, 0.0 }
 0x7ac   : > { %v11119_v31 = vsel %vm1471_vm12, %v11064_v58, 0.0  ;;  %v11019_v35 = vsel %vm1471_vm12, %v18533_v46, 0.0  ;;  %v11065_v11 = vmul.f32 %v18533_v46, %v18533_v46  ;;  %v11123_v61 = vsel %vm1471_vm12, %v11066_v29, 0.0 }
 0x7ad   : > { %v11020_v13 = vadd.f32 %v11019_v35, %v11018_v44  ;;  %v11120_v53 = vadd.f32 %v11119_v31, %v11118_v18  ;;  %v11125_v4 = vsel %vm1471_vm12, %v11067_v0, 0.0 }
 0x7ae   : > { %v11121_v15 = vsel %vm1471_vm12, %v11065_v11, 0.0  ;;  %v13174_v55 = vpop.f32.mrb[28].mxu1 }
 0x7af   : > { %v11022_v9 = vadd.f32 %v11021_v27, %v11020_v13  ;;  %v10884_v60 = vpop.f32.mrb[29].mxu1  ;;  %v11122_v43 = vadd.f32 %v11121_v15, %v11120_v53  ;;  %v18558_v14 = vadd.f32 %v13174_v55, %v18329_v16 }
 0x7b0   : > { %v18554_v21 = vadd.f32 %v18329_v16, %v10884_v60  ;;  %v13175_v62 = vpop.f32.mrb[30].mxu1 }
 0x7b1   : > { %v11024_v39 = vadd.f32 %v11023_v5, %v11022_v9  ;;  %v10887_v32 = vpop.f32.mrb[31].mxu1  ;;  %v11124_v59 = vadd.f32 %v11123_v61, %v11122_v43  ;;  %v18569_v23 = vadd.f32 %v13175_v62, %v18329_v16  ;;  %v11070_v58 = vmul.f32 %v18558_v14, %v18558_v14 }
 0x7b2   : > { %v11025_v56 = vsel %vm1471_vm12, %v18554_v21, 0.0  ;;  %v11068_v37 = vmul.f32 %v18554_v21, %v18554_v21  ;;  %v18565_v57 = vadd.f32 %v18329_v16, %v10887_v32  ;;  %v11029_v44 = vsel %vm1471_vm12, %v18558_v14, 0.0 }
 0x7b3   : > { %v11026_v47 = vadd.f32 %v11025_v56, %v11024_v39  ;;  %v11126_v38 = vadd.f32 %v11125_v4, %v11124_v59  ;;  %v11071_v31 = vmul.f32 %v18569_v23, %v18569_v23  ;;  %v11031_v11 = vsel %vm1471_vm12, %v18569_v23, 0.0 }
 0x7b4   : > { %v11127_v45 = vsel %vm1471_vm12, %v11068_v37, 0.0  ;;  %v11027_v41 = vsel %vm1471_vm12, %v18565_v57, 0.0  ;;  %v11069_v34 = vmul.f32 %v18565_v57, %v18565_v57  ;;  %v11131_v13 = vsel %vm1471_vm12, %v11070_v58, 0.0 }
 0x7b5   : > { %v11028_v54 = vadd.f32 %v11027_v41, %v11026_v47  ;;  %v11128_v18 = vadd.f32 %v11127_v45, %v11126_v38  ;;  %v11133_v15 = vsel %vm1471_vm12, %v11071_v31, 0.0 }
 0x7b6   : > { %v11129_v16 = vsel %vm1471_vm12, %v11069_v34, 0.0 }
 0x7b7   : > { %v11030_v35 = vadd.f32 %v11029_v44, %v11028_v54  ;;  %v11130_v29 = vadd.f32 %v11129_v16, %v11128_v18 }
 0x7b9   : > { %v11032_v27 = vadd.f32 %v11031_v11, %v11030_v35  ;;  %v11132_v53 = vadd.f32 %v11131_v13, %v11130_v29 }
 0x7bb   : > { %v11033_v55 = vrot.slane %v11032_v27, 4  ;;  %v11134_v0 = vadd.f32 %v11133_v15, %v11132_v53 }
 0x7bd   : > { %v11034_v9 = vadd.f32 %v11033_v55, %v11032_v27  ;;  %v11135_v60 = vrot.slane %v11134_v0, 4 }
 0x7bf   : > { %v11035_v5 = vrot.slane %v11034_v9, 2  ;;  %v11136_v43 = vadd.f32 %v11135_v60, %v11134_v0 }
 0x7c1   : > { %v11036_v62 = vadd.f32 %v11035_v5, %v11034_v9  ;;  %v11137_v61 = vrot.slane %v11136_v43, 2 }
 0x7c3   : > { %v11037_v39 = vrot.slane %v11036_v62, 1  ;;  %v11138_v32 = vadd.f32 %v11137_v61, %v11136_v43 }
 0x7c5   : > { %v11038_v59 = vadd.f32 %v11037_v39, %v11036_v62  ;;  %v11139_v56 = vrot.slane %v11138_v32, 1  ;;  %v11213_v39 = vld [vmem:[%s14393_s17 + $0x10] sm:$0xff] }
 0x7c7   : > { %v18587_v37 = vmul.f32 0.00390625, %v11038_v59  ;;  %v11140_v4 = vadd.f32 %v11139_v56, %v11138_v32 }
 0x7c9   : > { %v11142_v47 = vmul.f32 %v18587_v37, %v18587_v37  ;;  %v11174_v38 = vsub.f32 %v18565_v57, %v18587_v37  ;;  %v11141_v45 = vmul.f32 0.00390625, %v11140_v4  ;;  %v11154_v34 = vsub.f32 %v18405_v19, %v18587_v37 }
 0x7ca   : > { %v11157_v58 = vsub.f32 %v18426_v2, %v18587_v37  ;;  %v11158_v54 = vsub.f32 %v18437_v7, %v18587_v37  ;;  %v11159_v44 = vsub.f32 %v18430_v52, %v18587_v37  ;;  %v11160_v18 = vsub.f32 %v18441_v6, %v18587_v37 }
 0x7cb   : > { %v11143_v41 = vsub.f32 %v11141_v45, %v11142_v47  ;;  %v11161_v57 = vsub.f32 %v18458_v20, %v18587_v37  ;;  %v11162_v31 = vsub.f32 %v18469_v48, %v18587_v37  ;;  %v11163_v19 = vsub.f32 %v18462_v33, %v18587_v37  ;;  %v11214_v47 = vld [vmem:[%s14393_s17 + $0x18] sm:$0xff]  ;;  %v11217_v45 = vld [vmem:[%s14393_s17 + $0x30] sm:$0xff] }
 0x7cc   : > { %v11164_v2 = vsub.f32 %v18473_v24, %v18587_v37  ;;  %v11165_v7 = vsub.f32 %v18490_v49, %v18587_v37  ;;  %v11166_v52 = vsub.f32 %v18501_v30, %v18587_v37  ;;  %v11167_v6 = vsub.f32 %v18494_v63, %v18587_v37 }
 0x7cd   : > { %v11144_v16 = vmax.f32 %v11143_v41, 0.0  ;;  %v11168_v20 = vsub.f32 %v18505_v10, %v18587_v37  ;;  %v11169_v48 = vsub.f32 %v18522_v8, %v18587_v37  ;;  %v11170_v33 = vsub.f32 %v18533_v46, %v18587_v37  ;;  %v11215_v41 = vld [vmem:[%s14393_s17 + $0x20] sm:$0xff] }
 0x7ce   : > { %v11171_v24 = vsub.f32 %v18526_v26, %v18587_v37  ;;  %v11172_v49 = vsub.f32 %v18537_v22, %v18587_v37  ;;  %v11173_v30 = vsub.f32 %v18554_v21, %v18587_v37  ;;  %v11175_v11 = vsub.f32 %v18558_v14, %v18587_v37  ;;  %v11229_v26 = vld [vmem:[%s14393_s17 + $0x90] sm:$0xff] }
 0x7cf   : > { %v11177_v35 = vadd.f32 1e-05, %v11144_v16  ;;  %v11176_v10 = vsub.f32 %v18569_v23, %v18587_v37  ;;  %v11145_v8 = vsub.f32 %v18335_v40, %v18587_v37  ;;  %v11146_v46 = vsub.f32 %v18343_v36, %v18587_v37  ;;  %v11240_v40 = vld [vmem:[%s14393_s17 + $0xe8] sm:$0xff]  ;;  %v11233_v14 = vld [vmem:[%s14393_s17 + $0xb0] sm:$0xff] }
 0x7d0   : > { %v11147_v29 = vsub.f32 %v18332_v28, %v18587_v37  ;;  %v11148_v13 = vsub.f32 %v18340_v50, %v18587_v37  ;;  %v11149_v27 = vsub.f32 %v18363_v51, %v18587_v37  ;;  %v11150_v53 = vsub.f32 %v18374_v3, %v18587_v37  ;;  %v11232_v23 = vld [vmem:[%s14393_s17 + $0xa8] sm:$0xff] }
 0x7d1   : > { %13883 = vrsqrt.f32 %v11177_v35  ;;  %v11151_v15 = vsub.f32 %v18366_v25, %v18587_v37  ;;  %v11152_v36 = vsub.f32 %v18377_v17, %v18587_v37  ;;  %v11153_v28 = vsub.f32 %v18394_v12, %v18587_v37 }
 0x7d2   : > { %v11155_v50 = vsub.f32 %v18398_v1, %v18587_v37  ;;  %v11156_v51 = vsub.f32 %v18409_v42, %v18587_v37  ;;  %v11211_v42 = vld [vmem:[%s14393_s17] sm:$0xff]  ;;  %v11237_v37 = vld [vmem:[%s14393_s17 + $0xd0] sm:$0xff] }
 0x7db   : > { %v13884_v55 = vpop.eup %13883 }
 0x7dc   : > { %v11208_v3 = vmul.f32 %v13884_v55, %v11174_v38  ;;  %v11179_v0 = vmul.f32 %v13884_v55, %v11145_v8  ;;  %v11180_v9 = vmul.f32 %v13884_v55, %v11146_v46  ;;  %v11181_v25 = vmul.f32 %v13884_v55, %v11147_v29  ;;  %v11212_v38 = vld [vmem:[%s14393_s17 + $0x8] sm:$0xff]  ;;  %v11221_v46 = vld [vmem:[%s14393_s17 + $0x50] sm:$0xff]  ;;  %v11219_v29 = vld [vmem:[%s14393_s17 + $0x40] sm:$0xff] }
 0x7dd   : > { %v11182_v60 = vmul.f32 %v13884_v55, %v11148_v13  ;;  %v11183_v17 = vmul.f32 %v13884_v55, %v11149_v27  ;;  %v11184_v5 = vmul.f32 %v13884_v55, %v11150_v53  ;;  %v11185_v12 = vmul.f32 %v13884_v55, %v11151_v15  ;;  %v11216_v8 = vld [vmem:[%s14393_s17 + $0x28] sm:$0xff] }
 0x7de   : > { %v11272_v43 = vadd.f32 %v11240_v40, %v11208_v3  ;;  %v11186_v62 = vmul.f32 %v13884_v55, %v11152_v36  ;;  %v11187_v61 = vmul.f32 %v13884_v55, %v11153_v28  ;;  %v11188_v1 = vmul.f32 %v13884_v55, %v11154_v34 }
 0x7df   : > { %v11189_v32 = vmul.f32 %v13884_v55, %v11155_v50  ;;  %v11190_v59 = vmul.f32 %v13884_v55, %v11156_v51  ;;  %v11191_v56 = vmul.f32 %v13884_v55, %v11157_v58  ;;  %v11192_v4 = vmul.f32 %v13884_v55, %v11158_v54  ;;  %v11218_v54 = vld [vmem:[%s14393_s17 + $0x38] sm:$0xff] }
 0x7e0   : > { %11304 = vst.msk [vmem:[%s18664_s24 + $0xe8] sm:$0xff] %vm1471_vm12, %v11272_v43  ;;  %v11193_v34 = vmul.f32 %v13884_v55, %v11159_v44  ;;  %v18668_v16 = vmul.f32 %v13884_v55, %v11160_v18  ;;  %v18670_v35 = vmul.f32 %v13884_v55, %v11161_v57  ;;  %v18672_v58 = vmul.f32 %v13884_v55, %v11162_v31  ;;  %v11222_v18 = vld [vmem:[%s14393_s17 + $0x58] sm:$0xff]  ;;  %v11220_v57 = vld [vmem:[%s14393_s17 + $0x48] sm:$0xff]  ;;  %v11225_v31 = vld [vmem:[%s14393_s17 + $0x70] sm:$0xff] }
 0x7e1   : > { %v11197_v13 = vmul.f32 %v13884_v55, %v11163_v19  ;;  %v18678_v27 = vmul.f32 %v13884_v55, %v11164_v2  ;;  %v18680_v53 = vmul.f32 %v13884_v55, %v11165_v7  ;;  %v18682_v44 = vmul.f32 %v13884_v55, %v11166_v52  ;;  %v11223_v2 = vld [vmem:[%s14393_s17 + $0x60] sm:$0xff]  ;;  %v11226_v7 = vld [vmem:[%s14393_s17 + $0x78] sm:$0xff]  ;;  %v11224_v52 = vld [vmem:[%s14393_s17 + $0x68] sm:$0xff] }
 0x7e2   : > { %v11201_v15 = vmul.f32 %v13884_v55, %v11167_v6  ;;  %v18690_v40 = vmul.f32 %v13884_v55, %v11168_v20  ;;  %v18692_v36 = vmul.f32 %v13884_v55, %v11169_v48  ;;  %v18694_v19 = vmul.f32 %v13884_v55, %v11170_v33  ;;  %v11227_v48 = vld [vmem:[%s14393_s17 + $0x80] sm:$0xff]  ;;  %v11230_v33 = vld [vmem:[%s14393_s17 + $0x98] sm:$0xff] }
 0x7e3   : > { %v18702_v28 = vmul.f32 %v13884_v55, %v11171_v24  ;;  %v18707_v63 = vmul.f32 %v13884_v55, %v11172_v49  ;;  %v18712_v6 = vmul.f32 %v13884_v55, %v11173_v30  ;;  %v18717_v20 = vmul.f32 %v13884_v55, %v11175_v11  ;;  %v11228_v30 = vld [vmem:[%s14393_s17 + $0x88] sm:$0xff]  ;;  %v11231_v11 = vld [vmem:[%s14393_s17 + $0xa0] sm:$0xff] }
 0x7e4   : > { %v18725_v22 = vmul.f32 %v13884_v55, %v11176_v10  ;;  %v11243_v24 = vadd.f32 %v11211_v42, %v11179_v0  ;;  %v11244_v21 = vadd.f32 %v11212_v38, %v11180_v9  ;;  %v11245_v49 = vadd.f32 %v11213_v39, %v11181_v25  ;;  %v11235_v25 = vld [vmem:[%s14393_s17 + $0xc0] sm:$0xff]  ;;  %v11242_v42 = vld [vmem:[%s14393_s17 + $0xf8] sm:$0xff] }
 0x7e5   : > { %19275 = vst [vmem:[#allocation46_spill] sm:$0xff] %v18717_v20  ;;  %v11246_v50 = vadd.f32 %v11214_v47, %v11182_v60  ;;  %v11247_v51 = vadd.f32 %v11215_v41, %v11183_v17  ;;  %v11248_v3 = vadd.f32 %v11216_v8, %v11184_v5  ;;  %v11249_v43 = vadd.f32 %v11217_v45, %v11185_v12  ;;  %v11234_v20 = vld [vmem:[%s14393_s17 + $0xb8] sm:$0xff]  ;;  %v11236_v17 = vld [vmem:[%s14393_s17 + $0xc8] sm:$0xff]  ;;  %v11239_v39 = vld [vmem:[%s14393_s17 + $0xe0] sm:$0xff] }
 0x7e6   : > { %v11250_v10 = vadd.f32 %v11218_v54, %v11186_v62  ;;  %v11251_v55 = vadd.f32 %v11219_v29, %v11187_v61  ;;  %v11252_v0 = vadd.f32 %v11220_v57, %v11188_v1  ;;  %v11253_v9 = vadd.f32 %v11221_v46, %v11189_v32  ;;  %11275 = vst.msk [vmem:[%s18664_s24] sm:$0xff] %vm1471_vm12, %v11243_v24  ;;  %v11238_v60 = vld [vmem:[%s14393_s17 + $0xd8] sm:$0xff]  ;;  %v11241_v1 = vld [vmem:[%s14393_s17 + $0xf0] sm:$0xff] }
 0x7e7   : > { %11276 = vst.msk [vmem:[%s18664_s24 + $0x8] sm:$0xff] %vm1471_vm12, %v11244_v21  ;;  %11277 = vst.msk [vmem:[%s18664_s24 + $0x10] sm:$0xff] %vm1471_vm12, %v11245_v49  ;;  %v11254_v5 = vadd.f32 %v11222_v18, %v11190_v59  ;;  %v11255_v12 = vadd.f32 %v11223_v2, %v11191_v56  ;;  %v11256_v62 = vadd.f32 %v11224_v52, %v11192_v4 }
 0x7e8   : > { %v11257_v61 = vadd.f32 %v11225_v31, %v11193_v34  ;;  %11278 = vst.msk [vmem:[%s18664_s24 + $0x18] sm:$0xff] %vm1471_vm12, %v11246_v50  ;;  %11279 = vst.msk [vmem:[%s18664_s24 + $0x20] sm:$0xff] %vm1471_vm12, %v11247_v51  ;;  %v11258_v32 = vadd.f32 %v11226_v7, %v18668_v16  ;;  %v11259_v59 = vadd.f32 %v11227_v48, %v18670_v35 }
 0x7e9   : > { %11280 = vst.msk [vmem:[%s18664_s24 + $0x28] sm:$0xff] %vm1471_vm12, %v11248_v3  ;;  %11281 = vst.msk [vmem:[%s18664_s24 + $0x30] sm:$0xff] %vm1471_vm12, %v11249_v43  ;;  %v11260_v56 = vadd.f32 %v11228_v30, %v18672_v58  ;;  %v11261_v4 = vadd.f32 %v11229_v26, %v11197_v13  ;;  %v11262_v47 = vadd.f32 %v11230_v33, %v18678_v27 }
 0x7ea   : > { %11282 = vst.msk [vmem:[%s18664_s24 + $0x38] sm:$0xff] %vm1471_vm12, %v11250_v10  ;;  %11283 = vst.msk [vmem:[%s18664_s24 + $0x40] sm:$0xff] %vm1471_vm12, %v11251_v55  ;;  %v11263_v38 = vadd.f32 %v11231_v11, %v18680_v53  ;;  %v11264_v45 = vadd.f32 %v11232_v23, %v18682_v44  ;;  %v11265_v41 = vadd.f32 %v11233_v14, %v11201_v15 }
 0x7eb   : > { %11284 = vst.msk [vmem:[%s18664_s24 + $0x48] sm:$0xff] %vm1471_vm12, %v11252_v0  ;;  %11285 = vst.msk [vmem:[%s18664_s24 + $0x50] sm:$0xff] %vm1471_vm12, %v11253_v9  ;;  %v11266_v34 = vadd.f32 %v11234_v20, %v18690_v40  ;;  %v11267_v16 = vadd.f32 %v11235_v25, %v18692_v36  ;;  %v11268_v35 = vadd.f32 %v11236_v17, %v18694_v19 }
 0x7ec   : > { %11286 = vst.msk [vmem:[%s18664_s24 + $0x58] sm:$0xff] %vm1471_vm12, %v11254_v5  ;;  %11287 = vst.msk [vmem:[%s18664_s24 + $0x60] sm:$0xff] %vm1471_vm12, %v11255_v12  ;;  %v11269_v58 = vadd.f32 %v11237_v37, %v18702_v28  ;;  %v11270_v54 = vadd.f32 %v11238_v60, %v18707_v63  ;;  %v11271_v8 = vadd.f32 %v11239_v39, %v18712_v6  ;;  %v19276_v46 = vld [vmem:[#allocation46_spill] sm:$0xff] }
 0x7ed   : > { %11288 = vst.msk [vmem:[%s18664_s24 + $0x68] sm:$0xff] %vm1471_vm12, %v11256_v62  ;;  %11289 = vst.msk [vmem:[%s18664_s24 + $0x70] sm:$0xff] %vm1471_vm12, %v11257_v61  ;;  %v11273_v29 = vadd.f32 %v11241_v1, %v19276_v46  ;;  %v11274_v13 = vadd.f32 %v11242_v42, %v18725_v22 }
 0x7ee   : > { %11290 = vst.msk [vmem:[%s18664_s24 + $0x78] sm:$0xff] %vm1471_vm12, %v11258_v32  ;;  %11291 = vst.msk [vmem:[%s18664_s24 + $0x80] sm:$0xff] %vm1471_vm12, %v11259_v59 }
 0x7ef   : > { %11292 = vst.msk [vmem:[%s18664_s24 + $0x88] sm:$0xff] %vm1471_vm12, %v11260_v56  ;;  %11293 = vst.msk [vmem:[%s18664_s24 + $0x90] sm:$0xff] %vm1471_vm12, %v11261_v4 }
 0x7f0   : > { %11294 = vst.msk [vmem:[%s18664_s24 + $0x98] sm:$0xff] %vm1471_vm12, %v11262_v47  ;;  %11295 = vst.msk [vmem:[%s18664_s24 + $0xa0] sm:$0xff] %vm1471_vm12, %v11263_v38 }
 0x7f1   : > { %11296 = vst.msk [vmem:[%s18664_s24 + $0xa8] sm:$0xff] %vm1471_vm12, %v11264_v45  ;;  %11297 = vst.msk [vmem:[%s18664_s24 + $0xb0] sm:$0xff] %vm1471_vm12, %v11265_v41 }
 0x7f2   : > { %11298 = vst.msk [vmem:[%s18664_s24 + $0xb8] sm:$0xff] %vm1471_vm12, %v11266_v34  ;;  %11299 = vst.msk [vmem:[%s18664_s24 + $0xc0] sm:$0xff] %vm1471_vm12, %v11267_v16 }
 0x7f3   : > { %11300 = vst.msk [vmem:[%s18664_s24 + $0xc8] sm:$0xff] %vm1471_vm12, %v11268_v35  ;;  %11301 = vst.msk [vmem:[%s18664_s24 + $0xd0] sm:$0xff] %vm1471_vm12, %v11269_v58 }
 0x7f4   : > { %11302 = vst.msk [vmem:[%s18664_s24 + $0xd8] sm:$0xff] %vm1471_vm12, %v11270_v54  ;;  %11303 = vst.msk [vmem:[%s18664_s24 + $0xe0] sm:$0xff] %vm1471_vm12, %v11271_v8 }
 0x7f5   : > { %11305 = vst.msk [vmem:[%s18664_s24 + $0xf0] sm:$0xff] %vm1471_vm12, %v11273_v29  ;;  %11306 = vst.msk [vmem:[%s18664_s24 + $0xf8] sm:$0xff] %vm1471_vm12, %v11274_v13 }
 0x7f6   : > { %14070 = shalt.err (!%p14067_p13)
}
 0x7f7   : > { %s14071_s16 = scalar_lea.hbm %s18794_s15, 4096  ;;  %s14075_s7 = scalar_lea.hbm %s18875_s5, 8192 }
 0x7f8   : > { %p14072_p9 = scmp.ne.s32.totalorder %s18794_s15, %s14071_s16  ;;  %p14076_p6 = scmp.lt.u32.totalorder %s18794_s15, %s18875_s5 }
 0x7f9   : > { %p14077_p4 = scmp.lt.u32.totalorder %s14075_s7, %s14071_s16  ;;  %p14079_p3 = scmp.lt.u32.totalorder %s14071_s16, %s18794_s15 }
 0x7fa   : > { %p14073_p0 = pnand %p14072_p9, %p14335_p10 }
 0x7fb   : > { %p14078_p8 = por %p14077_p4, %p14076_p6 }
 0x7fc   : > { %p14074_p11 = pneg %p14073_p0 }
 0x7fd   : > { %p14080_p5 = por %p14079_p3, %p14078_p8 }
 0x7ff   : > { %p14081_p7 = pnand %p14080_p5, %p14074_p11 }
 0x801   : > { %14084 = shalt.err (!%p14081_p7)
}
 0x802   : > { %s14144_s26 = smov 128   ;;  %s14145_s13 = smov 8  }
 0x803   : > { %13724 = dma.vmem_to_hbm [thread:$0]  (%p14335_p10), %s18798_s11, 4096, %s18794_s15, %s11308_s22, %s14144_s26, %s14144_s26, %s14145_s13  }
 0x804 PF: > { %s11336_s8 = sand.u32 1, %s14119_s18   ;;  %p19277_p12 = scmp.ne.s32.totalorder %s18989_s25, 0 }
 0x805   : > { %p19278_p2 = scmp.ge.s32.totalorder %s14131_s21, 2  ;;  %s11337_s30 = scalar_lea.sflag [#allocation5], %s11336_s8 }
 0x807   : > { %p13744_p1 = pnand %p19278_p2, %p19277_p12 }
 0x809   : > { %14114 = dma.done.wait (!%p13744_p1), %s11337_s30, 4096  }
 0x80a   : > { %14116 = vsyncadd (!%p13744_p1), %s11337_s30, 4294963200  ;;  %p20_p13 = scmp.ge.s32.totalorder %s14325_s14, 4   ;;  %s19279_s18 = smov %s14123_s19 }
 0x80b   : > { %s19280_s19 = smov %s14127_s20  ;;  %s19281_s20 = smov %s14341_s28 }
 0x80c   : > { %s19282_s21 = smov %s14325_s14  ;;  %22 = sbr.rel (!%p20_p13) target bundleno = 7 (0x7), region = 120 }
 0x813   :  { %11342 = vsyncpa [#allocation4], 1 }
 0x814   :  { %11344 = vsyncpa [#allocation4 + $0x1], 1 }
 0x815   :  { %11345 = vsyncpa [#allocation7], 1 }
 0x816   :  { %11346 = vsyncpa [#allocation10], 1 }
 0x817   :  { %11347 = vsyncpa [#allocation5], 1 }
 0x818   :  { %11349 = vsyncpa [#allocation5 + $0x1], 1 }

</bundles_post_ra>
